<compile_context>
chip_gen: v5e
topology: v5e:2x2
jax: 0.10.0
libtpu: 0.0.40
codegen_flags: <defaults>
</compile_context>

<pallas_src>
import functools

import jax
import jax.numpy as jnp
from jax.experimental import pallas as pl
from jax.experimental.pallas import tpu as pltpu


# ----------------------------------------------------------------------------
# Pallas kernel: one block of Bw windows per grid step.
# ----------------------------------------------------------------------------
def _window_attn_kernel(x_ref, qkv_wT_ref, qkv_b_ref, proj_wT_ref, proj_b_ref,
                        bias_ref, o_ref, *, num_heads, Bw, N, C):
    hd = C // num_heads
    M = Bw * N

    # ---- fused QKV projection: one (M, C) @ (C, 3C) MXU matmul (bf16->f32) ----
    x_bf = x_ref[0].astype(jnp.bfloat16)                               # (M, C)
    qkv = jnp.dot(x_bf, qkv_wT_ref[...],
                  preferred_element_type=jnp.float32) + qkv_b_ref[0]   # (M, 3C) f32
    # split rows back into (window, token); N % 8 == 0 here so this reshape is
    # layout-preserving (no cross-tile relayout).  Single bf16 cast for q/k/v
    # (the q-scale is already folded into the weights).
    qkv = qkv.reshape(Bw, N, 3 * C).astype(jnp.bfloat16)

    head_outs = []
    for h in range(num_heads):                 # small static loop over heads
        qh = qkv[:, :, h * hd:(h + 1) * hd]
        kh = qkv[:, :, C + h * hd:C + (h + 1) * hd]
        vh = qkv[:, :, 2 * C + h * hd:2 * C + (h + 1) * hd]

        # q @ k^T batched over the Bw windows; contraction is on the head dim,
        # so no explicit transpose of k is materialized.
        attn = jnp.einsum('bnd,bmd->bnm', qh, kh,
                          preferred_element_type=jnp.float32)          # (Bw, N, N)

        # relative-position bias (+ shifted-window mask), pre-tiled per window
        # in the wrapper -> one add, no reshapes.
        attn = attn + bias_ref[h]

        # numerically-stable softmax; reciprocal on the otherwise-idle EUP.
        attn = attn - jnp.max(attn, axis=-1, keepdims=True)
        attn = jnp.exp(attn)
        attn = attn * pl.reciprocal(jnp.sum(attn, axis=-1, keepdims=True),
                                    approx=True)

        head_outs.append(jnp.einsum('bnm,bmd->bnd',
                                    attn.astype(jnp.bfloat16), vh,
                                    preferred_element_type=jnp.float32))

    # == PyTorch (attn @ v).transpose(1, 2).reshape(B_, N, C) for this block
    out = jnp.concatenate(head_outs, axis=-1).reshape(M, C)            # (M, C) f32

    # ---- output projection: one (M, C) @ (C, C) MXU matmul ----
    y = jnp.dot(out.astype(jnp.bfloat16), proj_wT_ref[...],
                preferred_element_type=jnp.float32) + proj_b_ref[0]    # (M, C) f32

    # ---- lane-dense store: pack the N token-rows of each window into the lane
    # dim -> (Bw, N*C) lanes (multiple of 128), so stores are full-width vst
    # instead of 32-lane masked partial stores.  Built from static sublane
    # slices + lane concat (layout-safe ops).
    y = y.reshape(Bw, N, C)
    y_dense = jnp.concatenate([y[:, n, :] for n in range(N)], axis=-1)  # (Bw, N*C)
    o_ref[0] = y_dense.astype(o_ref.dtype)


# ----------------------------------------------------------------------------
# Block-size selection
# ----------------------------------------------------------------------------
def _choose_block_windows(B_, N, base, target_rows=256):
    """Pick Bw: divides B_, multiple of `base` (= nW when a mask is used),
    Bw*N >= target_rows when possible, preferring an even grid of >= 2 steps
    so both TensorCores get work on megacore parts."""
    cands = [d for d in range(base, B_ + 1, base) if B_ % d == 0]
    assert cands, "B_ must be a multiple of the number of mask windows"
    big = [d for d in cands if d * N >= target_rows]
    if not big:
        return max(cands)
    even_grid = [d for d in big if (B_ // d) >= 2 and (B_ // d) % 2 == 0]
    return min(even_grid) if even_grid else min(big)


# ----------------------------------------------------------------------------
# Wrapper
# ----------------------------------------------------------------------------
def window_attention(x, params, window_size, num_heads, mask=None,
                     qk_scale=None, block_windows=None):
    """x: (B_, N, C) with N == window_size[0]*window_size[1]."""
    B_, N, C = x.shape
    assert N == window_size[0] * window_size[1]
    head_dim = C // num_heads
    scale = qk_scale if qk_scale is not None else head_dim ** (-0.5)

    # ---- relative position bias gather (plain-JAX indexing glue) ----
    rel_idx = _relative_position_index(window_size)           # (N, N) int32
    rpb = params["rel_pos_table"][rel_idx.reshape(-1)]        # (N*N, nH)
    rpb = rpb.reshape(N, N, num_heads).transpose(2, 0, 1)     # (nH, N, N)
    rpb = rpb.astype(jnp.float32)

    G = 1 if mask is None else mask.shape[0]
    assert B_ % G == 0

    # windows per grid step; Bw % G == 0 and B_ % Bw == 0 keep mask indexing exact
    Bw = block_windows if block_windows is not None else \
        _choose_block_windows(B_, N, G)
    assert B_ % Bw == 0 and Bw % G == 0
    num_blocks = B_ // Bw
    M = Bw * N

    # pre-tile bias (+ shifted-window mask) per window of a block; window j of
    # any block uses mask[j % G] because every block start is a multiple of G.
    if mask is None:
        bias = jnp.broadcast_to(rpb[:, None], (num_heads, Bw, N, N))
    else:
        bias_one = rpb[:, None] + mask[None, :].astype(jnp.float32)   # (nH,G,N,N)
        bias = jnp.tile(bias_one, (1, Bw // G, 1, 1))                 # (nH,Bw,N,N)
    bias = bias.astype(jnp.float32)

    # one-time weight transforms: fold the q-scale into the q rows of the QKV
    # weight/bias, pre-transpose + bf16 for the MXU.
    scale_vec = jnp.concatenate([jnp.full((C,), scale, jnp.float32),
                                 jnp.ones((2 * C,), jnp.float32)])     # (3C,)
    qkv_w = params["qkv_w"].astype(jnp.float32) * scale_vec[:, None]   # (3C, C)
    qkv_wT = qkv_w.T.astype(jnp.bfloat16)                              # (C, 3C)
    qkv_b = (params["qkv_b"].astype(jnp.float32) * scale_vec).reshape(1, 3 * C)
    proj_wT = params["proj_w"].T.astype(jnp.bfloat16)                  # (C, C)
    proj_b = params["proj_b"].reshape(1, C).astype(jnp.float32)

    x_in = x.reshape(num_blocks, M, C)        # contiguous regroup (free)

    kernel = functools.partial(_window_attn_kernel, num_heads=num_heads,
                               Bw=Bw, N=N, C=C)

    out = pl.pallas_call(
        kernel,
        out_shape=jax.ShapeDtypeStruct((num_blocks, Bw, N * C), x.dtype),
        grid_spec=pltpu.PrefetchScalarGridSpec(
            num_scalar_prefetch=0,
            grid=(num_blocks,),
            in_specs=[
                pl.BlockSpec((1, M, C), lambda i: (i, 0, 0)),
                pl.BlockSpec((C, 3 * C), lambda i: (0, 0)),
                pl.BlockSpec((1, 3 * C), lambda i: (0, 0)),
                pl.BlockSpec((C, C), lambda i: (0, 0)),
                pl.BlockSpec((1, C), lambda i: (0, 0)),
                # constant index map -> bias(+mask) stays VMEM resident
                pl.BlockSpec((num_heads, Bw, N, N), lambda i: (0, 0, 0, 0)),
            ],
            out_specs=pl.BlockSpec((1, Bw, N * C), lambda i: (i, 0, 0)),
        ),
        compiler_params=pltpu.CompilerParams(
            dimension_semantics=("parallel",),
            # tiny working set; explicit cap stays well inside v7x's 64 MiB VMEM
            vmem_limit_bytes=32 * 1024 * 1024,
        ),
    )(x_in, qkv_wT, qkv_b, proj_wT, proj_b, bias)

    return out.reshape(B_, N, C)              # contiguous regroup (free)


def _relative_position_index(window_size):
    Wh, Ww = window_size
    coords_h = jnp.arange(Wh)
    coords_w = jnp.arange(Ww)
    coords = jnp.stack(jnp.meshgrid(coords_h, coords_w, indexing="ij"))  # (2,Wh,Ww)
    coords_flatten = coords.reshape(2, -1)                               # (2, N)
    rel = coords_flatten[:, :, None] - coords_flatten[:, None, :]        # (2,N,N)
    rel = rel.transpose(1, 2, 0)                                         # (N,N,2)
    rel = rel.at[:, :, 0].add(Wh - 1)
    rel = rel.at[:, :, 1].add(Ww - 1)
    rel = rel.at[:, :, 0].multiply(2 * Ww - 1)
    return rel.sum(-1).astype(jnp.int32)                                 # (N,N)


# ----------------------------------------------------------------------------
# Pure-JAX reference (mirrors the PyTorch forward, dropout p=0, f32 math)
# ----------------------------------------------------------------------------
def window_attention_ref(x, params, window_size, num_heads, mask=None,
                         qk_scale=None):
    B_, N, C = x.shape
    hd = C // num_heads
    scale = qk_scale if qk_scale is not None else hd ** (-0.5)

    qkv = x @ params["qkv_w"].T + params["qkv_b"]
    qkv = qkv.reshape(B_, N, 3, num_heads, hd).transpose(2, 0, 3, 1, 4)
    q, k, v = qkv[0], qkv[1], qkv[2]
    q = q * scale
    attn = q @ jnp.swapaxes(k, -2, -1)

    rel_idx = _relative_position_index(window_size)
    rpb = params["rel_pos_table"][rel_idx.reshape(-1)]
    rpb = rpb.reshape(N, N, num_heads).transpose(2, 0, 1)
    attn = attn + rpb[None]

    if mask is not None:
        nW = mask.shape[0]
        attn = attn.reshape(B_ // nW, nW, num_heads, N, N) + mask[None, :, None]
        attn = attn.reshape(-1, num_heads, N, N)
    attn = jax.nn.softmax(attn, axis=-1)

    out = (attn @ v).transpose(0, 2, 1, 3).reshape(B_, N, C)
    return out @ params["proj_w"].T + params["proj_b"]


# ----------------------------------------------------------------------------
# Main
# ----------------------------------------------------------------------------
if __name__ == "__main__":
    # small shapes consistent with the module (B_ = num_windows * B)
    dim = 32
    window_size = (4, 4)
    num_heads = 4
    N = window_size[0] * window_size[1]   # 16
    B = 4
    nW = 8
    B_ = B * nW                           # 32 windows -> Bw=16, grid=(2,)

    key = jax.random.PRNGKey(0)
    k_x, k_rpb, k_qw, k_qb, k_pw, k_pb = jax.random.split(key, 6)

    x = jax.random.normal(k_x, (B_, N, dim), dtype=jnp.float32)

    params = {
        # trunc_normal(std=0.02)
        "rel_pos_table": 0.02 * jax.random.truncated_normal(
            k_rpb, -2.0, 2.0,
            ((2 * window_size[0] - 1) * (2 * window_size[1] - 1), num_heads),
            dtype=jnp.float32),
        "qkv_w": 0.05 * jax.random.normal(k_qw, (3 * dim, dim), jnp.float32),
        "qkv_b": 0.05 * jax.random.normal(k_qb, (3 * dim,), jnp.float32),
        "proj_w": 0.05 * jax.random.normal(k_pw, (dim, dim), jnp.float32),
        "proj_b": 0.05 * jax.random.normal(k_pb, (dim,), jnp.float32),
    }

    # Tolerances are loosened vs. the f32 reference because the kernel feeds the
    # MXU bf16 operands (f32 accumulation) and uses the approximate reciprocal.
    ATOL = RTOL = 3e-2

    # ---- mask=None path ----
    out = window_attention(x, params, window_size, num_heads, mask=None)
    out = jax.block_until_ready(out)
    ref = window_attention_ref(x, params, window_size, num_heads, mask=None)
    assert jnp.allclose(out, ref, atol=ATOL, rtol=RTOL), "mismatch (mask=None)"

    # ---- shifted-window mask path ----
    k_m = jax.random.PRNGKey(1)
    mask_bool = jax.random.bernoulli(k_m, 0.2, (nW, N, N))
    mask = jnp.where(mask_bool, -100.0, 0.0).astype(jnp.float32)
    out_m = window_attention(x, params, window_size, num_heads, mask=mask)
    out_m = jax.block_until_ready(out_m)
    ref_m = window_attention_ref(x, params, window_size, num_heads, mask=mask)
    assert jnp.allclose(out_m, ref_m, atol=ATOL, rtol=RTOL), "mismatch (mask)"

    print("KERNEL_OK")
</pallas_src>

<mosaic_0001>
module attributes {stable_mosaic.version = 11 : i64} {
  func.func @_window_attn_kernel(%arg0: i32, %arg1: memref<1x256x32xf32, #tpu.memory_space<vmem>>, %arg2: memref<32x96xbf16, #tpu.memory_space<vmem>>, %arg3: memref<1x96xf32, #tpu.memory_space<vmem>>, %arg4: memref<32x32xbf16, #tpu.memory_space<vmem>>, %arg5: memref<1x32xf32, #tpu.memory_space<vmem>>, %arg6: memref<4x16x16x16xf32, #tpu.memory_space<vmem>>, %arg7: memref<1x16x512xf32, #tpu.memory_space<vmem>>) attributes {dimension_semantics = [#tpu.dimension_semantics<parallel>], iteration_bounds = array<i64: 2>, scalar_prefetch = 0 : i64, scratch_operands = 0 : i64, tpu.core_type = #tpu.core_type<tc>, window_params = [{transform_indices = @transform_0, window_bounds = array<i64: 1, 256, 32>}, {pipeline_mode = #tpu.pipeline_mode<synchronous>, transform_indices = @transform_1, window_bounds = array<i64: 32, 96>}, {pipeline_mode = #tpu.pipeline_mode<synchronous>, transform_indices = @transform_2, window_bounds = array<i64: 1, 96>}, {pipeline_mode = #tpu.pipeline_mode<synchronous>, transform_indices = @transform_3, window_bounds = array<i64: 32, 32>}, {pipeline_mode = #tpu.pipeline_mode<synchronous>, transform_indices = @transform_4, window_bounds = array<i64: 1, 32>}, {pipeline_mode = #tpu.pipeline_mode<synchronous>, transform_indices = @transform_5, window_bounds = array<i64: 4, 16, 16, 16>}, {transform_indices = @transform_6, window_bounds = array<i64: 1, 16, 512>}]} {
    %c0 = arith.constant 0 : index
    %c0_0 = arith.constant 0 : index
    %c0_1 = arith.constant 0 : index
    %0 = vector.load %arg1[%c0, %c0_0, %c0_1] : memref<1x256x32xf32, #tpu.memory_space<vmem>>, vector<1x256x32xf32>
    %1 = vector.shape_cast %0 : vector<1x256x32xf32> to vector<256x32xf32>
    %2 = arith.truncf %1 : vector<256x32xf32> to vector<256x32xbf16>
    %c0_2 = arith.constant 0 : index
    %c0_3 = arith.constant 0 : index
    %3 = vector.load %arg2[%c0_2, %c0_3] : memref<32x96xbf16, #tpu.memory_space<vmem>>, vector<32x96xbf16>
    %cst = arith.constant dense<0.000000e+00> : vector<256x96xf32>
    %4 = tpu.matmul %2, %3, %cst {dimension_numbers = #tpu.dot_dimension_numbers<[1], [0], [0], [1], [0, 0, 1, 1], [], []>} : vector<256x32xbf16>, vector<32x96xbf16>, vector<256x96xf32> -> vector<256x96xf32>
    %c0_4 = arith.constant 0 : index
    %c0_5 = arith.constant 0 : index
    %5 = vector.load %arg3[%c0_4, %c0_5] : memref<1x96xf32, #tpu.memory_space<vmem>>, vector<1x96xf32>
    %6 = vector.shape_cast %5 : vector<1x96xf32> to vector<96xf32>
    %7 = vector.shape_cast %6 : vector<96xf32> to vector<1x96xf32>
    %8 = vector.broadcast %7 : vector<1x96xf32> to vector<256x96xf32>
    %9 = arith.addf %4, %8 : vector<256x96xf32>
    %10 = vector.shape_cast %9 : vector<256x96xf32> to vector<16x16x96xf32>
    %11 = arith.truncf %10 : vector<16x16x96xf32> to vector<16x16x96xbf16>
    %12 = vector.extract_strided_slice %11 {offsets = [0, 0, 0], sizes = [16, 16, 8], strides = [1, 1, 1]} : vector<16x16x96xbf16> to vector<16x16x8xbf16>
    %13 = vector.extract_strided_slice %11 {offsets = [0, 0, 32], sizes = [16, 16, 8], strides = [1, 1, 1]} : vector<16x16x96xbf16> to vector<16x16x8xbf16>
    %14 = vector.extract_strided_slice %11 {offsets = [0, 0, 64], sizes = [16, 16, 8], strides = [1, 1, 1]} : vector<16x16x96xbf16> to vector<16x16x8xbf16>
    "tpu.trace_start"() <{level = 10 : i32, message = "bnd,bmd->bnm"}> : () -> ()
    %cst_6 = arith.constant dense<0.000000e+00> : vector<16x16x16xf32>
    %15 = tpu.matmul %12, %13, %cst_6 {dimension_numbers = #tpu.dot_dimension_numbers<[2], [2], [1], [1], [0, 0, 0, 1, 1, 1], [0], [0]>} : vector<16x16x8xbf16>, vector<16x16x8xbf16>, vector<16x16x16xf32> -> vector<16x16x16xf32>
    "tpu.trace_stop"() : () -> ()
    %c0_7 = arith.constant 0 : index
    %c0_8 = arith.constant 0 : index
    %c0_9 = arith.constant 0 : index
    %c0_10 = arith.constant 0 : index
    %16 = vector.load %arg6[%c0_7, %c0_8, %c0_9, %c0_10] : memref<4x16x16x16xf32, #tpu.memory_space<vmem>>, vector<1x16x16x16xf32>
    %17 = vector.shape_cast %16 : vector<1x16x16x16xf32> to vector<16x16x16xf32>
    %18 = arith.addf %15, %17 : vector<16x16x16xf32>
    %cst_11 = arith.constant dense<0xFF800000> : vector<16x16xf32>
    %19 = vector.multi_reduction <maximumf>, %18, %cst_11 [2] : vector<16x16x16xf32> to vector<16x16xf32>
    %20 = vector.shape_cast %19 : vector<16x16xf32> to vector<16x16x1xf32>
    %21 = vector.broadcast %20 : vector<16x16x1xf32> to vector<16x16x16xf32>
    %22 = arith.subf %18, %21 : vector<16x16x16xf32>
    %23 = math.exp %22 : vector<16x16x16xf32>
    %cst_12 = arith.constant dense<0.000000e+00> : vector<16x16xf32>
    %24 = vector.multi_reduction <add>, %23, %cst_12 [2] : vector<16x16x16xf32> to vector<16x16xf32>
    %25 = vector.shape_cast %24 : vector<16x16xf32> to vector<16x16x1xf32>
    %26 = tpu.reciprocal %25 {approx = true} : vector<16x16x1xf32> -> vector<16x16x1xf32>
    %27 = vector.broadcast %26 : vector<16x16x1xf32> to vector<16x16x16xf32>
    %28 = arith.mulf %23, %27 : vector<16x16x16xf32>
    %29 = arith.truncf %28 : vector<16x16x16xf32> to vector<16x16x16xbf16>
    "tpu.trace_start"() <{level = 10 : i32, message = "bnm,bmd->bnd"}> : () -> ()
    %cst_13 = arith.constant dense<0.000000e+00> : vector<16x16x8xf32>
    %30 = tpu.matmul %29, %14, %cst_13 {dimension_numbers = #tpu.dot_dimension_numbers<[2], [1], [1], [2], [0, 0, 0, 1, 1, 2], [0], [0]>} : vector<16x16x16xbf16>, vector<16x16x8xbf16>, vector<16x16x8xf32> -> vector<16x16x8xf32>
    "tpu.trace_stop"() : () -> ()
    %31 = vector.extract_strided_slice %11 {offsets = [0, 0, 8], sizes = [16, 16, 8], strides = [1, 1, 1]} : vector<16x16x96xbf16> to vector<16x16x8xbf16>
    %32 = vector.extract_strided_slice %11 {offsets = [0, 0, 40], sizes = [16, 16, 8], strides = [1, 1, 1]} : vector<16x16x96xbf16> to vector<16x16x8xbf16>
    %33 = vector.extract_strided_slice %11 {offsets = [0, 0, 72], sizes = [16, 16, 8], strides = [1, 1, 1]} : vector<16x16x96xbf16> to vector<16x16x8xbf16>
    "tpu.trace_start"() <{level = 10 : i32, message = "bnd,bmd->bnm"}> : () -> ()
    %cst_14 = arith.constant dense<0.000000e+00> : vector<16x16x16xf32>
    %34 = tpu.matmul %31, %32, %cst_14 {dimension_numbers = #tpu.dot_dimension_numbers<[2], [2], [1], [1], [0, 0, 0, 1, 1, 1], [0], [0]>} : vector<16x16x8xbf16>, vector<16x16x8xbf16>, vector<16x16x16xf32> -> vector<16x16x16xf32>
    "tpu.trace_stop"() : () -> ()
    %c1 = arith.constant 1 : index
    %c0_15 = arith.constant 0 : index
    %c0_16 = arith.constant 0 : index
    %c0_17 = arith.constant 0 : index
    %35 = vector.load %arg6[%c1, %c0_15, %c0_16, %c0_17] : memref<4x16x16x16xf32, #tpu.memory_space<vmem>>, vector<1x16x16x16xf32>
    %36 = vector.shape_cast %35 : vector<1x16x16x16xf32> to vector<16x16x16xf32>
    %37 = arith.addf %34, %36 : vector<16x16x16xf32>
    %cst_18 = arith.constant dense<0xFF800000> : vector<16x16xf32>
    %38 = vector.multi_reduction <maximumf>, %37, %cst_18 [2] : vector<16x16x16xf32> to vector<16x16xf32>
    %39 = vector.shape_cast %38 : vector<16x16xf32> to vector<16x16x1xf32>
    %40 = vector.broadcast %39 : vector<16x16x1xf32> to vector<16x16x16xf32>
    %41 = arith.subf %37, %40 : vector<16x16x16xf32>
    %42 = math.exp %41 : vector<16x16x16xf32>
    %cst_19 = arith.constant dense<0.000000e+00> : vector<16x16xf32>
    %43 = vector.multi_reduction <add>, %42, %cst_19 [2] : vector<16x16x16xf32> to vector<16x16xf32>
    %44 = vector.shape_cast %43 : vector<16x16xf32> to vector<16x16x1xf32>
    %45 = tpu.reciprocal %44 {approx = true} : vector<16x16x1xf32> -> vector<16x16x1xf32>
    %46 = vector.broadcast %45 : vector<16x16x1xf32> to vector<16x16x16xf32>
    %47 = arith.mulf %42, %46 : vector<16x16x16xf32>
    %48 = arith.truncf %47 : vector<16x16x16xf32> to vector<16x16x16xbf16>
    "tpu.trace_start"() <{level = 10 : i32, message = "bnm,bmd->bnd"}> : () -> ()
    %cst_20 = arith.constant dense<0.000000e+00> : vector<16x16x8xf32>
    %49 = tpu.matmul %48, %33, %cst_20 {dimension_numbers = #tpu.dot_dimension_numbers<[2], [1], [1], [2], [0, 0, 0, 1, 1, 2], [0], [0]>} : vector<16x16x16xbf16>, vector<16x16x8xbf16>, vector<16x16x8xf32> -> vector<16x16x8xf32>
    "tpu.trace_stop"() : () -> ()
    %50 = vector.extract_strided_slice %11 {offsets = [0, 0, 16], sizes = [16, 16, 8], strides = [1, 1, 1]} : vector<16x16x96xbf16> to vector<16x16x8xbf16>
    %51 = vector.extract_strided_slice %11 {offsets = [0, 0, 48], sizes = [16, 16, 8], strides = [1, 1, 1]} : vector<16x16x96xbf16> to vector<16x16x8xbf16>
    %52 = vector.extract_strided_slice %11 {offsets = [0, 0, 80], sizes = [16, 16, 8], strides = [1, 1, 1]} : vector<16x16x96xbf16> to vector<16x16x8xbf16>
    "tpu.trace_start"() <{level = 10 : i32, message = "bnd,bmd->bnm"}> : () -> ()
    %cst_21 = arith.constant dense<0.000000e+00> : vector<16x16x16xf32>
    %53 = tpu.matmul %50, %51, %cst_21 {dimension_numbers = #tpu.dot_dimension_numbers<[2], [2], [1], [1], [0, 0, 0, 1, 1, 1], [0], [0]>} : vector<16x16x8xbf16>, vector<16x16x8xbf16>, vector<16x16x16xf32> -> vector<16x16x16xf32>
    "tpu.trace_stop"() : () -> ()
    %c2 = arith.constant 2 : index
    %c0_22 = arith.constant 0 : index
    %c0_23 = arith.constant 0 : index
    %c0_24 = arith.constant 0 : index
    %54 = vector.load %arg6[%c2, %c0_22, %c0_23, %c0_24] : memref<4x16x16x16xf32, #tpu.memory_space<vmem>>, vector<1x16x16x16xf32>
    %55 = vector.shape_cast %54 : vector<1x16x16x16xf32> to vector<16x16x16xf32>
    %56 = arith.addf %53, %55 : vector<16x16x16xf32>
    %cst_25 = arith.constant dense<0xFF800000> : vector<16x16xf32>
    %57 = vector.multi_reduction <maximumf>, %56, %cst_25 [2] : vector<16x16x16xf32> to vector<16x16xf32>
    %58 = vector.shape_cast %57 : vector<16x16xf32> to vector<16x16x1xf32>
    %59 = vector.broadcast %58 : vector<16x16x1xf32> to vector<16x16x16xf32>
    %60 = arith.subf %56, %59 : vector<16x16x16xf32>
    %61 = math.exp %60 : vector<16x16x16xf32>
    %cst_26 = arith.constant dense<0.000000e+00> : vector<16x16xf32>
    %62 = vector.multi_reduction <add>, %61, %cst_26 [2] : vector<16x16x16xf32> to vector<16x16xf32>
    %63 = vector.shape_cast %62 : vector<16x16xf32> to vector<16x16x1xf32>
    %64 = tpu.reciprocal %63 {approx = true} : vector<16x16x1xf32> -> vector<16x16x1xf32>
    %65 = vector.broadcast %64 : vector<16x16x1xf32> to vector<16x16x16xf32>
    %66 = arith.mulf %61, %65 : vector<16x16x16xf32>
    %67 = arith.truncf %66 : vector<16x16x16xf32> to vector<16x16x16xbf16>
    "tpu.trace_start"() <{level = 10 : i32, message = "bnm,bmd->bnd"}> : () -> ()
    %cst_27 = arith.constant dense<0.000000e+00> : vector<16x16x8xf32>
    %68 = tpu.matmul %67, %52, %cst_27 {dimension_numbers = #tpu.dot_dimension_numbers<[2], [1], [1], [2], [0, 0, 0, 1, 1, 2], [0], [0]>} : vector<16x16x16xbf16>, vector<16x16x8xbf16>, vector<16x16x8xf32> -> vector<16x16x8xf32>
    "tpu.trace_stop"() : () -> ()
    %69 = vector.extract_strided_slice %11 {offsets = [0, 0, 24], sizes = [16, 16, 8], strides = [1, 1, 1]} : vector<16x16x96xbf16> to vector<16x16x8xbf16>
    %70 = vector.extract_strided_slice %11 {offsets = [0, 0, 56], sizes = [16, 16, 8], strides = [1, 1, 1]} : vector<16x16x96xbf16> to vector<16x16x8xbf16>
    %71 = vector.extract_strided_slice %11 {offsets = [0, 0, 88], sizes = [16, 16, 8], strides = [1, 1, 1]} : vector<16x16x96xbf16> to vector<16x16x8xbf16>
    "tpu.trace_start"() <{level = 10 : i32, message = "bnd,bmd->bnm"}> : () -> ()
    %cst_28 = arith.constant dense<0.000000e+00> : vector<16x16x16xf32>
    %72 = tpu.matmul %69, %70, %cst_28 {dimension_numbers = #tpu.dot_dimension_numbers<[2], [2], [1], [1], [0, 0, 0, 1, 1, 1], [0], [0]>} : vector<16x16x8xbf16>, vector<16x16x8xbf16>, vector<16x16x16xf32> -> vector<16x16x16xf32>
    "tpu.trace_stop"() : () -> ()
    %c3 = arith.constant 3 : index
    %c0_29 = arith.constant 0 : index
    %c0_30 = arith.constant 0 : index
    %c0_31 = arith.constant 0 : index
    %73 = vector.load %arg6[%c3, %c0_29, %c0_30, %c0_31] : memref<4x16x16x16xf32, #tpu.memory_space<vmem>>, vector<1x16x16x16xf32>
    %74 = vector.shape_cast %73 : vector<1x16x16x16xf32> to vector<16x16x16xf32>
    %75 = arith.addf %72, %74 : vector<16x16x16xf32>
    %cst_32 = arith.constant dense<0xFF800000> : vector<16x16xf32>
    %76 = vector.multi_reduction <maximumf>, %75, %cst_32 [2] : vector<16x16x16xf32> to vector<16x16xf32>
    %77 = vector.shape_cast %76 : vector<16x16xf32> to vector<16x16x1xf32>
    %78 = vector.broadcast %77 : vector<16x16x1xf32> to vector<16x16x16xf32>
    %79 = arith.subf %75, %78 : vector<16x16x16xf32>
    %80 = math.exp %79 : vector<16x16x16xf32>
    %cst_33 = arith.constant dense<0.000000e+00> : vector<16x16xf32>
    %81 = vector.multi_reduction <add>, %80, %cst_33 [2] : vector<16x16x16xf32> to vector<16x16xf32>
    %82 = vector.shape_cast %81 : vector<16x16xf32> to vector<16x16x1xf32>
    %83 = tpu.reciprocal %82 {approx = true} : vector<16x16x1xf32> -> vector<16x16x1xf32>
    %84 = vector.broadcast %83 : vector<16x16x1xf32> to vector<16x16x16xf32>
    %85 = arith.mulf %80, %84 : vector<16x16x16xf32>
    %86 = arith.truncf %85 : vector<16x16x16xf32> to vector<16x16x16xbf16>
    "tpu.trace_start"() <{level = 10 : i32, message = "bnm,bmd->bnd"}> : () -> ()
    %cst_34 = arith.constant dense<0.000000e+00> : vector<16x16x8xf32>
    %87 = tpu.matmul %86, %71, %cst_34 {dimension_numbers = #tpu.dot_dimension_numbers<[2], [1], [1], [2], [0, 0, 0, 1, 1, 2], [0], [0]>} : vector<16x16x16xbf16>, vector<16x16x8xbf16>, vector<16x16x8xf32> -> vector<16x16x8xf32>
    "tpu.trace_stop"() : () -> ()
    %88 = tpu.concatenate %30, %49, %68, %87 in 2 : vector<16x16x8xf32>, vector<16x16x8xf32>, vector<16x16x8xf32>, vector<16x16x8xf32> -> vector<16x16x32xf32>
    %89 = vector.shape_cast %88 : vector<16x16x32xf32> to vector<256x32xf32>
    %90 = arith.truncf %89 : vector<256x32xf32> to vector<256x32xbf16>
    %c0_35 = arith.constant 0 : index
    %c0_36 = arith.constant 0 : index
    %91 = vector.load %arg4[%c0_35, %c0_36] : memref<32x32xbf16, #tpu.memory_space<vmem>>, vector<32x32xbf16>
    %cst_37 = arith.constant dense<0.000000e+00> : vector<256x32xf32>
    %92 = tpu.matmul %90, %91, %cst_37 {dimension_numbers = #tpu.dot_dimension_numbers<[1], [0], [0], [1], [0, 0, 1, 1], [], []>} : vector<256x32xbf16>, vector<32x32xbf16>, vector<256x32xf32> -> vector<256x32xf32>
    %c0_38 = arith.constant 0 : index
    %c0_39 = arith.constant 0 : index
    %93 = vector.load %arg5[%c0_38, %c0_39] : memref<1x32xf32, #tpu.memory_space<vmem>>, vector<1x32xf32>
    %94 = vector.shape_cast %93 : vector<1x32xf32> to vector<32xf32>
    %95 = vector.shape_cast %94 : vector<32xf32> to vector<1x32xf32>
    %96 = vector.broadcast %95 : vector<1x32xf32> to vector<256x32xf32>
    %97 = arith.addf %92, %96 : vector<256x32xf32>
    %98 = vector.shape_cast %97 : vector<256x32xf32> to vector<16x16x32xf32>
    %99 = vector.extract_strided_slice %98 {offsets = [0, 0, 0], sizes = [16, 1, 32], strides = [1, 1, 1]} : vector<16x16x32xf32> to vector<16x1x32xf32>
    %100 = vector.shape_cast %99 : vector<16x1x32xf32> to vector<16x32xf32>
    %101 = vector.extract_strided_slice %98 {offsets = [0, 1, 0], sizes = [16, 1, 32], strides = [1, 1, 1]} : vector<16x16x32xf32> to vector<16x1x32xf32>
    %102 = vector.shape_cast %101 : vector<16x1x32xf32> to vector<16x32xf32>
    %103 = vector.extract_strided_slice %98 {offsets = [0, 2, 0], sizes = [16, 1, 32], strides = [1, 1, 1]} : vector<16x16x32xf32> to vector<16x1x32xf32>
    %104 = vector.shape_cast %103 : vector<16x1x32xf32> to vector<16x32xf32>
    %105 = vector.extract_strided_slice %98 {offsets = [0, 3, 0], sizes = [16, 1, 32], strides = [1, 1, 1]} : vector<16x16x32xf32> to vector<16x1x32xf32>
    %106 = vector.shape_cast %105 : vector<16x1x32xf32> to vector<16x32xf32>
    %107 = vector.extract_strided_slice %98 {offsets = [0, 4, 0], sizes = [16, 1, 32], strides = [1, 1, 1]} : vector<16x16x32xf32> to vector<16x1x32xf32>
    %108 = vector.shape_cast %107 : vector<16x1x32xf32> to vector<16x32xf32>
    %109 = vector.extract_strided_slice %98 {offsets = [0, 5, 0], sizes = [16, 1, 32], strides = [1, 1, 1]} : vector<16x16x32xf32> to vector<16x1x32xf32>
    %110 = vector.shape_cast %109 : vector<16x1x32xf32> to vector<16x32xf32>
    %111 = vector.extract_strided_slice %98 {offsets = [0, 6, 0], sizes = [16, 1, 32], strides = [1, 1, 1]} : vector<16x16x32xf32> to vector<16x1x32xf32>
    %112 = vector.shape_cast %111 : vector<16x1x32xf32> to vector<16x32xf32>
    %113 = vector.extract_strided_slice %98 {offsets = [0, 7, 0], sizes = [16, 1, 32], strides = [1, 1, 1]} : vector<16x16x32xf32> to vector<16x1x32xf32>
    %114 = vector.shape_cast %113 : vector<16x1x32xf32> to vector<16x32xf32>
    %115 = vector.extract_strided_slice %98 {offsets = [0, 8, 0], sizes = [16, 1, 32], strides = [1, 1, 1]} : vector<16x16x32xf32> to vector<16x1x32xf32>
    %116 = vector.shape_cast %115 : vector<16x1x32xf32> to vector<16x32xf32>
    %117 = vector.extract_strided_slice %98 {offsets = [0, 9, 0], sizes = [16, 1, 32], strides = [1, 1, 1]} : vector<16x16x32xf32> to vector<16x1x32xf32>
    %118 = vector.shape_cast %117 : vector<16x1x32xf32> to vector<16x32xf32>
    %119 = vector.extract_strided_slice %98 {offsets = [0, 10, 0], sizes = [16, 1, 32], strides = [1, 1, 1]} : vector<16x16x32xf32> to vector<16x1x32xf32>
    %120 = vector.shape_cast %119 : vector<16x1x32xf32> to vector<16x32xf32>
    %121 = vector.extract_strided_slice %98 {offsets = [0, 11, 0], sizes = [16, 1, 32], strides = [1, 1, 1]} : vector<16x16x32xf32> to vector<16x1x32xf32>
    %122 = vector.shape_cast %121 : vector<16x1x32xf32> to vector<16x32xf32>
    %123 = vector.extract_strided_slice %98 {offsets = [0, 12, 0], sizes = [16, 1, 32], strides = [1, 1, 1]} : vector<16x16x32xf32> to vector<16x1x32xf32>
    %124 = vector.shape_cast %123 : vector<16x1x32xf32> to vector<16x32xf32>
    %125 = vector.extract_strided_slice %98 {offsets = [0, 13, 0], sizes = [16, 1, 32], strides = [1, 1, 1]} : vector<16x16x32xf32> to vector<16x1x32xf32>
    %126 = vector.shape_cast %125 : vector<16x1x32xf32> to vector<16x32xf32>
    %127 = vector.extract_strided_slice %98 {offsets = [0, 14, 0], sizes = [16, 1, 32], strides = [1, 1, 1]} : vector<16x16x32xf32> to vector<16x1x32xf32>
    %128 = vector.shape_cast %127 : vector<16x1x32xf32> to vector<16x32xf32>
    %129 = vector.extract_strided_slice %98 {offsets = [0, 15, 0], sizes = [16, 1, 32], strides = [1, 1, 1]} : vector<16x16x32xf32> to vector<16x1x32xf32>
    %130 = vector.shape_cast %129 : vector<16x1x32xf32> to vector<16x32xf32>
    %131 = tpu.concatenate %100, %102, %104, %106, %108, %110, %112, %114, %116, %118, %120, %122, %124, %126, %128, %130 in 1 : vector<16x32xf32>, vector<16x32xf32>, vector<16x32xf32>, vector<16x32xf32>, vector<16x32xf32>, vector<16x32xf32>, vector<16x32xf32>, vector<16x32xf32>, vector<16x32xf32>, vector<16x32xf32>, vector<16x32xf32>, vector<16x32xf32>, vector<16x32xf32>, vector<16x32xf32>, vector<16x32xf32>, vector<16x32xf32> -> vector<16x512xf32>
    %c0_40 = arith.constant 0 : index
    %c0_41 = arith.constant 0 : index
    %c0_42 = arith.constant 0 : index
    %132 = vector.load %arg7[%c0_40, %c0_41, %c0_42] : memref<1x16x512xf32, #tpu.memory_space<vmem>>, vector<1x16x512xf32>
    %133 = vector.shape_cast %132 : vector<1x16x512xf32> to vector<16x512xf32>
    %134 = vector.shape_cast %131 : vector<16x512xf32> to vector<1x16x512xf32>
    tpu.vector_store %arg7[%c0_40, %c0_41, %c0_42], %134 {strides = array<i32>} : memref<1x16x512xf32, #tpu.memory_space<vmem>>, vector<1x16x512xf32>,
    return
  }
  func.func @transform_0(%arg0: i32) -> (i32, i32, i32) {
    %c0_i32 = arith.constant 0 : i32
    %c0_i32_0 = arith.constant 0 : i32
    %c0_i32_1 = arith.constant 0 : i32
    return %arg0, %c0_i32, %c0_i32_0 : i32, i32, i32
  }
  func.func @transform_1(%arg0: i32) -> (i32, i32) {
    %c0_i32 = arith.constant 0 : i32
    %c0_i32_0 = arith.constant 0 : i32
    %c0_i32_1 = arith.constant 0 : i32
    return %c0_i32, %c0_i32_0 : i32, i32
  }
  func.func @transform_2(%arg0: i32) -> (i32, i32) {
    %c0_i32 = arith.constant 0 : i32
    %c0_i32_0 = arith.constant 0 : i32
    %c0_i32_1 = arith.constant 0 : i32
    return %c0_i32, %c0_i32_0 : i32, i32
  }
  func.func @transform_3(%arg0: i32) -> (i32, i32) {
    %c0_i32 = arith.constant 0 : i32
    %c0_i32_0 = arith.constant 0 : i32
    %c0_i32_1 = arith.constant 0 : i32
    return %c0_i32, %c0_i32_0 : i32, i32
  }
  func.func @transform_4(%arg0: i32) -> (i32, i32) {
    %c0_i32 = arith.constant 0 : i32
    %c0_i32_0 = arith.constant 0 : i32
    %c0_i32_1 = arith.constant 0 : i32
    return %c0_i32, %c0_i32_0 : i32, i32
  }
  func.func @transform_5(%arg0: i32) -> (i32, i32, i32, i32) {
    %c0_i32 = arith.constant 0 : i32
    %c0_i32_0 = arith.constant 0 : i32
    %c0_i32_1 = arith.constant 0 : i32
    %c0_i32_2 = arith.constant 0 : i32
    %c0_i32_3 = arith.constant 0 : i32
    return %c0_i32, %c0_i32_0, %c0_i32_1, %c0_i32_2 : i32, i32, i32, i32
  }
  func.func @transform_6(%arg0: i32) -> (i32, i32, i32) {
    %c0_i32 = arith.constant 0 : i32
    %c0_i32_0 = arith.constant 0 : i32
    %c0_i32_1 = arith.constant 0 : i32
    return %arg0, %c0_i32, %c0_i32_0 : i32, i32, i32
  }
}

</mosaic_0001>

<bundles_post_ra>
// kernel: tpu_custom_call.1
= control target key start
LH: loop header
LB: loop body
LE: loop exit
PB: predicated region body
PF: predicated region fallthrough
CT: control target
= control target key end

     0   :  { %11 = vsyncpa [#allocation3], 0  ;;  %s11430_s0 = inlined_call_operand.vmem [shape: f32[2,256,32], index: 0, kind: input, shape index: {}]   ;;  %s11431_s1 = inlined_call_operand.vmem [shape: bf16[32,96], index: 1, kind: input, shape index: {}]   ;;  %s11432_s2 = inlined_call_operand.vmem [shape: f32[1,96], index: 2, kind: input, shape index: {}]   ;;  %s11433_s3 = inlined_call_operand.vmem [shape: bf16[32,32], index: 3, kind: input, shape index: {}]   ;;  %s11434_s4 = inlined_call_operand.vmem [shape: f32[1,32], index: 4, kind: input, shape index: {}]   ;;  %s11435_s5 = inlined_call_operand.hbm [shape: f32[4,16,16,16], index: 5, kind: input, shape index: {}]   ;;  %s11436_s6 = inlined_call_operand.hbm [shape: f32[2,16,512], index: 6, kind: output, shape index: {}]  }
   0x1   :  { %12 = vsyncpa [#allocation4], 0 }
   0x2   :  { %14 = vsyncpa [#allocation4 + $0x1], 0  ;;  %s7881_s21 = smov 0   ;;  %s7883_s22 = smov 0  }
   0x3   :  { %s7885_s23 = smov 0   ;;  %s7887_s24 = smov 0  }
   0x4 LB: > { %s7902_s25 = sadd.s32 4294967295, %s7825_s24   ;;  %s6704_s26 = sadd.s32 4294967294, %s7825_s24   ;;  %s7825_s24 = sphi %s7887_s24, %s11836_s24   ;;  %s7821_s23 = sphi %s7885_s23, %s11835_s23   ;;  %s7817_s22 = sphi %s7883_s22, %s11834_s22   ;;  %s7813_s21 = sphi %s7881_s21, %s11833_s21  }
   0x5   : > { %s7906_s27 = sadd.s32 1, %s7825_s24   ;;  %s158_s28 = sadd.s32 1, %s7821_s23 }
   0x6   : > { %s155_s29 = ssub.s32 %s7825_s24, %s7906_s27  ;;  %p168_p0 = scmp.ne.s32.totalorder %s7821_s23, %s7817_s22 }
   0x7   : > { %p156_p1 = scmp.eq.s32.totalorder %s155_s29, 0  ;;  %p169_p2 = scmp.eq.s32.totalorder %s7902_s25, 1 }
   0x8   : > { %p174_p3 = scmp.ne.s32.totalorder %s7817_s22, %s7813_s21  ;;  %p175_p4 = scmp.eq.s32.totalorder %s6704_s26, 1 }
   0x9   : > { %s7917_s30 = scalar_select %p156_p1, %s7821_s23, %s158_s28  }
   0xa   : > { %p7919_p5 = por %p169_p2, %p168_p0  ;;  %p7923_p6 = por %p175_p4, %p174_p3 }
   0xb   : > { %p6705_p7 = scmp.ge.s32.totalorder %s7825_s24, 1  ;;  %p182_p8 = scmp.lt.s32.totalorder %s7825_s24, 3 }
   0xc   : > { %p6920_p9 = scmp.eq.s32.totalorder %s7902_s25, 0  ;;  %s205_s11 = sshll.u32 %s11435_s5, 4  ;;  %s206_s11 = int_to_ptr.hbm [resolvable:$true] %s205_s11 }
   0xd   : > { %p183_p10 = pnand %p6705_p7, %p182_p8  ;;  %s7827_s12 = smov [#allocation2]  }
   0xe   : > { %s207_s13 = sshll.u32 %s7827_s12, 4  ;;  %s7828_s14 = smov 128   ;;  %s208_s13 = int_to_ptr.vmem [resolvable:$true] %s207_s13 }
   0xf   : > { %p6912_p11 = pneg %p183_p10  ;;  %s7829_s15 = smov 8  }
  0x10   : > { %231 = sbr.rel (%p183_p10) target bundleno = 3160 (0xc58), region = 44 }
  0x11   : > { %p6913_p12 = pnand %p6920_p9, %p6912_p11 }
  0x13   : > { %6915 = dma.hbm_to_vmem [thread:$0]  (!%p6913_p12), %s206_s11, 16384, %s208_s13, [#allocation3], %s7828_s14, %s7828_s14, %s7829_s15  }
  0x15   : > { %7804 = dma.done.wait (%p6920_p9), [#allocation3], 16384  }
  0x16   : > { %7806 = vsyncadd (%p6920_p9), [#allocation3], 4294950912  ;;  %p262_p13 = scmp.lt.s32.totalorder %s7902_s25, 1  ;;  %v6896_v0 = vld [vmem:[%s11431_s1 + $0x8] sm:$0xff]  ;;  %v6895_v1 = vld [vmem:[%s11431_s1] sm:$0xff]  ;;  %vm336_vm0 = vcmask 261120  }
  0x17   : > { %391 = vmatpush.bf16.msra.mxu0 %v6896_v0  ;;  %6900 = vmatpush.bf16.msra.mxu1 %v6896_v0  ;;  %v8003_v52 = vld [vmem:[%s11432_s2] ss:$0 sm:$0xff]  ;;  %s7830_s12 = smov 96   ;;  %s7831_s13 = smov 88   ;;  %vm545_vm1 = vcmask 64512   ;;  %vm971_vm2 = vcmask 130048  }
  0x18   : > { %s263_s16 = scalar_select %p262_p13, %s7902_s25, 1  ;;  %6901 = vmatpush.bf16.msra.mxu2 %v6896_v0  ;;  %6902 = vmatpush.bf16.msra.mxu3 %v6896_v0  ;;  %vm5807_vm3 = vcmask 195584   ;;  %vm6030_vm4 = vcmask 1041409   ;;  %vm6033_vm5 = vcmask 1042434   ;;  %vm6036_vm6 = vcmask 1043459  }
  0x19   : > { %s7832_s14 = smov 64   ;;  %s7833_s15 = smov 120   ;;  %vm6039_vm7 = vcmask 1044484   ;;  %vm6042_vm8 = vcmask 1045509   ;;  %vm6045_vm9 = vcmask 1046534   ;;  %vm6048_vm10 = vcmask 1047559  }
  0x1a   : > { %s6894_s17 = sshll.u32 %s263_s16, 8  ;;  %s7834_s16 = smov 56   ;;  %vm6582_vm11 = vcmask 523264   ;;  %vm6585_vm12 = vcmask 785408  }
  0x1b   : > { %s7944_s20 = scalar_lea.vmem %s11430_s0, %s6894_s17  ;;  %392 = vmatpush.bf16.msra.mxu0 %v6895_v1  ;;  %6903 = vmatpush.bf16.msra.mxu1 %v6895_v1  ;;  %s7835_s17 = smov 112  }
  0x1c   : > { %v268_v2 = vld [vmem:[%s7944_s20] sm:$0xff]  ;;  %v269_v3 = vld [vmem:[%s7944_s20 + $0x8] sm:$0xff]  ;;  %6904 = vmatpush.bf16.msra.mxu2 %v6895_v1  ;;  %6905 = vmatpush.bf16.msra.mxu3 %v6895_v1  ;;  %v270_v14 = vld [vmem:[%s7944_s20 + $0x10] sm:$0xff]  ;;  %s7836_s18 = smov 80   ;;  %s7837_s19 = smov 48  }
  0x1d   : > { %v276_v4 = vld [vmem:[%s7944_s20 + $0x40] sm:$0xff]  ;;  %v277_v5 = vld [vmem:[%s7944_s20 + $0x48] sm:$0xff]  ;;  %v300_v10 = vpack.c.bf16 %v269_v3, %v268_v2  ;;  %v271_v15 = vld [vmem:[%s7944_s20 + $0x18] sm:$0xff]  ;;  %s7839_s26 = smov 104   ;;  %s7840_s28 = smov 40  }
  0x1e   : > { %v284_v6 = vld [vmem:[%s7944_s20 + $0x80] sm:$0xff]  ;;  %v285_v7 = vld [vmem:[%s7944_s20 + $0x88] sm:$0xff]  ;;  %v304_v11 = vpack.c.bf16 %v277_v5, %v276_v4  ;;  %v286_v16 = vld [vmem:[%s7944_s20 + $0x90] sm:$0xff]  ;;  %v301_v22 = vpack.c.bf16 %v271_v15, %v270_v14  ;;  %s7841_s29 = smov 16   ;;  %s7842_s9 = smov 8  }
  0x1f   : > { %v292_v8 = vld [vmem:[%s7944_s20 + $0xc0] sm:$0xff]  ;;  %v293_v9 = vld [vmem:[%s7944_s20 + $0xc8] sm:$0xff]  ;;  %v308_v12 = vpack.c.bf16 %v285_v7, %v284_v6  ;;  %6721 = vmatmul.msk.bf16.vlgmr.msra.gmra.mxu0 %vm336_vm0, %v300_v10  ;;  %v278_v17 = vld [vmem:[%s7944_s20 + $0x50] sm:$0xff]  ;;  %s7843_s10 = smov 24  }
  0x20   : > { %v312_v13 = vpack.c.bf16 %v293_v9, %v292_v8  ;;  %6725 = vmatmul.msk.bf16.vlgmr.msra.gmra.mxu1 %vm336_vm0, %v304_v11  ;;  %v279_v18 = vld [vmem:[%s7944_s20 + $0x58] sm:$0xff]  ;;  %v294_v20 = vld [vmem:[%s7944_s20 + $0xd0] sm:$0xff]  ;;  %v272_v26 = vld [vmem:[%s7944_s20 + $0x20] sm:$0xff] }
  0x21   : > { %6729 = vmatmul.msk.bf16.vlgmr.msra.gmra.mxu2 %vm336_vm0, %v308_v12  ;;  %v287_v19 = vld [vmem:[%s7944_s20 + $0x98] sm:$0xff]  ;;  %v305_v23 = vpack.c.bf16 %v279_v18, %v278_v17  ;;  %v273_v27 = vld [vmem:[%s7944_s20 + $0x28] sm:$0xff]  ;;  %v280_v28 = vld [vmem:[%s7944_s20 + $0x60] sm:$0xff] }
  0x22   : > { %6733 = vmatmul.msk.bf16.vlgmr.msra.gmra.mxu3 %vm336_vm0, %v312_v13  ;;  %v295_v21 = vld [vmem:[%s7944_s20 + $0xd8] sm:$0xff]  ;;  %v309_v24 = vpack.c.bf16 %v287_v19, %v286_v16  ;;  %v281_v29 = vld [vmem:[%s7944_s20 + $0x68] sm:$0xff]  ;;  %v288_v30 = vld [vmem:[%s7944_s20 + $0xa0] sm:$0xff]  ;;  %v302_v34 = vpack.c.bf16 %v273_v27, %v272_v26 }
  0x23   : > { %v313_v25 = vpack.c.bf16 %v295_v21, %v294_v20  ;;  %v289_v31 = vld [vmem:[%s7944_s20 + $0xa8] sm:$0xff]  ;;  %v296_v32 = vld [vmem:[%s7944_s20 + $0xe0] sm:$0xff]  ;;  %v306_v35 = vpack.c.bf16 %v281_v29, %v280_v28  ;;  %v282_v38 = vld [vmem:[%s7944_s20 + $0x70] sm:$0xff] }
  0x24   : > { %v297_v33 = vld [vmem:[%s7944_s20 + $0xe8] sm:$0xff]  ;;  %v310_v36 = vpack.c.bf16 %v289_v31, %v288_v30  ;;  %v283_v39 = vld [vmem:[%s7944_s20 + $0x78] sm:$0xff]  ;;  %v274_v40 = vld [vmem:[%s7944_s20 + $0x30] sm:$0xff] }
  0x25   : > { %v314_v37 = vpack.c.bf16 %v297_v33, %v296_v32  ;;  %v275_v41 = vld [vmem:[%s7944_s20 + $0x38] sm:$0xff]  ;;  %v290_v42 = vld [vmem:[%s7944_s20 + $0xb0] sm:$0xff]  ;;  %v307_v46 = vpack.c.bf16 %v283_v39, %v282_v38 }
  0x26   : > { %v291_v43 = vld [vmem:[%s7944_s20 + $0xb8] sm:$0xff]  ;;  %v298_v44 = vld [vmem:[%s7944_s20 + $0xf0] sm:$0xff]  ;;  %v303_v47 = vpack.c.bf16 %v275_v41, %v274_v40 }
  0x27   : > { %v299_v45 = vld [vmem:[%s7944_s20 + $0xf8] sm:$0xff]  ;;  %v311_v48 = vpack.c.bf16 %v291_v43, %v290_v42  ;;  %s7838_s20 = smov 72  }
  0x28   : > { %v315_v49 = vpack.c.bf16 %v299_v45, %v298_v44 }
  0x2f   : > { %6722 = vmatmul.msk.bf16.gmra.mxu0 %vm336_vm0, %v301_v22 }
  0x30   : > { %6726 = vmatmul.msk.bf16.gmra.mxu1 %vm336_vm0, %v305_v23 }
  0x31   : > { %6730 = vmatmul.msk.bf16.gmra.mxu2 %vm336_vm0, %v309_v24 }
  0x32   : > { %6734 = vmatmul.msk.bf16.gmra.mxu3 %vm336_vm0, %v313_v25 }
  0x3f   : > { %6723 = vmatmul.msk.bf16.gmra.mxu0 %vm336_vm0, %v302_v34 }
  0x40   : > { %6727 = vmatmul.msk.bf16.gmra.mxu1 %vm336_vm0, %v306_v35 }
  0x41   : > { %6731 = vmatmul.msk.bf16.gmra.mxu2 %vm336_vm0, %v310_v36 }
  0x42   : > { %6735 = vmatmul.msk.bf16.gmra.mxu3 %vm336_vm0, %v314_v37 }
  0x4f   : > { %6724 = vmatmul.msk.bf16.gmra.mxu0 %vm336_vm0, %v303_v47 }
  0x50   : > { %6728 = vmatmul.msk.bf16.gmra.mxu1 %vm336_vm0, %v307_v46 }
  0x51   : > { %6732 = vmatmul.msk.bf16.gmra.mxu2 %vm336_vm0, %v311_v48 }
  0x52   : > { %6736 = vmatmul.msk.bf16.gmra.mxu3 %vm336_vm0, %v315_v49 }
  0x9c   : > { %v394_v50 = vpop.f32.mrf.mxu0 }
  0x9d   : > { %v414_v51 = vpop.f32.mrf.mxu1  ;;  %v395_v54 = vadd.f32 %v8003_v52, %v394_v50 }
  0x9e   : > { %v415_v53 = vadd.f32 %v8003_v52, %v414_v51 }
  0x9f   : > { %v474_v59 = vpack.c.bf16 %v395_v54, %v395_v54 }
  0xa0   : > { %v482_v55 = vpack.c.bf16 %v415_v53, %v415_v53 }
  0xa1   : > { %v540_v2 = vunpack.c.l.b16 %v474_v59 }
  0xa2   : > { %v649_v62 = vunpack.c.l.b16 %v482_v55 }
  0xa4   : > { %v434_v56 = vpop.f32.mrf.mxu2  ;;  %v396_v57 = vpop.f32.mrf.mxu0 }
  0xa5   : > { %v416_v58 = vpop.f32.mrf.mxu1  ;;  %v397_v60 = vadd.f32 %v8003_v52, %v396_v57  ;;  %v454_v1 = vpop.f32.mrf.mxu3  ;;  %v435_v9 = vadd.f32 %v8003_v52, %v434_v56 }
  0xa6   : > { %v417_v61 = vadd.f32 %v8003_v52, %v416_v58  ;;  %v455_v16 = vadd.f32 %v8003_v52, %v454_v1 }
  0xa7   : > { %v475_v63 = vpack.c.bf16 %v397_v60, %v397_v60  ;;  %v490_v13 = vpack.c.bf16 %v435_v9, %v435_v9 }
  0xa8   : > { %v483_v0 = vpack.c.bf16 %v417_v61, %v417_v61  ;;  %v498_v23 = vpack.c.bf16 %v455_v16, %v455_v16 }
  0xa9   : > { %v541_v3 = vunpack.c.l.b16 %v475_v63  ;;  %v757_v18 = vunpack.c.l.b16 %v490_v13 }
  0xaa   : > { %v650_v4 = vunpack.c.l.b16 %v483_v0  ;;  %v865_v29 = vunpack.c.l.b16 %v498_v23 }
  0xab   : > { %v8009_v5 = vpack.c.b16 %v541_v3, %v540_v2 }
  0xac   : > { %v8011_v6 = vpack.c.b16 %v650_v4, %v649_v62  ;;  %v399_v7 = vpop.f32.mrf.mxu0  ;;  %v436_v8 = vpop.f32.mrf.mxu2 }
  0xad   : > { %11467 = vst [vmem:[#allocation8_spill] sm:$0xff] %v8009_v5  ;;  %1791 = vrot.lane.b32.xlu2 %v8009_v5, %s7831_s13  ;;  %543 = vrot.lane.b32.xlu0 %v8009_v5, %s7830_s12  ;;  %v437_v10 = vadd.f32 %v8003_v52, %v436_v8  ;;  %v456_v11 = vpop.f32.mrf.mxu3  ;;  %v419_v12 = vpop.f32.mrf.mxu1  ;;  %v400_v19 = vadd.f32 %v8003_v52, %v399_v7 }
  0xae   : > { %652 = vrot.lane.b32.xlu1 %v8011_v6, %s7830_s12  ;;  %v457_v17 = vadd.f32 %v8003_v52, %v456_v11  ;;  %v420_v33 = vadd.f32 %v8003_v52, %v419_v12 }
  0xaf   : > { %v491_v14 = vpack.c.bf16 %v437_v10, %v437_v10  ;;  %v476_v25 = vpack.c.bf16 %v400_v19, %v400_v19 }
  0xb0   : > { %v499_v24 = vpack.c.bf16 %v457_v17, %v457_v17  ;;  %v484_v39 = vpack.c.bf16 %v420_v33, %v420_v33 }
  0xb1   : > { %v758_v20 = vunpack.c.l.b16 %v491_v14  ;;  %v568_v31 = vunpack.c.l.b16 %v476_v25 }
  0xb2   : > { %v866_v30 = vunpack.c.l.b16 %v499_v24  ;;  %v676_v43 = vunpack.c.l.b16 %v484_v39 }
  0xb3   : > { %v8031_v26 = vpack.c.b16 %v758_v20, %v757_v18 }
  0xb4   : > { %v401_v15 = vpop.f32.mrf.mxu0  ;;  %v439_v22 = vpop.f32.mrf.mxu2  ;;  %v8041_v36 = vpack.c.b16 %v866_v30, %v865_v29 }
  0xb5   : > { %1887 = vrot.lane.b32.xlu2 %v8011_v6, %s7831_s13  ;;  %1789 = vrot.lane.b32.xlu0 %v8009_v5, %s7833_s15  ;;  %v402_v21 = vadd.f32 %v8003_v52, %v401_v15  ;;  %v421_v28 = vpop.f32.mrf.mxu1  ;;  %v440_v41 = vadd.f32 %v8003_v52, %v439_v22  ;;  %v459_v49 = vpop.f32.mrf.mxu3 }
  0xb6   : > { %1361 = vrot.lane.b32.xlu1 %v8009_v5, %s7832_s14  ;;  %v422_v34 = vadd.f32 %v8003_v52, %v421_v28  ;;  %v460_v1 = vadd.f32 %v8003_v52, %v459_v49 }
  0xb7   : > { %v477_v27 = vpack.c.bf16 %v402_v21, %v402_v21  ;;  %v492_v46 = vpack.c.bf16 %v440_v41, %v440_v41 }
  0xb8   : > { %v485_v40 = vpack.c.bf16 %v422_v34, %v422_v34  ;;  %v500_v9 = vpack.c.bf16 %v460_v1, %v460_v1 }
  0xb9   : > { %v569_v32 = vunpack.c.l.b16 %v477_v27  ;;  %v784_v51 = vunpack.c.l.b16 %v492_v46 }
  0xba   : > { %v677_v44 = vunpack.c.l.b16 %v485_v40  ;;  %v892_v13 = vunpack.c.l.b16 %v500_v9 }
  0xbb   : > { %v8043_v38 = vpack.c.b16 %v569_v32, %v568_v31 }
  0xbc   : > { %v404_v35 = vpop.f32.mrf.mxu0  ;;  %v441_v37 = vpop.f32.mrf.mxu2  ;;  %v8053_v50 = vpack.c.b16 %v677_v44, %v676_v43 }
  0xbd   : > { %1561 = vrot.lane.b32.xlu2 %v8031_v26, %s7832_s14  ;;  %760 = vrot.lane.b32.xlu0 %v8031_v26, %s7830_s12  ;;  %11468 = vst [vmem:[#allocation9_spill] sm:$0xff] %v8043_v38  ;;  %v442_v42 = vadd.f32 %v8003_v52, %v441_v37  ;;  %v424_v45 = vpop.f32.mrf.mxu1  ;;  %v405_v53 = vadd.f32 %v8003_v52, %v404_v35  ;;  %v461_v60 = vpop.f32.mrf.mxu3 }
  0xbe   : > { %1461 = vrot.lane.b32.xlu1 %v8011_v6, %s7832_s14  ;;  %v425_v63 = vadd.f32 %v8003_v52, %v424_v45  ;;  %v462_v2 = vadd.f32 %v8003_v52, %v461_v60 }
  0xbf   : > { %v493_v47 = vpack.c.bf16 %v442_v42, %v442_v42  ;;  %v478_v56 = vpack.c.bf16 %v405_v53, %v405_v53 }
  0xc0   : > { %v486_v7 = vpack.c.bf16 %v425_v63, %v425_v63  ;;  %v501_v10 = vpack.c.bf16 %v462_v2, %v462_v2 }
  0xc1   : > { %v785_v54 = vunpack.c.l.b16 %v493_v47  ;;  %v595_v61 = vunpack.c.l.b16 %v478_v56 }
  0xc2   : > { %v703_v11 = vunpack.c.l.b16 %v486_v7  ;;  %v893_v14 = vunpack.c.l.b16 %v501_v10 }
  0xc3   : > { %v8063_v57 = vpack.c.b16 %v785_v54, %v784_v51 }
  0xc4   : > { %v406_v48 = vpop.f32.mrf.mxu0  ;;  %v444_v3 = vpop.f32.mrf.mxu2  ;;  %v8085_v18 = vpack.c.b16 %v893_v14, %v892_v13 }
  0xc5   : > { %1386 = vrot.lane.b32.xlu2 %v8043_v38, %s7832_s14  ;;  %571 = vrot.lane.b32.xlu0 %v8043_v38, %s7830_s12  ;;  %v407_v55 = vadd.f32 %v8003_v52, %v406_v48  ;;  %v426_v59 = vpop.f32.mrf.mxu1  ;;  %v445_v19 = vadd.f32 %v8003_v52, %v444_v3  ;;  %v464_v21 = vpop.f32.mrf.mxu3 }
  0xc6   : > { %868 = vrot.lane.b32.xlu1 %v8041_v36, %s7830_s12  ;;  %v427_v0 = vadd.f32 %v8003_v52, %v426_v59  ;;  %11469 = vst [vmem:[#allocation10_spill] sm:$0xff] %v8085_v18  ;;  %v465_v43 = vadd.f32 %v8003_v52, %v464_v21 }
  0xc7   : > { %v479_v58 = vpack.c.bf16 %v407_v55, %v407_v55  ;;  %v494_v23 = vpack.c.bf16 %v445_v19, %v445_v19 }
  0xc8   : > { %v487_v8 = vpack.c.bf16 %v427_v0, %v427_v0  ;;  %v502_v49 = vpack.c.bf16 %v465_v43, %v465_v43 }
  0xc9   : > { %v596_v62 = vunpack.c.l.b16 %v479_v58  ;;  %v811_v27 = vunpack.c.l.b16 %v494_v23 }
  0xca   : > { %v704_v12 = vunpack.c.l.b16 %v487_v8  ;;  %v919_v59 = vunpack.c.l.b16 %v502_v49 }
  0xcb   : > { %v8075_v4 = vpack.c.b16 %v596_v62, %v595_v61 }
  0xcc   : > { %v8083_v16 = vpack.c.b16 %v704_v12, %v703_v11  ;;  %v446_v17 = vpop.f32.mrf.mxu2  ;;  %v409_v22 = vpop.f32.mrf.mxu0 }
  0xcd   : > { %1486 = vrot.lane.b32.xlu2 %v8053_v50, %s7832_s14  ;;  %679 = vrot.lane.b32.xlu0 %v8053_v50, %s7830_s12  ;;  %v429_v15 = vpop.f32.mrf.mxu1  ;;  %v447_v20 = vadd.f32 %v8003_v52, %v446_v17  ;;  %v466_v31 = vpop.f32.mrf.mxu3  ;;  %v410_v40 = vadd.f32 %v8003_v52, %v409_v22 }
  0xce   : > { %1661 = vrot.lane.b32.xlu1 %v8041_v36, %s7832_s14  ;;  %v430_v28 = vadd.f32 %v8003_v52, %v429_v15  ;;  %v467_v44 = vadd.f32 %v8003_v52, %v466_v31 }
  0xcf   : > { %v495_v24 = vpack.c.bf16 %v447_v20, %v447_v20  ;;  %v480_v46 = vpack.c.bf16 %v410_v40, %v410_v40 }
  0xd0   : > { %v488_v32 = vpack.c.bf16 %v430_v28, %v430_v28  ;;  %v503_v51 = vpack.c.bf16 %v467_v44, %v467_v44 }
  0xd1   : > { %v812_v29 = vunpack.c.l.b16 %v495_v24  ;;  %v622_v54 = vunpack.c.l.b16 %v480_v46 }
  0xd2   : > { %v730_v39 = vunpack.c.l.b16 %v488_v32  ;;  %v920_v60 = vunpack.c.l.b16 %v503_v51 }
  0xd3   : > { %v8103_v33 = vpack.c.b16 %v812_v29, %v811_v27 }
  0xd4   : > { %v449_v35 = vpop.f32.mrf.mxu2  ;;  %v411_v37 = vpop.f32.mrf.mxu0  ;;  %v8127_v1 = vpack.c.b16 %v920_v60, %v919_v59 }
  0xd5   : > { %1815 = vrot.lane.b32.xlu2 %v8043_v38, %s7831_s13  ;;  %1911 = vrot.lane.b32.xlu0 %v8053_v50, %s7831_s13  ;;  %v431_v25 = vpop.f32.mrf.mxu1  ;;  %v412_v42 = vadd.f32 %v8003_v52, %v411_v37  ;;  %v469_v45 = vpop.f32.mrf.mxu3  ;;  %v450_v56 = vadd.f32 %v8003_v52, %v449_v35 }
  0xd6   : > { %787 = vrot.lane.b32.xlu1 %v8063_v57, %s7830_s12  ;;  %v432_v30 = vadd.f32 %v8003_v52, %v431_v25  ;;  %v470_v2 = vadd.f32 %v8003_v52, %v469_v45 }
  0xd7   : > { %v481_v48 = vpack.c.bf16 %v412_v42, %v412_v42  ;;  %v496_v62 = vpack.c.bf16 %v450_v56, %v450_v56 }
  0xd8   : > { %v489_v34 = vpack.c.bf16 %v432_v30, %v432_v30  ;;  %v504_v10 = vpack.c.bf16 %v470_v2, %v470_v2 }
  0xd9   : > { %v623_v55 = vunpack.c.l.b16 %v481_v48  ;;  %v838_v7 = vunpack.c.l.b16 %v496_v62 }
  0xda   : > { %v731_v41 = vunpack.c.l.b16 %v489_v34  ;;  %v946_v13 = vunpack.c.l.b16 %v504_v10 }
  0xdb   : > { %v8125_v61 = vpack.c.b16 %v623_v55, %v622_v54 }
  0xdc   : > { %v8115_v47 = vpack.c.b16 %v731_v41, %v730_v39  ;;  %v451_v53 = vpop.f32.mrf.mxu2 }
  0xdd   : > { %1813 = vrot.lane.b32.xlu2 %v8043_v38, %s7833_s15  ;;  %1909 = vrot.lane.b32.xlu0 %v8053_v50, %s7833_s15  ;;  %v452_v58 = vadd.f32 %v8003_v52, %v451_v53  ;;  %11470 = vst [vmem:[#allocation11_spill] sm:$0xff] %v8125_v61  ;;  %v471_v0 = vpop.f32.mrf.mxu3 }
  0xde   : > { %598 = vrot.lane.b32.xlu1 %v8075_v4, %s7830_s12  ;;  %v472_v3 = vadd.f32 %v8003_v52, %v471_v0 }
  0xdf   : > { %v497_v63 = vpack.c.bf16 %v452_v58, %v452_v58 }
  0xe0   : > { %v505_v11 = vpack.c.bf16 %v472_v3, %v472_v3 }
  0xe1   : > { %v839_v8 = vunpack.c.l.b16 %v497_v63 }
  0xe2   : > { %v947_v14 = vunpack.c.l.b16 %v505_v11 }
  0xe3   : > { %v8139_v12 = vpack.c.b16 %v839_v8, %v838_v7 }
  0xe4   : > { %v8149_v15 = vpack.c.b16 %v947_v14, %v946_v13 }
  0xe5   : > { %895 = vrot.lane.b32.xlu2 %v8085_v18, %s7830_s12  ;;  %1586 = vrot.lane.b32.xlu0 %v8063_v57, %s7832_s14 }
  0xe6   : > { %706 = vrot.lane.b32.xlu1 %v8083_v16, %s7830_s12  ;;  %11473 = vst [vmem:[#allocation14_spill] sm:$0xff] %v8149_v15 }
  0xed   : > { %1411 = vrot.lane.b32.xlu2 %v8075_v4, %s7832_s14  ;;  %1686 = vrot.lane.b32.xlu0 %v8085_v18, %s7832_s14 }
  0xee   : > { %1935 = vrot.lane.b32.xlu1 %v8083_v16, %s7831_s13 }
  0xf5   : > { %1839 = vrot.lane.b32.xlu2 %v8075_v4, %s7831_s13  ;;  %1511 = vrot.lane.b32.xlu0 %v8083_v16, %s7832_s14 }
  0xf6   : > { %1611 = vrot.lane.b32.xlu1 %v8103_v33, %s7832_s14 }
  0xfd   : > { %814 = vrot.lane.b32.xlu2 %v8103_v33, %s7830_s12  ;;  %1837 = vrot.lane.b32.xlu0 %v8075_v4, %s7833_s15 }
  0xfe   : > { %1536 = vrot.lane.b32.xlu1 %v8115_v47, %s7832_s14 }
 0x105   : > { %922 = vrot.lane.b32.xlu2 %v8127_v1, %s7830_s12  ;;  %1436 = vrot.lane.b32.xlu0 %v8125_v61, %s7832_s14 }
 0x106   : > { %1863 = vrot.lane.b32.xlu1 %v8125_v61, %s7831_s13 }
 0x107   : > { %v8137_v9 = vpop.permute.xlu2 %1791 }
 0x108   : > { %11471 = vst [vmem:[#allocation12_spill] sm:$0xff] %v8137_v9 }
 0x10d   : > { %1711 = vrot.lane.b32.xlu2 %v8127_v1, %s7832_s14  ;;  %841 = vrot.lane.b32.xlu0 %v8139_v12, %s7830_s12 }
 0x10e   : > { %1861 = vrot.lane.b32.xlu1 %v8125_v61, %s7833_s15 }
 0x10f   : > { %v8147_v52 = vpop.permute.xlu2 %1887 }
 0x110   : > { %11472 = vst [vmem:[#allocation13_spill] sm:$0xff] %v8147_v52  ;;  %v524_v52 = vld [vmem:[#allocation2 + $0x90] sm:$0xff] }
 0x115   : > { %625 = vrot.lane.b32.xlu2 %v8125_v61, %s7830_s12  ;;  %949 = vrot.lane.b32.xlu0 %v8149_v15, %s7830_s12 }
 0x116   : > { %1736 = vrot.lane.b32.xlu1 %v8149_v15, %s7832_s14 }
 0x117   : > { %v8157_v17 = vpop.permute.xlu2 %1561 }
 0x11d   : > { %733 = vrot.lane.b32.xlu2 %v8115_v47, %s7830_s12  ;;  %1636 = vrot.lane.b32.xlu0 %v8139_v12, %s7832_s14 }
 0x11e   : > { %1933 = vrot.lane.b32.xlu1 %v8083_v16, %s7833_s15 }
 0x11f   : > { %v8165_v20 = vpop.permute.xlu2 %1386  ;;  %v544_v21 = vpop.permute.xlu0 %543 }
 0x120   : > { %v653_v19 = vpop.permute.xlu1 %652  ;;  %v550_v22 = vsel %vm545_vm1, %v544_v21, 0 }
 0x121   : > { %559 = vmatpush.bf16.xpose.msrb.mxu1 %v550_v22  ;;  %v658_v35 = vsel %vm545_vm1, %v653_v19, 0 }
 0x125   : > { %1885 = vrot.lane.b32.xlu2 %v8011_v6, %s7833_s15  ;;  %1983 = vrot.lane.b32.xlu0 %v8031_v26, %s7831_s13 }
 0x126   : > { %2007 = vrot.lane.b32.xlu1 %v8063_v57, %s7831_s13 }
 0x127   : > { %v8174_v23 = vpop.permute.xlu2 %1486  ;;  %v8178_v25 = vpop.permute.xlu0 %1789 }
 0x128   : > { %v8176_v24 = vpop.permute.xlu1 %1361  ;;  %11474 = vst [vmem:[#allocation15_spill] sm:$0xff] %v8178_v25  ;;  %6737 = vmatmul.msk.bf16.vlgmr.msrb.gmra.mxu1 %vm545_vm1, %v8009_v5 }
 0x12d   : > { %1959 = vrot.lane.b32.xlu2 %v8115_v47, %s7831_s13  ;;  %1981 = vrot.lane.b32.xlu0 %v8031_v26, %s7833_s15 }
 0x12e   : > { %2005 = vrot.lane.b32.xlu1 %v8063_v57, %s7833_s15 }
 0x12f   : > { %v8188_v27 = vpop.permute.xlu2 %1815  ;;  %v761_v29 = vpop.permute.xlu0 %760 }
 0x130   : > { %11475 = vst [vmem:[#allocation16_spill] sm:$0xff] %v8188_v27  ;;  %v8190_v28 = vpop.permute.xlu1 %1461  ;;  %v766_v53 = vsel %vm545_vm1, %v761_v29, 0 }
 0x135   : > { %1957 = vrot.lane.b32.xlu2 %v8115_v47, %s7833_s15  ;;  %2127 = vrot.lane.b32.xlu0 %v8127_v1, %s7831_s13 }
 0x136   : > { %2079 = vrot.lane.b32.xlu1 %v8041_v36, %s7831_s13 }
 0x137   : > { %v8198_v30 = vpop.permute.xlu2 %1813  ;;  %v572_v32 = vpop.permute.xlu0 %571 }
 0x138   : > { %11476 = vst [vmem:[#allocation17_spill] sm:$0xff] %v8198_v30  ;;  %v8200_v31 = vpop.permute.xlu1 %868  ;;  %v577_v34 = vsel %vm545_vm1, %v572_v32, 0 }
 0x139   : > { %586 = vmatpush.bf16.xpose.msrb.mxu2 %v577_v34  ;;  %v874_v32 = vsel %vm545_vm1, %v8200_v31, 0 }
 0x13d   : > { %2031 = vrot.lane.b32.xlu2 %v8103_v33, %s7831_s13  ;;  %2055 = vrot.lane.b32.xlu0 %v8139_v12, %s7831_s13 }
 0x13e   : > { %2077 = vrot.lane.b32.xlu1 %v8041_v36, %s7833_s15 }
 0x13f   : > { %v896_v37 = vpop.permute.xlu2 %895  ;;  %v680_v40 = vpop.permute.xlu0 %679 }
 0x140   : > { %v8210_v39 = vpop.permute.xlu1 %1661  ;;  %6738 = vmatmul.msk.bf16.vlgmr.msrb.gmra.mxu2 %vm545_vm1, %v8043_v38  ;;  %v685_v49 = vsel %vm545_vm1, %v680_v40, 0  ;;  %v901_v14 = vsel %vm545_vm1, %v896_v37, 0 }
 0x141   : > { %667 = vmatpush.bf16.xpose.msra.mxu2 %v658_v35  ;;  %11477 = vst [vmem:[#allocation18_spill] sm:$0xff] %v8210_v39  ;;  %v529_v39 = vld [vmem:[#allocation2 + $0xb8] sm:$0xff] }
 0x145   : > { %2029 = vrot.lane.b32.xlu2 %v8103_v33, %s7833_s15  ;;  %2053 = vrot.lane.b32.xlu0 %v8139_v12, %s7833_s15 }
 0x146   : > { %2103 = vrot.lane.b32.xlu1 %v8085_v18, %s7831_s13 }
 0x147   : > { %v8220_v41 = vpop.permute.xlu2 %1411  ;;  %v8222_v43 = vpop.permute.xlu0 %1911 }
 0x148   : > { %v788_v42 = vpop.permute.xlu1 %787  ;;  %11478 = vst [vmem:[#allocation19_spill] sm:$0xff] %v8222_v43  ;;  %v522_v43 = vld [vmem:[#allocation2 + $0x80] sm:$0xff] }
 0x149   : > { %v793_v7 = vsel %vm545_vm1, %v788_v42, 0 }
 0x14d   : > { %2125 = vrot.lane.b32.xlu2 %v8127_v1, %s7833_s15  ;;  %2101 = vrot.lane.b32.xlu0 %v8085_v18, %s7833_s15 }
 0x14e   : > { %2151 = vrot.lane.b32.xlu1 %v8149_v15, %s7831_s13 }
 0x14f   : > { %v8230_v44 = vpop.permute.xlu2 %1839  ;;  %v8232_v46 = vpop.permute.xlu0 %1909 }
 0x150   : > { %11479 = vst [vmem:[#allocation20_spill] sm:$0xff] %v8230_v44  ;;  %v599_v45 = vpop.permute.xlu1 %598  ;;  %6741 = vmatmul.msk.bf16.vlgmr.msra.gmra.mxu2 %vm545_vm1, %v8011_v6 }
 0x151   : > { %11480 = vst [vmem:[#allocation21_spill] sm:$0xff] %v8232_v46  ;;  %v604_v48 = vsel %vm545_vm1, %v599_v45, 0 }
 0x152   : > { %613 = vmatpush.bf16.xpose.msrb.mxu3 %v604_v48 }
 0x155   : > { %2149 = vrot.lane.b32.xlu2 %v8149_v15, %s7833_s15  ;;  %2587 = vrot.lane.b32.xlu0 %v8043_v38, %s7834_s16 }
 0x156   : > { %2612 = vrot.lane.b32.xlu1 %v8075_v4, %s7834_s16 }
 0x157   : > { %v815_v51 = vpop.permute.xlu2 %814  ;;  %v8245_v54 = vpop.permute.xlu0 %1586 }
 0x158   : > { %11481 = vst [vmem:[#allocation22_spill] sm:$0xff] %v8245_v54  ;;  %v707_v60 = vpop.permute.xlu1 %706  ;;  %v820_v11 = vsel %vm545_vm1, %v815_v51, 0  ;;  %v531_v54 = vld [vmem:[#allocation2 + $0xc8] sm:$0xff] }
 0x159   : > { %6739 = vmatmul.msk.bf16.vlgmr.msrb.gmra.mxu3 %vm545_vm1, %v8075_v4  ;;  %v712_v62 = vsel %vm545_vm1, %v707_v60, 0  ;;  %v507_v60 = vld [vmem:[#allocation2 + $0x8] sm:$0xff] }
 0x15a   : > { %694 = vmatpush.bf16.xpose.msra.mxu3 %v685_v49 }
 0x15d   : > { %2562 = vrot.lane.b32.xlu2 %v8009_v5, %s7834_s16  ;;  %2662 = vrot.lane.b32.xlu0 %v8011_v6, %s7834_s16 }
 0x15f   : > { %v923_v55 = vpop.permute.xlu2 %922  ;;  %v8253_v56 = vpop.permute.xlu0 %1686 }
 0x160   : > { %11482 = vst [vmem:[#allocation23_spill] sm:$0xff] %v8253_v56  ;;  %v928_v22 = vsel %vm545_vm1, %v923_v55, 0 }
 0x162   : > { %775 = vmatpush.bf16.xpose.msrb.mxu3 %v766_v53 }
 0x165   : > { %2637 = vrot.lane.b32.xlu0 %v8125_v61, %s7834_s16 }
 0x167   : > { %v8257_v58 = vpop.permute.xlu2 %1711  ;;  %v8259_v59 = vpop.permute.xlu0 %1511 }
 0x168   : > { %11483 = vst [vmem:[#allocation24_spill] sm:$0xff] %v8257_v58 }
 0x169   : > { %6742 = vmatmul.msk.bf16.vlgmr.msra.gmra.mxu3 %vm545_vm1, %v8053_v50 }
 0x16f   : > { %v626_v63 = vpop.permute.xlu2 %625  ;;  %v8265_v2 = vpop.permute.xlu0 %1837 }
 0x170   : > { %v631_v0 = vsel %vm545_vm1, %v626_v63, 0  ;;  %11484 = vst [vmem:[#allocation25_spill] sm:$0xff] %v8265_v2  ;;  %v521_v2 = vld [vmem:[#allocation2 + $0x78] sm:$0xff] }
 0x171   : > { %640 = vmatpush.bf16.xpose.msra.mxu1 %v631_v0 }
 0x177   : > { %v734_v3 = vpop.permute.xlu2 %733  ;;  %v1437_v10 = vpop.permute.xlu0 %1436 }
 0x178   : > { %v739_v8 = vsel %vm545_vm1, %v734_v3, 0  ;;  %6740 = vmatmul.msk.bf16.vlgmr.msra.gmra.mxu1 %vm545_vm1, %v8125_v61 }
 0x179   : > { %721 = vmatpush.bf16.xpose.msrb.mxu1 %v712_v62  ;;  %6745 = vmatmul.msk.bf16.vlgmr.msrb.gmra.mxu3 %vm545_vm1, %v8031_v26 }
 0x17a   : > { %748 = vmatpush.bf16.xpose.msrb.mxu2 %v739_v8 }
 0x17f   : > { %v8274_v13 = vpop.permute.xlu2 %1885  ;;  %v842_v19 = vpop.permute.xlu0 %841 }
 0x180   : > { %11485 = vst [vmem:[#allocation26_spill] sm:$0xff] %v8274_v13  ;;  %v847_v21 = vsel %vm545_vm1, %v842_v19, 0  ;;  %v508_v19 = vld [vmem:[#allocation2 + $0x10] sm:$0xff] }
 0x181   : > { %802 = vmatpush.bf16.xpose.msra.mxu1 %v793_v7  ;;  %6744 = vmatmul.msk.bf16.vlgmr.msrb.gmra.mxu2 %vm545_vm1, %v8115_v47 }
 0x182   : > { %829 = vmatpush.bf16.xpose.msra.mxu2 %v820_v11  ;;  %856 = vmatpush.bf16.xpose.msra.mxu3 %v847_v21 }
 0x187   : > { %v8281_v29 = vpop.permute.xlu2 %1959  ;;  %v950_v34 = vpop.permute.xlu0 %949 }
 0x188   : > { %11486 = vst [vmem:[#allocation27_spill] sm:$0xff] %v8281_v29  ;;  %6743 = vmatmul.msk.bf16.vlgmr.msrb.gmra.mxu1 %vm545_vm1, %v8083_v16  ;;  %v955_v31 = vsel %vm545_vm1, %v950_v34, 0 }
 0x189   : > { %6748 = vmatmul.msk.bf16.vlgmr.msra.gmra.mxu3 %vm545_vm1, %v8139_v12  ;;  %883 = vmatpush.bf16.xpose.msrb.mxu1 %v874_v32 }
 0x18a   : > { %910 = vmatpush.bf16.xpose.msrb.mxu2 %v901_v14  ;;  %937 = vmatpush.bf16.xpose.msrb.mxu3 %v928_v22 }
 0x18f   : > { %v8290_v35 = vpop.permute.xlu2 %1957  ;;  %v8292_v37 = vpop.permute.xlu0 %1636 }
 0x190   : > { %11487 = vst [vmem:[#allocation28_spill] sm:$0xff] %v8290_v35 }
 0x191   : > { %11488 = vst [vmem:[#allocation29_spill] sm:$0xff] %v8292_v37  ;;  %6747 = vmatmul.msk.bf16.vlgmr.msra.gmra.mxu2 %vm545_vm1, %v8103_v33 }
 0x192   : > { %1399 = vmatpush.bf16.msra.mxu3 %v8165_v20  ;;  %1374 = vmatpush.bf16.msra.mxu2 %v8176_v24  ;;  %v506_v24 = vld [vmem:[#allocation2] sm:$0xff] }
 0x197   : > { %v8298_v40 = vpop.permute.xlu2 %2031  ;;  %v8300_v42 = vpop.permute.xlu0 %1983 }
 0x198   : > { %11489 = vst [vmem:[#allocation30_spill] sm:$0xff] %v8298_v40  ;;  %6746 = vmatmul.msk.bf16.vlgmr.msra.gmra.mxu1 %vm545_vm1, %v8063_v57 }
 0x199   : > { %11490 = vst [vmem:[#allocation31_spill] sm:$0xff] %v8300_v42  ;;  %6751 = vmatmul.msk.bf16.vlgmr.msrb.gmra.mxu3 %vm545_vm1, %v8127_v1  ;;  %964 = vmatpush.bf16.xpose.msra.mxu1 %v955_v31  ;;  %v519_v42 = vld [vmem:[#allocation2 + $0x68] sm:$0xff] }
 0x19a   : > { %1474 = vmatpush.bf16.msrb.mxu3 %v8190_v28  ;;  %v8321_v28 = vpop.permute.xlu1 %1935 }
 0x19b   : > { %11495 = vst [vmem:[#allocation36_spill] sm:$0xff] %v8321_v28 }
 0x19f   : > { %v8307_v20 = vpop.permute.xlu2 %2029  ;;  %v8309_v45 = vpop.permute.xlu0 %1981 }
 0x1a0   : > { %11491 = vst [vmem:[#allocation32_spill] sm:$0xff] %v8307_v20 }
 0x1a1   : > { %11492 = vst [vmem:[#allocation33_spill] sm:$0xff] %v8309_v45  ;;  %6750 = vmatmul.msk.bf16.vlgmr.msrb.gmra.mxu2 %vm545_vm1, %v8085_v18 }
 0x1a2   : > { %1449 = vmatpush.bf16.msrb.mxu2 %v1437_v10  ;;  %v8334_v8 = vpop.permute.xlu1 %1611 }
 0x1a5   : > { %v561_v48 = vpop.f32.mrf.mxu1 }
 0x1a6   : > { %v8313_v49 = vadd.f32 %v561_v48, %v506_v24  ;;  %v509_v24 = vld [vmem:[#allocation2 + $0x18] sm:$0xff] }
 0x1a7   : > { %v8315_v51 = vpop.permute.xlu2 %2125  ;;  %v8317_v53 = vpop.permute.xlu0 %2127 }
 0x1a8   : > { %11493 = vst [vmem:[#allocation34_spill] sm:$0xff] %v8315_v51  ;;  %6749 = vmatmul.msk.bf16.vlgmr.msrb.gmra.mxu1 %vm545_vm1, %v8041_v36  ;;  %v972_v55 = vsel %vm971_vm2, %v8313_v49, -inf  ;;  %v515_v51 = vld [vmem:[#allocation2 + $0x48] sm:$0xff] }
 0x1a9   : > { %11494 = vst [vmem:[#allocation35_spill] sm:$0xff] %v8317_v53  ;;  %1424 = vmatpush.bf16.msrb.mxu1 %v8220_v41  ;;  %973 = vmax.xlane.f32.xlu1 %v972_v55 }
 0x1aa   : > { %v8341_v11 = vpop.permute.xlu1 %1536 }
 0x1ad   : > { %v563_v62 = vpop.f32.mrf.mxu1 }
 0x1ae   : > { %v8326_v63 = vadd.f32 %v563_v62, %v507_v60 }
 0x1af   : > { %v8328_v0 = vpop.permute.xlu2 %2149  ;;  %v8330_v3 = vpop.permute.xlu0 %2055 }
 0x1b0   : > { %11496 = vst [vmem:[#allocation37_spill] sm:$0xff] %v8328_v0  ;;  %v975_v7 = vsel %vm971_vm2, %v8326_v63, -inf }
 0x1b1   : > { %11497 = vst [vmem:[#allocation38_spill] sm:$0xff] %v8330_v3  ;;  %976 = vmax.xlane.f32.xlu2 %v975_v7  ;;  %v514_v7 = vld [vmem:[#allocation2 + $0x40] sm:$0xff] }
 0x1b2   : > { %v8347_v32 = vpop.permute.xlu1 %1863 }
 0x1b3   : > { %11500 = vst [vmem:[#allocation41_spill] sm:$0xff] %v8347_v32  ;;  %v533_v32 = vld [vmem:[#allocation2 + $0xd8] sm:$0xff] }
 0x1b7   : > { %v2563_v10 = vpop.permute.xlu2 %2562  ;;  %v8336_v41 = vpop.permute.xlu0 %2053 }
 0x1b8   : > { %11498 = vst [vmem:[#allocation39_spill] sm:$0xff] %v8336_v41  ;;  %6752 = vmatmul.msk.bf16.vlgmr.msra.gmra.mxu1 %vm545_vm1, %v8149_v15  ;;  %2575 = vmatpush.bf16.msrb.mxu0 %v2563_v10 }
 0x1b9   : > { %1499 = vmatpush.bf16.msra.mxu1 %v8174_v23 }
 0x1ba   : > { %v8357_v62 = vpop.permute.xlu1 %1861 }
 0x1bb   : > { %11502 = vst [vmem:[#allocation43_spill] sm:$0xff] %v8357_v62 }
 0x1bf   : > { %v8343_v14 = vpop.permute.xlu0 %2101 }
 0x1c0   : > { %11499 = vst [vmem:[#allocation40_spill] sm:$0xff] %v8343_v14 }
 0x1c3   : > { %v588_v21 = vpop.f32.mrf.mxu2 }
 0x1c4   : > { %v8345_v22 = vadd.f32 %v588_v21, %v508_v19 }
 0x1c6   : > { %v978_v34 = vsel %vm971_vm2, %v8345_v22, -inf }
 0x1c7   : > { %979 = vmax.xlane.f32.xlu0 %v978_v34  ;;  %v8351_v31 = vpop.permute.xlu0 %2587  ;;  %v510_v34 = vld [vmem:[#allocation2 + $0x20] sm:$0xff] }
 0x1c8   : > { %11501 = vst [vmem:[#allocation42_spill] sm:$0xff] %v8351_v31 }
 0x1cb   : > { %v590_v48 = vpop.f32.mrf.mxu2 }
 0x1cc   : > { %v8353_v55 = vadd.f32 %v590_v48, %v509_v24  ;;  %v8363_v24 = vpop.permute.xlu1 %1736 }
 0x1cd   : > { %11503 = vst [vmem:[#allocation44_spill] sm:$0xff] %v8363_v24 }
 0x1ce   : > { %v981_v23 = vsel %vm971_vm2, %v8353_v55, -inf }
 0x1cf   : > { %982 = vmax.xlane.f32.xlu2 %v981_v23  ;;  %v2663_v60 = vpop.permute.xlu0 %2662 }
 0x1d0   : > { %2675 = vmatpush.bf16.msra.mxu0 %v2663_v60 }
 0x1d3   : > { %v669_v10 = vpop.f32.mrf.mxu2 }
 0x1d4   : > { %v8359_v19 = vadd.f32 %v669_v10, %v514_v7  ;;  %v511_v10 = vld [vmem:[#allocation2 + $0x28] sm:$0xff]  ;;  %v8375_v31 = vpop.permute.xlu1 %1933 }
 0x1d5   : > { %11504 = vst [vmem:[#allocation45_spill] sm:$0xff] %v8375_v31 }
 0x1d6   : > { %v996_v21 = vsel %vm971_vm2, %v8359_v19, -inf }
 0x1d7   : > { %997 = vmax.xlane.f32.xlu0 %v996_v21 }
 0x1db   : > { %v671_v23 = vpop.f32.mrf.mxu2 }
 0x1dc   : > { %v615_v48 = vpop.f32.mrf.mxu3  ;;  %v8367_v14 = vadd.f32 %v671_v23, %v515_v51  ;;  %v516_v51 = vld [vmem:[#allocation2 + $0x50] sm:$0xff]  ;;  %v8383_v45 = vpop.permute.xlu1 %2007 }
 0x1dd   : > { %v8365_v0 = vadd.f32 %v615_v48, %v510_v34  ;;  %11505 = vst [vmem:[#allocation46_spill] sm:$0xff] %v8383_v45  ;;  %v518_v45 = vld [vmem:[#allocation2 + $0x60] sm:$0xff] }
 0x1de   : > { %v999_v7 = vsel %vm971_vm2, %v8367_v14, -inf }
 0x1df   : > { %v984_v60 = vsel %vm971_vm2, %v8365_v0, -inf  ;;  %1000 = vmax.xlane.f32.xlu1 %v999_v7 }
 0x1e0   : > { %985 = vmax.xlane.f32.xlu2 %v984_v60  ;;  %v512_v60 = vld [vmem:[#allocation2 + $0x30] sm:$0xff] }
 0x1e4   : > { %v617_v21 = vpop.f32.mrf.mxu3  ;;  %v8389_v53 = vpop.permute.xlu1 %2005 }
 0x1e5   : > { %v8373_v41 = vadd.f32 %v617_v21, %v511_v10  ;;  %11506 = vst [vmem:[#allocation47_spill] sm:$0xff] %v8389_v53  ;;  %v517_v53 = vld [vmem:[#allocation2 + $0x58] sm:$0xff] }
 0x1e7   : > { %v987_v34 = vsel %vm971_vm2, %v8373_v41, -inf }
 0x1e8   : > { %988 = vmax.xlane.f32.xlu0 %v987_v34  ;;  %v513_v34 = vld [vmem:[#allocation2 + $0x38] sm:$0xff] }
 0x1ec   : > { %v696_v48 = vpop.f32.mrf.mxu3  ;;  %v8395_v3 = vpop.permute.xlu1 %2079 }
 0x1ed   : > { %v8379_v23 = vadd.f32 %v696_v48, %v516_v51  ;;  %11507 = vst [vmem:[#allocation48_spill] sm:$0xff] %v8395_v3 }
 0x1ef   : > { %v1002_v20 = vsel %vm971_vm2, %v8379_v23, -inf }
 0x1f0   : > { %1003 = vmax.xlane.f32.xlu2 %v1002_v20  ;;  %v520_v20 = vld [vmem:[#allocation2 + $0x70] sm:$0xff] }
 0x1f4   : > { %v698_v35 = vpop.f32.mrf.mxu3 }
 0x1f5   : > { %v642_v7 = vpop.f32.mrf.mxu1 }
 0x1f6   : > { %v8385_v10 = vadd.f32 %v642_v7, %v512_v60 }
 0x1f8   : > { %v990_v21 = vsel %vm971_vm2, %v8385_v10, -inf }
 0x1f9   : > { %991 = vmax.xlane.f32.xlu1 %v990_v21 }
 0x1fc   : > { %v777_v13 = vpop.f32.mrf.mxu3 }
 0x1fd   : > { %v644_v51 = vpop.f32.mrf.mxu1 }
 0x1fe   : > { %v8391_v48 = vadd.f32 %v644_v51, %v513_v34  ;;  %v8401_v34 = vadd.f32 %v698_v35, %v517_v53 }
 0x200   : > { %v993_v46 = vsel %vm971_vm2, %v8391_v48, -inf }
 0x201   : > { %994 = vmax.xlane.f32.xlu2 %v993_v46  ;;  %v8405_v46 = vpop.permute.xlu1 %2077 }
 0x202   : > { %11508 = vst [vmem:[#allocation49_spill] sm:$0xff] %v8405_v46 }
 0x204   : > { %v750_v60 = vpop.f32.mrf.mxu2  ;;  %v779_v35 = vpop.f32.mrf.mxu3 }
 0x205   : > { %v8397_v7 = vadd.f32 %v750_v60, %v520_v20  ;;  %v723_v31 = vpop.f32.mrf.mxu1  ;;  %v1005_v60 = vsel %vm971_vm2, %v8401_v34, -inf }
 0x207   : > { %v1014_v21 = vsel %vm971_vm2, %v8397_v7, -inf }
 0x208   : > { %1015 = vmax.xlane.f32.xlu0 %v1014_v21  ;;  %v526_v21 = vld [vmem:[#allocation2 + $0xa0] sm:$0xff] }
 0x20c   : > { %v752_v51 = vpop.f32.mrf.mxu2 }
 0x20d   : > { %v8403_v40 = vadd.f32 %v752_v51, %v521_v2  ;;  %v725_v3 = vpop.f32.mrf.mxu1  ;;  %v523_v2 = vld [vmem:[#allocation2 + $0x88] sm:$0xff]  ;;  %v8415_v51 = vadd.f32 %v723_v31, %v518_v45  ;;  %v8429_v31 = vadd.f32 %v777_v13, %v522_v43 }
 0x20e   : > { %v8407_v62 = vadd.f32 %v725_v3, %v519_v42  ;;  %v8417_v3 = vadd.f32 %v779_v35, %v523_v2  ;;  %v858_v35 = vpop.f32.mrf.mxu3 }
 0x20f   : > { %v1017_v20 = vsel %vm971_vm2, %v8403_v40, -inf  ;;  %v1008_v29 = vsel %vm971_vm2, %v8415_v51, -inf }
 0x210   : > { %1018 = vmax.xlane.f32.xlu1 %v1017_v20  ;;  %1006 = vmax.xlane.f32.xlu0 %v1005_v60  ;;  %v1011_v53 = vsel %vm971_vm2, %v8407_v62, -inf  ;;  %v8425_v60 = vpop.permute.xlu1 %2103  ;;  %v1023_v45 = vsel %vm971_vm2, %v8417_v3, -inf }
 0x211   : > { %1012 = vmax.xlane.f32.xlu2 %v1011_v53  ;;  %11509 = vst [vmem:[#allocation50_spill] sm:$0xff] %v8425_v60  ;;  %v532_v60 = vld [vmem:[#allocation2 + $0xd0] sm:$0xff] }
 0x214   : > { %v831_v42 = vpop.f32.mrf.mxu2 }
 0x215   : > { %v8419_v46 = vadd.f32 %v831_v42, %v526_v21  ;;  %v804_v30 = vpop.f32.mrf.mxu1  ;;  %v1020_v21 = vsel %vm971_vm2, %v8429_v31, -inf  ;;  %v527_v42 = vld [vmem:[#allocation2 + $0xa8] sm:$0xff] }
 0x217   : > { %v1032_v20 = vsel %vm971_vm2, %v8419_v46, -inf }
 0x218   : > { %1009 = vmax.xlane.f32.xlu1 %v1008_v29  ;;  %1033 = vmax.xlane.f32.xlu0 %v1032_v20  ;;  %v8433_v25 = vpop.permute.xlu1 %2151  ;;  %v860_v20 = vpop.f32.mrf.mxu3 }
 0x219   : > { %1024 = vmax.xlane.f32.xlu2 %v1023_v45  ;;  %11510 = vst [vmem:[#allocation51_spill] sm:$0xff] %v8433_v25  ;;  %v8443_v25 = vadd.f32 %v804_v30, %v524_v52  ;;  %v530_v30 = vld [vmem:[#allocation2 + $0xc0] sm:$0xff] }
 0x21b   : > { %v1026_v9 = vsel %vm971_vm2, %v8443_v25, -inf }
 0x21c   : > { %v833_v53 = vpop.f32.mrf.mxu2 }
 0x21d   : > { %v806_v2 = vpop.f32.mrf.mxu1  ;;  %v8435_v28 = vadd.f32 %v833_v53, %v527_v42 }
 0x21f   : > { %v1035_v43 = vsel %vm971_vm2, %v8435_v28, -inf }
 0x220   : > { %1021 = vmax.xlane.f32.xlu1 %v1020_v21  ;;  %v525_v21 = vld [vmem:[#allocation2 + $0x98] sm:$0xff]  ;;  %v8445_v53 = vpop.permute.xlu1 %2612  ;;  %v939_v27 = vpop.f32.mrf.mxu3 }
 0x221   : > { %11511 = vst [vmem:[#allocation52_spill] sm:$0xff] %v8445_v53  ;;  %v8447_v42 = vadd.f32 %v806_v2, %v525_v21 }
 0x223   : > { %v1029_v52 = vsel %vm971_vm2, %v8447_v42, -inf }
 0x224   : > { %v912_v29 = vpop.f32.mrf.mxu2 }
 0x225   : > { %v8437_v44 = vadd.f32 %v912_v29, %v532_v60  ;;  %v885_v45 = vpop.f32.mrf.mxu1 }
 0x227   : > { %v1050_v13 = vsel %vm971_vm2, %v8437_v44, -inf }
 0x228   : > { %1036 = vmax.xlane.f32.xlu1 %v1035_v43  ;;  %1051 = vmax.xlane.f32.xlu2 %v1050_v13  ;;  %v528_v13 = vld [vmem:[#allocation2 + $0xb0] sm:$0xff]  ;;  %v974_v21 = vpop.xlane.xlu1 %973 }
 0x229   : > { %v8457_v2 = vadd.f32 %v858_v35, %v528_v13  ;;  %v1068_v58 = vsub.f32 %v8313_v49, %v974_v21  ;;  %v941_v35 = vpop.f32.mrf.mxu3  ;;  %v977_v49 = vpop.xlane.xlu2 %976 }
 0x22c   : > { %v914_v60 = vpop.f32.mrf.mxu2 }
 0x22d   : > { %v8449_v29 = vadd.f32 %v914_v60, %v533_v32  ;;  %v887_v24 = vpop.f32.mrf.mxu1  ;;  %v8459_v32 = vadd.f32 %v860_v20, %v529_v39  ;;  %v8461_v60 = vadd.f32 %v885_v45, %v530_v30  ;;  %v535_v39 = vld [vmem:[#allocation2 + $0xe8] sm:$0xff]  ;;  %v1100_v45 = vmul.f32 1.442695, %v1068_v58  ;;  %v537_v30 = vld [vmem:[#allocation2 + $0xf8] sm:$0xff]  ;;  %v8482_v58 = vpop.permute.xlu0 %2637 }
 0x22e   : > { %v8472_v13 = vadd.f32 %v941_v35, %v535_v39  ;;  %11512 = vst [vmem:[#allocation53_spill] sm:$0xff] %v8482_v58  ;;  %v1069_v35 = vsub.f32 %v8326_v63, %v977_v49 }
 0x22f   : > { %v1053_v43 = vsel %vm971_vm2, %v8449_v29, -inf  ;;  %v1041_v56 = vsel %vm971_vm2, %v8459_v32, -inf  ;;  %7216 = vpow2.f32 %v1100_v45 }
 0x230   : > { %1027 = vmax.xlane.f32.xlu1 %v1026_v9  ;;  %1054 = vmax.xlane.f32.xlu0 %v1053_v43  ;;  %v1038_v9 = vsel %vm971_vm2, %v8457_v2, -inf  ;;  %v534_v43 = vld [vmem:[#allocation2 + $0xe0] sm:$0xff] }
 0x231   : > { %1030 = vmax.xlane.f32.xlu2 %v1029_v52  ;;  %v1044_v52 = vsel %vm971_vm2, %v8461_v60, -inf  ;;  %v8470_v20 = vadd.f32 %v939_v27, %v534_v43 }
 0x233   : > { %v1056_v61 = vsel %vm971_vm2, %v8470_v20, -inf }
 0x235   : > { %v966_v53 = vpop.f32.mrf.mxu1 }
 0x238   : > { %1042 = vmax.xlane.f32.xlu0 %v1041_v56  ;;  %1039 = vmax.xlane.f32.xlu1 %v1038_v9  ;;  %v1059_v56 = vsel %vm971_vm2, %v8472_v13, -inf  ;;  %v8484_v9 = vadd.f32 %v887_v24, %v531_v54  ;;  %v1102_v54 = vmul.f32 1.442695, %v1069_v35 }
 0x239   : > { %1045 = vmax.xlane.f32.xlu2 %v1044_v52  ;;  %v8486_v52 = vpop.eup %7216 }
 0x23d   : > { %v968_v21 = vpop.f32.mrf.mxu1 }
 0x23e   : > { %v8474_v37 = vadd.f32 %v968_v21, %v537_v30  ;;  %v536_v30 = vld [vmem:[#allocation2 + $0xf0] sm:$0xff]  ;;  %v1164_v21 = vsel %vm971_vm2, %v8486_v52, 0.0 }
 0x23f   : > { %v8494_v24 = vadd.f32 %v966_v53, %v536_v30 }
 0x240   : > { %1057 = vmax.xlane.f32.xlu0 %v1056_v61  ;;  %v1065_v27 = vsel %vm971_vm2, %v8474_v37, -inf  ;;  %v1047_v61 = vsel %vm971_vm2, %v8484_v9, -inf }
 0x241   : > { %1060 = vmax.xlane.f32.xlu2 %v1059_v56  ;;  %1066 = vmax.xlane.f32.xlu1 %v1065_v27  ;;  %v980_v56 = vpop.xlane.xlu0 %979  ;;  %v1062_v63 = vsel %vm971_vm2, %v8494_v24, -inf }
 0x242   : > { %v983_v43 = vpop.xlane.xlu2 %982 }
 0x243   : > { %v1071_v39 = vsub.f32 %v8353_v55, %v983_v43  ;;  %v1070_v55 = vsub.f32 %v8345_v22, %v980_v56 }
 0x245   : > { %v1106_v45 = vmul.f32 1.442695, %v1071_v39  ;;  %v1104_v43 = vmul.f32 1.442695, %v1070_v55 }
 0x247   : > { %7218 = vpow2.f32 %v1106_v45 }
 0x248   : > { %1048 = vmax.xlane.f32.xlu0 %v1047_v61  ;;  %7220 = vpow2.f32 %v1102_v54 }
 0x249   : > { %1165 = vadd.xlane.f32.xlu2 %v1164_v21  ;;  %7222 = vpow2.f32 %v1104_v43 }
 0x24a   : > { %v998_v61 = vpop.xlane.xlu0 %997 }
 0x24d   : > { %v8497_v27 = vpop.eup %7218 }
 0x24e   : > { %v1173_v49 = vsel %vm971_vm2, %v8497_v27, 0.0  ;;  %v8503_v45 = vpop.eup %7220 }
 0x24f   : > { %1174 = vadd.xlane.f32.xlu1 %v1173_v49  ;;  %v1167_v22 = vsel %vm971_vm2, %v8503_v45, 0.0  ;;  %v8508_v21 = vpop.eup %7222 }
 0x250   : > { %1063 = vmax.xlane.f32.xlu0 %v1062_v63  ;;  %v1170_v56 = vsel %vm971_vm2, %v8508_v21, 0.0 }
 0x252   : > { %v1001_v30 = vpop.xlane.xlu1 %1000 }
 0x253   : > { %v986_v39 = vpop.xlane.xlu2 %985  ;;  %v1077_v54 = vsub.f32 %v8367_v14, %v1001_v30 }
 0x254   : > { %v1072_v53 = vsub.f32 %v8365_v0, %v986_v39 }
 0x255   : > { %v1118_v0 = vmul.f32 1.442695, %v1077_v54 }
 0x256   : > { %v1108_v35 = vmul.f32 1.442695, %v1072_v53 }
 0x258   : > { %1168 = vadd.xlane.f32.xlu0 %v1167_v22  ;;  %7224 = vpow2.f32 %v1108_v35 }
 0x259   : > { %7226 = vpow2.f32 %v1118_v0 }
 0x25b   : > { %v989_v55 = vpop.xlane.xlu0 %988 }
 0x25c   : > { %v1073_v49 = vsub.f32 %v8373_v41, %v989_v55  ;;  %v1076_v55 = vsub.f32 %v8359_v19, %v998_v61 }
 0x25e   : > { %v8515_v63 = vpop.eup %7224  ;;  %v1110_v14 = vmul.f32 1.442695, %v1073_v49 }
 0x25f   : > { %v1176_v43 = vsel %vm971_vm2, %v8515_v63, 0.0  ;;  %v8522_v39 = vpop.eup %7226 }
 0x260   : > { %1171 = vadd.xlane.f32.xlu0 %v1170_v56  ;;  %7228 = vpow2.f32 %v1110_v14  ;;  %v1191_v35 = vsel %vm971_vm2, %v8522_v39, 0.0 }
 0x261   : > { %2687 = vrot.lane.b32.xlu2 %v8053_v50, %s7834_s16 }
 0x263   : > { %v1004_v41 = vpop.xlane.xlu2 %1003 }
 0x264   : > { %v1078_v56 = vsub.f32 %v8379_v23, %v1004_v41 }
 0x266   : > { %v8527_v54 = vpop.eup %7228  ;;  %v1120_v49 = vmul.f32 1.442695, %v1078_v56 }
 0x267   : > { %v1179_v0 = vsel %vm971_vm2, %v8527_v54, 0.0 }
 0x268   : > { %1177 = vadd.xlane.f32.xlu0 %v1176_v43  ;;  %2712 = vrot.lane.b32.xlu1 %v8083_v16, %s7834_s16 }
 0x26c   : > { %v992_v53 = vpop.xlane.xlu1 %991 }
 0x26d   : > { %v1074_v22 = vsub.f32 %v8385_v10, %v992_v53  ;;  %v1116_v53 = vmul.f32 1.442695, %v1076_v55 }
 0x26f   : > { %v1112_v30 = vmul.f32 1.442695, %v1074_v22 }
 0x270   : > { %1192 = vadd.xlane.f32.xlu0 %v1191_v35 }
 0x271   : > { %7230 = vpow2.f32 %v1112_v30 }
 0x272   : > { %7232 = vpow2.f32 %v1120_v49 }
 0x273   : > { %7234 = vpow2.f32 %v1116_v53 }
 0x274   : > { %v995_v43 = vpop.xlane.xlu2 %994 }
 0x275   : > { %v1075_v22 = vsub.f32 %v8391_v48, %v995_v43 }
 0x277   : > { %v8533_v14 = vpop.eup %7230  ;;  %v1114_v23 = vmul.f32 1.442695, %v1075_v22 }
 0x278   : > { %1180 = vadd.xlane.f32.xlu0 %v1179_v0  ;;  %v1182_v35 = vsel %vm971_vm2, %v8533_v14, 0.0  ;;  %v8539_v19 = vpop.eup %7232 }
 0x279   : > { %v8542_v58 = vpop.eup %7234  ;;  %7236 = vpow2.f32 %v1114_v23  ;;  %v1194_v49 = vsel %vm971_vm2, %v8539_v19, 0.0 }
 0x27b   : > { %v1016_v10 = vpop.xlane.xlu0 %1015 }
 0x27c   : > { %v1082_v30 = vsub.f32 %v8397_v7, %v1016_v10  ;;  %v1188_v7 = vsel %vm971_vm2, %v8542_v58, 0.0 }
 0x27e   : > { %v1128_v55 = vmul.f32 1.442695, %v1082_v30 }
 0x27f   : > { %v8549_v10 = vpop.eup %7236 }
 0x280   : > { %1183 = vadd.xlane.f32.xlu0 %v1182_v35 }
 0x283   : > { %v1019_v41 = vpop.xlane.xlu1 %1018  ;;  %v1007_v56 = vpop.xlane.xlu0 %1006 }
 0x284   : > { %v1083_v61 = vsub.f32 %v8403_v40, %v1019_v41  ;;  %v1013_v0 = vpop.xlane.xlu2 %1012  ;;  %v1079_v43 = vsub.f32 %v8401_v34, %v1007_v56  ;;  %v1185_v34 = vsel %vm971_vm2, %v8549_v10, 0.0 }
 0x286   : > { %v1130_v48 = vmul.f32 1.442695, %v1083_v61  ;;  %v1122_v53 = vmul.f32 1.442695, %v1079_v43 }
 0x288   : > { %7238 = vpow2.f32 %v1130_v48  ;;  %1195 = vadd.xlane.f32.xlu0 %v1194_v49 }
 0x289   : > { %7240 = vpow2.f32 %v1128_v55 }
 0x28a   : > { %1189 = vadd.xlane.f32.xlu2 %v1188_v7  ;;  %7242 = vpow2.f32 %v1122_v53 }
 0x28b   : > { %v1010_v40 = vpop.xlane.xlu1 %1009  ;;  %v1034_v49 = vpop.xlane.xlu0 %1033 }
 0x28c   : > { %v1025_v22 = vpop.xlane.xlu2 %1024  ;;  %v1080_v30 = vsub.f32 %v8415_v51, %v1010_v40  ;;  %v1088_v53 = vsub.f32 %v8419_v46, %v1034_v49  ;;  %v1081_v46 = vsub.f32 %v8407_v62, %v1013_v0 }
 0x28d   : > { %v1085_v23 = vsub.f32 %v8417_v3, %v1025_v22 }
 0x28e   : > { %v8551_v35 = vpop.eup %7238  ;;  %v1124_v55 = vmul.f32 1.442695, %v1080_v30  ;;  %v1126_v49 = vmul.f32 1.442695, %v1081_v46 }
 0x28f   : > { %v1209_v41 = vsel %vm971_vm2, %v8551_v35, 0.0  ;;  %v8559_v61 = vpop.eup %7240  ;;  %v1134_v56 = vmul.f32 1.442695, %v1085_v23 }
 0x290   : > { %1186 = vadd.xlane.f32.xlu0 %v1185_v34  ;;  %v1206_v3 = vsel %vm971_vm2, %v8559_v61, 0.0  ;;  %v8564_v43 = vpop.eup %7242  ;;  %v1140_v34 = vmul.f32 1.442695, %v1088_v53 }
 0x291   : > { %7244 = vpow2.f32 %v1134_v56  ;;  %v1197_v22 = vsel %vm971_vm2, %v8564_v43, 0.0 }
 0x292   : > { %1210 = vadd.xlane.f32.xlu2 %v1209_v41  ;;  %1207 = vadd.xlane.f32.xlu1 %v1206_v3  ;;  %7246 = vpow2.f32 %v1124_v55 }
 0x293   : > { %v1022_v48 = vpop.xlane.xlu1 %1021 }
 0x294   : > { %v1084_v51 = vsub.f32 %v8429_v31, %v1022_v48 }
 0x296   : > { %v1132_v7 = vmul.f32 1.442695, %v1084_v51 }
 0x297   : > { %v8566_v40 = vpop.eup %7244 }
 0x298   : > { %7248 = vpow2.f32 %v1132_v7  ;;  %v1215_v23 = vsel %vm971_vm2, %v8566_v40, 0.0  ;;  %v8574_v56 = vpop.eup %7246 }
 0x299   : > { %7250 = vpow2.f32 %v1140_v34  ;;  %v1200_v51 = vsel %vm971_vm2, %v8574_v56, 0.0 }
 0x29a   : > { %1198 = vadd.xlane.f32.xlu2 %v1197_v22  ;;  %1216 = vadd.xlane.f32.xlu1 %v1215_v23 }
 0x29b   : > { %v1037_v30 = vpop.xlane.xlu1 %1036  ;;  %v1052_v31 = vpop.xlane.xlu2 %1051 }
 0x29c   : > { %v1094_v41 = vsub.f32 %v8437_v44, %v1052_v31  ;;  %v1089_v34 = vsub.f32 %v8435_v28, %v1037_v30 }
 0x29e   : > { %v8576_v55 = vpop.eup %7248  ;;  %v1152_v48 = vmul.f32 1.442695, %v1094_v41 }
 0x29f   : > { %v1212_v3 = vsel %vm971_vm2, %v8576_v55, 0.0  ;;  %v8585_v31 = vpop.eup %7250 }
 0x2a0   : > { %1213 = vadd.xlane.f32.xlu0 %v1212_v3  ;;  %7252 = vpow2.f32 %v1152_v48 }
 0x2a1   : > { %7254 = vpow2.f32 %v1126_v49 }
 0x2a2   : > { %1201 = vadd.xlane.f32.xlu2 %v1200_v51 }
 0x2a3   : > { %v1028_v44 = vpop.xlane.xlu1 %1027  ;;  %v1055_v7 = vpop.xlane.xlu0 %1054 }
 0x2a4   : > { %v1086_v53 = vsub.f32 %v8443_v25, %v1028_v44  ;;  %v1031_v22 = vpop.xlane.xlu2 %1030  ;;  %v1224_v25 = vsel %vm971_vm2, %v8585_v31, 0.0 }
 0x2a5   : > { %v1087_v23 = vsub.f32 %v8447_v42, %v1031_v22  ;;  %v1142_v42 = vmul.f32 1.442695, %v1089_v34 }
 0x2a6   : > { %v1136_v62 = vmul.f32 1.442695, %v1086_v53  ;;  %v8587_v0 = vpop.eup %7252 }
 0x2a7   : > { %v1138_v41 = vmul.f32 1.442695, %v1087_v23  ;;  %v1242_v48 = vsel %vm971_vm2, %v8587_v0, 0.0  ;;  %v8595_v44 = vpop.eup %7254 }
 0x2a8   : > { %7256 = vpow2.f32 %v1136_v62  ;;  %1243 = vadd.xlane.f32.xlu1 %v1242_v48  ;;  %v1095_v62 = vsub.f32 %v8449_v29, %v1055_v7  ;;  %v1203_v34 = vsel %vm971_vm2, %v8595_v44, 0.0 }
 0x2a9   : > { %7258 = vpow2.f32 %v1138_v41 }
 0x2aa   : > { %1225 = vadd.xlane.f32.xlu2 %v1224_v25  ;;  %7260 = vpow2.f32 %v1142_v42  ;;  %v1154_v48 = vmul.f32 1.442695, %v1095_v62 }
 0x2ab   : > { %v1040_v46 = vpop.xlane.xlu1 %1039  ;;  %v1043_v3 = vpop.xlane.xlu0 %1042 }
 0x2ac   : > { %v1090_v51 = vsub.f32 %v8457_v2, %v1040_v46  ;;  %v1046_v28 = vpop.xlane.xlu2 %1045  ;;  %v1091_v53 = vsub.f32 %v8459_v32, %v1043_v3 }
 0x2ae   : > { %v8597_v49 = vpop.eup %7256  ;;  %v1144_v30 = vmul.f32 1.442695, %v1090_v51  ;;  %v1146_v41 = vmul.f32 1.442695, %v1091_v53  ;;  %v1092_v51 = vsub.f32 %v8461_v60, %v1046_v28 }
 0x2af   : > { %v8600_v22 = vpop.eup %7258  ;;  %v1218_v23 = vsel %vm971_vm2, %v8597_v49, 0.0 }
 0x2b0   : > { %7262 = vpow2.f32 %v1144_v30  ;;  %1219 = vadd.xlane.f32.xlu0 %v1218_v23  ;;  %v1221_v2 = vsel %vm971_vm2, %v8600_v22, 0.0  ;;  %v8609_v25 = vpop.eup %7260 }
 0x2b1   : > { %1222 = vadd.xlane.f32.xlu1 %v1221_v2  ;;  %7264 = vpow2.f32 %v1146_v41  ;;  %v1227_v23 = vsel %vm971_vm2, %v8609_v25, 0.0 }
 0x2b2   : > { %1204 = vadd.xlane.f32.xlu2 %v1203_v34  ;;  %7266 = vpow2.f32 %v1154_v48 }
 0x2b3   : > { %v1058_v32 = vpop.xlane.xlu0 %1057 }
 0x2b4   : > { %v1067_v42 = vpop.xlane.xlu1 %1066  ;;  %v1096_v29 = vsub.f32 %v8470_v20, %v1058_v32  ;;  %v1061_v30 = vpop.xlane.xlu2 %1060  ;;  %v1148_v20 = vmul.f32 1.442695, %v1092_v51 }
 0x2b5   : > { %v1099_v7 = vsub.f32 %v8474_v37, %v1067_v42  ;;  %v1097_v32 = vsub.f32 %v8472_v13, %v1061_v30 }
 0x2b6   : > { %v8611_v46 = vpop.eup %7262  ;;  %v1156_v62 = vmul.f32 1.442695, %v1096_v29 }
 0x2b7   : > { %v1230_v3 = vsel %vm971_vm2, %v8611_v46, 0.0  ;;  %v1162_v53 = vmul.f32 1.442695, %v1099_v7  ;;  %v8620_v34 = vpop.eup %7264  ;;  %v1158_v51 = vmul.f32 1.442695, %v1097_v32 }
 0x2b8   : > { %1231 = vadd.xlane.f32.xlu0 %v1230_v3  ;;  %v8622_v37 = vpop.eup %7266  ;;  %v1233_v60 = vsel %vm971_vm2, %v8620_v34, 0.0 }
 0x2b9   : > { %7268 = vpow2.f32 %v1162_v53  ;;  %v1245_v48 = vsel %vm971_vm2, %v8622_v37, 0.0 }
 0x2ba   : > { %1228 = vadd.xlane.f32.xlu2 %v1227_v23  ;;  %7270 = vpow2.f32 %v1156_v62 }
 0x2bb   : > { %v1049_v2 = vpop.xlane.xlu0 %1048  ;;  %7272 = vpow2.f32 %v1148_v20 }
 0x2bc   : > { %v1093_v41 = vsub.f32 %v8484_v9, %v1049_v2  ;;  %v1166_v29 = vpop.xlane.xlu2 %1165 }
 0x2bd   : > { %7274 = vrcp.f32 %v1166_v29 }
 0x2be   : > { %v1150_v7 = vmul.f32 1.442695, %v1093_v41 }
 0x2bf   : > { %v8627_v28 = vpop.eup %7268 }
 0x2c0   : > { %1234 = vadd.xlane.f32.xlu0 %v1233_v60  ;;  %v1257_v42 = vsel %vm971_vm2, %v8627_v28, 0.0  ;;  %v8634_v3 = vpop.eup %7270  ;;  %7276 = vpow2.f32 %v1150_v7 }
 0x2c1   : > { %1258 = vadd.xlane.f32.xlu1 %v1257_v42  ;;  %v8636_v53 = vpop.eup %7272  ;;  %v1248_v13 = vsel %vm971_vm2, %v8634_v3, 0.0  ;;  %7278 = vpow2.f32 %v1158_v51 }
 0x2c2   : > { %1246 = vadd.xlane.f32.xlu2 %v1245_v48  ;;  %v1236_v23 = vsel %vm971_vm2, %v8636_v53, 0.0  ;;  %v1175_v2 = vpop.xlane.xlu1 %1174 }
 0x2c3   : > { %v1064_v9 = vpop.xlane.xlu0 %1063  ;;  %v7275_v62 = vpop.eup %7274 }
 0x2c4   : > { %v1098_v30 = vsub.f32 %v8494_v24, %v1064_v9  ;;  %v1292_v48 = vmul.f32 %v7275_v62, %v8486_v52 }
 0x2c6   : > { %v8643_v41 = vpop.eup %7276  ;;  %v1160_v60 = vmul.f32 1.442695, %v1098_v30  ;;  %v1324_v7 = vpack.c.bf16 %v1292_v48, %v1292_v48 }
 0x2c7   : > { %v8645_v32 = vpop.eup %7278  ;;  %v1239_v24 = vsel %vm971_vm2, %v8643_v41, 0.0 }
 0x2c8   : > { %1249 = vadd.xlane.f32.xlu0 %v1248_v13  ;;  %v1251_v42 = vsel %vm971_vm2, %v8645_v32, 0.0  ;;  %v1358_v52 = vunpack.c.l.b16 %v1324_v7 }
 0x2ca   : > { %1237 = vadd.xlane.f32.xlu2 %v1236_v23 }
 0x2cb   : > { %v1169_v20 = vpop.xlane.xlu0 %1168 }
 0x2cc   : > { %7280 = vrcp.f32 %v1169_v20 }
 0x2cd   : > { %7282 = vrcp.f32 %v1175_v2 }
 0x2ce   : > { %7284 = vpow2.f32 %v1160_v60 }
 0x2d0   : > { %1240 = vadd.xlane.f32.xlu0 %v1239_v24 }
 0x2d2   : > { %v7281_v29 = vpop.eup %7280  ;;  %1252 = vadd.xlane.f32.xlu2 %v1251_v42 }
 0x2d3   : > { %v1293_v9 = vmul.f32 %v7281_v29, %v8503_v45  ;;  %v1172_v51 = vpop.xlane.xlu0 %1171  ;;  %v7283_v13 = vpop.eup %7282 }
 0x2d4   : > { %7286 = vrcp.f32 %v1172_v51  ;;  %v8653_v23 = vpop.eup %7284  ;;  %v1295_v62 = vmul.f32 %v7283_v13, %v8497_v27 }
 0x2d5   : > { %v1325_v30 = vpack.c.bf16 %v1293_v9, %v1293_v9  ;;  %v1254_v60 = vsel %vm971_vm2, %v8653_v23, 0.0 }
 0x2d6   : > { %v1327_v42 = vpack.c.bf16 %v1295_v62, %v1295_v62 }
 0x2d7   : > { %v1359_v2 = vunpack.c.l.b16 %v1325_v30 }
 0x2d8   : > { %v1384_v27 = vunpack.c.l.b16 %v1327_v42 }
 0x2d9   : > { %v1360_v20 = vpack.c.b16 %v1359_v2, %v1358_v52  ;;  %v8681_v2 = vpop.permute.xlu2 %2687 }
 0x2da   : > { %v7287_v24 = vpop.eup %7286  ;;  %1255 = vadd.xlane.f32.xlu2 %v1254_v60  ;;  %2787 = vrot.lane.b32.xlu1 %v8063_v57, %s7834_s16 }
 0x2db   : > { %v1294_v48 = vmul.f32 %v7287_v24, %v8508_v21  ;;  %6753 = vmatmul.msk.bf16.vlgmr.msra.gmra.mxu2 %vm971_vm2, %v1360_v20  ;;  %v1178_v45 = vpop.xlane.xlu0 %1177 }
 0x2dc   : > { %1524 = vmatpush.bf16.msra.mxu2 %v8259_v59  ;;  %7288 = vrcp.f32 %v1178_v45  ;;  %v8691_v45 = vpop.permute.xlu1 %2712 }
 0x2dd   : > { %v1326_v29 = vpack.c.bf16 %v1294_v48, %v1294_v48 }
 0x2df   : > { %v1383_v7 = vunpack.c.l.b16 %v1326_v29 }
 0x2e1   : > { %v1385_v9 = vpack.c.b16 %v1384_v27, %v1383_v7 }
 0x2e2   : > { %2912 = vrot.lane.b32.xlu1 %v8127_v1, %s7834_s16  ;;  %v7289_v21 = vpop.eup %7288 }
 0x2e3   : > { %6754 = vmatmul.msk.bf16.vlgmr.msra.gmra.mxu3 %vm971_vm2, %v1385_v9  ;;  %v1193_v51 = vpop.xlane.xlu0 %1192  ;;  %v1296_v13 = vmul.f32 %v7289_v21, %v8515_v63 }
 0x2e4   : > { %1549 = vmatpush.bf16.msra.mxu3 %v8341_v11  ;;  %2762 = vrot.lane.b32.xlu0 %v8031_v26, %s7834_s16 }
 0x2e5   : > { %v1328_v11 = vpack.c.bf16 %v1296_v13, %v1296_v13 }
 0x2e7   : > { %v1408_v60 = vunpack.c.l.b16 %v1328_v11 }
 0x2ea   : > { %2990 = vrot.lane.b32.xlu1 %v8009_v5, %s7835_s17 }
 0x2eb   : > { %v1181_v59 = vpop.xlane.xlu0 %1180 }
 0x2ec   : > { %7290 = vrcp.f32 %v1181_v59  ;;  %2737 = vrot.lane.b32.xlu0 %v8115_v47, %s7834_s16 }
 0x2ed   : > { %7292 = vrcp.f32 %v1193_v51 }
 0x2f2   : > { %v7291_v30 = vpop.eup %7290  ;;  %2812 = vrot.lane.b32.xlu2 %v8103_v33, %s7834_s16  ;;  %3040 = vrot.lane.b32.xlu1 %v8075_v4, %s7836_s18 }
 0x2f3   : > { %v1297_v52 = vmul.f32 %v7291_v30, %v8527_v54  ;;  %v1184_v62 = vpop.xlane.xlu0 %1183  ;;  %v7293_v48 = vpop.eup %7292 }
 0x2f4   : > { %2862 = vrot.lane.b32.xlu0 %v8041_v36, %s7834_s16  ;;  %7294 = vrcp.f32 %v1184_v62  ;;  %v1301_v29 = vmul.f32 %v7293_v48, %v8522_v39 }
 0x2f5   : > { %v1329_v20 = vpack.c.bf16 %v1297_v52, %v1297_v52 }
 0x2f6   : > { %v1333_v9 = vpack.c.bf16 %v1301_v29, %v1301_v29 }
 0x2f7   : > { %v1409_v63 = vunpack.c.l.b16 %v1329_v20 }
 0x2f8   : > { %v1459_v30 = vunpack.c.l.b16 %v1333_v9 }
 0x2f9   : > { %v1410_v24 = vpack.c.b16 %v1409_v63, %v1408_v60 }
 0x2fa   : > { %2992 = vrot.lane.b32.xlu2 %v8009_v5, %s7836_s18  ;;  %3016 = vrot.lane.b32.xlu1 %v8043_v38, %s7836_s18  ;;  %v7295_v27 = vpop.eup %7294 }
 0x2fb   : > { %6755 = vmatmul.msk.bf16.vlgmr.msrb.gmra.mxu1 %vm971_vm2, %v1410_v24  ;;  %v1196_v54 = vpop.xlane.xlu0 %1195  ;;  %v1298_v39 = vmul.f32 %v7295_v27, %v8533_v14 }
 0x2fc   : > { %1574 = vmatpush.bf16.msrb.mxu1 %v8157_v17  ;;  %2837 = vrot.lane.b32.xlu0 %v8139_v12, %s7834_s16 }
 0x2fd   : > { %v1190_v42 = vpop.xlane.xlu2 %1189  ;;  %v1330_v62 = vpack.c.bf16 %v1298_v39, %v1298_v39 }
 0x2fe   : > { %7296 = vrcp.f32 %v1190_v42 }
 0x2ff   : > { %v1433_v42 = vunpack.c.l.b16 %v1330_v62 }
 0x302   : > { %3038 = vrot.lane.b32.xlu2 %v8075_v4, %s7835_s17  ;;  %3088 = vrot.lane.b32.xlu1 %v8011_v6, %s7836_s18 }
 0x303   : > { %v1187_v7 = vpop.xlane.xlu0 %1186 }
 0x304   : > { %v7297_v17 = vpop.eup %7296  ;;  %7298 = vrcp.f32 %v1187_v7  ;;  %2887 = vrot.lane.b32.xlu0 %v8085_v18, %s7834_s16 }
 0x305   : > { %v1300_v51 = vmul.f32 %v7297_v17, %v8542_v58  ;;  %v1211_v59 = vpop.xlane.xlu2 %1210  ;;  %7300 = vrcp.f32 %v1196_v54  ;;  %v1208_v13 = vpop.xlane.xlu1 %1207 }
 0x306   : > { %7302 = vrcp.f32 %v1211_v59 }
 0x307   : > { %v1332_v21 = vpack.c.bf16 %v1300_v51, %v1300_v51  ;;  %7304 = vrcp.f32 %v1208_v13  ;;  %v11513_v51 = vld [vmem:[#allocation22_spill] sm:$0xff] }
 0x309   : > { %v1458_v11 = vunpack.c.l.b16 %v1332_v21 }
 0x30a   : > { %v7299_v52 = vpop.eup %7298  ;;  %3112 = vrot.lane.b32.xlu2 %v8053_v50, %s7836_s18  ;;  %2937 = vrot.lane.b32.xlu1 %v8149_v15, %s7834_s16 }
 0x30b   : > { %v1460_v20 = vpack.c.b16 %v1459_v30, %v1458_v11  ;;  %v1299_v60 = vmul.f32 %v7299_v52, %v8549_v10  ;;  %v7301_v58 = vpop.eup %7300 }
 0x30c   : > { %3086 = vrot.lane.b32.xlu0 %v8011_v6, %s7835_s17  ;;  %v7303_v14 = vpop.eup %7302  ;;  %v1302_v29 = vmul.f32 %v7301_v58, %v8539_v19 }
 0x30d   : > { %v1331_v63 = vpack.c.bf16 %v1299_v60, %v1299_v60  ;;  %v1199_v24 = vpop.xlane.xlu2 %1198  ;;  %6757 = vmatmul.msk.bf16.vlgmr.msrb.gmra.mxu3 %vm971_vm2, %v1460_v20  ;;  %v7305_v54 = vpop.eup %7304  ;;  %v1307_v7 = vmul.f32 %v7303_v14, %v8551_v35  ;;  %v11514_v60 = vld [vmem:[#allocation11_spill] sm:$0xff] }
 0x30e   : > { %7306 = vrcp.f32 %v1199_v24  ;;  %1624 = vmatpush.bf16.msrb.mxu3 %v8334_v8  ;;  %v1306_v10 = vmul.f32 %v7305_v54, %v8559_v61  ;;  %v1334_v19 = vpack.c.bf16 %v1302_v29, %v1302_v29  ;;  %v1217_v59 = vpop.xlane.xlu1 %1216  ;;  %v11516_v24 = vld [vmem:[#allocation23_spill] sm:$0xff] }
 0x30f   : > { %v1434_v48 = vunpack.c.l.b16 %v1331_v63  ;;  %v1339_v61 = vpack.c.bf16 %v1307_v7, %v1307_v7  ;;  %v11515_v63 = vld [vmem:[#allocation29_spill] sm:$0xff] }
 0x310   : > { %v1338_v17 = vpack.c.bf16 %v1306_v10, %v1306_v10  ;;  %v1483_v30 = vunpack.c.l.b16 %v1334_v19 }
 0x311   : > { %v1435_v27 = vpack.c.b16 %v1434_v48, %v1433_v42  ;;  %v1534_v11 = vunpack.c.l.b16 %v1339_v61 }
 0x312   : > { %3134 = vrot.lane.b32.xlu2 %v8083_v16, %s7835_s17  ;;  %3014 = vrot.lane.b32.xlu1 %v8043_v38, %s7835_s17  ;;  %v1533_v21 = vunpack.c.l.b16 %v1338_v17 }
 0x313   : > { %6756 = vmatmul.msk.bf16.vlgmr.msrb.gmra.mxu2 %vm971_vm2, %v1435_v27  ;;  %v1214_v9 = vpop.xlane.xlu0 %1213 }
 0x314   : > { %v7307_v8 = vpop.eup %7306  ;;  %1599 = vmatpush.bf16.msrb.mxu2 %v11513_v51  ;;  %3184 = vrot.lane.b32.xlu0 %v8031_v26, %s7836_s18  ;;  %7308 = vrcp.f32 %v1214_v9  ;;  %v1535_v62 = vpack.c.b16 %v1534_v11, %v1533_v21  ;;  %v11517_v21 = vld [vmem:[#allocation24_spill] sm:$0xff] }
 0x315   : > { %v1303_v35 = vmul.f32 %v7307_v8, %v8564_v43  ;;  %v1202_v39 = vpop.xlane.xlu2 %1201  ;;  %7310 = vrcp.f32 %v1217_v59 }
 0x316   : > { %7312 = vrcp.f32 %v1202_v39 }
 0x317   : > { %v1335_v13 = vpack.c.bf16 %v1303_v35, %v1303_v35 }
 0x319   : > { %v1484_v52 = vunpack.c.l.b16 %v1335_v13 }
 0x31a   : > { %3160 = vrot.lane.b32.xlu2 %v8115_v47, %s7836_s18  ;;  %3064 = vrot.lane.b32.xlu1 %v11514_v60, %s7836_s18  ;;  %v7309_v58 = vpop.eup %7308 }
 0x31b   : > { %v1485_v20 = vpack.c.b16 %v1484_v52, %v1483_v30  ;;  %v7311_v14 = vpop.eup %7310  ;;  %v1308_v54 = vmul.f32 %v7309_v58, %v8576_v55  ;;  %v1244_v42 = vpop.xlane.xlu1 %1243 }
 0x31c   : > { %3110 = vrot.lane.b32.xlu0 %v8053_v50, %s7835_s17  ;;  %v1309_v48 = vmul.f32 %v7311_v14, %v8566_v40  ;;  %v7313_v17 = vpop.eup %7312 }
 0x31d   : > { %v1226_v43 = vpop.xlane.xlu2 %1225  ;;  %6758 = vmatmul.msk.bf16.vlgmr.msra.gmra.mxu1 %vm971_vm2, %v1485_v20  ;;  %6760 = vmatmul.msk.bf16.vlgmr.msra.gmra.mxu3 %vm971_vm2, %v1535_v62  ;;  %v1340_v10 = vpack.c.bf16 %v1308_v54, %v1308_v54  ;;  %v1304_v40 = vmul.f32 %v7313_v17, %v8574_v56 }
 0x31e   : > { %1649 = vmatpush.bf16.msra.mxu1 %v11515_v63  ;;  %1699 = vmatpush.bf16.msra.mxu3 %v11516_v24  ;;  %v1341_v27 = vpack.c.bf16 %v1309_v48, %v1309_v48  ;;  %v11518_v48 = vld [vmem:[#allocation18_spill] sm:$0xff] }
 0x31f   : > { %v1558_v55 = vunpack.c.l.b16 %v1340_v10  ;;  %v1336_v35 = vpack.c.bf16 %v1304_v40, %v1304_v40 }
 0x320   : > { %v1559_v9 = vunpack.c.l.b16 %v1341_v27 }
 0x321   : > { %v1508_v11 = vunpack.c.l.b16 %v1336_v35 }
 0x322   : > { %3280 = vrot.lane.b32.xlu2 %v8041_v36, %s7836_s18  ;;  %3136 = vrot.lane.b32.xlu1 %v8083_v16, %s7836_s18  ;;  %v1560_v51 = vpack.c.b16 %v1559_v9, %v1558_v55 }
 0x323   : > { %v1220_v29 = vpop.xlane.xlu0 %1219 }
 0x324   : > { %3232 = vrot.lane.b32.xlu0 %v8103_v33, %s7836_s18  ;;  %v1223_v8 = vpop.xlane.xlu1 %1222 }
 0x325   : > { %v1205_v7 = vpop.xlane.xlu2 %1204 }
 0x326   : > { %7314 = vrcp.f32 %v1205_v7 }
 0x327   : > { %7316 = vrcp.f32 %v1226_v43 }
 0x328   : > { %7318 = vrcp.f32 %v1220_v29 }
 0x329   : > { %7320 = vrcp.f32 %v1223_v8 }
 0x32a   : > { %3206 = vrot.lane.b32.xlu2 %v8063_v57, %s7835_s17  ;;  %3062 = vrot.lane.b32.xlu1 %v11514_v60, %s7835_s17 }
 0x32b   : > { %v1232_v19 = vpop.xlane.xlu0 %1231 }
 0x32c   : > { %v7315_v61 = vpop.eup %7314  ;;  %3158 = vrot.lane.b32.xlu0 %v8115_v47, %s7835_s17  ;;  %7322 = vrcp.f32 %v1232_v19 }
 0x32d   : > { %v1305_v59 = vmul.f32 %v7315_v61, %v8595_v44  ;;  %v1229_v56 = vpop.xlane.xlu2 %1228  ;;  %6761 = vmatmul.msk.bf16.vlgmr.msrb.gmra.mxu1 %vm971_vm2, %v1560_v51  ;;  %v7317_v39 = vpop.eup %7316 }
 0x32e   : > { %7324 = vrcp.f32 %v1229_v56  ;;  %1724 = vmatpush.bf16.msrb.mxu1 %v11517_v21  ;;  %v7319_v30 = vpop.eup %7318  ;;  %v1312_v52 = vmul.f32 %v7317_v39, %v8585_v31 }
 0x32f   : > { %v1337_v13 = vpack.c.bf16 %v1305_v59, %v1305_v59  ;;  %v7321_v20 = vpop.eup %7320  ;;  %v1310_v54 = vmul.f32 %v7319_v30, %v8597_v49 }
 0x330   : > { %v1344_v63 = vpack.c.bf16 %v1312_v52, %v1312_v52  ;;  %v1311_v10 = vmul.f32 %v7321_v20, %v8600_v22 }
 0x331   : > { %v1509_v62 = vunpack.c.l.b16 %v1337_v13  ;;  %v1342_v9 = vpack.c.bf16 %v1310_v54, %v1310_v54 }
 0x332   : > { %3328 = vrot.lane.b32.xlu2 %v8127_v1, %s7836_s18  ;;  %v7323_v58 = vpop.eup %7322  ;;  %3182 = vrot.lane.b32.xlu1 %v8031_v26, %s7835_s17  ;;  %v1608_v7 = vunpack.c.l.b16 %v1344_v63 }
 0x333   : > { %v1510_v44 = vpack.c.b16 %v1509_v62, %v1508_v11  ;;  %v1235_v43 = vpop.xlane.xlu0 %1234  ;;  %v1314_v29 = vmul.f32 %v7323_v58, %v8611_v46  ;;  %v11519_v46 = vld [vmem:[#allocation12_spill] sm:$0xff]  ;;  %v1583_v59 = vunpack.c.l.b16 %v1342_v9 }
 0x334   : > { %v7325_v14 = vpop.eup %7324  ;;  %7326 = vrcp.f32 %v1235_v43  ;;  %3278 = vrot.lane.b32.xlu0 %v8041_v36, %s7835_s17  ;;  %v11520_v11 = vld [vmem:[#allocation16_spill] sm:$0xff]  ;;  %v1259_v9 = vpop.xlane.xlu1 %1258 }
 0x335   : > { %v1313_v24 = vmul.f32 %v7325_v14, %v8609_v25  ;;  %v1247_v31 = vpop.xlane.xlu2 %1246  ;;  %6759 = vmatmul.msk.bf16.vlgmr.msra.gmra.mxu2 %vm971_vm2, %v1510_v44  ;;  %v1343_v25 = vpack.c.bf16 %v1311_v10, %v1311_v10  ;;  %v1346_v40 = vpack.c.bf16 %v1314_v29, %v1314_v29  ;;  %v1821_v52 = vsel %vm545_vm1, %v11520_v11, 0  ;;  %v11521_v14 = vld [vmem:[#allocation44_spill] sm:$0xff] }
 0x336   : > { %7328 = vrcp.f32 %v1247_v31  ;;  %1674 = vmatpush.bf16.msra.mxu2 %v11518_v48 }
 0x337   : > { %v1345_v27 = vpack.c.bf16 %v1313_v24, %v1313_v24  ;;  %7330 = vrcp.f32 %v1244_v42  ;;  %v1797_v42 = vsel %vm545_vm1, %v11519_v46, 0  ;;  %v1633_v56 = vunpack.c.l.b16 %v1346_v40 }
 0x339   : > { %v1609_v17 = vunpack.c.l.b16 %v1345_v27 }
 0x33a   : > { %v7327_v55 = vpop.eup %7326  ;;  %3326 = vrot.lane.b32.xlu2 %v8127_v1, %s7835_s17  ;;  %3208 = vrot.lane.b32.xlu1 %v8063_v57, %s7836_s18 }
 0x33b   : > { %v1610_v8 = vpack.c.b16 %v1609_v17, %v1608_v7  ;;  %v1315_v49 = vmul.f32 %v7327_v55, %v8620_v34  ;;  %v1250_v22 = vpop.xlane.xlu0 %1249  ;;  %v1584_v34 = vunpack.c.l.b16 %v1343_v25  ;;  %v11522_v17 = vld [vmem:[#allocation41_spill] sm:$0xff] }
 0x33c   : > { %v7329_v51 = vpop.eup %7328  ;;  %3304 = vrot.lane.b32.xlu0 %v8085_v18, %s7836_s18  ;;  %v1869_v55 = vsel %vm545_vm1, %v11522_v17, 0  ;;  %v11537_v17 = vld [vmem:[#allocation45_spill] sm:$0xff] }
 0x33d   : > { %v1347_v19 = vpack.c.bf16 %v1315_v49, %v1315_v49  ;;  %v1238_v61 = vpop.xlane.xlu2 %1237  ;;  %6763 = vmatmul.msk.bf16.vlgmr.msrb.gmra.mxu3 %vm971_vm2, %v1610_v8  ;;  %v7331_v35 = vpop.eup %7330  ;;  %v1319_v21 = vmul.f32 %v7329_v51, %v8622_v37  ;;  %v1585_v62 = vpack.c.b16 %v1584_v34, %v1583_v59 }
 0x33e   : > { %7332 = vrcp.f32 %v1238_v61  ;;  %1806 = vmatpush.bf16.xpose.msrb.mxu3 %v1797_v42  ;;  %v1318_v13 = vmul.f32 %v7331_v35, %v8587_v0  ;;  %v11523_v61 = vld [vmem:[#allocation13_spill] sm:$0xff]  ;;  %v11524_v35 = vld [vmem:[#allocation20_spill] sm:$0xff] }
 0x33f   : > { %v1634_v39 = vunpack.c.l.b16 %v1347_v19  ;;  %7334 = vrcp.f32 %v1250_v22  ;;  %v1351_v20 = vpack.c.bf16 %v1319_v21, %v1319_v21  ;;  %v1845_v59 = vsel %vm545_vm1, %v11524_v35, 0  ;;  %v11550_v35 = vld [vmem:[#allocation33_spill] sm:$0xff] }
 0x340   : > { %v1350_v0 = vpack.c.bf16 %v1318_v13, %v1318_v13  ;;  %v11525_v13 = vld [vmem:[#allocation36_spill] sm:$0xff] }
 0x341   : > { %v1635_v30 = vpack.c.b16 %v1634_v39, %v1633_v56  ;;  %v1684_v63 = vunpack.c.l.b16 %v1351_v20 }
 0x342   : > { %3350 = vrot.lane.b32.xlu2 %v8149_v15, %s7835_s17  ;;  %3230 = vrot.lane.b32.xlu1 %v8103_v33, %s7835_s17  ;;  %v1683_v31 = vunpack.c.l.b16 %v1350_v0  ;;  %v11528_v0 = vld [vmem:[#allocation27_spill] sm:$0xff] }
 0x343   : > { %6764 = vmatmul.msk.bf16.vlgmr.msra.gmra.mxu1 %vm971_vm2, %v1635_v30  ;;  %v1241_v58 = vpop.xlane.xlu0 %1240  ;;  %v1941_v30 = vsel %vm545_vm1, %v11525_v13, 0 }
 0x344   : > { %v7333_v44 = vpop.eup %7332  ;;  %1830 = vmatpush.bf16.xpose.msra.mxu1 %v1821_v52  ;;  %7336 = vrcp.f32 %v1241_v58  ;;  %3302 = vrot.lane.b32.xlu0 %v8085_v18, %s7835_s17  ;;  %v1685_v10 = vpack.c.b16 %v1684_v63, %v1683_v31  ;;  %v11526_v52 = vld [vmem:[#allocation15_spill] sm:$0xff] }
 0x345   : > { %v1253_v37 = vpop.xlane.xlu2 %1252  ;;  %6762 = vmatmul.msk.bf16.vlgmr.msrb.gmra.mxu2 %vm971_vm2, %v1585_v62  ;;  %v7335_v43 = vpop.eup %7334  ;;  %v1316_v24 = vmul.f32 %v7333_v44, %v8636_v53  ;;  %v11527_v44 = vld [vmem:[#allocation19_spill] sm:$0xff] }
 0x346   : > { %7338 = vrcp.f32 %v1253_v37  ;;  %1749 = vmatpush.bf16.msrb.mxu2 %v11521_v14  ;;  %v1320_v54 = vmul.f32 %v7335_v43, %v8634_v3  ;;  %v11529_v37 = vld [vmem:[#allocation17_spill] sm:$0xff]  ;;  %v11530_v43 = vld [vmem:[#allocation46_spill] sm:$0xff]  ;;  %v11531_v63 = vld [vmem:[#allocation43_spill] sm:$0xff] }
 0x347   : > { %v1348_v29 = vpack.c.bf16 %v1316_v24, %v1316_v24  ;;  %v2013_v14 = vsel %vm545_vm1, %v11530_v43, 0  ;;  %v11532_v24 = vld [vmem:[#allocation30_spill] sm:$0xff] }
 0x348   : > { %v1352_v25 = vpack.c.bf16 %v1320_v54, %v1320_v54  ;;  %v2037_v31 = vsel %vm545_vm1, %v11532_v24, 0  ;;  %v11533_v54 = vld [vmem:[#allocation31_spill] sm:$0xff] }
 0x349   : > { %v1658_v3 = vunpack.c.l.b16 %v1348_v29  ;;  %v11535_v29 = vld [vmem:[#allocation26_spill] sm:$0xff] }
 0x34a   : > { %v7337_v48 = vpop.eup %7336  ;;  %3256 = vrot.lane.b32.xlu1 %v8139_v12, %s7836_s18  ;;  %v1708_v22 = vunpack.c.l.b16 %v1352_v25  ;;  %v11539_v25 = vld [vmem:[#allocation50_spill] sm:$0xff] }
 0x34b   : > { %v1317_v27 = vmul.f32 %v7337_v48, %v8643_v41  ;;  %v1989_v48 = vsel %vm545_vm1, %v11533_v54, 0 }
 0x34c   : > { %v7339_v7 = vpop.eup %7338  ;;  %v8898_v24 = vpop.permute.xlu1 %2787 }
 0x34d   : > { %v1349_v40 = vpack.c.bf16 %v1317_v27, %v1317_v27  ;;  %v1321_v53 = vmul.f32 %v7339_v7, %v8645_v32  ;;  %v1256_v8 = vpop.xlane.xlu2 %1255  ;;  %6766 = vmatmul.msk.bf16.vlgmr.msra.gmra.mxu3 %vm971_vm2, %v1685_v10  ;;  %v1893_v32 = vsel %vm545_vm1, %v11523_v61, 0  ;;  %v11534_v10 = vld [vmem:[#allocation25_spill] sm:$0xff]  ;;  %v11536_v27 = vld [vmem:[#allocation48_spill] sm:$0xff]  ;;  %v11549_v61 = vld [vmem:[#allocation35_spill] sm:$0xff] }
 0x34e   : > { %7340 = vrcp.f32 %v1256_v8  ;;  %1878 = vmatpush.bf16.xpose.msra.mxu3 %v1869_v55  ;;  %v2085_v7 = vsel %vm545_vm1, %v11536_v27, 0  ;;  %v11538_v55 = vld [vmem:[#allocation38_spill] sm:$0xff]  ;;  %v11541_v8 = vld [vmem:[#allocation28_spill] sm:$0xff] }
 0x34f   : > { %v1659_v49 = vunpack.c.l.b16 %v1349_v40  ;;  %v1353_v41 = vpack.c.bf16 %v1321_v53, %v1321_v53  ;;  %7342 = vrcp.f32 %v1259_v9  ;;  %v2061_v9 = vsel %vm545_vm1, %v11538_v55, 0  ;;  %v11540_v53 = vld [vmem:[#allocation21_spill] sm:$0xff] }
 0x350   : > { %v2109_v40 = vsel %vm545_vm1, %v11539_v25, 0 }
 0x351   : > { %v1660_v51 = vpack.c.b16 %v1659_v49, %v1658_v3  ;;  %v1709_v46 = vunpack.c.l.b16 %v1353_v41  ;;  %v11544_v41 = vld [vmem:[#allocation51_spill] sm:$0xff] }
 0x352   : > { %3254 = vrot.lane.b32.xlu1 %v8139_v12, %s7835_s17 }
 0x353   : > { %v1710_v42 = vpack.c.b16 %v1709_v46, %v1708_v22  ;;  %v2157_v22 = vsel %vm545_vm1, %v11544_v41, 0 }
 0x354   : > { %v7341_v19 = vpop.eup %7340 }
 0x355   : > { %6765 = vmatmul.msk.bf16.vlgmr.msra.gmra.mxu2 %vm971_vm2, %v1660_v51  ;;  %6767 = vmatmul.msk.bf16.vlgmr.msrb.gmra.mxu1 %vm971_vm2, %v1710_v42  ;;  %v7343_v34 = vpop.eup %7342  ;;  %v1322_v56 = vmul.f32 %v7341_v19, %v8653_v23  ;;  %v1917_v23 = vsel %vm545_vm1, %v11527_v44, 0  ;;  %v11545_v51 = vld [vmem:[#allocation47_spill] sm:$0xff] }
 0x356   : > { %1854 = vmatpush.bf16.xpose.msra.mxu2 %v1845_v59  ;;  %1902 = vmatpush.bf16.xpose.msrb.mxu1 %v1893_v32  ;;  %v1323_v39 = vmul.f32 %v7343_v34, %v8627_v28  ;;  %v1965_v28 = vsel %vm545_vm1, %v11528_v0, 0  ;;  %v2133_v32 = vsel %vm545_vm1, %v11549_v61, 0  ;;  %v11551_v59 = vld [vmem:[#allocation32_spill] sm:$0xff]  ;;  %v11552_v34 = vld [vmem:[#allocation42_spill] sm:$0xff] }
 0x357   : > { %v1354_v21 = vpack.c.bf16 %v1322_v56, %v1322_v56 }
 0x358   : > { %v1355_v11 = vpack.c.bf16 %v1323_v39, %v1323_v39 }
 0x359   : > { %v1733_v62 = vunpack.c.l.b16 %v1354_v21  ;;  %v11555_v21 = vld [vmem:[#allocation49_spill] sm:$0xff] }
 0x35a   : > { %3352 = vrot.lane.b32.xlu1 %v8149_v15, %s7836_s18  ;;  %v1734_v20 = vunpack.c.l.b16 %v1355_v11  ;;  %v8873_v11 = vpop.permute.xlu0 %2762 }
 0x35c   : > { %v1735_v58 = vpack.c.b16 %v1734_v20, %v1733_v62  ;;  %v11560_v20 = vld [vmem:[#allocation39_spill] sm:$0xff] }
 0x35d   : > { %6769 = vmatmul.msk.bf16.vlgmr.msrb.gmra.mxu3 %vm545_vm1, %v11526_v52 }
 0x35e   : > { %1950 = vmatpush.bf16.xpose.msrb.mxu3 %v1941_v30  ;;  %v8855_v19 = vpop.f32.mrf.mxu2  ;;  %v11557_v30 = vld [vmem:[#allocation53_spill] sm:$0xff] }
 0x35f   : > { %11548 = vst [vmem:[#allocation24_spill] sm:$0xff] %v8855_v19 }
 0x362   : > { %v2738_v0 = vpop.permute.xlu0 %2737 }
 0x365   : > { %6768 = vmatmul.msk.bf16.vlgmr.msrb.gmra.mxu2 %vm971_vm2, %v1735_v58  ;;  %6770 = vmatmul.msk.bf16.vlgmr.msra.gmra.mxu1 %vm545_vm1, %v11529_v37  ;;  %v11561_v58 = vld [vmem:[#allocation40_spill] sm:$0xff] }
 0x366   : > { %1926 = vmatpush.bf16.xpose.msrb.mxu2 %v1917_v23  ;;  %1974 = vmatpush.bf16.xpose.msra.mxu1 %v1965_v28  ;;  %v8843_v3 = vpop.f32.mrf.mxu3  ;;  %v8870_v13 = vpop.f32.mrf.mxu2  ;;  %v11563_v23 = vld [vmem:[#allocation52_spill] sm:$0xff]  ;;  %v11564_v28 = vld [vmem:[#allocation37_spill] sm:$0xff] }
 0x367   : > { %11542 = vst [vmem:[#allocation22_spill] sm:$0xff] %v8843_v3 }
 0x368   : > { %11556 = vst [vmem:[#allocation16_spill] sm:$0xff] %v8870_v13 }
 0x36d   : > { %6772 = vmatmul.msk.bf16.vlgmr.msra.gmra.mxu3 %vm545_vm1, %v11531_v63  ;;  %v11568_v63 = vld [vmem:[#allocation34_spill] sm:$0xff] }
 0x36e   : > { %2022 = vmatpush.bf16.xpose.msra.mxu3 %v2013_v14  ;;  %v8851_v46 = vpop.f32.mrf.mxu3 }
 0x36f   : > { %11546 = vst [vmem:[#allocation29_spill] sm:$0xff] %v8851_v46 }
 0x375   : > { %6771 = vmatmul.msk.bf16.vlgmr.msra.gmra.mxu2 %vm545_vm1, %v11534_v10  ;;  %6773 = vmatmul.msk.bf16.vlgmr.msrb.gmra.mxu1 %vm545_vm1, %v11535_v29  ;;  %v8910_v29 = vpop.permute.xlu1 %2912 }
 0x376   : > { %1998 = vmatpush.bf16.xpose.msra.mxu2 %v1989_v48  ;;  %2046 = vmatpush.bf16.xpose.msrb.mxu1 %v2037_v31  ;;  %11574 = vst [vmem:[#allocation30_spill] sm:$0xff] %v8910_v29 }
 0x378   : > { %v8845_v49 = vpop.f32.mrf.mxu1 }
 0x379   : > { %11543 = vst [vmem:[#allocation11_spill] sm:$0xff] %v8845_v49 }
 0x37d   : > { %6775 = vmatmul.msk.bf16.vlgmr.msrb.gmra.mxu3 %vm545_vm1, %v11537_v17  ;;  %v8920_v55 = vpop.permute.xlu1 %2990 }
 0x37e   : > { %2094 = vmatpush.bf16.xpose.msrb.mxu3 %v2085_v7  ;;  %11579 = vst [vmem:[#allocation45_spill] sm:$0xff] %v8920_v55 }
 0x380   : > { %v8853_v42 = vpop.f32.mrf.mxu1 }
 0x381   : > { %11547 = vst [vmem:[#allocation23_spill] sm:$0xff] %v8853_v42 }
 0x385   : > { %6774 = vmatmul.msk.bf16.vlgmr.msrb.gmra.mxu2 %vm545_vm1, %v11540_v53  ;;  %6776 = vmatmul.msk.bf16.vlgmr.msra.gmra.mxu1 %vm545_vm1, %v11541_v8  ;;  %v8928_v53 = vpop.permute.xlu1 %3040 }
 0x386   : > { %2070 = vmatpush.bf16.xpose.msrb.mxu2 %v2061_v9  ;;  %2118 = vmatpush.bf16.xpose.msra.mxu1 %v2109_v40  ;;  %11583 = vst [vmem:[#allocation28_spill] sm:$0xff] %v8928_v53 }
 0x38d   : > { %6778 = vmatmul.msk.bf16.vlgmr.msra.gmra.mxu3 %vm545_vm1, %v11545_v51  ;;  %v1757_v51 = vld [vmem:[#allocation2 + $0x100] sm:$0xff]  ;;  %v8936_v61 = vpop.permute.xlu1 %3016 }
 0x38e   : > { %2166 = vmatpush.bf16.xpose.msra.mxu3 %v2157_v22  ;;  %11587 = vst [vmem:[#allocation33_spill] sm:$0xff] %v8936_v61 }
 0x390   : > { %v8864_v56 = vpop.f32.mrf.mxu3 }
 0x391   : > { %11553 = vst [vmem:[#allocation18_spill] sm:$0xff] %v8864_v56 }
 0x395   : > { %6777 = vmatmul.msk.bf16.vlgmr.msra.gmra.mxu2 %vm545_vm1, %v11550_v35  ;;  %6779 = vmatmul.msk.bf16.vlgmr.msrb.gmra.mxu1 %vm545_vm1, %v11551_v59 }
 0x396   : > { %2142 = vmatpush.bf16.xpose.msra.mxu2 %v2133_v32  ;;  %2600 = vmatpush.bf16.msrb.mxu1 %v11552_v34  ;;  %v8883_v44 = vpop.f32.mrf.mxu2 }
 0x397   : > { %11562 = vst [vmem:[#allocation13_spill] sm:$0xff] %v8883_v44 }
 0x398   : > { %v8875_v52 = vpop.f32.mrf.mxu3 }
 0x399   : > { %11558 = vst [vmem:[#allocation44_spill] sm:$0xff] %v8875_v52 }
 0x39a   : > { %v8866_v39 = vpop.f32.mrf.mxu1 }
 0x39b   : > { %11554 = vst [vmem:[#allocation12_spill] sm:$0xff] %v8866_v39 }
 0x39d   : > { %6781 = vmatmul.msk.bf16.vlgmr.msrb.gmra.mxu3 %vm545_vm1, %v11555_v21 }
 0x39e   : > { %2650 = vmatpush.bf16.msrb.mxu3 %v11557_v30  ;;  %v8893_v14 = vpop.f32.mrf.mxu2  ;;  %v1758_v30 = vld [vmem:[#allocation2 + $0x108] sm:$0xff] }
 0x39f   : > { %11567 = vst [vmem:[#allocation15_spill] sm:$0xff] %v8893_v14 }
 0x3a0   : > { %v8889_v37 = vpop.f32.mrf.mxu3 }
 0x3a1   : > { %11565 = vst [vmem:[#allocation20_spill] sm:$0xff] %v8889_v37 }
 0x3a2   : > { %v8877_v62 = vpop.f32.mrf.mxu1 }
 0x3a3   : > { %11559 = vst [vmem:[#allocation41_spill] sm:$0xff] %v8877_v62 }
 0x3a5   : > { %6780 = vmatmul.msk.bf16.vlgmr.msrb.gmra.mxu2 %vm545_vm1, %v11560_v20  ;;  %6782 = vmatmul.msk.bf16.vlgmr.msra.gmra.mxu1 %vm545_vm1, %v11561_v58 }
 0x3a6   : > { %2625 = vmatpush.bf16.msrb.mxu2 %v11563_v23  ;;  %2700 = vmatpush.bf16.msra.mxu1 %v8681_v2  ;;  %v8946_v23 = vpop.permute.xlu1 %3088 }
 0x3a7   : > { %11590 = vst [vmem:[#allocation49_spill] sm:$0xff] %v8946_v23 }
 0x3a8   : > { %v8900_v31 = vpop.f32.mrf.mxu3 }
 0x3a9   : > { %11569 = vst [vmem:[#allocation19_spill] sm:$0xff] %v8900_v31 }
 0x3aa   : > { %v8891_v43 = vpop.f32.mrf.mxu1 }
 0x3ab   : > { %11566 = vst [vmem:[#allocation36_spill] sm:$0xff] %v8891_v43 }
 0x3ad   : > { %6784 = vmatmul.msk.bf16.vlgmr.msra.gmra.mxu3 %vm545_vm1, %v11564_v28 }
 0x3ae   : > { %2750 = vmatpush.bf16.msra.mxu3 %v2738_v0 }
 0x3b2   : > { %v8904_v54 = vpop.f32.mrf.mxu1 }
 0x3b3   : > { %11571 = vst [vmem:[#allocation17_spill] sm:$0xff] %v8904_v54 }
 0x3b5   : > { %6783 = vmatmul.msk.bf16.vlgmr.msra.gmra.mxu2 %vm545_vm1, %v11568_v63  ;;  %v8950_v63 = vpop.permute.xlu0 %2862 }
 0x3b6   : > { %2725 = vmatpush.bf16.msra.mxu2 %v8691_v45 }
 0x3b8   : > { %v8902_v2 = vpop.f32.mrf.mxu2 }
 0x3b9   : > { %11570 = vst [vmem:[#allocation27_spill] sm:$0xff] %v8902_v2  ;;  %v1762_v2 = vld [vmem:[#allocation2 + $0x128] sm:$0xff] }
 0x3c0   : > { %v8906_v48 = vpop.f32.mrf.mxu2  ;;  %v8908_v10 = vpop.f32.mrf.mxu3 }
 0x3c1   : > { %11572 = vst [vmem:[#allocation46_spill] sm:$0xff] %v8906_v48  ;;  %v8912_v27 = vpop.f32.mrf.mxu1 }
 0x3c2   : > { %11573 = vst [vmem:[#allocation43_spill] sm:$0xff] %v8908_v10 }
 0x3c3   : > { %11575 = vst [vmem:[#allocation31_spill] sm:$0xff] %v8912_v27 }
 0x3c8   : > { %v8914_v7 = vpop.f32.mrf.mxu2  ;;  %v8916_v17 = vpop.f32.mrf.mxu3 }
 0x3c9   : > { %11576 = vst [vmem:[#allocation25_spill] sm:$0xff] %v8914_v7  ;;  %v8918_v45 = vpop.f32.mrf.mxu1 }
 0x3ca   : > { %11577 = vst [vmem:[#allocation26_spill] sm:$0xff] %v8916_v17 }
 0x3cb   : > { %11578 = vst [vmem:[#allocation48_spill] sm:$0xff] %v8918_v45  ;;  %v8972_v45 = vpop.permute.xlu2 %2812 }
 0x3d0   : > { %v8922_v9 = vpop.f32.mrf.mxu2  ;;  %v8924_v25 = vpop.f32.mrf.mxu3 }
 0x3d1   : > { %11580 = vst [vmem:[#allocation38_spill] sm:$0xff] %v8922_v9 }
 0x3d2   : > { %11581 = vst [vmem:[#allocation50_spill] sm:$0xff] %v8924_v25  ;;  %v8926_v40 = vpop.f32.mrf.mxu1 }
 0x3d3   : > { %11582 = vst [vmem:[#allocation21_spill] sm:$0xff] %v8926_v40  ;;  %v1763_v40 = vld [vmem:[#allocation2 + $0x130] sm:$0xff] }
 0x3d8   : > { %v8930_v8 = vpop.f32.mrf.mxu2  ;;  %v8932_v41 = vpop.f32.mrf.mxu3 }
 0x3d9   : > { %11584 = vst [vmem:[#allocation51_spill] sm:$0xff] %v8930_v8  ;;  %v8960_v8 = vpop.permute.xlu1 %2937 }
 0x3da   : > { %11585 = vst [vmem:[#allocation47_spill] sm:$0xff] %v8932_v41  ;;  %v8934_v22 = vpop.f32.mrf.mxu1 }
 0x3db   : > { %11586 = vst [vmem:[#allocation35_spill] sm:$0xff] %v8934_v22 }
 0x3dc   : > { %11592 = vst [vmem:[#allocation39_spill] sm:$0xff] %v8960_v8 }
 0x3e0   : > { %v8938_v32 = vpop.f32.mrf.mxu2  ;;  %v1808_v35 = vpop.f32.mrf.mxu3 }
 0x3e1   : > { %11588 = vst [vmem:[#allocation32_spill] sm:$0xff] %v8938_v32  ;;  %v8940_v59 = vadd.f32 %v1808_v35, %v1757_v51  ;;  %v1759_v35 = vld [vmem:[#allocation2 + $0x110] sm:$0xff]  ;;  %v1760_v32 = vld [vmem:[#allocation2 + $0x118] sm:$0xff] }
 0x3e2   : > { %v1832_v34 = vpop.f32.mrf.mxu1 }
 0x3e3   : > { %v2173_v21 = vsel %vm971_vm2, %v8940_v59, -inf  ;;  %v8954_v22 = vadd.f32 %v1832_v34, %v1759_v35  ;;  %v1764_v34 = vld [vmem:[#allocation2 + $0x138] sm:$0xff] }
 0x3e4   : > { %2174 = vmax.xlane.f32.xlu0 %v2173_v21 }
 0x3e8   : > { %v8944_v20 = vpop.f32.mrf.mxu2  ;;  %v1810_v58 = vpop.f32.mrf.mxu3 }
 0x3e9   : > { %11589 = vst [vmem:[#allocation42_spill] sm:$0xff] %v8944_v20  ;;  %v8948_v0 = vadd.f32 %v1810_v58, %v1758_v30  ;;  %v2179_v58 = vsel %vm971_vm2, %v8954_v22, -inf }
 0x3ea   : > { %v1834_v28 = vpop.f32.mrf.mxu1 }
 0x3eb   : > { %v2176_v51 = vsel %vm971_vm2, %v8948_v0, -inf  ;;  %v8968_v35 = vadd.f32 %v1834_v28, %v1760_v32  ;;  %v1761_v32 = vld [vmem:[#allocation2 + $0x120] sm:$0xff] }
 0x3ec   : > { %2177 = vmax.xlane.f32.xlu1 %v2176_v51  ;;  %v8966_v51 = vpop.permute.xlu0 %2837  ;;  %v1769_v28 = vld [vmem:[#allocation2 + $0x160] sm:$0xff] }
 0x3ed   : > { %v2182_v17 = vsel %vm971_vm2, %v8968_v35, -inf }
 0x3f0   : > { %v8956_v21 = vpop.f32.mrf.mxu2  ;;  %v1880_v25 = vpop.f32.mrf.mxu3 }
 0x3f1   : > { %11591 = vst [vmem:[#allocation53_spill] sm:$0xff] %v8956_v21  ;;  %v8958_v20 = vadd.f32 %v1880_v25, %v1763_v40 }
 0x3f2   : > { %v1904_v41 = vpop.f32.mrf.mxu1 }
 0x3f3   : > { %v2191_v30 = vsel %vm971_vm2, %v8958_v20, -inf }
 0x3f4   : > { %2192 = vmax.xlane.f32.xlu2 %v2191_v30  ;;  %2180 = vmax.xlane.f32.xlu1 %v2179_v58  ;;  %v1765_v30 = vld [vmem:[#allocation2 + $0x140] sm:$0xff]  ;;  %v8978_v58 = vpop.permute.xlu1 %3014  ;;  %v8980_v7 = vpop.permute.xlu0 %2887 }
 0x3f5   : > { %11593 = vst [vmem:[#allocation40_spill] sm:$0xff] %v8978_v58 }
 0x3f6   : > { %11594 = vst [vmem:[#allocation52_spill] sm:$0xff] %v8980_v7 }
 0x3f8   : > { %v1856_v21 = vpop.f32.mrf.mxu2  ;;  %v1882_v25 = vpop.f32.mrf.mxu3 }
 0x3f9   : > { %v8970_v40 = vadd.f32 %v1882_v25, %v1764_v34  ;;  %v8982_v34 = vadd.f32 %v1904_v41, %v1765_v30  ;;  %v8984_v25 = vadd.f32 %v1856_v21, %v1761_v32  ;;  %v8994_v21 = vpop.permute.xlu2 %2992  ;;  %v1770_v30 = vld [vmem:[#allocation2 + $0x168] sm:$0xff] }
 0x3fa   : > { %v1906_v27 = vpop.f32.mrf.mxu1  ;;  %11595 = vst [vmem:[#allocation37_spill] sm:$0xff] %v8994_v21 }
 0x3fb   : > { %v2194_v10 = vsel %vm971_vm2, %v8970_v40, -inf  ;;  %v2197_v31 = vsel %vm971_vm2, %v8982_v34, -inf  ;;  %v2185_v41 = vsel %vm971_vm2, %v8984_v25, -inf }
 0x3fc   : > { %2195 = vmax.xlane.f32.xlu0 %v2194_v10  ;;  %2183 = vmax.xlane.f32.xlu2 %v2182_v17  ;;  %v1766_v17 = vld [vmem:[#allocation2 + $0x148] sm:$0xff]  ;;  %v9002_v62 = vpop.permute.xlu0 %3086 }
 0x3fd   : > { %v8998_v32 = vadd.f32 %v1906_v27, %v1766_v17  ;;  %11597 = vst [vmem:[#allocation54_spill] sm:$0xff] %v9002_v62  ;;  %v1771_v27 = vld [vmem:[#allocation2 + $0x170] sm:$0xff] }
 0x3fe   : > { %v1767_v17 = vld [vmem:[#allocation2 + $0x150] sm:$0xff] }
 0x400   : > { %v1858_v9 = vpop.f32.mrf.mxu2  ;;  %v1952_v43 = vpop.f32.mrf.mxu3 }
 0x401   : > { %v8986_v54 = vadd.f32 %v1952_v43, %v1769_v28  ;;  %v8996_v43 = vpop.permute.xlu1 %3064  ;;  %v9000_v28 = vadd.f32 %v1858_v9, %v1762_v2  ;;  %v1775_v2 = vld [vmem:[#allocation2 + $0x190] sm:$0xff]  ;;  %v9012_v9 = vpop.permute.xlu2 %3038 }
 0x402   : > { %v1976_v37 = vpop.f32.mrf.mxu1  ;;  %11596 = vst [vmem:[#allocation34_spill] sm:$0xff] %v8996_v43 }
 0x403   : > { %v2209_v10 = vsel %vm971_vm2, %v8986_v54, -inf  ;;  %11598 = vst [vmem:[#allocation55_spill] sm:$0xff] %v9012_v9 }
 0x404   : > { %2198 = vmax.xlane.f32.xlu0 %v2197_v31  ;;  %2210 = vmax.xlane.f32.xlu1 %v2209_v10  ;;  %v2200_v10 = vsel %vm971_vm2, %v8998_v32, -inf  ;;  %v9022_v46 = vpop.permute.xlu0 %3184 }
 0x405   : > { %2186 = vmax.xlane.f32.xlu2 %v2185_v41  ;;  %v2188_v41 = vsel %vm971_vm2, %v9000_v28, -inf  ;;  %11600 = vst [vmem:[#allocation57_spill] sm:$0xff] %v9022_v46 }
 0x408   : > { %v1928_v48 = vpop.f32.mrf.mxu2  ;;  %v1954_v39 = vpop.f32.mrf.mxu3 }
 0x409   : > { %v9004_v56 = vadd.f32 %v1954_v39, %v1770_v30  ;;  %v9014_v39 = vadd.f32 %v1976_v37, %v1771_v27  ;;  %v9016_v30 = vadd.f32 %v1928_v48, %v1767_v17  ;;  %v9018_v44 = vpop.permute.xlu1 %3136  ;;  %v1768_v48 = vld [vmem:[#allocation2 + $0x158] sm:$0xff]  ;;  %v9034_v13 = vpop.permute.xlu2 %3112 }
 0x40a   : > { %v1978_v31 = vpop.f32.mrf.mxu1  ;;  %11599 = vst [vmem:[#allocation56_spill] sm:$0xff] %v9018_v44  ;;  %v1776_v27 = vld [vmem:[#allocation2 + $0x198] sm:$0xff] }
 0x40b   : > { %v2212_v52 = vsel %vm971_vm2, %v9004_v56, -inf  ;;  %11601 = vst [vmem:[#allocation58_spill] sm:$0xff] %v9034_v13  ;;  %v1784_v13 = vld [vmem:[#allocation2 + $0x1d8] sm:$0xff] }
 0x40c   : > { %2201 = vmax.xlane.f32.xlu1 %v2200_v10  ;;  %2189 = vmax.xlane.f32.xlu0 %v2188_v41  ;;  %v2215_v10 = vsel %vm971_vm2, %v9014_v39, -inf  ;;  %v1772_v41 = vld [vmem:[#allocation2 + $0x178] sm:$0xff] }
 0x40d   : > { %2213 = vmax.xlane.f32.xlu2 %v2212_v52  ;;  %v2203_v52 = vsel %vm971_vm2, %v9016_v30, -inf  ;;  %v9032_v17 = vadd.f32 %v1978_v31, %v1772_v41  ;;  %v9046_v31 = vpop.permute.xlu0 %3110 }
 0x40e   : > { %11603 = vst [vmem:[#allocation60_spill] sm:$0xff] %v9046_v31  ;;  %v1778_v31 = vld [vmem:[#allocation2 + $0x1a8] sm:$0xff] }
 0x410   : > { %v1930_v49 = vpop.f32.mrf.mxu2  ;;  %v2024_v42 = vpop.f32.mrf.mxu3 }
 0x411   : > { %v9020_v14 = vadd.f32 %v2024_v42, %v1775_v2  ;;  %v9030_v42 = vadd.f32 %v1930_v49, %v1768_v48  ;;  %v9038_v9 = vpop.permute.xlu1 %3062  ;;  %v2218_v49 = vsel %vm971_vm2, %v9032_v17, -inf  ;;  %v1773_v48 = vld [vmem:[#allocation2 + $0x180] sm:$0xff]  ;;  %v9054_v46 = vpop.permute.xlu2 %3134 }
 0x412   : > { %v2048_v3 = vpop.f32.mrf.mxu1  ;;  %11602 = vst [vmem:[#allocation59_spill] sm:$0xff] %v9038_v9 }
 0x413   : > { %v2227_v37 = vsel %vm971_vm2, %v9020_v14, -inf  ;;  %11604 = vst [vmem:[#allocation61_spill] sm:$0xff] %v9054_v46 }
 0x414   : > { %2216 = vmax.xlane.f32.xlu1 %v2215_v10  ;;  %2204 = vmax.xlane.f32.xlu0 %v2203_v52  ;;  %v2206_v10 = vsel %vm971_vm2, %v9030_v42, -inf }
 0x415   : > { %2228 = vmax.xlane.f32.xlu2 %v2227_v37  ;;  %v1777_v37 = vld [vmem:[#allocation2 + $0x1a0] sm:$0xff] }
 0x416   : > { %v9048_v41 = vadd.f32 %v2048_v3, %v1777_v37  ;;  %v9064_v37 = vpop.permute.xlu0 %3232 }
 0x417   : > { %11606 = vst [vmem:[#allocation63_spill] sm:$0xff] %v9064_v37 }
 0x418   : > { %v2000_v2 = vpop.f32.mrf.mxu2  ;;  %v2026_v19 = vpop.f32.mrf.mxu3 }
 0x419   : > { %v9036_v15 = vadd.f32 %v2026_v19, %v1776_v27  ;;  %v1781_v19 = vld [vmem:[#allocation2 + $0x1c0] sm:$0xff]  ;;  %v9050_v27 = vadd.f32 %v2000_v2, %v1773_v48  ;;  %v9062_v2 = vpop.permute.xlu1 %3182 }
 0x41a   : > { %v2050_v62 = vpop.f32.mrf.mxu1  ;;  %11605 = vst [vmem:[#allocation62_spill] sm:$0xff] %v9062_v2  ;;  %v1783_v2 = vld [vmem:[#allocation2 + $0x1d0] sm:$0xff] }
 0x41b   : > { %v2230_v52 = vsel %vm971_vm2, %v9036_v15, -inf  ;;  %v2221_v3 = vsel %vm971_vm2, %v9050_v27, -inf  ;;  %v9066_v48 = vadd.f32 %v2050_v62, %v1778_v31  ;;  %v9078_v62 = vpop.permute.xlu2 %3160 }
 0x41c   : > { %2207 = vmax.xlane.f32.xlu1 %v2206_v10  ;;  %2231 = vmax.xlane.f32.xlu0 %v2230_v52  ;;  %v2233_v52 = vsel %vm971_vm2, %v9048_v41, -inf  ;;  %11607 = vst [vmem:[#allocation64_spill] sm:$0xff] %v9078_v62  ;;  %v1780_v62 = vld [vmem:[#allocation2 + $0x1b8] sm:$0xff] }
 0x41d   : > { %2219 = vmax.xlane.f32.xlu2 %v2218_v49  ;;  %v1774_v49 = vld [vmem:[#allocation2 + $0x188] sm:$0xff] }
 0x41e   : > { %v9088_v61 = vpop.permute.xlu0 %3158 }
 0x41f   : > { %11609 = vst [vmem:[#allocation66_spill] sm:$0xff] %v9088_v61 }
 0x420   : > { %v2002_v9 = vpop.f32.mrf.mxu2  ;;  %v2096_v58 = vpop.f32.mrf.mxu3 }
 0x421   : > { %v9052_v55 = vadd.f32 %v2096_v58, %v1781_v19  ;;  %v1782_v58 = vld [vmem:[#allocation2 + $0x1c8] sm:$0xff]  ;;  %v9068_v19 = vadd.f32 %v2002_v9, %v1774_v49  ;;  %v1779_v9 = vld [vmem:[#allocation2 + $0x1b0] sm:$0xff] }
 0x422   : > { %v2120_v44 = vpop.f32.mrf.mxu1 }
 0x423   : > { %v2245_v10 = vsel %vm971_vm2, %v9052_v55, -inf  ;;  %v9082_v31 = vadd.f32 %v2120_v44, %v1783_v2  ;;  %v9096_v2 = vpop.permute.xlu2 %3280 }
 0x424   : > { %2246 = vmax.xlane.f32.xlu1 %v2245_v10  ;;  %2234 = vmax.xlane.f32.xlu0 %v2233_v52  ;;  %v2236_v10 = vsel %vm971_vm2, %v9066_v48, -inf  ;;  %v2224_v52 = vsel %vm971_vm2, %v9068_v19, -inf  ;;  %11610 = vst [vmem:[#allocation67_spill] sm:$0xff] %v9096_v2 }
 0x425   : > { %2222 = vmax.xlane.f32.xlu2 %v2221_v3 }
 0x426   : > { %v9106_v7 = vpop.permute.xlu0 %3278 }
 0x427   : > { %11612 = vst [vmem:[#allocation69_spill] sm:$0xff] %v9106_v7 }
 0x428   : > { %v2072_v46 = vpop.f32.mrf.mxu2  ;;  %v2098_v43 = vpop.f32.mrf.mxu3 }
 0x429   : > { %v9070_v23 = vadd.f32 %v2098_v43, %v1782_v58  ;;  %v9080_v43 = vpop.permute.xlu1 %3208  ;;  %v9086_v58 = vadd.f32 %v2072_v46, %v1779_v9  ;;  %v1785_v46 = vld [vmem:[#allocation2 + $0x1e0] sm:$0xff] }
 0x42a   : > { %v2122_v37 = vpop.f32.mrf.mxu1  ;;  %11608 = vst [vmem:[#allocation65_spill] sm:$0xff] %v9080_v43 }
 0x42b   : > { %v2248_v3 = vsel %vm971_vm2, %v9070_v23, -inf  ;;  %v9084_v49 = vadd.f32 %v2122_v37, %v1784_v13  ;;  %v2239_v44 = vsel %vm971_vm2, %v9086_v58, -inf  ;;  %v1787_v13 = vld [vmem:[#allocation2 + $0x1f0] sm:$0xff] }
 0x42c   : > { %2237 = vmax.xlane.f32.xlu1 %v2236_v10  ;;  %2225 = vmax.xlane.f32.xlu0 %v2224_v52  ;;  %v2251_v52 = vsel %vm971_vm2, %v9082_v31, -inf }
 0x42d   : > { %2249 = vmax.xlane.f32.xlu2 %v2248_v3  ;;  %v2254_v10 = vsel %vm971_vm2, %v9084_v49, -inf }
 0x430   : > { %v2074_v53 = vpop.f32.mrf.mxu2  ;;  %v2168_v21 = vpop.f32.mrf.mxu3 }
 0x431   : > { %v9098_v37 = vadd.f32 %v2074_v53, %v1780_v62  ;;  %v9100_v3 = vadd.f32 %v2168_v21, %v1787_v13  ;;  %v9102_v61 = vpop.permute.xlu1 %3230  ;;  %v1786_v21 = vld [vmem:[#allocation2 + $0x1e8] sm:$0xff] }
 0x432   : > { %11611 = vst [vmem:[#allocation68_spill] sm:$0xff] %v9102_v61 }
 0x433   : > { %v2263_v53 = vsel %vm971_vm2, %v9100_v3, -inf }
 0x434   : > { %2255 = vmax.xlane.f32.xlu1 %v2254_v10  ;;  %2252 = vmax.xlane.f32.xlu0 %v2251_v52  ;;  %v2242_v52 = vsel %vm971_vm2, %v9098_v37, -inf }
 0x435   : > { %2240 = vmax.xlane.f32.xlu2 %v2239_v44  ;;  %v1788_v44 = vld [vmem:[#allocation2 + $0x1f8] sm:$0xff] }
 0x438   : > { %v2144_v9 = vpop.f32.mrf.mxu2  ;;  %v2170_v8 = vpop.f32.mrf.mxu3 }
 0x439   : > { %v9104_v43 = vadd.f32 %v2144_v9, %v1785_v46  ;;  %v9114_v62 = vadd.f32 %v2170_v8, %v1788_v44  ;;  %v9116_v46 = vpop.permute.xlu2 %3206  ;;  %v9120_v7 = vpop.permute.xlu1 %3256 }
 0x43a   : > { %11613 = vst [vmem:[#allocation70_spill] sm:$0xff] %v9116_v46 }
 0x43b   : > { %v2257_v10 = vsel %vm971_vm2, %v9104_v43, -inf  ;;  %11614 = vst [vmem:[#allocation71_spill] sm:$0xff] %v9120_v7  ;;  %v2266_v61 = vsel %vm971_vm2, %v9114_v62, -inf }
 0x43c   : > { %2258 = vmax.xlane.f32.xlu1 %v2257_v10  ;;  %2243 = vmax.xlane.f32.xlu0 %v2242_v52  ;;  %v9126_v52 = vpop.permute.xlu0 %3304 }
 0x43d   : > { %2264 = vmax.xlane.f32.xlu2 %v2263_v53  ;;  %11615 = vst [vmem:[#allocation72_spill] sm:$0xff] %v9126_v52 }
 0x440   : > { %v2146_v13 = vpop.f32.mrf.mxu2 }
 0x441   : > { %v9118_v9 = vadd.f32 %v2146_v13, %v1786_v21  ;;  %v9128_v53 = vpop.permute.xlu2 %3328  ;;  %v9130_v8 = vpop.permute.xlu1 %3254 }
 0x442   : > { %11616 = vst [vmem:[#allocation73_spill] sm:$0xff] %v9128_v53 }
 0x443   : > { %v2260_v10 = vsel %vm971_vm2, %v9118_v9, -inf  ;;  %11617 = vst [vmem:[#allocation74_spill] sm:$0xff] %v9130_v8 }
 0x444   : > { %2267 = vmax.xlane.f32.xlu0 %v2266_v61  ;;  %v9132_v44 = vpop.permute.xlu0 %3302 }
 0x445   : > { %2261 = vmax.xlane.f32.xlu2 %v2260_v10  ;;  %11618 = vst [vmem:[#allocation75_spill] sm:$0xff] %v9132_v44 }
 0x449   : > { %v9134_v21 = vpop.permute.xlu2 %3326  ;;  %v9136_v13 = vpop.permute.xlu1 %3352 }
 0x44a   : > { %11619 = vst [vmem:[#allocation76_spill] sm:$0xff] %v9134_v21 }
 0x44b   : > { %11620 = vst [vmem:[#allocation77_spill] sm:$0xff] %v9136_v13 }
 0x451   : > { %v9139_v29 = vpop.permute.xlu2 %3350 }
 0x452   : > { %11621 = vst [vmem:[#allocation78_spill] sm:$0xff] %v9139_v29 }
 0x457   : > { %v2175_v46 = vpop.xlane.xlu0 %2174 }
 0x458   : > { %v2269_v7 = vsub.f32 %v8940_v59, %v2175_v46 }
 0x45a   : > { %v2301_v2 = vmul.f32 1.442695, %v2269_v7 }
 0x45c   : > { %7344 = vpow2.f32 %v2301_v2 }
 0x45f   : > { %v2178_v61 = vpop.xlane.xlu1 %2177 }
 0x460   : > { %v2270_v10 = vsub.f32 %v8948_v0, %v2178_v61 }
 0x462   : > { %v9142_v52 = vpop.eup %7344  ;;  %v2303_v53 = vmul.f32 1.442695, %v2270_v10 }
 0x463   : > { %v2365_v8 = vsel %vm971_vm2, %v9142_v52, 0.0 }
 0x464   : > { %7346 = vpow2.f32 %v2303_v53  ;;  %2366 = vadd.xlane.f32.xlu0 %v2365_v8 }
 0x467   : > { %v2193_v21 = vpop.xlane.xlu2 %2192  ;;  %v2181_v44 = vpop.xlane.xlu1 %2180 }
 0x468   : > { %v2275_v13 = vsub.f32 %v8958_v20, %v2193_v21  ;;  %v2271_v7 = vsub.f32 %v8954_v22, %v2181_v44 }
 0x46a   : > { %v9148_v59 = vpop.eup %7346  ;;  %v2313_v2 = vmul.f32 1.442695, %v2275_v13  ;;  %v2305_v46 = vmul.f32 1.442695, %v2271_v7 }
 0x46b   : > { %v2368_v0 = vsel %vm971_vm2, %v9148_v59, 0.0 }
 0x46c   : > { %7348 = vpow2.f32 %v2313_v2  ;;  %2369 = vadd.xlane.f32.xlu1 %v2368_v0 }
 0x46d   : > { %7350 = vpow2.f32 %v2305_v46 }
 0x46f   : > { %v2184_v61 = vpop.xlane.xlu2 %2183  ;;  %v2196_v10 = vpop.xlane.xlu0 %2195 }
 0x470   : > { %v2272_v53 = vsub.f32 %v8968_v35, %v2184_v61  ;;  %v2276_v8 = vsub.f32 %v8970_v40, %v2196_v10 }
 0x472   : > { %v9154_v29 = vpop.eup %7348  ;;  %v2307_v20 = vmul.f32 1.442695, %v2272_v53  ;;  %v2315_v22 = vmul.f32 1.442695, %v2276_v8 }
 0x473   : > { %v9156_v44 = vpop.eup %7350  ;;  %v2383_v21 = vsel %vm971_vm2, %v9154_v29, 0.0 }
 0x474   : > { %7352 = vpow2.f32 %v2307_v20  ;;  %2384 = vadd.xlane.f32.xlu1 %v2383_v21  ;;  %v2371_v13 = vsel %vm971_vm2, %v9156_v44, 0.0 }
 0x475   : > { %7354 = vpow2.f32 %v2315_v22  ;;  %2372 = vadd.xlane.f32.xlu0 %v2371_v13 }
 0x477   : > { %v2211_v7 = vpop.xlane.xlu1 %2210  ;;  %v2199_v35 = vpop.xlane.xlu0 %2198 }
 0x478   : > { %v2281_v40 = vsub.f32 %v8986_v54, %v2211_v7  ;;  %v2187_v2 = vpop.xlane.xlu2 %2186  ;;  %v2277_v8 = vsub.f32 %v8982_v34, %v2199_v35 }
 0x479   : > { %v2273_v46 = vsub.f32 %v8984_v25, %v2187_v2 }
 0x47a   : > { %v9164_v0 = vpop.eup %7352  ;;  %v2325_v61 = vmul.f32 1.442695, %v2281_v40  ;;  %v2317_v54 = vmul.f32 1.442695, %v2277_v8 }
 0x47b   : > { %v9166_v10 = vpop.eup %7354  ;;  %v2309_v53 = vmul.f32 1.442695, %v2273_v46  ;;  %v2374_v20 = vsel %vm971_vm2, %v9164_v0, 0.0 }
 0x47c   : > { %7356 = vpow2.f32 %v2325_v61  ;;  %2375 = vadd.xlane.f32.xlu1 %v2374_v20  ;;  %v2386_v22 = vsel %vm971_vm2, %v9166_v10, 0.0 }
 0x47d   : > { %7358 = vpow2.f32 %v2309_v53  ;;  %2387 = vadd.xlane.f32.xlu0 %v2386_v22 }
 0x47e   : > { %7360 = vpow2.f32 %v2317_v54 }
 0x47f   : > { %v2202_v25 = vpop.xlane.xlu1 %2201  ;;  %v2190_v21 = vpop.xlane.xlu0 %2189 }
 0x480   : > { %v2214_v13 = vpop.xlane.xlu2 %2213  ;;  %v2274_v7 = vsub.f32 %v9000_v28, %v2190_v21  ;;  %v2278_v53 = vsub.f32 %v8998_v32, %v2202_v25 }
 0x481   : > { %v2282_v40 = vsub.f32 %v9004_v56, %v2214_v13 }
 0x482   : > { %v9175_v2 = vpop.eup %7356  ;;  %v2311_v34 = vmul.f32 1.442695, %v2274_v7  ;;  %v2319_v20 = vmul.f32 1.442695, %v2278_v53 }
 0x483   : > { %v9177_v35 = vpop.eup %7358  ;;  %v2327_v46 = vmul.f32 1.442695, %v2282_v40  ;;  %v2401_v61 = vsel %vm971_vm2, %v9175_v2, 0.0 }
 0x484   : > { %2402 = vadd.xlane.f32.xlu2 %v2401_v61  ;;  %v2377_v8 = vsel %vm971_vm2, %v9177_v35, 0.0  ;;  %v9185_v54 = vpop.eup %7360 }
 0x485   : > { %7362 = vpow2.f32 %v2327_v46  ;;  %2378 = vadd.xlane.f32.xlu0 %v2377_v8  ;;  %v2389_v46 = vsel %vm971_vm2, %v9185_v54, 0.0 }
 0x486   : > { %7364 = vpow2.f32 %v2311_v34 }
 0x487   : > { %v2217_v56 = vpop.xlane.xlu1 %2216  ;;  %v2205_v28 = vpop.xlane.xlu0 %2204  ;;  %7366 = vpow2.f32 %v2319_v20 }
 0x488   : > { %v2229_v22 = vpop.xlane.xlu2 %2228  ;;  %v2279_v21 = vsub.f32 %v9016_v30, %v2205_v28  ;;  %v2283_v32 = vsub.f32 %v9014_v39, %v2217_v56 }
 0x489   : > { %v2287_v40 = vsub.f32 %v9020_v14, %v2229_v22 }
 0x48a   : > { %v2321_v13 = vmul.f32 1.442695, %v2279_v21  ;;  %v2329_v61 = vmul.f32 1.442695, %v2283_v32 }
 0x48b   : > { %v9187_v7 = vpop.eup %7362  ;;  %v2337_v8 = vmul.f32 1.442695, %v2287_v40 }
 0x48c   : > { %v9190_v25 = vpop.eup %7364  ;;  %v2404_v34 = vsel %vm971_vm2, %v9187_v7, 0.0  ;;  %7368 = vpow2.f32 %v2321_v13 }
 0x48d   : > { %2405 = vadd.xlane.f32.xlu2 %v2404_v34  ;;  %2390 = vadd.xlane.f32.xlu0 %v2389_v46  ;;  %v2380_v30 = vsel %vm971_vm2, %v9190_v25, 0.0  ;;  %v9200_v28 = vpop.eup %7366  ;;  %7370 = vpow2.f32 %v2329_v61 }
 0x48e   : > { %2381 = vadd.xlane.f32.xlu1 %v2380_v30  ;;  %7372 = vpow2.f32 %v2337_v8  ;;  %v2392_v13 = vsel %vm971_vm2, %v9200_v28, 0.0 }
 0x48f   : > { %v2208_v39 = vpop.xlane.xlu1 %2207  ;;  %v2232_v53 = vpop.xlane.xlu0 %2231 }
 0x490   : > { %v2220_v56 = vpop.xlane.xlu2 %2219  ;;  %v2288_v14 = vsub.f32 %v9036_v15, %v2232_v53  ;;  %v2280_v22 = vsub.f32 %v9030_v42, %v2208_v39 }
 0x491   : > { %v2284_v34 = vsub.f32 %v9032_v17, %v2220_v56 }
 0x492   : > { %v2339_v20 = vmul.f32 1.442695, %v2288_v14  ;;  %v9203_v21 = vpop.eup %7368  ;;  %v2323_v15 = vmul.f32 1.442695, %v2280_v22 }
 0x493   : > { %v2395_v32 = vsel %vm971_vm2, %v9203_v21, 0.0  ;;  %v2331_v30 = vmul.f32 1.442695, %v2284_v34  ;;  %v9211_v39 = vpop.eup %7370 }
 0x494   : > { %7374 = vpow2.f32 %v2339_v20  ;;  %v9213_v53 = vpop.eup %7372  ;;  %v2407_v22 = vsel %vm971_vm2, %v9211_v39, 0.0 }
 0x495   : > { %2396 = vadd.xlane.f32.xlu2 %v2395_v32  ;;  %7376 = vpow2.f32 %v2323_v15  ;;  %v2419_v20 = vsel %vm971_vm2, %v9213_v53, 0.0 }
 0x496   : > { %2393 = vadd.xlane.f32.xlu1 %v2392_v13  ;;  %7378 = vpow2.f32 %v2331_v30 }
 0x497   : > { %v2247_v40 = vpop.xlane.xlu1 %2246  ;;  %v2235_v46 = vpop.xlane.xlu0 %2234 }
 0x498   : > { %v2223_v61 = vpop.xlane.xlu2 %2222  ;;  %v2289_v42 = vsub.f32 %v9048_v41, %v2235_v46  ;;  %v2293_v8 = vsub.f32 %v9052_v55, %v2247_v40 }
 0x499   : > { %v2285_v14 = vsub.f32 %v9050_v27, %v2223_v61 }
 0x49a   : > { %v2341_v17 = vmul.f32 1.442695, %v2289_v42  ;;  %v9216_v56 = vpop.eup %7374  ;;  %v2349_v34 = vmul.f32 1.442695, %v2293_v8 }
 0x49b   : > { %v2422_v41 = vsel %vm971_vm2, %v9216_v56, 0.0  ;;  %v2333_v32 = vmul.f32 1.442695, %v2285_v14  ;;  %v9225_v40 = vpop.eup %7376 }
 0x49c   : > { %7380 = vpow2.f32 %v2341_v17  ;;  %2423 = vadd.xlane.f32.xlu0 %v2422_v41  ;;  %v9227_v27 = vpop.eup %7378  ;;  %v2398_v17 = vsel %vm971_vm2, %v9225_v40, 0.0 }
 0x49d   : > { %2408 = vadd.xlane.f32.xlu2 %v2407_v22  ;;  %7382 = vpow2.f32 %v2349_v34  ;;  %v2410_v42 = vsel %vm971_vm2, %v9227_v27, 0.0 }
 0x49e   : > { %2420 = vadd.xlane.f32.xlu1 %v2419_v20  ;;  %7384 = vpow2.f32 %v2333_v32 }
 0x49f   : > { %v2238_v55 = vpop.xlane.xlu1 %2237  ;;  %v2226_v13 = vpop.xlane.xlu0 %2225 }
 0x4a0   : > { %v2250_v15 = vpop.xlane.xlu2 %2249  ;;  %v2286_v61 = vsub.f32 %v9068_v19, %v2226_v13  ;;  %v2290_v32 = vsub.f32 %v9066_v48, %v2238_v55 }
 0x4a1   : > { %v2294_v46 = vsub.f32 %v9070_v23, %v2250_v15 }
 0x4a2   : > { %v9230_v30 = vpop.eup %7380  ;;  %v2335_v22 = vmul.f32 1.442695, %v2286_v61 }
 0x4a3   : > { %11622 = vst [vmem:[#allocation79_spill] sm:$0xff] %v9230_v30  ;;  %v2425_v8 = vsel %vm971_vm2, %v9230_v30, 0.0  ;;  %v2351_v14 = vmul.f32 1.442695, %v2294_v46  ;;  %v9239_v34 = vpop.eup %7382 }
 0x4a4   : > { %2426 = vadd.xlane.f32.xlu0 %v2425_v8  ;;  %v9242_v13 = vpop.eup %7384 }
 0x4a5   : > { %2399 = vadd.xlane.f32.xlu2 %v2398_v17  ;;  %7386 = vpow2.f32 %v2351_v14  ;;  %v2413_v61 = vsel %vm971_vm2, %v9242_v13, 0.0  ;;  %v2343_v17 = vmul.f32 1.442695, %v2290_v32 }
 0x4a6   : > { %2411 = vadd.xlane.f32.xlu1 %v2410_v42  ;;  %7388 = vpow2.f32 %v2335_v22  ;;  %v2437_v42 = vsel %vm971_vm2, %v9239_v34, 0.0 }
 0x4a7   : > { %v2256_v20 = vpop.xlane.xlu1 %2255  ;;  %v2253_v23 = vpop.xlane.xlu0 %2252 }
 0x4a8   : > { %v2241_v41 = vpop.xlane.xlu2 %2240  ;;  %v2295_v30 = vsub.f32 %v9082_v31, %v2253_v23  ;;  %v2296_v46 = vsub.f32 %v9084_v49, %v2256_v20 }
 0x4a9   : > { %v2291_v19 = vsub.f32 %v9086_v58, %v2241_v41 }
 0x4aa   : > { %v2353_v58 = vmul.f32 1.442695, %v2295_v30  ;;  %v2355_v55 = vmul.f32 1.442695, %v2296_v46 }
 0x4ab   : > { %v2345_v15 = vmul.f32 1.442695, %v2291_v19  ;;  %v9251_v41 = vpop.eup %7386 }
 0x4ac   : > { %v9253_v31 = vpop.eup %7388  ;;  %v2440_v22 = vsel %vm971_vm2, %v9251_v41, 0.0 }
 0x4ad   : > { %7390 = vpow2.f32 %v2345_v15  ;;  %2438 = vadd.xlane.f32.xlu2 %v2437_v42  ;;  %v2416_v19 = vsel %vm971_vm2, %v9253_v31, 0.0 }
 0x4ae   : > { %2414 = vadd.xlane.f32.xlu1 %v2413_v61  ;;  %7392 = vpow2.f32 %v2343_v17 }
 0x4af   : > { %v2259_v8 = vpop.xlane.xlu1 %2258  ;;  %v2244_v48 = vpop.xlane.xlu0 %2243  ;;  %7394 = vpow2.f32 %v2353_v58 }
 0x4b0   : > { %v2265_v14 = vpop.xlane.xlu2 %2264  ;;  %v2297_v49 = vsub.f32 %v9104_v43, %v2259_v8  ;;  %7396 = vpow2.f32 %v2355_v55  ;;  %v2292_v58 = vsub.f32 %v9098_v37, %v2244_v48 }
 0x4b1   : > { %v2299_v23 = vsub.f32 %v9100_v3, %v2265_v14 }
 0x4b2   : > { %v2357_v32 = vmul.f32 1.442695, %v2297_v49  ;;  %v2347_v49 = vmul.f32 1.442695, %v2292_v58 }
 0x4b3   : > { %v9256_v20 = vpop.eup %7390  ;;  %v2361_v43 = vmul.f32 1.442695, %v2299_v23 }
 0x4b4   : > { %v2431_v30 = vsel %vm971_vm2, %v9256_v20, 0.0  ;;  %v9265_v46 = vpop.eup %7392  ;;  %7398 = vpow2.f32 %v2357_v32 }
 0x4b5   : > { %2432 = vadd.xlane.f32.xlu0 %v2431_v30  ;;  %2417 = vadd.xlane.f32.xlu2 %v2416_v19  ;;  %v9268_v61 = vpop.eup %7394  ;;  %7400 = vpow2.f32 %v2361_v43  ;;  %v2428_v14 = vsel %vm971_vm2, %v9265_v46, 0.0 }
 0x4b6   : > { %2441 = vadd.xlane.f32.xlu1 %v2440_v22  ;;  %v9270_v42 = vpop.eup %7396  ;;  %v2443_v8 = vsel %vm971_vm2, %v9268_v61, 0.0 }
 0x4b7   : > { %v2268_v15 = vpop.xlane.xlu0 %2267  ;;  %v2446_v55 = vsel %vm971_vm2, %v9270_v42, 0.0 }
 0x4b8   : > { %v2300_v3 = vsub.f32 %v9114_v62, %v2268_v15  ;;  %v2262_v30 = vpop.xlane.xlu2 %2261 }
 0x4b9   : > { %v2298_v22 = vsub.f32 %v9118_v9, %v2262_v30 }
 0x4ba   : > { %v2363_v17 = vmul.f32 1.442695, %v2300_v3  ;;  %v9279_v62 = vpop.eup %7398 }
 0x4bb   : > { %v9281_v23 = vpop.eup %7400  ;;  %v2449_v19 = vsel %vm971_vm2, %v9279_v62, 0.0  ;;  %v2359_v43 = vmul.f32 1.442695, %v2298_v22 }
 0x4bc   : > { %7402 = vpow2.f32 %v2363_v17  ;;  %v2455_v32 = vsel %vm971_vm2, %v9281_v23, 0.0 }
 0x4bd   : > { %2444 = vadd.xlane.f32.xlu0 %v2443_v8  ;;  %2429 = vadd.xlane.f32.xlu2 %v2428_v14  ;;  %7404 = vpow2.f32 %v2347_v49 }
 0x4be   : > { %2447 = vadd.xlane.f32.xlu1 %v2446_v55  ;;  %7406 = vpow2.f32 %v2359_v43 }
 0x4c2   : > { %v9283_v37 = vpop.eup %7402 }
 0x4c3   : > { %v2458_v48 = vsel %vm971_vm2, %v9283_v37, 0.0  ;;  %v9292_v15 = vpop.eup %7404 }
 0x4c4   : > { %v2434_v3 = vsel %vm971_vm2, %v9292_v15, 0.0  ;;  %v9296_v17 = vpop.eup %7406 }
 0x4c5   : > { %2459 = vadd.xlane.f32.xlu0 %v2458_v48  ;;  %2456 = vadd.xlane.f32.xlu2 %v2455_v32  ;;  %v2452_v9 = vsel %vm971_vm2, %v9296_v17, 0.0 }
 0x4c6   : > { %2450 = vadd.xlane.f32.xlu1 %v2449_v19 }
 0x4cd   : > { %2435 = vadd.xlane.f32.xlu2 %v2434_v3 }
 0x4d5   : > { %2453 = vadd.xlane.f32.xlu2 %v2452_v9 }
 0x4d7   : > { %v2367_v58 = vpop.xlane.xlu0 %2366 }
 0x4d8   : > { %7408 = vrcp.f32 %v2367_v58 }
 0x4d9   : > { %3788 = vrot.lane.b32.xlu0 %v8043_v38, %s7837_s19 }
 0x4de   : > { %v7409_v55 = vpop.eup %7408 }
 0x4df   : > { %3763 = vrot.lane.b32.xlu1 %v8009_v5, %s7837_s19  ;;  %v2370_v8 = vpop.xlane.xlu1 %2369  ;;  %v2493_v14 = vmul.f32 %v7409_v55, %v9142_v52 }
 0x4e0   : > { %7410 = vrcp.f32 %v2370_v8 }
 0x4e1   : > { %3963 = vrot.lane.b32.xlu0 %v8031_v26, %s7837_s19  ;;  %v2525_v30 = vpack.c.bf16 %v2493_v14, %v2493_v14 }
 0x4e3   : > { %v2559_v43 = vunpack.c.l.b16 %v2525_v30 }
 0x4e6   : > { %v7411_v49 = vpop.eup %7410 }
 0x4e7   : > { %v2494_v48 = vmul.f32 %v7411_v49, %v9148_v59  ;;  %3813 = vrot.lane.b32.xlu1 %v8075_v4, %s7837_s19  ;;  %v2385_v22 = vpop.xlane.xlu1 %2384 }
 0x4e8   : > { %v2373_v19 = vpop.xlane.xlu0 %2372 }
 0x4e9   : > { %v2526_v32 = vpack.c.bf16 %v2494_v48, %v2494_v48  ;;  %4063 = vrot.lane.b32.xlu0 %v8041_v36, %s7837_s19  ;;  %7412 = vrcp.f32 %v2373_v19 }
 0x4ea   : > { %7414 = vrcp.f32 %v2385_v22 }
 0x4eb   : > { %v2560_v3 = vunpack.c.l.b16 %v2526_v32 }
 0x4ed   : > { %v2561_v9 = vpack.c.b16 %v2560_v3, %v2559_v43  ;;  %3863 = vrot.lane.b32.xlu2 %v8011_v6, %s7837_s19 }
 0x4ef   : > { %3838 = vrot.lane.b32.xlu1 %v11514_v60, %s7837_s19  ;;  %v2376_v52 = vpop.xlane.xlu1 %2375  ;;  %6785 = vmatmul.msk.bf16.vlgmr.msrb.gmra.mxu0 %vm971_vm2, %v2561_v9  ;;  %v7413_v59 = vpop.eup %7412 }
 0x4f0   : > { %7416 = vrcp.f32 %v2376_v52  ;;  %2775 = vmatpush.bf16.msrb.mxu0 %v8873_v11  ;;  %v2388_v58 = vpop.xlane.xlu0 %2387  ;;  %v7415_v8 = vpop.eup %7414  ;;  %v2495_v55 = vmul.f32 %v7413_v59, %v9156_v44 }
 0x4f1   : > { %7418 = vrcp.f32 %v2388_v58  ;;  %4193 = vrot.lane.b32.xlu0 %v8009_v5, %s7838_s20  ;;  %v2499_v14 = vmul.f32 %v7415_v8, %v9154_v29 }
 0x4f2   : > { %v2527_v48 = vpack.c.bf16 %v2495_v55, %v2495_v55 }
 0x4f3   : > { %v2531_v19 = vpack.c.bf16 %v2499_v14, %v2499_v14 }
 0x4f4   : > { %v2584_v44 = vunpack.c.l.b16 %v2527_v48 }
 0x4f5   : > { %3888 = vrot.lane.b32.xlu2 %v8053_v50, %s7837_s19  ;;  %v2634_v52 = vunpack.c.l.b16 %v2531_v19 }
 0x4f6   : > { %v7417_v49 = vpop.eup %7416 }
 0x4f7   : > { %v7419_v30 = vpop.eup %7418  ;;  %v2496_v22 = vmul.f32 %v7417_v49, %v9164_v0  ;;  %3938 = vrot.lane.b32.xlu1 %v8115_v47, %s7837_s19  ;;  %v2403_v11 = vpop.xlane.xlu2 %2402 }
 0x4f8   : > { %v2500_v32 = vmul.f32 %v7419_v30, %v9166_v10  ;;  %v2379_v43 = vpop.xlane.xlu0 %2378 }
 0x4f9   : > { %v2528_v3 = vpack.c.bf16 %v2496_v22, %v2496_v22  ;;  %4088 = vrot.lane.b32.xlu0 %v8085_v18, %s7837_s19  ;;  %7420 = vrcp.f32 %v2379_v43 }
 0x4fa   : > { %v2532_v29 = vpack.c.bf16 %v2500_v32, %v2500_v32 }
 0x4fb   : > { %v2585_v9 = vunpack.c.l.b16 %v2528_v3 }
 0x4fc   : > { %v2635_v59 = vunpack.c.l.b16 %v2532_v29 }
 0x4fd   : > { %v2586_v58 = vpack.c.b16 %v2585_v9, %v2584_v44  ;;  %3913 = vrot.lane.b32.xlu2 %v8083_v16, %s7837_s19 }
 0x4fe   : > { %v2636_v0 = vpack.c.b16 %v2635_v59, %v2634_v52 }
 0x4ff   : > { %4191 = vrot.lane.b32.xlu1 %v8009_v5, %s7839_s26  ;;  %6786 = vmatmul.msk.bf16.vlgmr.msrb.gmra.mxu1 %vm971_vm2, %v2586_v58  ;;  %v7421_v14 = vpop.eup %7420 }
 0x500   : > { %v2406_v10 = vpop.xlane.xlu2 %2405  ;;  %6788 = vmatmul.msk.bf16.vlgmr.msrb.gmra.mxu3 %vm971_vm2, %v2636_v0  ;;  %2800 = vmatpush.bf16.msrb.mxu1 %v8898_v24  ;;  %v2391_v55 = vpop.xlane.xlu0 %2390  ;;  %v2497_v49 = vmul.f32 %v7421_v14, %v9177_v35 }
 0x501   : > { %v2382_v8 = vpop.xlane.xlu1 %2381  ;;  %2850 = vmatpush.bf16.msrb.mxu3 %v8966_v51  ;;  %4038 = vrot.lane.b32.xlu0 %v8139_v12, %s7837_s19 }
 0x502   : > { %7422 = vrcp.f32 %v2382_v8  ;;  %v2529_v48 = vpack.c.bf16 %v2497_v49, %v2497_v49 }
 0x503   : > { %7424 = vrcp.f32 %v2391_v55 }
 0x504   : > { %7426 = vrcp.f32 %v2406_v10  ;;  %v2609_v43 = vunpack.c.l.b16 %v2529_v48 }
 0x505   : > { %3988 = vrot.lane.b32.xlu2 %v8063_v57, %s7837_s19 }
 0x508   : > { %v7423_v30 = vpop.eup %7422  ;;  %v2397_v19 = vpop.xlane.xlu2 %2396 }
 0x509   : > { %v2498_v24 = vmul.f32 %v7423_v30, %v9190_v25  ;;  %v2394_v22 = vpop.xlane.xlu1 %2393  ;;  %v7425_v51 = vpop.eup %7424 }
 0x50a   : > { %7428 = vrcp.f32 %v2394_v22  ;;  %v2501_v29 = vmul.f32 %v7425_v51, %v9185_v54  ;;  %v7427_v35 = vpop.eup %7426 }
 0x50b   : > { %v2530_v32 = vpack.c.bf16 %v2498_v24, %v2498_v24  ;;  %7430 = vrcp.f32 %v2403_v11  ;;  %v2506_v11 = vmul.f32 %v7427_v35, %v9187_v7 }
 0x50c   : > { %v2533_v52 = vpack.c.bf16 %v2501_v29, %v2501_v29 }
 0x50d   : > { %v2610_v3 = vunpack.c.l.b16 %v2530_v32  ;;  %4013 = vrot.lane.b32.xlu2 %v8103_v33, %s7837_s19 }
 0x50e   : > { %v2659_v8 = vunpack.c.l.b16 %v2533_v52 }
 0x50f   : > { %v2611_v44 = vpack.c.b16 %v2610_v3, %v2609_v43  ;;  %v2424_v14 = vpop.xlane.xlu0 %2423 }
 0x510   : > { %v7429_v9 = vpop.eup %7428  ;;  %v2409_v58 = vpop.xlane.xlu2 %2408 }
 0x511   : > { %v2502_v59 = vmul.f32 %v7429_v9, %v9200_v28  ;;  %v2421_v25 = vpop.xlane.xlu1 %2420  ;;  %6787 = vmatmul.msk.bf16.vlgmr.msrb.gmra.mxu2 %vm971_vm2, %v2611_v44  ;;  %v7431_v0 = vpop.eup %7430  ;;  %7432 = vrcp.f32 %v2409_v58  ;;  %v2538_v28 = vpack.c.bf16 %v2506_v11, %v2506_v11 }
 0x512   : > { %2825 = vmatpush.bf16.msrb.mxu2 %v8972_v45  ;;  %v2505_v54 = vmul.f32 %v7431_v0, %v9175_v2  ;;  %7434 = vrcp.f32 %v2397_v19 }
 0x513   : > { %v2534_v10 = vpack.c.bf16 %v2502_v59, %v2502_v59  ;;  %v2710_v2 = vunpack.c.l.b16 %v2538_v28  ;;  %v11623_v59 = vld [vmem:[#allocation30_spill] sm:$0xff] }
 0x514   : > { %v2537_v30 = vpack.c.bf16 %v2505_v54, %v2505_v54 }
 0x515   : > { %v2660_v55 = vunpack.c.l.b16 %v2534_v10  ;;  %4113 = vrot.lane.b32.xlu2 %v8127_v1, %s7837_s19 }
 0x516   : > { %v2709_v22 = vunpack.c.l.b16 %v2537_v30 }
 0x517   : > { %v2661_v49 = vpack.c.b16 %v2660_v55, %v2659_v8  ;;  %v7433_v45 = vpop.eup %7432  ;;  %v2427_v3 = vpop.xlane.xlu0 %2426 }
 0x518   : > { %v2400_v24 = vpop.xlane.xlu2 %2399  ;;  %v7435_v7 = vpop.eup %7434  ;;  %v2507_v19 = vmul.f32 %v7433_v45, %v9211_v39  ;;  %v2711_v32 = vpack.c.b16 %v2710_v2, %v2709_v22 }
 0x519   : > { %v2412_v48 = vpop.xlane.xlu1 %2411  ;;  %6789 = vmatmul.msk.bf16.vlgmr.msra.gmra.mxu0 %vm971_vm2, %v2661_v49  ;;  %v2503_v51 = vmul.f32 %v7435_v7, %v9203_v21 }
 0x51a   : > { %7436 = vrcp.f32 %v2412_v48  ;;  %2875 = vmatpush.bf16.msra.mxu0 %v8950_v63  ;;  %v2539_v35 = vpack.c.bf16 %v2507_v19, %v2507_v19  ;;  %v11625_v48 = vld [vmem:[#allocation52_spill] sm:$0xff] }
 0x51b   : > { %7438 = vrcp.f32 %v2400_v24  ;;  %v2535_v52 = vpack.c.bf16 %v2503_v51, %v2503_v51 }
 0x51c   : > { %7440 = vrcp.f32 %v2421_v25  ;;  %v2734_v0 = vunpack.c.l.b16 %v2539_v35 }
 0x51d   : > { %4217 = vrot.lane.b32.xlu2 %v8043_v38, %s7838_s20  ;;  %7442 = vrcp.f32 %v2424_v14  ;;  %v2684_v10 = vunpack.c.l.b16 %v2535_v52  ;;  %v11624_v14 = vld [vmem:[#allocation39_spill] sm:$0xff] }
 0x520   : > { %v7437_v43 = vpop.eup %7436  ;;  %v2439_v63 = vpop.xlane.xlu2 %2438 }
 0x521   : > { %v7439_v29 = vpop.eup %7438  ;;  %v2508_v44 = vmul.f32 %v7437_v43, %v9227_v27  ;;  %v2415_v9 = vpop.xlane.xlu1 %2414  ;;  %6791 = vmatmul.msk.bf16.vlgmr.msra.gmra.mxu2 %vm971_vm2, %v2711_v32 }
 0x522   : > { %v2504_v39 = vmul.f32 %v7439_v29, %v9225_v40  ;;  %2925 = vmatpush.bf16.msra.mxu2 %v11623_v59  ;;  %7444 = vrcp.f32 %v2415_v9  ;;  %v7441_v8 = vpop.eup %7440  ;;  %v11626_v9 = vld [vmem:[#allocation79_spill] sm:$0xff] }
 0x523   : > { %v2540_v21 = vpack.c.bf16 %v2508_v44, %v2508_v44  ;;  %v7443_v25 = vpop.eup %7442  ;;  %v2511_v24 = vmul.f32 %v7441_v8, %v9213_v53  ;;  %v11628_v8 = vld [vmem:[#allocation33_spill] sm:$0xff] }
 0x524   : > { %v2536_v58 = vpack.c.bf16 %v2504_v39, %v2504_v39  ;;  %v2512_v45 = vmul.f32 %v7443_v25, %v9216_v56 }
 0x525   : > { %v2735_v11 = vunpack.c.l.b16 %v2540_v21  ;;  %4241 = vrot.lane.b32.xlu2 %v8075_v4, %s7838_s20  ;;  %v2543_v2 = vpack.c.bf16 %v2511_v24, %v2511_v24 }
 0x526   : > { %v2685_v54 = vunpack.c.l.b16 %v2536_v58  ;;  %v2544_v22 = vpack.c.bf16 %v2512_v45, %v2512_v45 }
 0x527   : > { %v2736_v27 = vpack.c.b16 %v2735_v11, %v2734_v0  ;;  %v2784_v56 = vunpack.c.l.b16 %v2543_v2 }
 0x528   : > { %v2686_v55 = vpack.c.b16 %v2685_v54, %v2684_v10  ;;  %v2433_v28 = vpop.xlane.xlu0 %2432  ;;  %v2418_v40 = vpop.xlane.xlu2 %2417 }
 0x529   : > { %v2442_v49 = vpop.xlane.xlu1 %2441  ;;  %6792 = vmatmul.msk.bf16.vlgmr.msra.gmra.mxu3 %vm971_vm2, %v2736_v27  ;;  %v7445_v30 = vpop.eup %7444  ;;  %7446 = vrcp.f32 %v2418_v40  ;;  %v11627_v27 = vld [vmem:[#allocation37_spill] sm:$0xff] }
 0x52a   : > { %6790 = vmatmul.msk.bf16.vlgmr.msra.gmra.mxu1 %vm971_vm2, %v2686_v55  ;;  %2950 = vmatpush.bf16.msra.mxu3 %v11624_v14  ;;  %7448 = vrcp.f32 %v2427_v3  ;;  %v2509_v7 = vmul.f32 %v7445_v30, %v9242_v13  ;;  %v2785_v3 = vunpack.c.l.b16 %v2544_v22  ;;  %v3022_v55 = vsel %vm545_vm1, %v11628_v8, 0 }
 0x52b   : > { %2900 = vmatpush.bf16.msra.mxu1 %v11625_v48  ;;  %7450 = vrcp.f32 %v2442_v49 }
 0x52c   : > { %v2541_v29 = vpack.c.bf16 %v2509_v7, %v2509_v7  ;;  %v2786_v0 = vpack.c.b16 %v2785_v3, %v2784_v56 }
 0x52d   : > { %4215 = vrot.lane.b32.xlu2 %v8043_v38, %s7839_s26 }
 0x52e   : > { %v2759_v39 = vunpack.c.l.b16 %v2541_v29 }
 0x52f   : > { %v7447_v51 = vpop.eup %7446 }
 0x530   : > { %v2445_v19 = vpop.xlane.xlu0 %2444  ;;  %v2430_v43 = vpop.xlane.xlu2 %2429  ;;  %v2510_v35 = vmul.f32 %v7447_v51, %v9253_v31  ;;  %v2998_v31 = vsel %vm545_vm1, %v11627_v27, 0 }
 0x531   : > { %v2448_v32 = vpop.xlane.xlu1 %2447  ;;  %7452 = vrcp.f32 %v2445_v19  ;;  %v7449_v53 = vpop.eup %7448 }
 0x532   : > { %7454 = vrcp.f32 %v2448_v32  ;;  %v2542_v13 = vpack.c.bf16 %v2510_v35, %v2510_v35  ;;  %v7451_v44 = vpop.eup %7450  ;;  %v2513_v52 = vmul.f32 %v7449_v53, %v11626_v9 }
 0x533   : > { %7456 = vrcp.f32 %v2430_v43  ;;  %v2518_v40 = vmul.f32 %v7451_v44, %v9251_v41  ;;  %v11629_v43 = vld [vmem:[#allocation28_spill] sm:$0xff] }
 0x534   : > { %7458 = vrcp.f32 %v2439_v63  ;;  %v2760_v59 = vunpack.c.l.b16 %v2542_v13  ;;  %v2545_v25 = vpack.c.bf16 %v2513_v52, %v2513_v52  ;;  %v3046_v29 = vsel %vm545_vm1, %v11629_v43, 0 }
 0x535   : > { %7460 = vrcp.f32 %v2433_v28 }
 0x536   : > { %v2761_v11 = vpack.c.b16 %v2760_v59, %v2759_v39  ;;  %v2809_v24 = vunpack.c.l.b16 %v2545_v25  ;;  %v11632_v25 = vld [vmem:[#allocation34_spill] sm:$0xff] }
 0x537   : > { %v7453_v21 = vpop.eup %7452 }
 0x538   : > { %v7455_v58 = vpop.eup %7454  ;;  %v2457_v54 = vpop.xlane.xlu2 %2456  ;;  %6793 = vmatmul.msk.bf16.vlgmr.msrb.gmra.mxu0 %vm971_vm2, %v2761_v11  ;;  %v2519_v48 = vmul.f32 %v7453_v21, %v9268_v61  ;;  %v11630_v21 = vld [vmem:[#allocation58_spill] sm:$0xff] }
 0x539   : > { %v7457_v10 = vpop.eup %7456  ;;  %3007 = vmatpush.bf16.xpose.msrb.mxu0 %v2998_v31  ;;  %v2520_v14 = vmul.f32 %v7455_v58, %v9270_v42  ;;  %v2451_v32 = vpop.xlane.xlu1 %2450  ;;  %v3118_v58 = vsel %vm545_vm1, %v11630_v21, 0  ;;  %v11647_v21 = vld [vmem:[#allocation61_spill] sm:$0xff] }
 0x53a   : > { %v2514_v63 = vmul.f32 %v7457_v10, %v9265_v46  ;;  %6794 = vmatmul.msk.bf16.vlgmr.msrb.gmra.mxu1 %vm971_vm2, %v2786_v0  ;;  %v7459_v49 = vpop.eup %7458  ;;  %v2550_v46 = vpack.c.bf16 %v2518_v40, %v2518_v40  ;;  %v2551_v19 = vpack.c.bf16 %v2519_v48, %v2519_v48  ;;  %v2460_v53 = vpop.xlane.xlu0 %2459  ;;  %v11631_v0 = vld [vmem:[#allocation49_spill] sm:$0xff] }
 0x53b   : > { %3031 = vmatpush.bf16.xpose.msrb.mxu1 %v3022_v55  ;;  %v2517_v45 = vmul.f32 %v7459_v49, %v9239_v34  ;;  %v2552_v2 = vpack.c.bf16 %v2520_v14, %v2520_v14  ;;  %v7461_v51 = vpop.eup %7460  ;;  %v3094_v11 = vsel %vm545_vm1, %v11631_v0, 0 }
 0x53c   : > { %v2546_v30 = vpack.c.bf16 %v2514_v63, %v2514_v63  ;;  %v2860_v61 = vunpack.c.l.b16 %v2550_v46  ;;  %v2884_v35 = vunpack.c.l.b16 %v2551_v19  ;;  %v2515_v34 = vmul.f32 %v7461_v51, %v9256_v20  ;;  %v11634_v19 = vld [vmem:[#allocation56_spill] sm:$0xff]  ;;  %v11635_v51 = vld [vmem:[#allocation45_spill] sm:$0xff] }
 0x53d   : > { %v2549_v41 = vpack.c.bf16 %v2517_v45, %v2517_v45  ;;  %v2885_v42 = vunpack.c.l.b16 %v2552_v2  ;;  %v3070_v63 = vsel %vm545_vm1, %v11632_v25, 0  ;;  %v11633_v2 = vld [vmem:[#allocation57_spill] sm:$0xff]  ;;  %v11653_v25 = vld [vmem:[#allocation68_spill] sm:$0xff] }
 0x53e   : > { %v2810_v7 = vunpack.c.l.b16 %v2546_v30  ;;  %v2547_v9 = vpack.c.bf16 %v2515_v34, %v2515_v34 }
 0x53f   : > { %v2859_v56 = vunpack.c.l.b16 %v2549_v41  ;;  %v2886_v44 = vpack.c.b16 %v2885_v42, %v2884_v35  ;;  %v11638_v41 = vld [vmem:[#allocation64_spill] sm:$0xff]  ;;  %v11639_v42 = vld [vmem:[#allocation55_spill] sm:$0xff] }
 0x540   : > { %v2811_v22 = vpack.c.b16 %v2810_v7, %v2809_v24  ;;  %v2436_v28 = vpop.xlane.xlu2 %2435  ;;  %v2834_v10 = vunpack.c.l.b16 %v2547_v9  ;;  %v11640_v35 = vld [vmem:[#allocation67_spill] sm:$0xff] }
 0x541   : > { %7462 = vrcp.f32 %v2436_v28  ;;  %v2861_v13 = vpack.c.b16 %v2860_v61, %v2859_v56  ;;  %v3166_v61 = vsel %vm545_vm1, %v11638_v41, 0  ;;  %v3286_v34 = vsel %vm545_vm1, %v11640_v35, 0 }
 0x542   : > { %6795 = vmatmul.msk.bf16.vlgmr.msrb.gmra.mxu2 %vm971_vm2, %v2811_v22  ;;  %7464 = vrcp.f32 %v2451_v32  ;;  %v3190_v22 = vsel %vm545_vm1, %v11633_v2, 0 }
 0x543   : > { %3055 = vmatpush.bf16.xpose.msrb.mxu2 %v3046_v29  ;;  %7466 = vrcp.f32 %v2460_v53  ;;  %v11641_v53 = vld [vmem:[#allocation63_spill] sm:$0xff] }
 0x544   : > { %7468 = vrcp.f32 %v2457_v54  ;;  %v3238_v56 = vsel %vm545_vm1, %v11641_v53, 0 }
 0x547   : > { %v7463_v3 = vpop.eup %7462 }
 0x548   : > { %v2516_v52 = vmul.f32 %v7463_v3, %v9292_v15  ;;  %v2454_v39 = vpop.xlane.xlu2 %2453  ;;  %v7465_v59 = vpop.eup %7464  ;;  %6797 = vmatmul.msk.bf16.vlgmr.msra.gmra.mxu0 %vm971_vm2, %v2861_v13  ;;  %v11642_v3 = vld [vmem:[#allocation54_spill] sm:$0xff]  ;;  %v11643_v13 = vld [vmem:[#allocation60_spill] sm:$0xff] }
 0x549   : > { %7470 = vrcp.f32 %v2454_v39  ;;  %3103 = vmatpush.bf16.xpose.msra.mxu0 %v3094_v11  ;;  %v2521_v54 = vmul.f32 %v7465_v59, %v9279_v62  ;;  %v7467_v27 = vpop.eup %7466  ;;  %v11646_v59 = vld [vmem:[#allocation59_spill] sm:$0xff] }
 0x54a   : > { %6798 = vmatmul.msk.bf16.vlgmr.msra.gmra.mxu1 %vm971_vm2, %v2886_v44  ;;  %v2548_v20 = vpack.c.bf16 %v2516_v52, %v2516_v52  ;;  %v7469_v31 = vpop.eup %7468  ;;  %v2524_v30 = vmul.f32 %v7467_v27, %v9283_v37  ;;  %v11637_v37 = vld [vmem:[#allocation65_spill] sm:$0xff]  ;;  %v11644_v44 = vld [vmem:[#allocation72_spill] sm:$0xff]  ;;  %v11645_v52 = vld [vmem:[#allocation71_spill] sm:$0xff] }
 0x54b   : > { %3127 = vmatpush.bf16.xpose.msra.mxu1 %v3118_v58  ;;  %v2553_v49 = vpack.c.bf16 %v2521_v54, %v2521_v54  ;;  %v2523_v14 = vmul.f32 %v7469_v31, %v9281_v23  ;;  %v11636_v23 = vld [vmem:[#allocation40_spill] sm:$0xff]  ;;  %v3214_v32 = vsel %vm545_vm1, %v11637_v37, 0  ;;  %v3310_v9 = vsel %vm545_vm1, %v11644_v44, 0  ;;  %v11648_v58 = vld [vmem:[#allocation73_spill] sm:$0xff]  ;;  %v3789_v54 = vpop.permute.xlu0 %3788 }
 0x54c   : > { %v2835_v15 = vunpack.c.l.b16 %v2548_v20  ;;  %v2556_v7 = vpack.c.bf16 %v2524_v30, %v2524_v30  ;;  %v3262_v39 = vsel %vm545_vm1, %v11645_v52, 0  ;;  %v3334_v0 = vsel %vm545_vm1, %v11648_v58, 0  ;;  %v11649_v20 = vld [vmem:[#allocation62_spill] sm:$0xff] }
 0x54d   : > { %v2909_v62 = vunpack.c.l.b16 %v2553_v49  ;;  %v2555_v45 = vpack.c.bf16 %v2523_v14, %v2523_v14  ;;  %v11655_v49 = vld [vmem:[#allocation75_spill] sm:$0xff]  ;;  %v11656_v30 = vld [vmem:[#allocation74_spill] sm:$0xff] }
 0x54e   : > { %v2836_v8 = vpack.c.b16 %v2835_v15, %v2834_v10  ;;  %v2935_v43 = vunpack.c.l.b16 %v2556_v7  ;;  %v11650_v10 = vld [vmem:[#allocation70_spill] sm:$0xff]  ;;  %v11651_v15 = vld [vmem:[#allocation77_spill] sm:$0xff] }
 0x54f   : > { %v7471_v55 = vpop.eup %7470  ;;  %v2934_v28 = vunpack.c.l.b16 %v2555_v45  ;;  %v3358_v27 = vsel %vm545_vm1, %v11651_v15, 0  ;;  %v11659_v45 = vld [vmem:[#allocation76_spill] sm:$0xff]  ;;  %v2960_v58 = vld [vmem:[#allocation2 + $0x210] sm:$0xff] }
 0x550   : > { %v2522_v40 = vmul.f32 %v7471_v55, %v9296_v17  ;;  %6796 = vmatmul.msk.bf16.vlgmr.msrb.gmra.mxu3 %vm971_vm2, %v2836_v8  ;;  %v3142_v17 = vsel %vm545_vm1, %v11634_v19, 0  ;;  %v3864_v31 = vpop.permute.xlu2 %3863  ;;  %v11652_v8 = vld [vmem:[#allocation66_spill] sm:$0xff] }
 0x551   : > { %3079 = vmatpush.bf16.xpose.msrb.mxu3 %v3070_v63  ;;  %v2936_v29 = vpack.c.b16 %v2935_v43, %v2934_v28  ;;  %v3764_v11 = vpop.permute.xlu1 %3763  ;;  %v11654_v63 = vld [vmem:[#allocation69_spill] sm:$0xff] }
 0x552   : > { %v2554_v48 = vpack.c.bf16 %v2522_v40, %v2522_v40 }
 0x554   : > { %v2910_v24 = vunpack.c.l.b16 %v2554_v48 }
 0x556   : > { %v2911_v46 = vpack.c.b16 %v2910_v24, %v2909_v62 }
 0x558   : > { %6799 = vmatmul.msk.bf16.vlgmr.msra.gmra.mxu2 %vm971_vm2, %v2911_v46  ;;  %6801 = vmatmul.msk.bf16.vlgmr.msrb.gmra.mxu0 %vm545_vm1, %v11635_v51  ;;  %v3889_v40 = vpop.permute.xlu2 %3888 }
 0x559   : > { %3151 = vmatpush.bf16.xpose.msra.mxu2 %v3142_v17  ;;  %3199 = vmatpush.bf16.xpose.msrb.mxu0 %v3190_v22  ;;  %v3814_v55 = vpop.permute.xlu1 %3813  ;;  %v11662_v22 = vld [vmem:[#allocation78_spill] sm:$0xff] }
 0x55a   : > { %6802 = vmatmul.msk.bf16.vlgmr.msrb.gmra.mxu1 %vm545_vm1, %v11636_v23 }
 0x55b   : > { %3223 = vmatpush.bf16.xpose.msrb.mxu1 %v3214_v32 }
 0x560   : > { %6800 = vmatmul.msk.bf16.vlgmr.msra.gmra.mxu3 %vm971_vm2, %v2936_v29  ;;  %v3914_v24 = vpop.permute.xlu2 %3913 }
 0x561   : > { %3175 = vmatpush.bf16.xpose.msra.mxu3 %v3166_v61  ;;  %v3839_v14 = vpop.permute.xlu1 %3838 }
 0x568   : > { %6803 = vmatmul.msk.bf16.vlgmr.msrb.gmra.mxu2 %vm545_vm1, %v11639_v42  ;;  %6805 = vmatmul.msk.bf16.vlgmr.msra.gmra.mxu0 %vm545_vm1, %v11642_v3 }
 0x569   : > { %3247 = vmatpush.bf16.xpose.msrb.mxu2 %v3238_v56  ;;  %3295 = vmatpush.bf16.xpose.msra.mxu0 %v3286_v34  ;;  %v3939_v2 = vpop.permute.xlu1 %3938 }
 0x56a   : > { %6806 = vmatmul.msk.bf16.vlgmr.msra.gmra.mxu1 %vm545_vm1, %v11643_v13 }
 0x56b   : > { %3319 = vmatpush.bf16.xpose.msra.mxu1 %v3310_v9 }
 0x56c   : > { %v9456_v48 = vpop.f32.mrf.mxu0 }
 0x56d   : > { %11657 = vst [vmem:[#allocation30_spill] sm:$0xff] %v9456_v48 }
 0x570   : > { %6804 = vmatmul.msk.bf16.vlgmr.msrb.gmra.mxu3 %vm545_vm1, %v11646_v59 }
 0x571   : > { %3271 = vmatpush.bf16.xpose.msrb.mxu3 %v3262_v39 }
 0x574   : > { %v9462_v7 = vpop.f32.mrf.mxu0 }
 0x575   : > { %11660 = vst [vmem:[#allocation52_spill] sm:$0xff] %v9462_v7 }
 0x578   : > { %6807 = vmatmul.msk.bf16.vlgmr.msra.gmra.mxu2 %vm545_vm1, %v11647_v21  ;;  %6809 = vmatmul.msk.bf16.vlgmr.msrb.gmra.mxu0 %vm545_vm1, %v11649_v20  ;;  %v2958_v21 = vld [vmem:[#allocation2 + $0x200] sm:$0xff] }
 0x579   : > { %3343 = vmatpush.bf16.xpose.msra.mxu2 %v3334_v0  ;;  %3776 = vmatpush.bf16.msrb.mxu0 %v3764_v11 }
 0x57a   : > { %6810 = vmatmul.msk.bf16.vlgmr.msrb.gmra.mxu1 %vm545_vm1, %v11650_v10 }
 0x57b   : > { %3801 = vmatpush.bf16.msrb.mxu1 %v3789_v54 }
 0x57c   : > { %v9458_v62 = vpop.f32.mrf.mxu1 }
 0x57d   : > { %11658 = vst [vmem:[#allocation39_spill] sm:$0xff] %v9458_v62  ;;  %v2987_v62 = vld [vmem:[#allocation2 + $0x2e8] sm:$0xff] }
 0x580   : > { %6808 = vmatmul.msk.bf16.vlgmr.msra.gmra.mxu3 %vm545_vm1, %v11652_v8  ;;  %v2959_v8 = vld [vmem:[#allocation2 + $0x208] sm:$0xff] }
 0x581   : > { %3367 = vmatpush.bf16.xpose.msra.mxu3 %v3358_v27 }
 0x583   : > { %v9480_v28 = vpop.f32.mrf.mxu3 }
 0x584   : > { %v9464_v46 = vpop.f32.mrf.mxu1  ;;  %11669 = vst [vmem:[#allocation57_spill] sm:$0xff] %v9480_v28 }
 0x585   : > { %11661 = vst [vmem:[#allocation79_spill] sm:$0xff] %v9464_v46 }
 0x588   : > { %6811 = vmatmul.msk.bf16.vlgmr.msrb.gmra.mxu2 %vm545_vm1, %v11653_v25  ;;  %6813 = vmatmul.msk.bf16.vlgmr.msra.gmra.mxu0 %vm545_vm1, %v11654_v63 }
 0x589   : > { %3826 = vmatpush.bf16.msrb.mxu2 %v3814_v55  ;;  %3876 = vmatpush.bf16.msra.mxu0 %v3864_v31  ;;  %v2961_v55 = vld [vmem:[#allocation2 + $0x218] sm:$0xff] }
 0x58a   : > { %6814 = vmatmul.msk.bf16.vlgmr.msra.gmra.mxu1 %vm545_vm1, %v11655_v49 }
 0x58b   : > { %3901 = vmatpush.bf16.msra.mxu1 %v3889_v40  ;;  %v9488_v61 = vpop.f32.mrf.mxu3 }
 0x58c   : > { %11673 = vst [vmem:[#allocation65_spill] sm:$0xff] %v9488_v61 }
 0x590   : > { %6812 = vmatmul.msk.bf16.vlgmr.msrb.gmra.mxu3 %vm545_vm1, %v11656_v30 }
 0x591   : > { %3851 = vmatpush.bf16.msrb.mxu3 %v3839_v14 }
 0x594   : > { %v9468_v19 = vpop.f32.mrf.mxu2 }
 0x595   : > { %11663 = vst [vmem:[#allocation37_spill] sm:$0xff] %v9468_v19 }
 0x596   : > { %v9470_v17 = vpop.f32.mrf.mxu0 }
 0x597   : > { %11664 = vst [vmem:[#allocation33_spill] sm:$0xff] %v9470_v17  ;;  %v2980_v17 = vld [vmem:[#allocation2 + $0x2b0] sm:$0xff] }
 0x598   : > { %6815 = vmatmul.msk.bf16.vlgmr.msra.gmra.mxu2 %vm545_vm1, %v11659_v45 }
 0x599   : > { %3926 = vmatpush.bf16.msra.mxu2 %v3914_v24 }
 0x59c   : > { %v9474_v23 = vpop.f32.mrf.mxu2 }
 0x59d   : > { %11666 = vst [vmem:[#allocation58_spill] sm:$0xff] %v9474_v23  ;;  %v2988_v23 = vld [vmem:[#allocation2 + $0x2f0] sm:$0xff] }
 0x59e   : > { %v9476_v37 = vpop.f32.mrf.mxu0 }
 0x59f   : > { %11667 = vst [vmem:[#allocation49_spill] sm:$0xff] %v9476_v37 }
 0x5a0   : > { %6816 = vmatmul.msk.bf16.vlgmr.msra.gmra.mxu3 %vm545_vm1, %v11662_v22  ;;  %v2968_v22 = vld [vmem:[#allocation2 + $0x250] sm:$0xff] }
 0x5a1   : > { %3951 = vmatpush.bf16.msra.mxu3 %v3939_v2  ;;  %v2966_v2 = vld [vmem:[#allocation2 + $0x240] sm:$0xff] }
 0x5a4   : > { %v9486_v41 = vpop.f32.mrf.mxu2 }
 0x5a5   : > { %11672 = vst [vmem:[#allocation40_spill] sm:$0xff] %v9486_v41  ;;  %v2984_v41 = vld [vmem:[#allocation2 + $0x2d0] sm:$0xff] }
 0x5a7   : > { %v9472_v51 = vpop.f32.mrf.mxu1 }
 0x5a8   : > { %11665 = vst [vmem:[#allocation28_spill] sm:$0xff] %v9472_v51  ;;  %v9620_v51 = vpop.permute.xlu0 %3963 }
 0x5ac   : > { %v9494_v34 = vpop.f32.mrf.mxu2  ;;  %v9496_v53 = vpop.f32.mrf.mxu3 }
 0x5ad   : > { %11676 = vst [vmem:[#allocation67_spill] sm:$0xff] %v9494_v34 }
 0x5ae   : > { %11677 = vst [vmem:[#allocation63_spill] sm:$0xff] %v9496_v53 }
 0x5af   : > { %v9478_v32 = vpop.f32.mrf.mxu1 }
 0x5b0   : > { %11668 = vst [vmem:[#allocation34_spill] sm:$0xff] %v9478_v32  ;;  %v9636_v61 = vpop.permute.xlu0 %4063 }
 0x5b4   : > { %v9504_v44 = vpop.f32.mrf.mxu3 }
 0x5b5   : > { %v9482_v43 = vpop.f32.mrf.mxu0  ;;  %11681 = vst [vmem:[#allocation71_spill] sm:$0xff] %v9504_v44 }
 0x5b6   : > { %11670 = vst [vmem:[#allocation56_spill] sm:$0xff] %v9482_v43 }
 0x5b7   : > { %v9484_v29 = vpop.f32.mrf.mxu1 }
 0x5b8   : > { %11671 = vst [vmem:[#allocation45_spill] sm:$0xff] %v9484_v29 }
 0x5bd   : > { %v9490_v42 = vpop.f32.mrf.mxu0 }
 0x5be   : > { %11674 = vst [vmem:[#allocation64_spill] sm:$0xff] %v9490_v42 }
 0x5bf   : > { %v9492_v35 = vpop.f32.mrf.mxu1 }
 0x5c0   : > { %11675 = vst [vmem:[#allocation55_spill] sm:$0xff] %v9492_v35 }
 0x5c5   : > { %v9498_v56 = vpop.f32.mrf.mxu0  ;;  %v9502_v13 = vpop.f32.mrf.mxu2 }
 0x5c6   : > { %11678 = vst [vmem:[#allocation54_spill] sm:$0xff] %v9498_v56 }
 0x5c7   : > { %v9500_v3 = vpop.f32.mrf.mxu1  ;;  %11680 = vst [vmem:[#allocation72_spill] sm:$0xff] %v9502_v13  ;;  %v2976_v13 = vld [vmem:[#allocation2 + $0x290] sm:$0xff] }
 0x5c8   : > { %11679 = vst [vmem:[#allocation60_spill] sm:$0xff] %v9500_v3 }
 0x5cd   : > { %v9506_v9 = vpop.f32.mrf.mxu0  ;;  %v9510_v39 = vpop.f32.mrf.mxu2 }
 0x5ce   : > { %11682 = vst [vmem:[#allocation59_spill] sm:$0xff] %v9506_v9 }
 0x5cf   : > { %v9508_v52 = vpop.f32.mrf.mxu1  ;;  %11684 = vst [vmem:[#allocation73_spill] sm:$0xff] %v9510_v39 }
 0x5d0   : > { %11683 = vst [vmem:[#allocation61_spill] sm:$0xff] %v9508_v52  ;;  %v2970_v52 = vld [vmem:[#allocation2 + $0x260] sm:$0xff] }
 0x5d3   : > { %v9512_v59 = vpop.f32.mrf.mxu3 }
 0x5d4   : > { %11685 = vst [vmem:[#allocation62_spill] sm:$0xff] %v9512_v59 }
 0x5d5   : > { %v3009_v0 = vpop.f32.mrf.mxu0 }
 0x5d6   : > { %v9514_v20 = vadd.f32 %v3009_v0, %v2958_v21 }
 0x5d7   : > { %v3033_v11 = vpop.f32.mrf.mxu1 }
 0x5d8   : > { %v9516_v10 = vadd.f32 %v3033_v11, %v2960_v58  ;;  %v3374_v54 = vsel %vm971_vm2, %v9514_v20, -inf }
 0x5d9   : > { %3375 = vmax.xlane.f32.xlu0 %v3374_v54 }
 0x5da   : > { %v3380_v15 = vsel %vm971_vm2, %v9516_v10, -inf }
 0x5db   : > { %3381 = vmax.xlane.f32.xlu2 %v3380_v15  ;;  %v9522_v27 = vpop.f32.mrf.mxu3  ;;  %v9524_v31 = vpop.f32.mrf.mxu2 }
 0x5dc   : > { %11686 = vst [vmem:[#allocation70_spill] sm:$0xff] %v9522_v27 }
 0x5dd   : > { %11687 = vst [vmem:[#allocation77_spill] sm:$0xff] %v9524_v31  ;;  %v3011_v25 = vpop.f32.mrf.mxu0  ;;  %v2965_v31 = vld [vmem:[#allocation2 + $0x238] sm:$0xff] }
 0x5de   : > { %v9526_v49 = vadd.f32 %v3011_v25, %v2959_v8  ;;  %v2962_v8 = vld [vmem:[#allocation2 + $0x220] sm:$0xff] }
 0x5df   : > { %v3035_v63 = vpop.f32.mrf.mxu1 }
 0x5e0   : > { %v9528_v40 = vadd.f32 %v3035_v63, %v2961_v55  ;;  %v3377_v14 = vsel %vm971_vm2, %v9526_v49, -inf }
 0x5e1   : > { %3378 = vmax.xlane.f32.xlu1 %v3377_v14  ;;  %v2967_v14 = vld [vmem:[#allocation2 + $0x248] sm:$0xff] }
 0x5e2   : > { %v3383_v30 = vsel %vm971_vm2, %v9528_v40, -inf }
 0x5e3   : > { %3384 = vmax.xlane.f32.xlu0 %v3383_v30  ;;  %v9534_v24 = vpop.f32.mrf.mxu2  ;;  %v9536_v45 = vpop.f32.mrf.mxu3 }
 0x5e4   : > { %11688 = vst [vmem:[#allocation66_spill] sm:$0xff] %v9534_v24 }
 0x5e5   : > { %11689 = vst [vmem:[#allocation68_spill] sm:$0xff] %v9536_v45  ;;  %v3105_v21 = vpop.f32.mrf.mxu0  ;;  %v2963_v45 = vld [vmem:[#allocation2 + $0x228] sm:$0xff] }
 0x5e6   : > { %v9538_v0 = vadd.f32 %v3105_v21, %v2966_v2 }
 0x5e7   : > { %v3129_v58 = vpop.f32.mrf.mxu1 }
 0x5e8   : > { %v9540_v11 = vadd.f32 %v3129_v58, %v2968_v22  ;;  %v3398_v54 = vsel %vm971_vm2, %v9538_v0, -inf }
 0x5e9   : > { %3399 = vmax.xlane.f32.xlu1 %v3398_v54  ;;  %v2964_v54 = vld [vmem:[#allocation2 + $0x230] sm:$0xff] }
 0x5ea   : > { %v3404_v15 = vsel %vm971_vm2, %v9540_v11, -inf }
 0x5eb   : > { %3405 = vmax.xlane.f32.xlu2 %v3404_v15  ;;  %v9546_v55 = vpop.f32.mrf.mxu3  ;;  %v3057_v25 = vpop.f32.mrf.mxu2 }
 0x5ec   : > { %11690 = vst [vmem:[#allocation69_spill] sm:$0xff] %v9546_v55  ;;  %v9548_v63 = vadd.f32 %v3057_v25, %v2962_v8 }
 0x5ed   : > { %v3107_v30 = vpop.f32.mrf.mxu0 }
 0x5ee   : > { %v3386_v2 = vsel %vm971_vm2, %v9548_v63, -inf  ;;  %v9552_v22 = vadd.f32 %v3107_v30, %v2967_v14  ;;  %v2969_v30 = vld [vmem:[#allocation2 + $0x258] sm:$0xff] }
 0x5ef   : > { %3387 = vmax.xlane.f32.xlu0 %v3386_v2  ;;  %v3131_v21 = vpop.f32.mrf.mxu1 }
 0x5f0   : > { %v3401_v58 = vsel %vm971_vm2, %v9552_v22, -inf }
 0x5f3   : > { %3402 = vmax.xlane.f32.xlu2 %v3401_v58  ;;  %v3059_v15 = vpop.f32.mrf.mxu2  ;;  %v3081_v55 = vpop.f32.mrf.mxu3  ;;  %v9564_v58 = vadd.f32 %v3131_v21, %v2969_v30  ;;  %v2971_v21 = vld [vmem:[#allocation2 + $0x268] sm:$0xff]  ;;  %v2972_v30 = vld [vmem:[#allocation2 + $0x270] sm:$0xff] }
 0x5f4   : > { %v9556_v24 = vadd.f32 %v3059_v15, %v2963_v45  ;;  %v9558_v8 = vadd.f32 %v3081_v55, %v2964_v54 }
 0x5f5   : > { %v3201_v2 = vpop.f32.mrf.mxu0  ;;  %v3407_v56 = vsel %vm971_vm2, %v9564_v58, -inf }
 0x5f6   : > { %v3389_v25 = vsel %vm971_vm2, %v9556_v24, -inf  ;;  %v3392_v14 = vsel %vm971_vm2, %v9558_v8, -inf }
 0x5f7   : > { %3390 = vmax.xlane.f32.xlu1 %v3389_v25  ;;  %3393 = vmax.xlane.f32.xlu0 %v3392_v14  ;;  %v3225_v3 = vpop.f32.mrf.mxu1  ;;  %v2974_v14 = vld [vmem:[#allocation2 + $0x280] sm:$0xff] }
 0x5f8   : > { %v9576_v27 = vadd.f32 %v3201_v2, %v2974_v14  ;;  %v2975_v2 = vld [vmem:[#allocation2 + $0x288] sm:$0xff]  ;;  %v2973_v14 = vld [vmem:[#allocation2 + $0x278] sm:$0xff]  ;;  %v9588_v35 = vadd.f32 %v3225_v3, %v2976_v13  ;;  %v2982_v13 = vld [vmem:[#allocation2 + $0x2c0] sm:$0xff] }
 0x5fa   : > { %v3428_v43 = vsel %vm971_vm2, %v9588_v35, -inf }
 0x5fb   : > { %v3083_v9 = vpop.f32.mrf.mxu3  ;;  %v3153_v45 = vpop.f32.mrf.mxu2 }
 0x5fc   : > { %v9566_v15 = vadd.f32 %v3083_v9, %v2965_v31  ;;  %v9568_v55 = vadd.f32 %v3153_v45, %v2970_v52 }
 0x5fd   : > { %v3203_v9 = vpop.f32.mrf.mxu0 }
 0x5fe   : > { %v3410_v54 = vsel %vm971_vm2, %v9568_v55, -inf  ;;  %v3395_v25 = vsel %vm971_vm2, %v9566_v15, -inf }
 0x5ff   : > { %3411 = vmax.xlane.f32.xlu2 %v3410_v54  ;;  %3396 = vmax.xlane.f32.xlu1 %v3395_v25  ;;  %v3227_v45 = vpop.f32.mrf.mxu1  ;;  %v3422_v25 = vsel %vm971_vm2, %v9576_v27, -inf }
 0x600   : > { %3408 = vmax.xlane.f32.xlu0 %v3407_v56 }
 0x603   : > { %v3155_v52 = vpop.f32.mrf.mxu2  ;;  %v3177_v31 = vpop.f32.mrf.mxu3 }
 0x604   : > { %v9578_v59 = vadd.f32 %v3155_v52, %v2971_v21  ;;  %v9580_v39 = vadd.f32 %v3177_v31, %v2972_v30  ;;  %v9590_v21 = vadd.f32 %v3203_v9, %v2975_v2 }
 0x605   : > { %v3297_v31 = vpop.f32.mrf.mxu0 }
 0x606   : > { %v3416_v54 = vsel %vm971_vm2, %v9580_v39, -inf  ;;  %v3413_v56 = vsel %vm971_vm2, %v9578_v59, -inf  ;;  %v3425_v42 = vsel %vm971_vm2, %v9590_v21, -inf }
 0x607   : > { %3417 = vmax.xlane.f32.xlu2 %v3416_v54  ;;  %3423 = vmax.xlane.f32.xlu1 %v3422_v25  ;;  %v3321_v29 = vpop.f32.mrf.mxu1  ;;  %v2977_v25 = vld [vmem:[#allocation2 + $0x298] sm:$0xff] }
 0x608   : > { %3414 = vmax.xlane.f32.xlu0 %v3413_v56  ;;  %v2978_v56 = vld [vmem:[#allocation2 + $0x2a0] sm:$0xff]  ;;  %v9600_v9 = vadd.f32 %v3227_v45, %v2977_v25 }
 0x60a   : > { %v3431_v53 = vsel %vm971_vm2, %v9600_v9, -inf }
 0x60b   : > { %v3179_v30 = vpop.f32.mrf.mxu3  ;;  %v3249_v3 = vpop.f32.mrf.mxu2 }
 0x60c   : > { %v9592_v52 = vadd.f32 %v3179_v30, %v2973_v14  ;;  %v9602_v2 = vadd.f32 %v3249_v3, %v2978_v56  ;;  %v9604_v14 = vpop.permute.xlu2 %3988  ;;  %v9606_v30 = vadd.f32 %v3297_v31, %v2982_v13  ;;  %v9614_v31 = vadd.f32 %v3321_v29, %v2984_v41  ;;  %v2981_v41 = vld [vmem:[#allocation2 + $0x2b8] sm:$0xff] }
 0x60e   : > { %v3419_v54 = vsel %vm971_vm2, %v9592_v52, -inf  ;;  %v3434_v34 = vsel %vm971_vm2, %v9602_v2, -inf  ;;  %v3446_v45 = vsel %vm971_vm2, %v9606_v30, -inf }
 0x60f   : > { %3426 = vmax.xlane.f32.xlu2 %v3425_v42  ;;  %3429 = vmax.xlane.f32.xlu1 %v3428_v43  ;;  %v2983_v42 = vld [vmem:[#allocation2 + $0x2c8] sm:$0xff]  ;;  %v3299_v43 = vpop.f32.mrf.mxu0  ;;  %v3323_v25 = vpop.f32.mrf.mxu1 }
 0x610   : > { %3420 = vmax.xlane.f32.xlu0 %v3419_v54  ;;  %v2985_v54 = vld [vmem:[#allocation2 + $0x2d8] sm:$0xff]  ;;  %v9616_v56 = vadd.f32 %v3299_v43, %v2983_v42 }
 0x611   : > { %v9618_v3 = vadd.f32 %v3323_v25, %v2985_v54 }
 0x613   : > { %v3273_v44 = vpop.f32.mrf.mxu3  ;;  %v3251_v32 = vpop.f32.mrf.mxu2  ;;  %v3455_v29 = vsel %vm971_vm2, %v9618_v3, -inf }
 0x614   : > { %v9622_v37 = vpop.permute.xlu2 %4013  ;;  %v9630_v42 = vadd.f32 %v3273_v44, %v2980_v17  ;;  %v2989_v17 = vld [vmem:[#allocation2 + $0x2f8] sm:$0xff] }
 0x616   : > { %v3440_v25 = vsel %vm971_vm2, %v9630_v42, -inf }
 0x617   : > { %3432 = vmax.xlane.f32.xlu2 %v3431_v53  ;;  %3435 = vmax.xlane.f32.xlu1 %v3434_v34  ;;  %v3452_v34 = vsel %vm971_vm2, %v9614_v31, -inf  ;;  %v3449_v53 = vsel %vm971_vm2, %v9616_v56, -inf }
 0x618   : > { %3447 = vmax.xlane.f32.xlu0 %v3446_v45 }
 0x61b   : > { %v3275_v13 = vpop.f32.mrf.mxu3  ;;  %v3345_v54 = vpop.f32.mrf.mxu2 }
 0x61c   : > { %v9632_v43 = vadd.f32 %v3275_v13, %v2981_v41  ;;  %v9638_v28 = vpop.permute.xlu2 %4113 }
 0x61d   : > { %11691 = vst [vmem:[#allocation75_spill] sm:$0xff] %v9638_v28 }
 0x61f   : > { %3453 = vmax.xlane.f32.xlu2 %v3452_v34  ;;  %3450 = vmax.xlane.f32.xlu1 %v3449_v53  ;;  %v2979_v34 = vld [vmem:[#allocation2 + $0x2a8] sm:$0xff]  ;;  %v3443_v53 = vsel %vm971_vm2, %v9632_v43, -inf }
 0x620   : > { %3456 = vmax.xlane.f32.xlu0 %v3455_v29  ;;  %v9642_v44 = vadd.f32 %v3251_v32, %v2979_v34 }
 0x622   : > { %v3437_v19 = vsel %vm971_vm2, %v9642_v44, -inf }
 0x623   : > { %v3369_v45 = vpop.f32.mrf.mxu3  ;;  %v3347_v32 = vpop.f32.mrf.mxu2 }
 0x624   : > { %v9644_v13 = vadd.f32 %v3369_v45, %v2988_v23  ;;  %v9654_v23 = vpop.permute.xlu0 %4193  ;;  %v9656_v45 = vpop.permute.xlu2 %4217 }
 0x625   : > { %11692 = vst [vmem:[#allocation74_spill] sm:$0xff] %v9654_v23 }
 0x626   : > { %11693 = vst [vmem:[#allocation76_spill] sm:$0xff] %v9656_v45 }
 0x627   : > { %3441 = vmax.xlane.f32.xlu2 %v3440_v25  ;;  %v2986_v25 = vld [vmem:[#allocation2 + $0x2e0] sm:$0xff] }
 0x628   : > { %3444 = vmax.xlane.f32.xlu0 %v3443_v53  ;;  %v3464_v53 = vsel %vm971_vm2, %v9644_v13, -inf  ;;  %v9658_v34 = vadd.f32 %v3345_v54, %v2986_v25  ;;  %v9674_v54 = vpop.permute.xlu1 %4191 }
 0x629   : > { %11696 = vst [vmem:[#allocation81_spill] sm:$0xff] %v9674_v54 }
 0x62b   : > { %v3371_v29 = vpop.f32.mrf.mxu3 }
 0x62c   : > { %v9646_v41 = vadd.f32 %v3371_v29, %v2989_v17  ;;  %v9660_v17 = vadd.f32 %v3347_v32, %v2987_v62  ;;  %v3458_v29 = vsel %vm971_vm2, %v9658_v34, -inf  ;;  %v9668_v7 = vpop.permute.xlu2 %4241 }
 0x62d   : > { %11694 = vst [vmem:[#allocation78_spill] sm:$0xff] %v9668_v7 }
 0x62e   : > { %v3467_v46 = vsel %vm971_vm2, %v9646_v41, -inf }
 0x62f   : > { %3438 = vmax.xlane.f32.xlu2 %v3437_v19  ;;  %3468 = vmax.xlane.f32.xlu1 %v3467_v46  ;;  %v3461_v46 = vsel %vm971_vm2, %v9660_v17, -inf  ;;  %v9666_v19 = vpop.permute.xlu0 %4088 }
 0x630   : > { %3465 = vmax.xlane.f32.xlu0 %v3464_v53 }
 0x634   : > { %v9672_v48 = vpop.permute.xlu2 %4215 }
 0x635   : > { %11695 = vst [vmem:[#allocation80_spill] sm:$0xff] %v9672_v48 }
 0x637   : > { %3459 = vmax.xlane.f32.xlu2 %v3458_v29  ;;  %v9670_v53 = vpop.permute.xlu0 %4038 }
 0x638   : > { %3462 = vmax.xlane.f32.xlu0 %v3461_v46 }
 0x64c   : > { %v3376_v25 = vpop.xlane.xlu0 %3375 }
 0x64d   : > { %v3470_v29 = vsub.f32 %v9514_v20, %v3376_v25 }
 0x64e   : > { %v3382_v62 = vpop.xlane.xlu2 %3381 }
 0x64f   : > { %v3472_v32 = vsub.f32 %v9516_v10, %v3382_v62  ;;  %v3502_v23 = vmul.f32 1.442695, %v3470_v29 }
 0x651   : > { %v3506_v5 = vmul.f32 1.442695, %v3472_v32 }
 0x653   : > { %7472 = vpow2.f32 %v3506_v5 }
 0x654   : > { %7474 = vpow2.f32 %v3502_v23  ;;  %v3379_v46 = vpop.xlane.xlu1 %3378 }
 0x655   : > { %v3471_v7 = vsub.f32 %v9526_v49, %v3379_v46 }
 0x656   : > { %v3385_v38 = vpop.xlane.xlu0 %3384 }
 0x657   : > { %v3473_v45 = vsub.f32 %v9528_v40, %v3385_v38  ;;  %v3504_v48 = vmul.f32 1.442695, %v3471_v7 }
 0x659   : > { %v9680_v18 = vpop.eup %7472  ;;  %v3508_v54 = vmul.f32 1.442695, %v3473_v45  ;;  %7476 = vpow2.f32 %v3504_v48 }
 0x65a   : > { %v9682_v28 = vpop.eup %7474  ;;  %v3572_v10 = vsel %vm971_vm2, %v9680_v18, 0.0 }
 0x65b   : > { %3573 = vadd.xlane.f32.xlu2 %v3572_v10  ;;  %v3566_v5 = vsel %vm971_vm2, %v9682_v28, 0.0  ;;  %7478 = vpow2.f32 %v3508_v54 }
 0x65c   : > { %3567 = vadd.xlane.f32.xlu0 %v3566_v5  ;;  %v3400_v20 = vpop.xlane.xlu1 %3399 }
 0x65d   : > { %v3478_v38 = vsub.f32 %v9538_v0, %v3400_v20 }
 0x65e   : > { %v3406_v49 = vpop.xlane.xlu2 %3405 }
 0x65f   : > { %v3480_v40 = vsub.f32 %v9540_v11, %v3406_v49  ;;  %v9690_v7 = vpop.eup %7476  ;;  %v3518_v23 = vmul.f32 1.442695, %v3478_v38 }
 0x660   : > { %v3569_v48 = vsel %vm971_vm2, %v9690_v7, 0.0 }
 0x661   : > { %v3522_v45 = vmul.f32 1.442695, %v3480_v40  ;;  %v9692_v62 = vpop.eup %7478  ;;  %7480 = vpow2.f32 %v3518_v23  ;;  %3570 = vadd.xlane.f32.xlu1 %v3569_v48 }
 0x662   : > { %v3575_v54 = vsel %vm971_vm2, %v9692_v62, 0.0  ;;  %v3388_v25 = vpop.xlane.xlu0 %3387 }
 0x663   : > { %7482 = vpow2.f32 %v3522_v45  ;;  %v3474_v0 = vsub.f32 %v9548_v63, %v3388_v25 }
 0x664   : > { %3576 = vadd.xlane.f32.xlu0 %v3575_v54 }
 0x665   : > { %v3510_v11 = vmul.f32 1.442695, %v3474_v0 }
 0x666   : > { %v3403_v32 = vpop.xlane.xlu2 %3402 }
 0x667   : > { %v3479_v29 = vsub.f32 %v9552_v22, %v3403_v32  ;;  %7484 = vpow2.f32 %v3510_v11  ;;  %v9700_v46 = vpop.eup %7480 }
 0x668   : > { %v3590_v20 = vsel %vm971_vm2, %v9700_v46, 0.0 }
 0x669   : > { %v3520_v10 = vmul.f32 1.442695, %v3479_v29  ;;  %v9702_v5 = vpop.eup %7482  ;;  %3591 = vadd.xlane.f32.xlu1 %v3590_v20 }
 0x66a   : > { %v3596_v49 = vsel %vm971_vm2, %v9702_v5, 0.0  ;;  %v3391_v38 = vpop.xlane.xlu1 %3390  ;;  %v3394_v63 = vpop.xlane.xlu0 %3393 }
 0x66b   : > { %7486 = vpow2.f32 %v3520_v10  ;;  %3597 = vadd.xlane.f32.xlu2 %v3596_v49  ;;  %v3475_v40 = vsub.f32 %v9556_v24, %v3391_v38  ;;  %v3476_v22 = vsub.f32 %v9558_v8, %v3394_v63 }
 0x66d   : > { %v9710_v23 = vpop.eup %7484  ;;  %v3512_v45 = vmul.f32 1.442695, %v3475_v40  ;;  %v3514_v48 = vmul.f32 1.442695, %v3476_v22 }
 0x66e   : > { %v3578_v54 = vsel %vm971_vm2, %v9710_v23, 0.0 }
 0x66f   : > { %3579 = vadd.xlane.f32.xlu0 %v3578_v54  ;;  %7488 = vpow2.f32 %v3514_v48 }
 0x670   : > { %7490 = vpow2.f32 %v3512_v45 }
 0x671   : > { %v9714_v25 = vpop.eup %7486 }
 0x672   : > { %v3593_v0 = vsel %vm971_vm2, %v9714_v25, 0.0  ;;  %v3412_v11 = vpop.xlane.xlu2 %3411  ;;  %v3397_v32 = vpop.xlane.xlu1 %3396 }
 0x673   : > { %3594 = vadd.xlane.f32.xlu2 %v3593_v0  ;;  %v3482_v24 = vsub.f32 %v9568_v55, %v3412_v11  ;;  %v3477_v8 = vsub.f32 %v9566_v15, %v3397_v32  ;;  %v3409_v29 = vpop.xlane.xlu0 %3408 }
 0x674   : > { %v3481_v10 = vsub.f32 %v9564_v58, %v3409_v29 }
 0x675   : > { %v3526_v20 = vmul.f32 1.442695, %v3482_v24  ;;  %v3516_v49 = vmul.f32 1.442695, %v3477_v8  ;;  %v9721_v38 = vpop.eup %7488 }
 0x676   : > { %v3524_v63 = vmul.f32 1.442695, %v3481_v10  ;;  %v9723_v40 = vpop.eup %7490  ;;  %v3584_v22 = vsel %vm971_vm2, %v9721_v38, 0.0 }
 0x677   : > { %7492 = vpow2.f32 %v3526_v20  ;;  %3585 = vadd.xlane.f32.xlu0 %v3584_v22  ;;  %v3581_v15 = vsel %vm971_vm2, %v9723_v40, 0.0 }
 0x678   : > { %7494 = vpow2.f32 %v3516_v49 }
 0x679   : > { %7496 = vpow2.f32 %v3524_v63 }
 0x67a   : > { %v3418_v55 = vpop.xlane.xlu2 %3417  ;;  %v3424_v45 = vpop.xlane.xlu1 %3423 }
 0x67b   : > { %3582 = vadd.xlane.f32.xlu2 %v3581_v15  ;;  %v3484_v58 = vsub.f32 %v9580_v39, %v3418_v55  ;;  %v3486_v48 = vsub.f32 %v9576_v27, %v3424_v45  ;;  %v3415_v54 = vpop.xlane.xlu0 %3414 }
 0x67c   : > { %v3483_v8 = vsub.f32 %v9578_v59, %v3415_v54 }
 0x67d   : > { %v9731_v0 = vpop.eup %7492  ;;  %v3530_v11 = vmul.f32 1.442695, %v3484_v58  ;;  %v3534_v32 = vmul.f32 1.442695, %v3486_v48 }
 0x67e   : > { %v9733_v24 = vpop.eup %7494  ;;  %v3528_v27 = vmul.f32 1.442695, %v3483_v8  ;;  %v3602_v20 = vsel %vm971_vm2, %v9731_v0, 0.0 }
 0x67f   : > { %v9736_v29 = vpop.eup %7496  ;;  %7498 = vpow2.f32 %v3530_v11  ;;  %v3587_v10 = vsel %vm971_vm2, %v9733_v24, 0.0 }
 0x680   : > { %7500 = vpow2.f32 %v3534_v32  ;;  %3588 = vadd.xlane.f32.xlu0 %v3587_v10  ;;  %v3599_v39 = vsel %vm971_vm2, %v9736_v29, 0.0 }
 0x681   : > { %3600 = vadd.xlane.f32.xlu1 %v3599_v39  ;;  %7502 = vpow2.f32 %v3528_v27 }
 0x682   : > { %v3427_v49 = vpop.xlane.xlu2 %3426  ;;  %v3430_v63 = vpop.xlane.xlu1 %3429 }
 0x683   : > { %3603 = vadd.xlane.f32.xlu2 %v3602_v20  ;;  %v3488_v59 = vsub.f32 %v9588_v35, %v3430_v63  ;;  %v3421_v22 = vpop.xlane.xlu0 %3420  ;;  %v3487_v55 = vsub.f32 %v9590_v21, %v3427_v49 }
 0x684   : > { %v3485_v48 = vsub.f32 %v9592_v52, %v3421_v22 }
 0x685   : > { %v9745_v15 = vpop.eup %7498  ;;  %v3538_v45 = vmul.f32 1.442695, %v3488_v59  ;;  %v3536_v35 = vmul.f32 1.442695, %v3487_v55 }
 0x686   : > { %v9748_v58 = vpop.eup %7500  ;;  %v3608_v54 = vsel %vm971_vm2, %v9745_v15, 0.0  ;;  %v3532_v32 = vmul.f32 1.442695, %v3485_v48 }
 0x687   : > { %v3614_v11 = vsel %vm971_vm2, %v9748_v58, 0.0  ;;  %7504 = vpow2.f32 %v3538_v45  ;;  %v9756_v20 = vpop.eup %7502 }
 0x688   : > { %3609 = vadd.xlane.f32.xlu0 %v3608_v54  ;;  %7506 = vpow2.f32 %v3536_v35  ;;  %v3605_v22 = vsel %vm971_vm2, %v9756_v20, 0.0 }
 0x689   : > { %3615 = vadd.xlane.f32.xlu1 %v3614_v11  ;;  %7508 = vpow2.f32 %v3532_v32 }
 0x68a   : > { %v3433_v8 = vpop.xlane.xlu2 %3432  ;;  %v3436_v10 = vpop.xlane.xlu1 %3435 }
 0x68b   : > { %v3489_v21 = vsub.f32 %v9600_v9, %v3433_v8  ;;  %v3448_v39 = vpop.xlane.xlu0 %3447  ;;  %v3490_v27 = vsub.f32 %v9602_v2, %v3436_v10 }
 0x68c   : > { %v3494_v63 = vsub.f32 %v9606_v30, %v3448_v39 }
 0x68d   : > { %v3540_v52 = vmul.f32 1.442695, %v3489_v21  ;;  %v9759_v49 = vpop.eup %7504  ;;  %v3542_v9 = vmul.f32 1.442695, %v3490_v27 }
 0x68e   : > { %v3620_v59 = vsel %vm971_vm2, %v9759_v49, 0.0  ;;  %v3550_v55 = vmul.f32 1.442695, %v3494_v63  ;;  %v9766_v48 = vpop.eup %7506 }
 0x68f   : > { %7510 = vpow2.f32 %v3540_v52  ;;  %v9769_v11 = vpop.eup %7508 }
 0x690   : > { %3606 = vadd.xlane.f32.xlu0 %v3605_v22  ;;  %7512 = vpow2.f32 %v3542_v9  ;;  %v3611_v10 = vsel %vm971_vm2, %v9769_v11, 0.0 }
 0x691   : > { %3621 = vadd.xlane.f32.xlu1 %v3620_v59  ;;  %7514 = vpow2.f32 %v3550_v55 }
 0x692   : > { %v3454_v45 = vpop.xlane.xlu2 %3453  ;;  %v3451_v27 = vpop.xlane.xlu1 %3450 }
 0x693   : > { %v3496_v2 = vsub.f32 %v9614_v31, %v3454_v45  ;;  %v3457_v54 = vpop.xlane.xlu0 %3456  ;;  %v3617_v31 = vsel %vm971_vm2, %v9766_v48, 0.0  ;;  %v3495_v9 = vsub.f32 %v9616_v56, %v3451_v27 }
 0x694   : > { %v3497_v32 = vsub.f32 %v9618_v3, %v3457_v54 }
 0x695   : > { %v9771_v30 = vpop.eup %7510  ;;  %v3554_v35 = vmul.f32 1.442695, %v3496_v2  ;;  %v3552_v54 = vmul.f32 1.442695, %v3495_v9 }
 0x696   : > { %v3623_v8 = vsel %vm971_vm2, %v9771_v30, 0.0  ;;  %v3556_v21 = vmul.f32 1.442695, %v3497_v32  ;;  %v9780_v52 = vpop.eup %7512 }
 0x697   : > { %7516 = vpow2.f32 %v3554_v35  ;;  %3624 = vadd.xlane.f32.xlu2 %v3623_v8  ;;  %v9783_v63 = vpop.eup %7514 }
 0x698   : > { %3612 = vadd.xlane.f32.xlu0 %v3611_v10  ;;  %7518 = vpow2.f32 %v3556_v21  ;;  %v3638_v2 = vsel %vm971_vm2, %v9783_v63, 0.0 }
 0x699   : > { %3618 = vadd.xlane.f32.xlu1 %v3617_v31 }
 0x69a   : > { %v3442_v39 = vpop.xlane.xlu2 %3441 }
 0x69b   : > { %v3492_v3 = vsub.f32 %v9630_v42, %v3442_v39  ;;  %v3445_v45 = vpop.xlane.xlu0 %3444  ;;  %v3626_v42 = vsel %vm971_vm2, %v9780_v52, 0.0 }
 0x69c   : > { %v3493_v31 = vsub.f32 %v9632_v43, %v3445_v45 }
 0x69d   : > { %v9785_v59 = vpop.eup %7516  ;;  %v3546_v22 = vmul.f32 1.442695, %v3492_v3 }
 0x69e   : > { %v3644_v55 = vsel %vm971_vm2, %v9785_v59, 0.0  ;;  %v9795_v8 = vpop.eup %7518 }
 0x69f   : > { %7520 = vpow2.f32 %v3546_v22  ;;  %3645 = vadd.xlane.f32.xlu2 %v3644_v55  ;;  %v3647_v3 = vsel %vm971_vm2, %v9795_v8, 0.0 }
 0x6a0   : > { %3639 = vadd.xlane.f32.xlu0 %v3638_v2  ;;  %7522 = vpow2.f32 %v3552_v54 }
 0x6a1   : > { %3627 = vadd.xlane.f32.xlu1 %v3626_v42 }
 0x6a2   : > { %v3439_v35 = vpop.xlane.xlu2 %3438  ;;  %v3469_v56 = vpop.xlane.xlu1 %3468 }
 0x6a3   : > { %v3491_v32 = vsub.f32 %v9642_v44, %v3439_v35  ;;  %v3501_v39 = vsub.f32 %v9646_v41, %v3469_v56  ;;  %v3548_v44 = vmul.f32 1.442695, %v3493_v31  ;;  %v3466_v22 = vpop.xlane.xlu0 %3465 }
 0x6a4   : > { %v3500_v42 = vsub.f32 %v9644_v13, %v3466_v22 }
 0x6a5   : > { %v9797_v10 = vpop.eup %7520  ;;  %v3544_v21 = vmul.f32 1.442695, %v3491_v32  ;;  %v3564_v9 = vmul.f32 1.442695, %v3501_v39 }
 0x6a6   : > { %v3632_v27 = vsel %vm971_vm2, %v9797_v10, 0.0  ;;  %v9806_v43 = vpop.eup %7522  ;;  %v3562_v32 = vmul.f32 1.442695, %v3500_v42 }
 0x6a7   : > { %7524 = vpow2.f32 %v3544_v21  ;;  %v3641_v35 = vsel %vm971_vm2, %v9806_v43, 0.0 }
 0x6a8   : > { %3648 = vadd.xlane.f32.xlu0 %v3647_v3  ;;  %7526 = vpow2.f32 %v3548_v44 }
 0x6a9   : > { %3633 = vadd.xlane.f32.xlu1 %v3632_v27  ;;  %7528 = vpow2.f32 %v3564_v9 }
 0x6aa   : > { %v3460_v55 = vpop.xlane.xlu2 %3459 }
 0x6ab   : > { %v3498_v2 = vsub.f32 %v9658_v34, %v3460_v55  ;;  %v3463_v56 = vpop.xlane.xlu0 %3462 }
 0x6ac   : > { %v3499_v13 = vsub.f32 %v9660_v17, %v3463_v56 }
 0x6ad   : > { %v9808_v45 = vpop.eup %7524  ;;  %v3558_v41 = vmul.f32 1.442695, %v3498_v2 }
 0x6ae   : > { %v3629_v54 = vsel %vm971_vm2, %v9808_v45, 0.0  ;;  %v9815_v34 = vpop.eup %7526  ;;  %v3560_v44 = vmul.f32 1.442695, %v3499_v13 }
 0x6af   : > { %7530 = vpow2.f32 %v3558_v41  ;;  %v9817_v31 = vpop.eup %7528  ;;  %v3635_v27 = vsel %vm971_vm2, %v9815_v34, 0.0 }
 0x6b0   : > { %3630 = vadd.xlane.f32.xlu0 %v3629_v54  ;;  %11697 = vst [vmem:[#allocation82_spill] sm:$0xff] %v9817_v31  ;;  %7532 = vpow2.f32 %v3562_v32  ;;  %v3659_v3 = vsel %vm971_vm2, %v9817_v31, 0.0 }
 0x6b1   : > { %3642 = vadd.xlane.f32.xlu1 %v3641_v35  ;;  %7534 = vpow2.f32 %v3560_v44 }
 0x6b5   : > { %v9819_v21 = vpop.eup %7530 }
 0x6b6   : > { %v3650_v39 = vsel %vm971_vm2, %v9819_v21, 0.0  ;;  %v9828_v22 = vpop.eup %7532 }
 0x6b7   : > { %3651 = vadd.xlane.f32.xlu2 %v3650_v39  ;;  %v3656_v9 = vsel %vm971_vm2, %v9828_v22, 0.0  ;;  %v9832_v17 = vpop.eup %7534 }
 0x6b8   : > { %3636 = vadd.xlane.f32.xlu0 %v3635_v27  ;;  %v3653_v55 = vsel %vm971_vm2, %v9832_v17, 0.0  ;;  %v11698_v27 = vld [vmem:[#allocation14_spill] sm:$0xff] }
 0x6b9   : > { %3660 = vadd.xlane.f32.xlu1 %v3659_v3 }
 0x6c0   : > { %3657 = vadd.xlane.f32.xlu0 %v3656_v9 }
 0x6c8   : > { %3654 = vadd.xlane.f32.xlu0 %v3653_v55 }
 0x6ce   : > { %v3574_v2 = vpop.xlane.xlu2 %3573 }
 0x6cf   : > { %v3568_v41 = vpop.xlane.xlu0 %3567  ;;  %4239 = vrot.lane.b32.xlu2 %v8075_v4, %s7839_s26 }
 0x6d0   : > { %7536 = vrcp.f32 %v3568_v41 }
 0x6d1   : > { %7538 = vrcp.f32 %v3574_v2 }
 0x6d2   : > { %4265 = vrot.lane.b32.xlu1 %v11514_v60, %s7838_s20 }
 0x6d4   : > { %v3571_v42 = vpop.xlane.xlu1 %3570 }
 0x6d5   : > { %7540 = vrcp.f32 %v3571_v42 }
 0x6d6   : > { %v7537_v54 = vpop.eup %7536 }
 0x6d7   : > { %v3577_v35 = vpop.xlane.xlu0 %3576  ;;  %v7539_v32 = vpop.eup %7538  ;;  %4263 = vrot.lane.b32.xlu2 %v11514_v60, %s7839_s26  ;;  %v3694_v56 = vmul.f32 %v7537_v54, %v9682_v28 }
 0x6d8   : > { %7542 = vrcp.f32 %v3577_v35  ;;  %v3696_v13 = vmul.f32 %v7539_v32, %v9680_v18 }
 0x6d9   : > { %v3726_v44 = vpack.c.bf16 %v3694_v56, %v3694_v56 }
 0x6da   : > { %4335 = vrot.lane.b32.xlu1 %v8083_v16, %s7839_s26  ;;  %v3728_v55 = vpack.c.bf16 %v3696_v13, %v3696_v13 }
 0x6db   : > { %v7541_v39 = vpop.eup %7540  ;;  %v3760_v28 = vunpack.c.l.b16 %v3726_v44 }
 0x6dc   : > { %4138 = vrot.lane.b32.xlu0 %v11698_v27, %s7837_s19  ;;  %v3695_v9 = vmul.f32 %v7541_v39, %v9690_v7  ;;  %v3592_v42 = vpop.xlane.xlu1 %3591  ;;  %v3785_v32 = vunpack.c.l.b16 %v3728_v55  ;;  %s7844_s19 = smov 32  }
 0x6dd   : > { %7544 = vrcp.f32 %v3592_v42 }
 0x6de   : > { %v7543_v3 = vpop.eup %7542  ;;  %v3598_v41 = vpop.xlane.xlu2 %3597  ;;  %v3727_v35 = vpack.c.bf16 %v3695_v9, %v3695_v9 }
 0x6df   : > { %v3697_v2 = vmul.f32 %v7543_v3, %v9692_v62  ;;  %4289 = vrot.lane.b32.xlu2 %v8011_v6, %s7838_s20 }
 0x6e0   : > { %v3761_v54 = vunpack.c.l.b16 %v3727_v35 }
 0x6e1   : > { %v3729_v18 = vpack.c.bf16 %v3697_v2, %v3697_v2 }
 0x6e2   : > { %4385 = vrot.lane.b32.xlu1 %v8031_v26, %s7838_s20  ;;  %v3580_v56 = vpop.xlane.xlu0 %3579  ;;  %v3762_v7 = vpack.c.b16 %v3761_v54, %v3760_v28 }
 0x6e3   : > { %v3786_v31 = vunpack.c.l.b16 %v3729_v18  ;;  %v7545_v39 = vpop.eup %7544 }
 0x6e4   : > { %4287 = vrot.lane.b32.xlu0 %v8011_v6, %s7839_s26  ;;  %6817 = vmatmul.msk.bf16.vlgmr.msrb.gmra.mxu0 %vm971_vm2, %v3762_v7 }
 0x6e5   : > { %v3787_v13 = vpack.c.b16 %v3786_v31, %v3785_v32  ;;  %3976 = vmatpush.bf16.msrb.mxu0 %v9620_v51  ;;  %v3702_v31 = vmul.f32 %v7545_v39, %v9700_v46 }
 0x6e6   : > { %v3595_v62 = vpop.xlane.xlu2 %3594 }
 0x6e7   : > { %6818 = vmatmul.msk.bf16.vlgmr.msrb.gmra.mxu1 %vm971_vm2, %v3787_v13  ;;  %7546 = vrcp.f32 %v3595_v62  ;;  %4313 = vrot.lane.b32.xlu2 %v8053_v50, %s7838_s20  ;;  %v3734_v51 = vpack.c.bf16 %v3702_v31, %v3702_v31 }
 0x6e8   : > { %4001 = vmatpush.bf16.msrb.mxu1 %v9604_v14  ;;  %7548 = vrcp.f32 %v3580_v56 }
 0x6e9   : > { %7550 = vrcp.f32 %v3598_v41  ;;  %v3860_v2 = vunpack.c.l.b16 %v3734_v51 }
 0x6ea   : > { %4433 = vrot.lane.b32.xlu1 %v8103_v33, %s7838_s20  ;;  %v3586_v3 = vpop.xlane.xlu0 %3585 }
 0x6eb   : > { %7552 = vrcp.f32 %v3586_v3 }
 0x6ec   : > { %4337 = vrot.lane.b32.xlu0 %v8083_v16, %s7838_s20 }
 0x6ed   : > { %v7547_v44 = vpop.eup %7546 }
 0x6ee   : > { %v3703_v9 = vmul.f32 %v7547_v44, %v9714_v25  ;;  %v3583_v14 = vpop.xlane.xlu2 %3582  ;;  %v7549_v55 = vpop.eup %7548 }
 0x6ef   : > { %7554 = vrcp.f32 %v3583_v14  ;;  %4311 = vrot.lane.b32.xlu2 %v8053_v50, %s7839_s26  ;;  %v3698_v42 = vmul.f32 %v7549_v55, %v9710_v23  ;;  %v7551_v18 = vpop.eup %7550 }
 0x6f0   : > { %v3735_v46 = vpack.c.bf16 %v3703_v9, %v3703_v9  ;;  %v3704_v13 = vmul.f32 %v7551_v18, %v9702_v5 }
 0x6f1   : > { %v7553_v28 = vpop.eup %7552  ;;  %v3730_v56 = vpack.c.bf16 %v3698_v42, %v3698_v42 }
 0x6f2   : > { %v3861_v35 = vunpack.c.l.b16 %v3735_v46  ;;  %4481 = vrot.lane.b32.xlu1 %v8041_v36, %s7838_s20  ;;  %v3700_v23 = vmul.f32 %v7553_v28, %v9721_v38  ;;  %v3736_v14 = vpack.c.bf16 %v3704_v13, %v3704_v13 }
 0x6f3   : > { %v3589_v41 = vpop.xlane.xlu0 %3588  ;;  %v3810_v31 = vunpack.c.l.b16 %v3730_v56 }
 0x6f4   : > { %v3862_v54 = vpack.c.b16 %v3861_v35, %v3860_v2  ;;  %v3601_v25 = vpop.xlane.xlu1 %3600  ;;  %7556 = vrcp.f32 %v3589_v41  ;;  %4361 = vrot.lane.b32.xlu0 %v8115_v47, %s7838_s20 }
 0x6f5   : > { %v7555_v32 = vpop.eup %7554  ;;  %7558 = vrcp.f32 %v3601_v25 }
 0x6f6   : > { %v3699_v7 = vmul.f32 %v7555_v32, %v9723_v40  ;;  %6821 = vmatmul.msk.bf16.vlgmr.msra.gmra.mxu0 %vm971_vm2, %v3862_v54  ;;  %v3732_v40 = vpack.c.bf16 %v3700_v23, %v3700_v23  ;;  %v3604_v9 = vpop.xlane.xlu2 %3603 }
 0x6f7   : > { %4076 = vmatpush.bf16.msra.mxu0 %v9636_v61  ;;  %4359 = vrot.lane.b32.xlu2 %v8115_v47, %s7839_s26  ;;  %7560 = vrcp.f32 %v3604_v9 }
 0x6f8   : > { %v3731_v62 = vpack.c.bf16 %v3699_v7, %v3699_v7  ;;  %v3835_v42 = vunpack.c.l.b16 %v3732_v40 }
 0x6fa   : > { %v7557_v39 = vpop.eup %7556  ;;  %v3811_v3 = vunpack.c.l.b16 %v3731_v62  ;;  %4455 = vrot.lane.b32.xlu1 %v8139_v12, %s7839_s26 }
 0x6fb   : > { %v7559_v44 = vpop.eup %7558  ;;  %v3701_v51 = vmul.f32 %v7557_v39, %v9733_v24  ;;  %v3610_v38 = vpop.xlane.xlu0 %3609  ;;  %v3885_v24 = vunpack.c.l.b16 %v3736_v14 }
 0x6fc   : > { %v3812_v61 = vpack.c.b16 %v3811_v3, %v3810_v31  ;;  %v3705_v55 = vmul.f32 %v7559_v44, %v9736_v29  ;;  %v3616_v46 = vpop.xlane.xlu1 %3615  ;;  %4383 = vrot.lane.b32.xlu0 %v8031_v26, %s7839_s26 }
 0x6fd   : > { %v3733_v5 = vpack.c.bf16 %v3701_v51, %v3701_v51  ;;  %v7561_v54 = vpop.eup %7560 }
 0x6fe   : > { %v3737_v2 = vpack.c.bf16 %v3705_v55, %v3705_v55  ;;  %6819 = vmatmul.msk.bf16.vlgmr.msrb.gmra.mxu2 %vm971_vm2, %v3812_v61 }
 0x6ff   : > { %v3836_v35 = vunpack.c.l.b16 %v3733_v5  ;;  %4026 = vmatpush.bf16.msrb.mxu2 %v9622_v37  ;;  %4409 = vrot.lane.b32.xlu2 %v8063_v57, %s7838_s20  ;;  %v3706_v37 = vmul.f32 %v7561_v54, %v9731_v0 }
 0x700   : > { %v3886_v18 = vunpack.c.l.b16 %v3737_v2 }
 0x701   : > { %v3837_v41 = vpack.c.b16 %v3836_v35, %v3835_v42  ;;  %v3738_v7 = vpack.c.bf16 %v3706_v37, %v3706_v37 }
 0x702   : > { %v3887_v29 = vpack.c.b16 %v3886_v18, %v3885_v24  ;;  %4529 = vrot.lane.b32.xlu1 %v8127_v1, %s7838_s20  ;;  %v11699_v24 = vld [vmem:[#allocation75_spill] sm:$0xff] }
 0x703   : > { %6820 = vmatmul.msk.bf16.vlgmr.msrb.gmra.mxu3 %vm971_vm2, %v3837_v41  ;;  %v3607_v28 = vpop.xlane.xlu0 %3606  ;;  %v3910_v3 = vunpack.c.l.b16 %v3738_v7 }
 0x704   : > { %v3622_v25 = vpop.xlane.xlu1 %3621  ;;  %6822 = vmatmul.msk.bf16.vlgmr.msra.gmra.mxu1 %vm971_vm2, %v3887_v29  ;;  %4051 = vmatpush.bf16.msrb.mxu3 %v9670_v53  ;;  %7562 = vrcp.f32 %v3607_v28 }
 0x705   : > { %7564 = vrcp.f32 %v3622_v25  ;;  %4101 = vmatpush.bf16.msra.mxu1 %v9666_v19  ;;  %4407 = vrot.lane.b32.xlu0 %v8063_v57, %s7839_s26 }
 0x706   : > { %7566 = vrcp.f32 %v3610_v38 }
 0x707   : > { %7568 = vrcp.f32 %v3616_v46  ;;  %4431 = vrot.lane.b32.xlu2 %v8103_v33, %s7839_s26 }
 0x70a   : > { %v7563_v32 = vpop.eup %7562  ;;  %4553 = vrot.lane.b32.xlu1 %v11698_v27, %s7838_s20  ;;  %v3625_v56 = vpop.xlane.xlu2 %3624 }
 0x70b   : > { %v7565_v53 = vpop.eup %7564  ;;  %v3707_v23 = vmul.f32 %v7563_v32, %v9756_v20  ;;  %7570 = vrcp.f32 %v3625_v56  ;;  %v3613_v19 = vpop.xlane.xlu0 %3612  ;;  %v11701_v56 = vld [vmem:[#allocation76_spill] sm:$0xff] }
 0x70c   : > { %v7567_v13 = vpop.eup %7566  ;;  %v3619_v62 = vpop.xlane.xlu1 %3618  ;;  %7572 = vrcp.f32 %v3613_v19  ;;  %v3712_v31 = vmul.f32 %v7565_v53, %v9759_v49  ;;  %v4223_v53 = vsel %vm545_vm1, %v11701_v56, 0 }
 0x70d   : > { %v7569_v39 = vpop.eup %7568  ;;  %v3739_v0 = vpack.c.bf16 %v3707_v23, %v3707_v23  ;;  %7574 = vrcp.f32 %v3619_v62  ;;  %4457 = vrot.lane.b32.xlu0 %v8139_v12, %s7838_s20  ;;  %v3708_v44 = vmul.f32 %v7567_v13, %v9745_v15  ;;  %v11702_v23 = vld [vmem:[#allocation9_spill] sm:$0xff]  ;;  %v11703_v62 = vld [vmem:[#allocation74_spill] sm:$0xff] }
 0x70e   : > { %v3710_v20 = vmul.f32 %v7569_v39, %v9748_v58  ;;  %v3744_v14 = vpack.c.bf16 %v3712_v31, %v3712_v31  ;;  %v4199_v39 = vsel %vm545_vm1, %v11703_v62, 0  ;;  %v11704_v31 = vld [vmem:[#allocation8_spill] sm:$0xff] }
 0x70f   : > { %v3911_v40 = vunpack.c.l.b16 %v3739_v0  ;;  %4479 = vrot.lane.b32.xlu2 %v8041_v36, %s7839_s26  ;;  %v3740_v49 = vpack.c.bf16 %v3708_v44, %v3708_v44 }
 0x710   : > { %v3742_v2 = vpack.c.bf16 %v3710_v20, %v3710_v20  ;;  %v3985_v41 = vunpack.c.l.b16 %v3744_v14 }
 0x711   : > { %v7571_v51 = vpop.eup %7570  ;;  %v3912_v9 = vpack.c.b16 %v3911_v40, %v3910_v3 }
 0x712   : > { %v7573_v38 = vpop.eup %7572  ;;  %v3713_v61 = vmul.f32 %v7571_v51, %v9771_v30  ;;  %4551 = vrot.lane.b32.xlu1 %v11698_v27, %s7839_s26  ;;  %v3646_v15 = vpop.xlane.xlu2 %3645  ;;  %v11700_v30 = vld [vmem:[#allocation10_spill] sm:$0xff]  ;;  %v3960_v25 = vunpack.c.l.b16 %v3742_v2 }
 0x713   : > { %v7575_v55 = vpop.eup %7574  ;;  %v3709_v46 = vmul.f32 %v7573_v38, %v9769_v11  ;;  %6823 = vmatmul.msk.bf16.vlgmr.msra.gmra.mxu2 %vm971_vm2, %v3912_v9  ;;  %v3640_v5 = vpop.xlane.xlu0 %3639  ;;  %7576 = vrcp.f32 %v3646_v15  ;;  %v3935_v11 = vunpack.c.l.b16 %v3740_v49 }
 0x714   : > { %v3745_v42 = vpack.c.bf16 %v3713_v61, %v3713_v61  ;;  %v3711_v58 = vmul.f32 %v7575_v55, %v9766_v48  ;;  %v3628_v35 = vpop.xlane.xlu1 %3627  ;;  %4126 = vmatpush.bf16.msra.mxu2 %v11699_v24 }
 0x715   : > { %v3741_v18 = vpack.c.bf16 %v3709_v46, %v3709_v46  ;;  %4503 = vrot.lane.b32.xlu0 %v11700_v30, %s7839_s26 }
 0x716   : > { %v3986_v29 = vunpack.c.l.b16 %v3745_v42  ;;  %v3743_v28 = vpack.c.bf16 %v3711_v58, %v3711_v58 }
 0x717   : > { %v3936_v54 = vunpack.c.l.b16 %v3741_v18  ;;  %4505 = vrot.lane.b32.xlu2 %v11700_v30, %s7838_s20 }
 0x718   : > { %v3987_v37 = vpack.c.b16 %v3986_v29, %v3985_v41  ;;  %v3961_v32 = vunpack.c.l.b16 %v3743_v28 }
 0x719   : > { %v3937_v48 = vpack.c.b16 %v3936_v54, %v3935_v11  ;;  %v7577_v13 = vpop.eup %7576 }
 0x71a   : > { %v3962_v7 = vpack.c.b16 %v3961_v32, %v3960_v25  ;;  %4989 = vrot.lane.b32.xlu1 %v11702_v23, %s7840_s28  ;;  %6826 = vmatmul.msk.bf16.vlgmr.msrb.gmra.mxu1 %vm971_vm2, %v3987_v37  ;;  %v3720_v3 = vmul.f32 %v7577_v13, %v9785_v59 }
 0x71b   : > { %6824 = vmatmul.msk.bf16.vlgmr.msra.gmra.mxu3 %vm971_vm2, %v3937_v48  ;;  %4232 = vmatpush.bf16.xpose.msrb.mxu1 %v4223_v53  ;;  %v3649_v19 = vpop.xlane.xlu0 %3648 }
 0x71c   : > { %v3634_v0 = vpop.xlane.xlu1 %3633  ;;  %6825 = vmatmul.msk.bf16.vlgmr.msrb.gmra.mxu0 %vm971_vm2, %v3962_v7  ;;  %7578 = vrcp.f32 %v3649_v19  ;;  %v3752_v40 = vpack.c.bf16 %v3720_v3, %v3720_v3  ;;  %v11706_v19 = vld [vmem:[#allocation80_spill] sm:$0xff] }
 0x71d   : > { %4208 = vmatpush.bf16.xpose.msrb.mxu0 %v4199_v39  ;;  %4964 = vrot.lane.b32.xlu0 %v11704_v31, %s7840_s28  ;;  %7580 = vrcp.f32 %v3628_v35 }
 0x71e   : > { %7582 = vrcp.f32 %v3640_v5  ;;  %v4085_v59 = vunpack.c.l.b16 %v3752_v40 }
 0x71f   : > { %4527 = vrot.lane.b32.xlu2 %v8127_v1, %s7839_s26  ;;  %s7779_s26 = scalar_lea.hbm %s11436_s6, 128 }
 0x722   : > { %v7579_v44 = vpop.eup %7578  ;;  %5114 = vrot.lane.b32.xlu1 %v8083_v16, %s7840_s28 }
 0x723   : > { %v3721_v20 = vmul.f32 %v7579_v44, %v9795_v8  ;;  %v3631_v51 = vpop.xlane.xlu0 %3630  ;;  %v7581_v9 = vpop.eup %7580 }
 0x724   : > { %v3643_v38 = vpop.xlane.xlu1 %3642  ;;  %7584 = vrcp.f32 %v3631_v51  ;;  %v7583_v14 = vpop.eup %7582  ;;  %v3714_v55 = vmul.f32 %v7581_v9, %v9780_v52 }
 0x725   : > { %v3753_v61 = vpack.c.bf16 %v3721_v20, %v3721_v20  ;;  %7586 = vrcp.f32 %v3643_v38  ;;  %5039 = vrot.lane.b32.xlu0 %v11514_v60, %s7840_s28  ;;  %v3718_v16 = vmul.f32 %v7583_v14, %v9783_v63  ;;  %v11707_v38 = vld [vmem:[#allocation81_spill] sm:$0xff] }
 0x726   : > { %7588 = vrcp.f32 %v3634_v0  ;;  %v3746_v2 = vpack.c.bf16 %v3714_v55, %v3714_v55 }
 0x727   : > { %v4086_v49 = vunpack.c.l.b16 %v3753_v61  ;;  %5014 = vrot.lane.b32.xlu2 %v8075_v4, %s7840_s28  ;;  %v3750_v35 = vpack.c.bf16 %v3718_v16, %v3718_v16  ;;  %v11708_v61 = vld [vmem:[#allocation82_spill] sm:$0xff] }
 0x728   : > { %v4010_v63 = vunpack.c.l.b16 %v3746_v2 }
 0x729   : > { %v4087_v8 = vpack.c.b16 %v4086_v49, %v4085_v59 }
 0x72a   : > { %v7585_v46 = vpop.eup %7584  ;;  %v3652_v15 = vpop.xlane.xlu2 %3651 }
 0x72b   : > { %v7587_v5 = vpop.eup %7586  ;;  %v3715_v42 = vmul.f32 %v7585_v46, %v9808_v45  ;;  %6830 = vmatmul.msk.bf16.vlgmr.msra.gmra.mxu1 %vm971_vm2, %v4087_v8  ;;  %v3637_v60 = vpop.xlane.xlu0 %3636  ;;  %v4060_v45 = vunpack.c.l.b16 %v3750_v35 }
 0x72c   : > { %v7589_v58 = vpop.eup %7588  ;;  %v3719_v52 = vmul.f32 %v7587_v5, %v9806_v43  ;;  %7590 = vrcp.f32 %v3637_v60  ;;  %v11705_v43 = vld [vmem:[#allocation78_spill] sm:$0xff]  ;;  %v3661_v7 = vpop.xlane.xlu1 %3660 }
 0x72d   : > { %v3747_v24 = vpack.c.bf16 %v3715_v42, %v3715_v42  ;;  %5089 = vrot.lane.b32.xlu0 %v8053_v50, %s7840_s28  ;;  %v3716_v18 = vmul.f32 %v7589_v58, %v9797_v10  ;;  %v4247_v37 = vsel %vm545_vm1, %v11705_v43, 0  ;;  %7592 = vrcp.f32 %v3652_v15 }
 0x72e   : > { %v3751_v4 = vpack.c.bf16 %v3719_v52, %v3719_v52 }
 0x72f   : > { %v4011_v41 = vunpack.c.l.b16 %v3747_v24  ;;  %5064 = vrot.lane.b32.xlu2 %v8011_v6, %s7840_s28  ;;  %v3748_v32 = vpack.c.bf16 %v3716_v18, %v3716_v18 }
 0x730   : > { %v4061_v29 = vunpack.c.l.b16 %v3751_v4 }
 0x731   : > { %v4012_v28 = vpack.c.b16 %v4011_v41, %v4010_v63  ;;  %v4035_v6 = vunpack.c.l.b16 %v3748_v32 }
 0x732   : > { %v7591_v11 = vpop.eup %7590  ;;  %v4062_v54 = vpack.c.b16 %v4061_v29, %v4060_v45  ;;  %v4240_v25 = vpop.permute.xlu2 %4239 }
 0x733   : > { %v3717_v50 = vmul.f32 %v7591_v11, %v9815_v34  ;;  %6827 = vmatmul.msk.bf16.vlgmr.msrb.gmra.mxu2 %vm971_vm2, %v4012_v28  ;;  %v3658_v48 = vpop.xlane.xlu0 %3657  ;;  %v7593_v13 = vpop.eup %7592 }
 0x734   : > { %6829 = vmatmul.msk.bf16.vlgmr.msra.gmra.mxu0 %vm971_vm2, %v4062_v54  ;;  %4256 = vmatpush.bf16.xpose.msrb.mxu2 %v4247_v37  ;;  %7594 = vrcp.f32 %v3658_v48  ;;  %v3722_v62 = vmul.f32 %v7593_v13, %v9819_v21  ;;  %v4176_v48 = vld [vmem:[#allocation2 + $0x388] sm:$0xff] }
 0x735   : > { %v3749_v10 = vpack.c.bf16 %v3717_v50, %v3717_v50 }
 0x736   : > { %v3754_v44 = vpack.c.bf16 %v3722_v62, %v3722_v62 }
 0x737   : > { %v4036_v56 = vunpack.c.l.b16 %v3749_v10 }
 0x738   : > { %v4110_v21 = vunpack.c.l.b16 %v3754_v44 }
 0x739   : > { %v4037_v53 = vpack.c.b16 %v4036_v56, %v4035_v6 }
 0x73a   : > { %v4264_v23 = vpop.permute.xlu2 %4263  ;;  %v7595_v39 = vpop.eup %7594 }
 0x73b   : > { %6828 = vmatmul.msk.bf16.vlgmr.msrb.gmra.mxu3 %vm971_vm2, %v4037_v53  ;;  %6834 = vmatmul.msk.bf16.vlgmr.msrb.gmra.mxu1 %vm545_vm1, %v11706_v19  ;;  %v3655_v34 = vpop.xlane.xlu0 %3654  ;;  %v3724_v51 = vmul.f32 %v7595_v39, %v9828_v22 }
 0x73c   : > { %7596 = vrcp.f32 %v3655_v34 }
 0x73d   : > { %7598 = vrcp.f32 %v3661_v7  ;;  %v3756_v49 = vpack.c.bf16 %v3724_v51, %v3724_v51 }
 0x73f   : > { %v4135_v15 = vunpack.c.l.b16 %v3756_v49 }
 0x742   : > { %v7597_v0 = vpop.eup %7596  ;;  %v4290_v31 = vpop.permute.xlu2 %4289 }
 0x743   : > { %v7599_v3 = vpop.eup %7598  ;;  %v3723_v40 = vmul.f32 %v7597_v0, %v9832_v17  ;;  %v4295_v20 = vsel %vm545_vm1, %v4290_v31, 0 }
 0x744   : > { %v4266_v9 = vpop.permute.xlu1 %4265  ;;  %6833 = vmatmul.msk.bf16.vlgmr.msrb.gmra.mxu0 %vm545_vm1, %v11707_v38  ;;  %v3725_v59 = vmul.f32 %v7599_v3, %v11708_v61 }
 0x745   : > { %v3755_v14 = vpack.c.bf16 %v3723_v40, %v3723_v40  ;;  %4304 = vmatpush.bf16.xpose.msra.mxu0 %v4295_v20  ;;  %v4271_v42 = vsel %vm545_vm1, %v4266_v9, 0 }
 0x746   : > { %v3757_v8 = vpack.c.bf16 %v3725_v59, %v3725_v59 }
 0x747   : > { %v4111_v55 = vunpack.c.l.b16 %v3755_v14 }
 0x748   : > { %v4136_v5 = vunpack.c.l.b16 %v3757_v8 }
 0x749   : > { %v4112_v16 = vpack.c.b16 %v4111_v55, %v4110_v21 }
 0x74a   : > { %v4314_v46 = vpop.permute.xlu2 %4313  ;;  %v4137_v60 = vpack.c.b16 %v4136_v5, %v4135_v15 }
 0x74b   : > { %v4319_v17 = vsel %vm545_vm1, %v4314_v46, 0  ;;  %6831 = vmatmul.msk.bf16.vlgmr.msra.gmra.mxu2 %vm971_vm2, %v4112_v16 }
 0x74c   : > { %v4336_v22 = vpop.permute.xlu1 %4335  ;;  %4328 = vmatpush.bf16.xpose.msra.mxu1 %v4319_v17 }
 0x74e   : > { %v4139_v2 = vpop.permute.xlu0 %4138 }
 0x74f   : > { %4151 = vmatpush.bf16.msra.mxu3 %v4139_v2 }
 0x752   : > { %6832 = vmatmul.msk.bf16.vlgmr.msra.gmra.mxu3 %vm971_vm2, %v4137_v60  ;;  %v4312_v58 = vpop.permute.xlu2 %4311 }
 0x753   : > { %4280 = vmatpush.bf16.xpose.msrb.mxu3 %v4271_v42  ;;  %6838 = vmatmul.msk.bf16.vlgmr.msra.gmra.mxu1 %vm545_vm1, %v4312_v58 }
 0x754   : > { %v4386_v35 = vpop.permute.xlu1 %4385 }
 0x755   : > { %v4391_v52 = vsel %vm545_vm1, %v4386_v35, 0 }
 0x756   : > { %4400 = vmatpush.bf16.xpose.msrb.mxu0 %v4391_v52  ;;  %v4288_v24 = vpop.permute.xlu0 %4287 }
 0x757   : > { %6837 = vmatmul.msk.bf16.vlgmr.msra.gmra.mxu0 %vm545_vm1, %v4288_v24 }
 0x75a   : > { %v4360_v4 = vpop.permute.xlu2 %4359 }
 0x75b   : > { %6835 = vmatmul.msk.bf16.vlgmr.msrb.gmra.mxu2 %vm545_vm1, %v4240_v25 }
 0x75c   : > { %v4434_v63 = vpop.permute.xlu1 %4433 }
 0x75d   : > { %v4439_v45 = vsel %vm545_vm1, %v4434_v63, 0 }
 0x75e   : > { %v4338_v18 = vpop.permute.xlu0 %4337 }
 0x75f   : > { %v4343_v41 = vsel %vm545_vm1, %v4338_v18, 0 }
 0x760   : > { %4352 = vmatpush.bf16.xpose.msra.mxu2 %v4343_v41 }
 0x762   : > { %6836 = vmatmul.msk.bf16.vlgmr.msrb.gmra.mxu3 %vm545_vm1, %v4264_v23  ;;  %v4410_v29 = vpop.permute.xlu2 %4409  ;;  %v9994_v23 = vpop.f32.mrf.mxu0 }
 0x763   : > { %v4415_v11 = vsel %vm545_vm1, %v4410_v29, 0 }
 0x764   : > { %v9981_v28 = vpop.f32.mrf.mxu1  ;;  %v4482_v54 = vpop.permute.xlu1 %4481  ;;  %4424 = vmatpush.bf16.xpose.msrb.mxu1 %v4415_v11 }
 0x765   : > { %v4487_v43 = vsel %vm545_vm1, %v4482_v54, 0 }
 0x766   : > { %4496 = vmatpush.bf16.xpose.msra.mxu0 %v4487_v43  ;;  %v4362_v25 = vpop.permute.xlu0 %4361 }
 0x767   : > { %v4367_v37 = vsel %vm545_vm1, %v4362_v25, 0  ;;  %v4163_v25 = vld [vmem:[#allocation2 + $0x320] sm:$0xff] }
 0x768   : > { %4448 = vmatpush.bf16.xpose.msrb.mxu2 %v4439_v45  ;;  %4376 = vmatpush.bf16.xpose.msra.mxu3 %v4367_v37 }
 0x76a   : > { %v4432_v32 = vpop.permute.xlu2 %4431  ;;  %v10000_v0 = vpop.f32.mrf.mxu0 }
 0x76b   : > { %6839 = vmatmul.msk.bf16.vlgmr.msra.gmra.mxu2 %vm545_vm1, %v4336_v22 }
 0x76c   : > { %v9986_v50 = vpop.f32.mrf.mxu1  ;;  %v4456_v10 = vpop.permute.xlu1 %4455 }
 0x76e   : > { %v4384_v6 = vpop.permute.xlu0 %4383 }
 0x76f   : > { %6841 = vmatmul.msk.bf16.vlgmr.msrb.gmra.mxu0 %vm545_vm1, %v4384_v6 }
 0x772   : > { %6840 = vmatmul.msk.bf16.vlgmr.msra.gmra.mxu3 %vm545_vm1, %v4360_v4  ;;  %v4480_v56 = vpop.permute.xlu2 %4479 }
 0x773   : > { %v10020_v49 = vpop.f32.mrf.mxu0 }
 0x774   : > { %v4530_v53 = vpop.permute.xlu1 %4529  ;;  %11711 = vst [vmem:[#allocation10_spill] sm:$0xff] %v10020_v49  ;;  %v4189_v49 = vld [vmem:[#allocation2 + $0x3f0] sm:$0xff] }
 0x775   : > { %v4535_v7 = vsel %vm545_vm1, %v4530_v53, 0 }
 0x776   : > { %4544 = vmatpush.bf16.xpose.msra.mxu2 %v4535_v7 }
 0x777   : > { %v4408_v19 = vpop.permute.xlu0 %4407 }
 0x778   : > { %6842 = vmatmul.msk.bf16.vlgmr.msrb.gmra.mxu1 %vm545_vm1, %v4408_v19 }
 0x77a   : > { %v4506_v34 = vpop.permute.xlu2 %4505 }
 0x77b   : > { %v4511_v13 = vsel %vm545_vm1, %v4506_v34, 0  ;;  %6843 = vmatmul.msk.bf16.vlgmr.msrb.gmra.mxu2 %vm545_vm1, %v4432_v32  ;;  %v10027_v5 = vpop.f32.mrf.mxu0  ;;  %v4161_v32 = vld [vmem:[#allocation2 + $0x310] sm:$0xff] }
 0x77c   : > { %v4554_v62 = vpop.permute.xlu1 %4553  ;;  %4520 = vmatpush.bf16.xpose.msra.mxu1 %v4511_v13  ;;  %11712 = vst [vmem:[#allocation76_spill] sm:$0xff] %v10027_v5  ;;  %v4159_v13 = vld [vmem:[#allocation2 + $0x300] sm:$0xff] }
 0x77d   : > { %v4559_v3 = vsel %vm545_vm1, %v4554_v62, 0 }
 0x77f   : > { %v4458_v39 = vpop.permute.xlu0 %4457  ;;  %6845 = vmatmul.msk.bf16.vlgmr.msra.gmra.mxu0 %vm545_vm1, %v4480_v56 }
 0x780   : > { %v4463_v31 = vsel %vm545_vm1, %v4458_v39, 0 }
 0x781   : > { %v10004_v44 = vpop.f32.mrf.mxu2  ;;  %v10006_v40 = vpop.f32.mrf.mxu1  ;;  %4472 = vmatpush.bf16.xpose.msrb.mxu3 %v4463_v31 }
 0x782   : > { %11709 = vst [vmem:[#allocation14_spill] sm:$0xff] %v10006_v40  ;;  %v4528_v20 = vpop.permute.xlu2 %4527 }
 0x784   : > { %v4552_v51 = vpop.permute.xlu1 %4551 }
 0x786   : > { %v10008_v9 = vpop.f32.mrf.mxu3 }
 0x787   : > { %v4504_v38 = vpop.permute.xlu0 %4503 }
 0x788   : > { %6844 = vmatmul.msk.bf16.vlgmr.msrb.gmra.mxu3 %vm545_vm1, %v4456_v10  ;;  %6846 = vmatmul.msk.bf16.vlgmr.msra.gmra.mxu1 %vm545_vm1, %v4504_v38  ;;  %v4165_v38 = vld [vmem:[#allocation2 + $0x330] sm:$0xff] }
 0x789   : > { %4568 = vmatpush.bf16.xpose.msra.mxu3 %v4559_v3  ;;  %v10012_v14 = vpop.f32.mrf.mxu2  ;;  %v10014_v61 = vpop.f32.mrf.mxu1  ;;  %v4162_v3 = vld [vmem:[#allocation2 + $0x318] sm:$0xff] }
 0x78a   : > { %11710 = vst [vmem:[#allocation75_spill] sm:$0xff] %v10014_v61  ;;  %v5015_v55 = vpop.permute.xlu2 %5014 }
 0x78b   : > { %6847 = vmatmul.msk.bf16.vlgmr.msra.gmra.mxu2 %vm545_vm1, %v4528_v20 }
 0x78c   : > { %v4990_v16 = vpop.permute.xlu1 %4989  ;;  %5027 = vmatpush.bf16.msrb.mxu2 %v5015_v55  ;;  %v4160_v55 = vld [vmem:[#allocation2 + $0x308] sm:$0xff] }
 0x78d   : > { %5002 = vmatpush.bf16.msrb.mxu1 %v4990_v16 }
 0x78e   : > { %v10023_v8 = vpop.f32.mrf.mxu3 }
 0x78f   : > { %v4965_v17 = vpop.permute.xlu0 %4964 }
 0x790   : > { %4977 = vmatpush.bf16.msrb.mxu0 %v4965_v17 }
 0x792   : > { %v5065_v15 = vpop.permute.xlu2 %5064 }
 0x794   : > { %5077 = vmatpush.bf16.msra.mxu0 %v5065_v15  ;;  %v5115_v22 = vpop.permute.xlu1 %5114 }
 0x795   : > { %5127 = vmatpush.bf16.msra.mxu2 %v5115_v22 }
 0x796   : > { %v10029_v2 = vpop.f32.mrf.mxu2 }
 0x797   : > { %11713 = vst [vmem:[#allocation9_spill] sm:$0xff] %v10029_v2  ;;  %v5040_v42 = vpop.permute.xlu0 %5039  ;;  %v10031_v60 = vpop.f32.mrf.mxu1 }
 0x798   : > { %11714 = vst [vmem:[#allocation74_spill] sm:$0xff] %v10031_v60  ;;  %6848 = vmatmul.msk.bf16.vlgmr.msra.gmra.mxu3 %vm545_vm1, %v4552_v51 }
 0x799   : > { %5052 = vmatpush.bf16.msrb.mxu3 %v5040_v42  ;;  %v10034_v58 = vpop.f32.mrf.mxu0 }
 0x79a   : > { %11715 = vst [vmem:[#allocation8_spill] sm:$0xff] %v10034_v58 }
 0x79e   : > { %v10036_v35 = vpop.f32.mrf.mxu2  ;;  %v10038_v52 = vpop.f32.mrf.mxu3 }
 0x79f   : > { %11716 = vst [vmem:[#allocation78_spill] sm:$0xff] %v10036_v35  ;;  %v5090_v4 = vpop.permute.xlu0 %5089  ;;  %v10042_v63 = vpop.f32.mrf.mxu1 }
 0x7a0   : > { %11717 = vst [vmem:[#allocation80_spill] sm:$0xff] %v10038_v52  ;;  %5102 = vmatpush.bf16.msra.mxu1 %v5090_v4 }
 0x7a1   : > { %11718 = vst [vmem:[#allocation81_spill] sm:$0xff] %v10042_v63  ;;  %v10052_v11 = vpop.f32.mrf.mxu0 }
 0x7a2   : > { %11721 = vst [vmem:[#allocation84_spill] sm:$0xff] %v10052_v11 }
 0x7a6   : > { %v10046_v41 = vpop.f32.mrf.mxu3 }
 0x7a7   : > { %11719 = vst [vmem:[#allocation82_spill] sm:$0xff] %v10046_v41 }
 0x7a8   : > { %v10050_v29 = vpop.f32.mrf.mxu1 }
 0x7a9   : > { %11720 = vst [vmem:[#allocation83_spill] sm:$0xff] %v10050_v29 }
 0x7b0   : > { %v10054_v54 = vpop.f32.mrf.mxu1 }
 0x7b1   : > { %11722 = vst [vmem:[#allocation85_spill] sm:$0xff] %v10054_v54  ;;  %v10056_v43 = vpop.f32.mrf.mxu0 }
 0x7b2   : > { %11723 = vst [vmem:[#allocation86_spill] sm:$0xff] %v10056_v43 }
 0x7b6   : > { %v10060_v37 = vpop.f32.mrf.mxu2 }
 0x7b7   : > { %11724 = vst [vmem:[#allocation87_spill] sm:$0xff] %v10060_v37 }
 0x7b8   : > { %v4234_v10 = vpop.f32.mrf.mxu1 }
 0x7b9   : > { %v10062_v6 = vpop.f32.mrf.mxu0  ;;  %v10064_v56 = vadd.f32 %v4234_v10, %v4161_v32  ;;  %v4167_v32 = vld [vmem:[#allocation2 + $0x340] sm:$0xff] }
 0x7ba   : > { %11725 = vst [vmem:[#allocation88_spill] sm:$0xff] %v10062_v6 }
 0x7bb   : > { %v4581_v53 = vsel %vm971_vm2, %v10064_v56, -inf }
 0x7bc   : > { %4582 = vmax.xlane.f32.xlu1 %v4581_v53 }
 0x7be   : > { %v10068_v7 = vpop.f32.mrf.mxu2  ;;  %v10070_v19 = vpop.f32.mrf.mxu3 }
 0x7bf   : > { %11726 = vst [vmem:[#allocation89_spill] sm:$0xff] %v10068_v7 }
 0x7c0   : > { %11727 = vst [vmem:[#allocation90_spill] sm:$0xff] %v10070_v19  ;;  %v4236_v20 = vpop.f32.mrf.mxu1 }
 0x7c1   : > { %v4210_v62 = vpop.f32.mrf.mxu0  ;;  %v10082_v16 = vadd.f32 %v4236_v20, %v4162_v3 }
 0x7c2   : > { %v10074_v39 = vadd.f32 %v4210_v62, %v4159_v13 }
 0x7c3   : > { %v4584_v42 = vsel %vm971_vm2, %v10082_v16, -inf }
 0x7c4   : > { %v4575_v31 = vsel %vm971_vm2, %v10074_v39, -inf }
 0x7c5   : > { %4576 = vmax.xlane.f32.xlu0 %v4575_v31 }
 0x7c6   : > { %v10078_v51 = vpop.f32.mrf.mxu3 }
 0x7c7   : > { %11728 = vst [vmem:[#allocation91_spill] sm:$0xff] %v10078_v51 }
 0x7c9   : > { %v4212_v17 = vpop.f32.mrf.mxu0 }
 0x7ca   : > { %v10084_v15 = vadd.f32 %v4212_v17, %v4160_v55  ;;  %v4169_v55 = vld [vmem:[#allocation2 + $0x350] sm:$0xff]  ;;  %v4168_v17 = vld [vmem:[#allocation2 + $0x348] sm:$0xff] }
 0x7cc   : > { %v4578_v22 = vsel %vm971_vm2, %v10084_v15, -inf }
 0x7cd   : > { %4579 = vmax.xlane.f32.xlu2 %v4578_v22  ;;  %4585 = vmax.xlane.f32.xlu0 %v4584_v42 }
 0x7ce   : > { %v10090_v4 = vpop.f32.mrf.mxu2 }
 0x7cf   : > { %11729 = vst [vmem:[#allocation92_spill] sm:$0xff] %v10090_v4  ;;  %v4164_v4 = vld [vmem:[#allocation2 + $0x328] sm:$0xff] }
 0x7d0   : > { %v4330_v62 = vpop.f32.mrf.mxu1 }
 0x7d1   : > { %v10102_v22 = vadd.f32 %v4330_v62, %v4169_v55  ;;  %v4170_v62 = vld [vmem:[#allocation2 + $0x358] sm:$0xff] }
 0x7d4   : > { %v4306_v10 = vpop.f32.mrf.mxu0 }
 0x7d5   : > { %v10092_v53 = vadd.f32 %v4306_v10, %v4167_v32  ;;  %v10094_v13 = vpop.f32.mrf.mxu3 }
 0x7d6   : > { %11730 = vst [vmem:[#allocation93_spill] sm:$0xff] %v10094_v13  ;;  %v10096_v31 = vpop.f32.mrf.mxu2 }
 0x7d7   : > { %11731 = vst [vmem:[#allocation94_spill] sm:$0xff] %v10096_v31  ;;  %v4599_v20 = vsel %vm971_vm2, %v10092_v53, -inf }
 0x7d8   : > { %4600 = vmax.xlane.f32.xlu0 %v4599_v20  ;;  %v4605_v20 = vsel %vm971_vm2, %v10102_v22, -inf  ;;  %v4332_v55 = vpop.f32.mrf.mxu1 }
 0x7dc   : > { %v4308_v42 = vpop.f32.mrf.mxu0 }
 0x7dd   : > { %v10104_v32 = vadd.f32 %v4308_v42, %v4168_v17  ;;  %v10106_v10 = vpop.f32.mrf.mxu3  ;;  %v10118_v42 = vadd.f32 %v4332_v55, %v4170_v62 }
 0x7de   : > { %11732 = vst [vmem:[#allocation95_spill] sm:$0xff] %v10106_v10  ;;  %v4258_v34 = vpop.f32.mrf.mxu2 }
 0x7df   : > { %v10110_v18 = vadd.f32 %v4258_v34, %v4163_v25  ;;  %v4602_v3 = vsel %vm971_vm2, %v10104_v32, -inf  ;;  %v4608_v24 = vsel %vm971_vm2, %v10118_v42, -inf }
 0x7e0   : > { %4603 = vmax.xlane.f32.xlu2 %v4602_v3  ;;  %4606 = vmax.xlane.f32.xlu0 %v4605_v20  ;;  %v4175_v3 = vld [vmem:[#allocation2 + $0x380] sm:$0xff]  ;;  %v4166_v20 = vld [vmem:[#allocation2 + $0x338] sm:$0xff] }
 0x7e1   : > { %v4587_v17 = vsel %vm971_vm2, %v10110_v18, -inf }
 0x7e2   : > { %4588 = vmax.xlane.f32.xlu1 %v4587_v17 }
 0x7e5   : > { %v4282_v45 = vpop.f32.mrf.mxu3 }
 0x7e6   : > { %v10120_v25 = vadd.f32 %v4282_v45, %v4165_v38  ;;  %v4260_v34 = vpop.f32.mrf.mxu2 }
 0x7e8   : > { %4609 = vmax.xlane.f32.xlu2 %v4608_v24  ;;  %v4593_v21 = vsel %vm971_vm2, %v10120_v25, -inf  ;;  %v4171_v24 = vld [vmem:[#allocation2 + $0x360] sm:$0xff] }
 0x7e9   : > { %4594 = vmax.xlane.f32.xlu0 %v4593_v21  ;;  %v4177_v21 = vld [vmem:[#allocation2 + $0x390] sm:$0xff] }
 0x7ec   : > { %v4402_v59 = vpop.f32.mrf.mxu0 }
 0x7ed   : > { %v10126_v46 = vadd.f32 %v4402_v59, %v4175_v3  ;;  %v4284_v62 = vpop.f32.mrf.mxu3 }
 0x7ee   : > { %v10128_v55 = vadd.f32 %v4284_v62, %v4166_v20  ;;  %v4354_v17 = vpop.f32.mrf.mxu2 }
 0x7ef   : > { %v4623_v45 = vsel %vm971_vm2, %v10126_v46, -inf  ;;  %v10134_v13 = vadd.f32 %v4354_v17, %v4171_v24  ;;  %v4183_v24 = vld [vmem:[#allocation2 + $0x3c0] sm:$0xff]  ;;  %v4178_v17 = vld [vmem:[#allocation2 + $0x398] sm:$0xff] }
 0x7f0   : > { %4624 = vmax.xlane.f32.xlu1 %v4623_v45  ;;  %v4596_v38 = vsel %vm971_vm2, %v10128_v55, -inf }
 0x7f1   : > { %4597 = vmax.xlane.f32.xlu2 %v4596_v38  ;;  %v4611_v38 = vsel %vm971_vm2, %v10134_v13, -inf }
 0x7f4   : > { %v4404_v10 = vpop.f32.mrf.mxu0 }
 0x7f5   : > { %v10136_v59 = vadd.f32 %v4404_v10, %v4176_v48  ;;  %v4426_v3 = vpop.f32.mrf.mxu1  ;;  %v10146_v48 = vadd.f32 %v4260_v34, %v4164_v4  ;;  %v4378_v29 = vpop.f32.mrf.mxu3  ;;  %v4172_v4 = vld [vmem:[#allocation2 + $0x368] sm:$0xff] }
 0x7f6   : > { %v10138_v20 = vadd.f32 %v4426_v3, %v4177_v21  ;;  %v4356_v21 = vpop.f32.mrf.mxu2  ;;  %v4184_v34 = vld [vmem:[#allocation2 + $0x3c8] sm:$0xff] }
 0x7f7   : > { %v4626_v62 = vsel %vm971_vm2, %v10136_v59, -inf }
 0x7f8   : > { %4627 = vmax.xlane.f32.xlu1 %v4626_v62  ;;  %v4629_v45 = vsel %vm971_vm2, %v10138_v20, -inf }
 0x7f9   : > { %4630 = vmax.xlane.f32.xlu0 %v4629_v45  ;;  %4612 = vmax.xlane.f32.xlu2 %v4611_v38  ;;  %v4590_v45 = vsel %vm971_vm2, %v10146_v48, -inf  ;;  %v4173_v38 = vld [vmem:[#allocation2 + $0x370] sm:$0xff] }
 0x7fc   : > { %v4498_v10 = vpop.f32.mrf.mxu0 }
 0x7fd   : > { %v4428_v3 = vpop.f32.mrf.mxu1  ;;  %v10148_v31 = vadd.f32 %v4498_v10, %v4183_v24  ;;  %v10158_v24 = vadd.f32 %v4378_v29, %v4173_v38  ;;  %v4380_v51 = vpop.f32.mrf.mxu3 }
 0x7fe   : > { %v10150_v62 = vadd.f32 %v4428_v3, %v4178_v17  ;;  %v10160_v17 = vadd.f32 %v4356_v21, %v4172_v4  ;;  %v4450_v43 = vpop.f32.mrf.mxu2 }
 0x7ff   : > { %v4647_v54 = vsel %vm971_vm2, %v10148_v31, -inf  ;;  %v4617_v37 = vsel %vm971_vm2, %v10158_v24, -inf }
 0x800   : > { %v4632_v6 = vsel %vm971_vm2, %v10150_v62, -inf  ;;  %v4614_v29 = vsel %vm971_vm2, %v10160_v17, -inf }
 0x801   : > { %4633 = vmax.xlane.f32.xlu1 %v4632_v6  ;;  %4591 = vmax.xlane.f32.xlu0 %v4590_v45  ;;  %v4179_v6 = vld [vmem:[#allocation2 + $0x3a0] sm:$0xff] }
 0x802   : > { %4648 = vmax.xlane.f32.xlu2 %v4647_v54  ;;  %v4174_v54 = vld [vmem:[#allocation2 + $0x378] sm:$0xff]  ;;  %v10170_v21 = vadd.f32 %v4450_v43, %v4179_v6 }
 0x803   : > { %v10172_v45 = vadd.f32 %v4380_v51, %v4174_v54  ;;  %v4182_v6 = vld [vmem:[#allocation2 + $0x3b8] sm:$0xff] }
 0x804   : > { %v4500_v10 = vpop.f32.mrf.mxu0  ;;  %v4635_v4 = vsel %vm971_vm2, %v10170_v21, -inf }
 0x805   : > { %v10162_v3 = vadd.f32 %v4500_v10, %v4184_v34  ;;  %v4180_v34 = vld [vmem:[#allocation2 + $0x3a8] sm:$0xff] }
 0x806   : > { %v4452_v10 = vpop.f32.mrf.mxu2 }
 0x807   : > { %v4650_v19 = vsel %vm971_vm2, %v10162_v3, -inf  ;;  %v10178_v7 = vadd.f32 %v4452_v10, %v4180_v34 }
 0x809   : > { %4651 = vmax.xlane.f32.xlu1 %v4650_v19  ;;  %4618 = vmax.xlane.f32.xlu0 %v4617_v37  ;;  %v4620_v19 = vsel %vm971_vm2, %v10172_v45, -inf  ;;  %v4181_v37 = vld [vmem:[#allocation2 + $0x3b0] sm:$0xff]  ;;  %v4638_v43 = vsel %vm971_vm2, %v10178_v7, -inf }
 0x80a   : > { %4615 = vmax.xlane.f32.xlu2 %v4614_v29 }
 0x80b   : > { %v4474_v38 = vpop.f32.mrf.mxu3 }
 0x80c   : > { %v10180_v60 = vadd.f32 %v4474_v38, %v4181_v37 }
 0x80e   : > { %v4641_v51 = vsel %vm971_vm2, %v10180_v60, -inf }
 0x811   : > { %4636 = vmax.xlane.f32.xlu1 %v4635_v4 }
 0x812   : > { %4621 = vmax.xlane.f32.xlu2 %v4620_v19 }
 0x813   : > { %v4476_v29 = vpop.f32.mrf.mxu3 }
 0x814   : > { %v10186_v54 = vadd.f32 %v4476_v29, %v4182_v6 }
 0x816   : > { %v4644_v4 = vsel %vm971_vm2, %v10186_v54, -inf }
 0x819   : > { %4639 = vmax.xlane.f32.xlu1 %v4638_v43 }
 0x81a   : > { %4642 = vmax.xlane.f32.xlu2 %v4641_v51 }
 0x81d   : > { %5164 = vrot.lane.b32.xlu0 %v8031_v26, %s7840_s28 }
 0x822   : > { %4645 = vmax.xlane.f32.xlu2 %v4644_v4 }
 0x838   : > { %v4577_v38 = vpop.xlane.xlu0 %4576 }
 0x839   : > { %v4671_v34 = vsub.f32 %v10074_v39, %v4577_v38  ;;  %v4583_v39 = vpop.xlane.xlu1 %4582 }
 0x83a   : > { %5139 = vrot.lane.b32.xlu2 %v8115_v47, %s7840_s28 }
 0x83b   : > { %v4703_v10 = vmul.f32 1.442695, %v4671_v34 }
 0x83d   : > { %7600 = vpow2.f32 %v4703_v10 }
 0x840   : > { %v4586_v19 = vpop.xlane.xlu0 %4585  ;;  %v4580_v6 = vpop.xlane.xlu2 %4579 }
 0x841   : > { %v4674_v37 = vsub.f32 %v10082_v16, %v4586_v19  ;;  %v4673_v16 = vsub.f32 %v10064_v56, %v4583_v39  ;;  %v4672_v56 = vsub.f32 %v10084_v15, %v4580_v6 }
 0x843   : > { %v10196_v43 = vpop.eup %7600  ;;  %v4709_v51 = vmul.f32 1.442695, %v4674_v37  ;;  %v4707_v10 = vmul.f32 1.442695, %v4673_v16 }
 0x844   : > { %v4767_v26 = vsel %vm971_vm2, %v10196_v43, 0.0 }
 0x845   : > { %4768 = vadd.xlane.f32.xlu1 %v4767_v26  ;;  %7602 = vpow2.f32 %v4709_v51 }
 0x84b   : > { %v4601_v29 = vpop.xlane.xlu0 %4600  ;;  %v10200_v4 = vpop.eup %7602 }
 0x84c   : > { %v4679_v47 = vsub.f32 %v10092_v53, %v4601_v29  ;;  %v4776_v38 = vsel %vm971_vm2, %v10200_v4, 0.0 }
 0x84d   : > { %4777 = vadd.xlane.f32.xlu1 %v4776_v38 }
 0x84e   : > { %v4719_v34 = vmul.f32 1.442695, %v4679_v47 }
 0x850   : > { %7604 = vpow2.f32 %v4719_v34 }
 0x851   : > { %7606 = vpow2.f32 %v4707_v10 }
 0x853   : > { %v4604_v19 = vpop.xlane.xlu2 %4603  ;;  %v4607_v37 = vpop.xlane.xlu0 %4606 }
 0x854   : > { %v4680_v51 = vsub.f32 %v10104_v32, %v4604_v19  ;;  %v4681_v26 = vsub.f32 %v10102_v22, %v4607_v37  ;;  %v4705_v22 = vmul.f32 1.442695, %v4672_v56 }
 0x855   : > { %v4589_v29 = vpop.xlane.xlu1 %4588 }
 0x856   : > { %v10208_v63 = vpop.eup %7604  ;;  %v4721_v11 = vmul.f32 1.442695, %v4680_v51  ;;  %v4723_v58 = vmul.f32 1.442695, %v4681_v26  ;;  %v4675_v15 = vsub.f32 %v10110_v18, %v4589_v29 }
 0x857   : > { %v4791_v53 = vsel %vm971_vm2, %v10208_v63, 0.0  ;;  %v10214_v38 = vpop.eup %7606 }
 0x858   : > { %7608 = vpow2.f32 %v4721_v11  ;;  %4792 = vadd.xlane.f32.xlu1 %v4791_v53  ;;  %v4711_v26 = vmul.f32 1.442695, %v4675_v15 }
 0x859   : > { %7610 = vpow2.f32 %v4723_v58 }
 0x85b   : > { %v4610_v39 = vpop.xlane.xlu2 %4609 }
 0x85c   : > { %v4682_v47 = vsub.f32 %v10118_v42, %v4610_v39  ;;  %v4595_v32 = vpop.xlane.xlu0 %4594  ;;  %v4773_v42 = vsel %vm971_vm2, %v10214_v38, 0.0 }
 0x85d   : > { %v4677_v19 = vsub.f32 %v10120_v25, %v4595_v32 }
 0x85e   : > { %v10216_v34 = vpop.eup %7608  ;;  %v4725_v16 = vmul.f32 1.442695, %v4682_v47 }
 0x85f   : > { %v10218_v10 = vpop.eup %7610  ;;  %v4794_v11 = vsel %vm971_vm2, %v10216_v34, 0.0  ;;  %v4715_v6 = vmul.f32 1.442695, %v4677_v19 }
 0x860   : > { %7612 = vpow2.f32 %v4725_v16  ;;  %4795 = vadd.xlane.f32.xlu0 %v4794_v11  ;;  %v4797_v58 = vsel %vm971_vm2, %v10218_v10, 0.0 }
 0x861   : > { %7614 = vpow2.f32 %v4705_v22  ;;  %4798 = vadd.xlane.f32.xlu1 %v4797_v58 }
 0x862   : > { %7616 = vpow2.f32 %v4715_v6 }
 0x863   : > { %4774 = vadd.xlane.f32.xlu2 %v4773_v42  ;;  %v4625_v37 = vpop.xlane.xlu1 %4624 }
 0x864   : > { %v4687_v25 = vsub.f32 %v10126_v46, %v4625_v37  ;;  %v4598_v51 = vpop.xlane.xlu2 %4597 }
 0x865   : > { %v4678_v39 = vsub.f32 %v10128_v55, %v4598_v51 }
 0x866   : > { %v10229_v53 = vpop.eup %7612  ;;  %v4735_v56 = vmul.f32 1.442695, %v4687_v25 }
 0x867   : > { %v10232_v47 = vpop.eup %7614  ;;  %v4800_v18 = vsel %vm971_vm2, %v10229_v53, 0.0  ;;  %v4717_v29 = vmul.f32 1.442695, %v4678_v39 }
 0x868   : > { %7618 = vpow2.f32 %v4735_v56  ;;  %v4770_v46 = vsel %vm971_vm2, %v10232_v47, 0.0  ;;  %v10238_v19 = vpop.eup %7616 }
 0x869   : > { %7620 = vpow2.f32 %v4711_v26  ;;  %4801 = vadd.xlane.f32.xlu1 %v4800_v18  ;;  %v4785_v37 = vsel %vm971_vm2, %v10238_v19, 0.0 }
 0x86a   : > { %7622 = vpow2.f32 %v4717_v29 }
 0x86b   : > { %4771 = vadd.xlane.f32.xlu2 %v4770_v46  ;;  %v4628_v32 = vpop.xlane.xlu1 %4627 }
 0x86c   : > { %v4631_v22 = vpop.xlane.xlu0 %4630  ;;  %v4613_v16 = vpop.xlane.xlu2 %4612  ;;  %v4688_v58 = vsub.f32 %v10136_v59, %v4628_v32 }
 0x86d   : > { %v4689_v55 = vsub.f32 %v10138_v20, %v4631_v22  ;;  %v4683_v32 = vsub.f32 %v10134_v13, %v4613_v16 }
 0x86e   : > { %v10241_v11 = vpop.eup %7618  ;;  %v4737_v25 = vmul.f32 1.442695, %v4688_v58 }
 0x86f   : > { %v10244_v15 = vpop.eup %7620  ;;  %v4739_v42 = vmul.f32 1.442695, %v4689_v55  ;;  %v4815_v6 = vsel %vm971_vm2, %v10241_v11, 0.0  ;;  %v4727_v58 = vmul.f32 1.442695, %v4683_v32 }
 0x870   : > { %4816 = vadd.xlane.f32.xlu0 %v4815_v6  ;;  %v4779_v20 = vsel %vm971_vm2, %v10244_v15, 0.0  ;;  %v10252_v51 = vpop.eup %7622 }
 0x871   : > { %7624 = vpow2.f32 %v4739_v42  ;;  %4786 = vadd.xlane.f32.xlu1 %v4785_v37  ;;  %v4788_v46 = vsel %vm971_vm2, %v10252_v51, 0.0 }
 0x872   : > { %7626 = vpow2.f32 %v4737_v25 }
 0x873   : > { %4780 = vadd.xlane.f32.xlu2 %v4779_v20 }
 0x874   : > { %v4634_v59 = vpop.xlane.xlu1 %4633  ;;  %v4592_v26 = vpop.xlane.xlu0 %4591 }
 0x875   : > { %v4676_v56 = vsub.f32 %v10146_v48, %v4592_v26  ;;  %v4649_v39 = vpop.xlane.xlu2 %4648 }
 0x877   : > { %v10255_v18 = vpop.eup %7624  ;;  %v4713_v29 = vmul.f32 1.442695, %v4676_v56 }
 0x878   : > { %4789 = vadd.xlane.f32.xlu0 %v4788_v46  ;;  %v4821_v22 = vsel %vm971_vm2, %v10255_v18, 0.0  ;;  %v10262_v55 = vpop.eup %7626 }
 0x879   : > { %4822 = vadd.xlane.f32.xlu1 %v4821_v22  ;;  %7628 = vpow2.f32 %v4713_v29  ;;  %v4818_v13 = vsel %vm971_vm2, %v10262_v55, 0.0 }
 0x87a   : > { %7630 = vpow2.f32 %v4727_v58  ;;  %v4690_v58 = vsub.f32 %v10150_v62, %v4634_v59 }
 0x87c   : > { %v10264_v48 = vpop.xlane.xlu1 %4651  ;;  %v4619_v42 = vpop.xlane.xlu0 %4618 }
 0x87d   : > { %v4685_v6 = vsub.f32 %v10158_v24, %v4619_v42  ;;  %v4616_v37 = vpop.xlane.xlu2 %4615 }
 0x87e   : > { %v4684_v25 = vsub.f32 %v10160_v17, %v4616_v37 }
 0x87f   : > { %v4731_v20 = vmul.f32 1.442695, %v4685_v6  ;;  %v10270_v16 = vpop.eup %7628 }
 0x880   : > { %v4729_v26 = vmul.f32 1.442695, %v4684_v25  ;;  %4819 = vadd.xlane.f32.xlu0 %v4818_v13  ;;  %v4782_v56 = vsel %vm971_vm2, %v10270_v16, 0.0  ;;  %v10275_v17 = vpop.eup %7630 }
 0x881   : > { %7632 = vpow2.f32 %v4731_v20  ;;  %4783 = vadd.xlane.f32.xlu1 %v4782_v56  ;;  %v4803_v25 = vsel %vm971_vm2, %v10275_v17, 0.0  ;;  %v4741_v20 = vmul.f32 1.442695, %v4690_v58  ;;  %v4185_v58 = vld [vmem:[#allocation2 + $0x3d0] sm:$0xff] }
 0x882   : > { %7634 = vpow2.f32 %v4729_v26 }
 0x884   : > { %v4637_v29 = vpop.xlane.xlu1 %4636 }
 0x885   : > { %v4691_v24 = vsub.f32 %v10170_v21, %v4637_v29  ;;  %v4622_v46 = vpop.xlane.xlu2 %4621 }
 0x886   : > { %v4686_v32 = vsub.f32 %v10172_v45, %v4622_v46 }
 0x887   : > { %v4743_v22 = vmul.f32 1.442695, %v4691_v24  ;;  %v10278_v42 = vpop.eup %7632  ;;  %v4522_v24 = vpop.f32.mrf.mxu1 }
 0x888   : > { %v4733_v6 = vmul.f32 1.442695, %v4686_v32  ;;  %v10281_v37 = vpop.eup %7634  ;;  %v4809_v21 = vsel %vm971_vm2, %v10278_v42, 0.0  ;;  %v4695_v32 = vsub.f32 %v10148_v31, %v4649_v39  ;;  %v4187_v39 = vld [vmem:[#allocation2 + $0x3e0] sm:$0xff] }
 0x889   : > { %7636 = vpow2.f32 %v4743_v22  ;;  %4804 = vadd.xlane.f32.xlu1 %v4803_v25  ;;  %4810 = vadd.xlane.f32.xlu0 %v4809_v21  ;;  %v4806_v45 = vsel %vm971_vm2, %v10281_v37, 0.0 }
 0x88a   : > { %7638 = vpow2.f32 %v4733_v6  ;;  %4807 = vadd.xlane.f32.xlu2 %v4806_v45  ;;  %v4751_v6 = vmul.f32 1.442695, %v4695_v32 }
 0x88b   : > { %7640 = vpow2.f32 %v4741_v20 }
 0x88c   : > { %v4640_v13 = vpop.xlane.xlu1 %4639 }
 0x88d   : > { %v4692_v62 = vsub.f32 %v10178_v7, %v4640_v13  ;;  %v4643_v59 = vpop.xlane.xlu2 %4642  ;;  %v10299_v7 = vadd.f32 %v4522_v24, %v4185_v58  ;;  %v4546_v13 = vpop.f32.mrf.mxu2  ;;  %v4186_v24 = vld [vmem:[#allocation2 + $0x3d8] sm:$0xff] }
 0x88e   : > { %v4693_v20 = vsub.f32 %v10180_v60, %v4643_v59  ;;  %v10314_v59 = vadd.f32 %v4546_v13, %v4187_v39 }
 0x88f   : > { %v10290_v26 = vpop.eup %7636  ;;  %v4745_v56 = vmul.f32 1.442695, %v4692_v62  ;;  %v4696_v62 = vsub.f32 %v10162_v3, %v10264_v48 }
 0x890   : > { %v10292_v29 = vpop.eup %7638  ;;  %v4827_v46 = vsel %vm971_vm2, %v10290_v26, 0.0  ;;  %v4747_v60 = vmul.f32 1.442695, %v4693_v20 }
 0x891   : > { %7642 = vpow2.f32 %v4745_v56  ;;  %v4812_v22 = vsel %vm971_vm2, %v10292_v29, 0.0  ;;  %4828 = vadd.xlane.f32.xlu1 %v4827_v46  ;;  %v10301_v21 = vpop.eup %7640  ;;  %v4653_v56 = vsel %vm971_vm2, %v10299_v7, -inf  ;;  %v4524_v46 = vpop.f32.mrf.mxu1  ;;  %v4753_v58 = vmul.f32 1.442695, %v4696_v62 }
 0x892   : > { %4813 = vadd.xlane.f32.xlu2 %v4812_v22  ;;  %7644 = vpow2.f32 %v4751_v6  ;;  %v4824_v32 = vsel %vm971_vm2, %v10301_v21, 0.0  ;;  %v10316_v22 = vadd.f32 %v4524_v46, %v4186_v24 }
 0x893   : > { %7646 = vpow2.f32 %v4747_v60 }
 0x894   : > { %7648 = vpow2.f32 %v4753_v58  ;;  %v4656_v20 = vsel %vm971_vm2, %v10316_v22, -inf }
 0x895   : > { %v4646_v25 = vpop.xlane.xlu2 %4645 }
 0x896   : > { %v4694_v48 = vsub.f32 %v10186_v54, %v4646_v25 }
 0x897   : > { %v10303_v45 = vpop.eup %7642 }
 0x898   : > { %v4830_v31 = vsel %vm971_vm2, %v10303_v45, 0.0  ;;  %v10318_v3 = vpop.eup %7644  ;;  %v4749_v13 = vmul.f32 1.442695, %v4694_v48 }
 0x899   : > { %4831 = vadd.xlane.f32.xlu0 %v4830_v31  ;;  %4654 = vmax.xlane.f32.xlu1 %v4653_v56  ;;  %v4659_v31 = vsel %vm971_vm2, %v10314_v59, -inf  ;;  %v4839_v39 = vsel %vm971_vm2, %v10318_v3, 0.0  ;;  %v10327_v62 = vpop.eup %7646 }
 0x89a   : > { %4825 = vadd.xlane.f32.xlu2 %v4824_v32  ;;  %v10329_v56 = vpop.eup %7648  ;;  %7650 = vpow2.f32 %v4749_v13  ;;  %v4833_v54 = vsel %vm971_vm2, %v10327_v62, 0.0 }
 0x89b   : > { %v4842_v25 = vsel %vm971_vm2, %v10329_v56, 0.0 }
 0x89d   : > { %v5140_v6 = vpop.permute.xlu2 %5139 }
 0x89e   : > { %5152 = vmatpush.bf16.msra.mxu3 %v5140_v6  ;;  %v10345_v6 = vpop.permute.xlu0 %5164 }
 0x8a0   : > { %v10335_v24 = vpop.eup %7650 }
 0x8a1   : > { %4660 = vmax.xlane.f32.xlu0 %v4659_v31  ;;  %4657 = vmax.xlane.f32.xlu1 %v4656_v20  ;;  %v4836_v46 = vsel %vm971_vm2, %v10335_v24, 0.0 }
 0x8a2   : > { %4840 = vadd.xlane.f32.xlu2 %v4839_v39 }
 0x8a9   : > { %4834 = vadd.xlane.f32.xlu0 %v4833_v54 }
 0x8aa   : > { %4843 = vadd.xlane.f32.xlu2 %v4842_v25  ;;  %v4188_v25 = vld [vmem:[#allocation2 + $0x3e8] sm:$0xff] }
 0x8b1   : > { %4837 = vadd.xlane.f32.xlu0 %v4836_v46  ;;  %v4548_v46 = vpop.f32.mrf.mxu2 }
 0x8b2   : > { %v10349_v2 = vadd.f32 %v4548_v46, %v4188_v25 }
 0x8b8   : > { %v4769_v32 = vpop.xlane.xlu1 %4768 }
 0x8ba   : > { %5189 = vrot.lane.b32.xlu1 %v8063_v57, %s7840_s28 }
 0x8c0   : > { %v4778_v60 = vpop.xlane.xlu1 %4777 }
 0x8c1   : > { %7652 = vrcp.f32 %v4778_v60 }
 0x8c2   : > { %5214 = vrot.lane.b32.xlu2 %v8103_v33, %s7840_s28  ;;  %v4570_v33 = vpop.f32.mrf.mxu3 }
 0x8c5   : > { %5264 = vrot.lane.b32.xlu0 %v8041_v36, %s7840_s28 }
 0x8c7   : > { %v7653_v20 = vpop.eup %7652 }
 0x8c8   : > { %v4898_v39 = vmul.f32 %v7653_v20, %v10200_v4 }
 0x8ca   : > { %v4930_v52 = vpack.c.bf16 %v4898_v39, %v4898_v39 }
 0x8cb   : > { %v4793_v58 = vpop.xlane.xlu1 %4792 }
 0x8cc   : > { %v4987_v4 = vunpack.c.l.b16 %v4930_v52  ;;  %v4572_v52 = vpop.f32.mrf.mxu3 }
 0x8d3   : > { %v4796_v13 = vpop.xlane.xlu0 %4795 }
 0x8d4   : > { %v4799_v48 = vpop.xlane.xlu1 %4798 }
 0x8d6   : > { %v4775_v31 = vpop.xlane.xlu2 %4774 }
 0x8d7   : > { %7654 = vrcp.f32 %v4775_v31 }
 0x8d8   : > { %7656 = vrcp.f32 %v4769_v32 }
 0x8dc   : > { %v4802_v57 = vpop.xlane.xlu1 %4801 }
 0x8dd   : > { %v7655_v54 = vpop.eup %7654  ;;  %7658 = vrcp.f32 %v4802_v57 }
 0x8de   : > { %v4897_v36 = vmul.f32 %v7655_v54, %v10214_v38  ;;  %v4772_v60 = vpop.xlane.xlu2 %4771  ;;  %v7657_v41 = vpop.eup %7656  ;;  %v4662_v38 = vsel %vm971_vm2, %v10349_v2, -inf }
 0x8df   : > { %7660 = vrcp.f32 %v4772_v60  ;;  %v4895_v32 = vmul.f32 %v7657_v41, %v10196_v43  ;;  %v10356_v41 = vadd.f32 %v4570_v33, %v4189_v49 }
 0x8e0   : > { %v4929_v35 = vpack.c.bf16 %v4897_v36, %v4897_v36  ;;  %7662 = vrcp.f32 %v4799_v48 }
 0x8e1   : > { %v4927_v57 = vpack.c.bf16 %v4895_v32, %v4895_v32 }
 0x8e2   : > { %v4986_v31 = vunpack.c.l.b16 %v4929_v35  ;;  %v4190_v35 = vld [vmem:[#allocation2 + $0x3f8] sm:$0xff] }
 0x8e3   : > { %v4817_v20 = vpop.xlane.xlu0 %4816  ;;  %v7659_v5 = vpop.eup %7658  ;;  %v10359_v46 = vadd.f32 %v4572_v52, %v4190_v35  ;;  %v4961_v36 = vunpack.c.l.b16 %v4927_v57 }
 0x8e4   : > { %v4988_v40 = vpack.c.b16 %v4987_v4, %v4986_v31  ;;  %v4787_v61 = vpop.xlane.xlu1 %4786  ;;  %4663 = vmax.xlane.f32.xlu1 %v4662_v38  ;;  %v4906_v43 = vmul.f32 %v7659_v5, %v10229_v53 }
 0x8e5   : > { %v7661_v39 = vpop.eup %7660  ;;  %7664 = vrcp.f32 %v4787_v61  ;;  %v4665_v61 = vsel %vm971_vm2, %v10356_v41, -inf }
 0x8e6   : > { %v4896_v54 = vmul.f32 %v7661_v39, %v10232_v47  ;;  %6850 = vmatmul.msk.bf16.vlgmr.msrb.gmra.mxu1 %vm971_vm2, %v4988_v40  ;;  %v7663_v48 = vpop.eup %7662  ;;  %7666 = vrcp.f32 %v4796_v13  ;;  %v4938_v49 = vpack.c.bf16 %v4906_v43, %v4906_v43  ;;  %v4781_v53 = vpop.xlane.xlu2 %4780 }
 0x8e7   : > { %7668 = vrcp.f32 %v4793_v58  ;;  %v4905_v60 = vmul.f32 %v7663_v48, %v10218_v10  ;;  %v4668_v10 = vsel %vm971_vm2, %v10359_v46, -inf }
 0x8e8   : > { %v4928_v25 = vpack.c.bf16 %v4896_v54, %v4896_v54  ;;  %v5087_v39 = vunpack.c.l.b16 %v4938_v49 }
 0x8e9   : > { %v4937_v58 = vpack.c.bf16 %v4905_v60, %v4905_v60 }
 0x8ea   : > { %v4962_v32 = vunpack.c.l.b16 %v4928_v25 }
 0x8eb   : > { %v4790_v40 = vpop.xlane.xlu0 %4789  ;;  %v7665_v47 = vpop.eup %7664  ;;  %4666 = vmax.xlane.f32.xlu2 %v4665_v61  ;;  %v5086_v48 = vunpack.c.l.b16 %v4937_v58 }
 0x8ec   : > { %v4963_v33 = vpack.c.b16 %v4962_v32, %v4961_v36  ;;  %v10364_v4 = vpop.xlane.xlu1 %4822  ;;  %7670 = vrcp.f32 %v4790_v40  ;;  %v7667_v5 = vpop.eup %7666  ;;  %v4901_v31 = vmul.f32 %v7665_v47, %v10238_v19 }
 0x8ed   : > { %v7669_v13 = vpop.eup %7668  ;;  %v4904_v38 = vmul.f32 %v7667_v5, %v10216_v34  ;;  %7672 = vrcp.f32 %v4781_v53  ;;  %v5088_v25 = vpack.c.b16 %v5087_v39, %v5086_v48  ;;  %v11734_v48 = vld [vmem:[#allocation52_spill] sm:$0xff] }
 0x8ee   : > { %6849 = vmatmul.msk.bf16.vlgmr.msrb.gmra.mxu0 %vm971_vm2, %v4963_v33  ;;  %v4903_v54 = vmul.f32 %v7669_v13, %v10208_v63  ;;  %v4933_v35 = vpack.c.bf16 %v4901_v31, %v4901_v31 }
 0x8ef   : > { %5177 = vmatpush.bf16.msrb.mxu0 %v10345_v6  ;;  %4669 = vmax.xlane.f32.xlu0 %v4668_v10  ;;  %v4936_v43 = vpack.c.bf16 %v4904_v38, %v4904_v38 }
 0x8f0   : > { %v4935_v61 = vpack.c.bf16 %v4903_v54, %v4903_v54  ;;  %v5036_v34 = vunpack.c.l.b16 %v4933_v35  ;;  %v11733_v54 = vld [vmem:[#allocation30_spill] sm:$0xff] }
 0x8f1   : > { %v5062_v40 = vunpack.c.l.b16 %v4936_v43 }
 0x8f2   : > { %v7671_v57 = vpop.eup %7670  ;;  %v5061_v49 = vunpack.c.l.b16 %v4935_v61 }
 0x8f3   : > { %v4902_v52 = vmul.f32 %v7671_v57, %v10252_v51  ;;  %v4820_v36 = vpop.xlane.xlu0 %4819  ;;  %v7673_v19 = vpop.eup %7672 }
 0x8f4   : > { %v4784_v32 = vpop.xlane.xlu1 %4783  ;;  %v4899_v63 = vmul.f32 %v7673_v19, %v10244_v15  ;;  %v5063_v33 = vpack.c.b16 %v5062_v40, %v5061_v49  ;;  %v11736_v40 = vld [vmem:[#allocation39_spill] sm:$0xff] }
 0x8f5   : > { %v4934_v60 = vpack.c.bf16 %v4902_v52, %v4902_v52  ;;  %7674 = vrcp.f32 %v4784_v32 }
 0x8f6   : > { %6854 = vmatmul.msk.bf16.vlgmr.msra.gmra.mxu1 %vm971_vm2, %v5088_v25  ;;  %7676 = vrcp.f32 %v4820_v36  ;;  %v4931_v53 = vpack.c.bf16 %v4899_v63, %v4899_v63  ;;  %v11737_v63 = vld [vmem:[#allocation79_spill] sm:$0xff] }
 0x8f7   : > { %v5037_v6 = vunpack.c.l.b16 %v4934_v60  ;;  %7678 = vrcp.f32 %v4817_v20 }
 0x8f8   : > { %v5011_v39 = vunpack.c.l.b16 %v4931_v53 }
 0x8f9   : > { %v5038_v47 = vpack.c.b16 %v5037_v6, %v5036_v34 }
 0x8fb   : > { %6852 = vmatmul.msk.bf16.vlgmr.msrb.gmra.mxu3 %vm971_vm2, %v5038_v47  ;;  %v7675_v51 = vpop.eup %7674  ;;  %v6984_v47 = vpack.i.bf16 %v11737_v63, %v11736_v40 }
 0x8fc   : > { %v7677_v5 = vpop.eup %7676  ;;  %v4900_v58 = vmul.f32 %v7675_v51, %v10270_v16  ;;  %v4805_v10 = vpop.xlane.xlu1 %4804  ;;  %v6974_v16 = vpack.i.bf16 %v11734_v48, %v11733_v54 }
 0x8fd   : > { %7680 = vrcp.f32 %v4805_v10  ;;  %v4811_v13 = vpop.xlane.xlu0 %4810  ;;  %v4808_v31 = vpop.xlane.xlu2 %4807  ;;  %5239 = vrot.lane.b32.xlu1 %v8139_v12, %s7840_s28  ;;  %v4912_v38 = vmul.f32 %v7677_v5, %v10262_v55  ;;  %v11735_v12 = vpack.i.bf16 %v9986_v50, %v9981_v28  ;;  %v6979_v55 = vpack.i.bf16 %v10000_v0, %v9994_v23 }
 0x8fe   : > { %6853 = vmatmul.msk.bf16.vlgmr.msra.gmra.mxu0 %vm971_vm2, %v5063_v33  ;;  %v7679_v15 = vpop.eup %7678  ;;  %v4932_v20 = vpack.c.bf16 %v4900_v58, %v4900_v58  ;;  %7682 = vrcp.f32 %v4808_v31 }
 0x8ff   : > { %7684 = vrcp.f32 %v4811_v13  ;;  %v4911_v35 = vmul.f32 %v7679_v15, %v10241_v11  ;;  %v4944_v25 = vpack.c.bf16 %v4912_v38, %v4912_v38 }
 0x900   : > { %v5012_v57 = vunpack.c.l.b16 %v4932_v20 }
 0x901   : > { %v4943_v11 = vpack.c.bf16 %v4911_v35, %v4911_v35  ;;  %v5162_v61 = vunpack.c.l.b16 %v4944_v25 }
 0x902   : > { %v5013_v52 = vpack.c.b16 %v5012_v57, %v5011_v39 }
 0x903   : > { %6990 = vrot.lane.b32.xlu0 %v11735_v12, %s7841_s29  ;;  %v7681_v43 = vpop.eup %7680  ;;  %6975 = vrot.lane.b32.xlu2 %v6974_v16, %s7842_s9  ;;  %v5161_v23 = vunpack.c.l.b16 %v4943_v11 }
 0x904   : > { %6851 = vmatmul.msk.bf16.vlgmr.msrb.gmra.mxu2 %vm971_vm2, %v5013_v52  ;;  %v4829_v36 = vpop.xlane.xlu1 %4828  ;;  %v7683_v60 = vpop.eup %7682  ;;  %v4907_v28 = vmul.f32 %v7681_v43, %v10275_v17 }
 0x905   : > { %v4814_v32 = vpop.xlane.xlu2 %4813  ;;  %6980 = vrot.lane.b32.xlu1 %v6979_v55, %s7841_s29  ;;  %v7685_v19 = vpop.eup %7684  ;;  %v4908_v50 = vmul.f32 %v7683_v60, %v10281_v37  ;;  %v5163_v49 = vpack.c.b16 %v5162_v61, %v5161_v23 }
 0x906   : > { %7686 = vrcp.f32 %v4814_v32  ;;  %v4909_v0 = vmul.f32 %v7685_v19, %v10278_v42  ;;  %v4939_v34 = vpack.c.bf16 %v4907_v28, %v4907_v28 }
 0x907   : > { %v4940_v6 = vpack.c.bf16 %v4908_v50, %v4908_v50 }
 0x908   : > { %v4941_v5 = vpack.c.bf16 %v4909_v0, %v4909_v0  ;;  %v5111_v37 = vunpack.c.l.b16 %v4939_v34 }
 0x909   : > { %v5112_v10 = vunpack.c.l.b16 %v4940_v6 }
 0x90a   : > { %v5136_v13 = vunpack.c.l.b16 %v4941_v5 }
 0x90b   : > { %v5113_v15 = vpack.c.b16 %v5112_v10, %v5111_v37 }
 0x90c   : > { %v7687_v51 = vpop.eup %7686  ;;  %v4832_v33 = vpop.xlane.xlu0 %4831 }
 0x90d   : > { %v4910_v53 = vmul.f32 %v7687_v51, %v10292_v29  ;;  %v4655_v58 = vpop.xlane.xlu1 %4654  ;;  %v4826_v17 = vpop.xlane.xlu2 %4825  ;;  %6985 = vrot.lane.b32.xlu1 %v6984_v47, %s7842_s9  ;;  %7688 = vrcp.f32 %v4832_v33 }
 0x90e   : > { %6857 = vmatmul.msk.bf16.vlgmr.msrb.gmra.mxu0 %vm971_vm2, %v5163_v49  ;;  %7690 = vrcp.f32 %v4829_v36 }
 0x90f   : > { %v4942_v42 = vpack.c.bf16 %v4910_v53, %v4910_v53  ;;  %7692 = vrcp.f32 %v4826_v17 }
 0x910   : > { %7694 = vrcp.f32 %v10364_v4 }
 0x911   : > { %v5137_v31 = vunpack.c.l.b16 %v4942_v42 }
 0x913   : > { %v5138_v20 = vpack.c.b16 %v5137_v31, %v5136_v13  ;;  %v7689_v57 = vpop.eup %7688  ;;  %v11739_v31 = vld [vmem:[#allocation58_spill] sm:$0xff] }
 0x914   : > { %6855 = vmatmul.msk.bf16.vlgmr.msra.gmra.mxu2 %vm971_vm2, %v5113_v15  ;;  %v4661_v29 = vpop.xlane.xlu0 %4660  ;;  %v7691_v48 = vpop.eup %7690  ;;  %v4916_v35 = vmul.f32 %v7689_v57, %v10303_v45  ;;  %v4697_v45 = vsub.f32 %v10299_v7, %v4655_v58 }
 0x915   : > { %v4841_v38 = vpop.xlane.xlu2 %4840  ;;  %6856 = vmatmul.msk.bf16.vlgmr.msra.gmra.mxu3 %vm971_vm2, %v5138_v20  ;;  %v4658_v39 = vpop.xlane.xlu1 %4657  ;;  %v4699_v54 = vsub.f32 %v10314_v59, %v4661_v29  ;;  %v4915_v52 = vmul.f32 %v7691_v48, %v10290_v26  ;;  %v11740_v20 = vld [vmem:[#allocation57_spill] sm:$0xff] }
 0x916   : > { %v4698_v16 = vsub.f32 %v10316_v22, %v4658_v39  ;;  %v7693_v25 = vpop.eup %7692  ;;  %v4948_v36 = vpack.c.bf16 %v4916_v35, %v4916_v35  ;;  %v4755_v34 = vmul.f32 1.442695, %v4697_v45 }
 0x917   : > { %v4759_v12 = vmul.f32 1.442695, %v4699_v54  ;;  %v7695_v60 = vpop.eup %7694  ;;  %v4947_v11 = vpack.c.bf16 %v4915_v52, %v4915_v52  ;;  %v4914_v32 = vmul.f32 %v7693_v25, %v10301_v21 }
 0x918   : > { %v4757_v55 = vmul.f32 1.442695, %v4698_v16  ;;  %v5212_v59 = vunpack.c.l.b16 %v4948_v36  ;;  %v4913_v22 = vmul.f32 %v7695_v60, %v10255_v18 }
 0x919   : > { %7696 = vpow2.f32 %v4759_v12  ;;  %v5211_v19 = vunpack.c.l.b16 %v4947_v11  ;;  %v4946_v28 = vpack.c.bf16 %v4914_v32, %v4914_v32 }
 0x91a   : > { %7698 = vpow2.f32 %v4757_v55  ;;  %v4945_v0 = vpack.c.bf16 %v4913_v22, %v4913_v22 }
 0x91b   : > { %v5213_v61 = vpack.c.b16 %v5212_v59, %v5211_v19  ;;  %v5187_v6 = vunpack.c.l.b16 %v4946_v28 }
 0x91c   : > { %v4835_v4 = vpop.xlane.xlu0 %4834  ;;  %v5186_v63 = vunpack.c.l.b16 %v4945_v0 }
 0x91d   : > { %v4844_v43 = vpop.xlane.xlu2 %4843 }
 0x91e   : > { %7700 = vrcp.f32 %v4844_v43  ;;  %v5188_v51 = vpack.c.b16 %v5187_v6, %v5186_v63  ;;  %v11745_v6 = vpack.i.bf16 %v10012_v14, %v10004_v44 }
 0x91f   : > { %7702 = vrcp.f32 %v4841_v38  ;;  %v10412_v50 = vpop.eup %7696  ;;  %v11741_v38 = vld [vmem:[#allocation65_spill] sm:$0xff] }
 0x920   : > { %v10414_v23 = vpop.eup %7698  ;;  %v4851_v7 = vsel %vm971_vm2, %v10412_v50, 0.0  ;;  %7704 = vpow2.f32 %v4755_v34  ;;  %v7019_v29 = vpack.i.bf16 %v11741_v38, %v11740_v20 }
 0x921   : > { %v4848_v40 = vsel %vm971_vm2, %v10414_v23, 0.0 }
 0x924   : > { %v7701_v21 = vpop.eup %7700  ;;  %v4838_v5 = vpop.xlane.xlu0 %4837 }
 0x925   : > { %v5215_v26 = vpop.permute.xlu2 %5214  ;;  %v7703_v18 = vpop.eup %7702  ;;  %v4920_v47 = vmul.f32 %v7701_v21, %v10329_v56  ;;  %7706 = vrcp.f32 %v4838_v5  ;;  %v11746_v5 = vld [vmem:[#allocation29_spill] sm:$0xff] }
 0x926   : > { %5227 = vmatpush.bf16.msrb.mxu2 %v5215_v26  ;;  %v4919_v33 = vmul.f32 %v7703_v18, %v10318_v3  ;;  %v10424_v17 = vpop.eup %7704  ;;  %v11738_v3 = vld [vmem:[#allocation37_spill] sm:$0xff]  ;;  %v11743_v26 = vld [vmem:[#allocation16_spill] sm:$0xff] }
 0x927   : > { %v4952_v53 = vpack.c.bf16 %v4920_v47, %v4920_v47  ;;  %v4845_v56 = vsel %vm971_vm2, %v10424_v17, 0.0  ;;  %v6994_v15 = vpack.i.bf16 %v11739_v31, %v11738_v3  ;;  %v11748_v3 = vld [vmem:[#allocation33_spill] sm:$0xff] }
 0x928   : > { %v4951_v58 = vpack.c.bf16 %v4919_v33, %v4919_v33  ;;  %v11749_v31 = vld [vmem:[#allocation49_spill] sm:$0xff] }
 0x929   : > { %6859 = vmatmul.msk.bf16.vlgmr.msrb.gmra.mxu2 %vm971_vm2, %v5213_v61  ;;  %v5262_v37 = vunpack.c.l.b16 %v4952_v53  ;;  %v11744_v61 = vld [vmem:[#allocation24_spill] sm:$0xff] }
 0x92a   : > { %v5261_v10 = vunpack.c.l.b16 %v4951_v58  ;;  %v11747_v58 = vld [vmem:[#allocation22_spill] sm:$0xff] }
 0x92c   : > { %4849 = vadd.xlane.f32.xlu2 %v4848_v40  ;;  %v5190_v49 = vpop.permute.xlu1 %5189  ;;  %v5263_v13 = vpack.c.b16 %v5262_v37, %v5261_v10 }
 0x92d   : > { %4852 = vadd.xlane.f32.xlu0 %v4851_v7  ;;  %5202 = vmatpush.bf16.msrb.mxu1 %v5190_v49 }
 0x930   : > { %6858 = vmatmul.msk.bf16.vlgmr.msrb.gmra.mxu1 %vm971_vm2, %v5188_v51 }
 0x937   : > { %v5265_v42 = vpop.permute.xlu0 %5264  ;;  %4846 = vadd.xlane.f32.xlu1 %v4845_v56 }
 0x938   : > { %5277 = vmatpush.bf16.msra.mxu0 %v5265_v42 }
 0x93b   : > { %6861 = vmatmul.msk.bf16.vlgmr.msra.gmra.mxu0 %vm971_vm2, %v5263_v13 }
 0x941   : > { %5289 = vrot.lane.b32.xlu0 %v11700_v30, %s7840_s28  ;;  %v11742_v30 = vpack.i.bf16 %v10023_v8, %v10008_v9 }
 0x944   : > { %6995 = vrot.lane.b32.xlu2 %v6994_v15, %s7842_s9  ;;  %v7034_v15 = vpack.i.bf16 %v11749_v31, %v11748_v3 }
 0x949   : > { %5314 = vrot.lane.b32.xlu0 %v8127_v1, %s7840_s28  ;;  %v7707_v1 = vpop.eup %7706 }
 0x94a   : > { %v4918_v52 = vmul.f32 %v7707_v1, %v10335_v24 }
 0x94c   : > { %v4950_v12 = vpack.c.bf16 %v4918_v52, %v4918_v52 }
 0x94e   : > { %v5237_v36 = vunpack.c.l.b16 %v4950_v12 }
 0x951   : > { %7020 = vrot.lane.b32.xlu0 %v7019_v29, %s7842_s9  ;;  %v11750_v29 = vld [vmem:[#allocation28_spill] sm:$0xff] }
 0x957   : > { %v4664_v39 = vpop.xlane.xlu1 %4663 }
 0x958   : > { %v4700_v57 = vsub.f32 %v10349_v2, %v4664_v39  ;;  %v11751_v39 = vld [vmem:[#allocation34_spill] sm:$0xff] }
 0x959   : > { %7025 = vrot.lane.b32.xlu0 %v11742_v30, %s7841_s29 }
 0x95a   : > { %v4761_v54 = vmul.f32 1.442695, %v4700_v57  ;;  %v7049_v57 = vpack.i.bf16 %v11751_v39, %v11750_v29 }
 0x95c   : > { %7708 = vpow2.f32 %v4761_v54 }
 0x95d   : > { %7710 = vrcp.f32 %v4835_v4 }
 0x95e   : > { %v4667_v8 = vpop.xlane.xlu2 %4666 }
 0x95f   : > { %v4701_v54 = vsub.f32 %v10356_v41, %v4667_v8 }
 0x961   : > { %5339 = vrot.lane.b32.xlu0 %v11698_v27, %s7840_s28  ;;  %s259_s28 = sand.u32 1, %s7817_s22  }
 0x962   : > { %v10446_v48 = vpop.eup %7708  ;;  %v4670_v22 = vpop.xlane.xlu0 %4669 }
 0x963   : > { %v5004_v16 = vpop.f32.mrf.mxu1  ;;  %v4854_v35 = vsel %vm971_vm2, %v10446_v48, 0.0  ;;  %v7711_v2 = vpop.eup %7710  ;;  %v4702_v41 = vsub.f32 %v10359_v46, %v4670_v22 }
 0x964   : > { %4855 = vadd.xlane.f32.xlu1 %v4854_v35  ;;  %v4917_v9 = vmul.f32 %v7711_v2, %v10327_v62  ;;  %v11752_v35 = vld [vmem:[#allocation75_spill] sm:$0xff]  ;;  %v11753_v2 = vld [vmem:[#allocation14_spill] sm:$0xff] }
 0x965   : > { %v11754_v52 = vpack.i.bf16 %v11752_v35, %v11753_v2  ;;  %v11758_v2 = vld [vmem:[#allocation13_spill] sm:$0xff] }
 0x966   : > { %v4949_v55 = vpack.c.bf16 %v4917_v9, %v4917_v9  ;;  %v6976_v32 = vpop.permute.xlu2 %6975 }
 0x967   : > { %v6978_v59 = vunpack.i.h.bf16 %v6976_v32  ;;  %v6977_v24 = vunpack.i.l.bf16 %v6976_v32 }
 0x968   : > { %v5236_v27 = vunpack.c.l.b16 %v4949_v55 }
 0x969   : > { %v5744_v28 = vsel %vm545_vm1, %v11743_v26, %v6978_v59  ;;  %v5743_v0 = vsel %vm545_vm1, %v11744_v61, %v6977_v24  ;;  %v4765_v59 = vmul.f32 1.442695, %v4702_v41 }
 0x96a   : > { %v5238_v11 = vpack.c.b16 %v5237_v36, %v5236_v27 }
 0x96b   : > { %v5006_v43 = vpop.f32.mrf.mxu1  ;;  %v4979_v62 = vpop.f32.mrf.mxu0 }
 0x96c   : > { %v7009_v25 = vpack.i.bf16 %v5006_v43, %v5004_v16  ;;  %v4763_v16 = vmul.f32 1.442695, %v4701_v54 }
 0x96e   : > { %7010 = vrot.lane.b32.xlu2 %v7009_v25, %s7843_s10  ;;  %7712 = vpow2.f32 %v4763_v16  ;;  %v11757_v16 = vld [vmem:[#allocation15_spill] sm:$0xff] }
 0x96f   : > { %v5240_v60 = vpop.permute.xlu1 %5239 }
 0x970   : > { %5252 = vmatpush.bf16.msrb.mxu3 %v5240_v60 }
 0x973   : > { %6860 = vmatmul.msk.bf16.vlgmr.msrb.gmra.mxu3 %vm971_vm2, %v5238_v11  ;;  %v4981_v63 = vpop.f32.mrf.mxu0  ;;  %v5104_v30 = vpop.f32.mrf.mxu1 }
 0x974   : > { %v7004_v10 = vpack.i.bf16 %v4981_v63, %v4979_v62  ;;  %v10498_v36 = vpop.eup %7712 }
 0x975   : > { %v6991_v40 = vpop.permute.xlu0 %6990 }
 0x976   : > { %v6993_v51 = vunpack.i.h.bf16 %v6991_v40  ;;  %v6992_v33 = vunpack.i.l.bf16 %v6991_v40 }
 0x977   : > { %v6981_v4 = vpop.permute.xlu1 %6980 }
 0x978   : > { %v6983_v19 = vunpack.i.h.bf16 %v6981_v4  ;;  %v6982_v45 = vunpack.i.l.bf16 %v6981_v4  ;;  %v4857_v4 = vsel %vm971_vm2, %v10498_v36, 0.0 }
 0x97a   : > { %v10459_v21 = vsel %vm971_vm2, %v5744_v28, %v6983_v19  ;;  %v10462_v34 = vsel %vm971_vm2, %v5743_v0, %v6982_v45 }
 0x97b   : > { %v10488_v1 = vpop.f32.mrf.mxu0  ;;  %v5106_v43 = vpop.f32.mrf.mxu1 }
 0x97c   : > { %v7059_v55 = vpack.i.bf16 %v5106_v43, %v5104_v30 }
 0x97d   : > { %7000 = vrot.lane.b32.xlu1 %v11745_v6, %s7841_s29 }
 0x97e   : > { %v5054_v18 = vpop.f32.mrf.mxu3 }
 0x97f   : > { %v6986_v7 = vpop.permute.xlu1 %6985 }
 0x980   : > { %v6988_v47 = vunpack.i.h.bf16 %v6986_v7  ;;  %v6987_v49 = vunpack.i.l.bf16 %v6986_v7 }
 0x982   : > { %v5746_v53 = vsel %vm545_vm1, %v11746_v5, %v6988_v47  ;;  %v5745_v37 = vsel %vm545_vm1, %v11747_v58, %v6987_v49  ;;  %v11755_v58 = vld [vmem:[#allocation10_spill] sm:$0xff] }
 0x983   : > { %v10473_v56 = vsel %vm971_vm2, %v5745_v37, %v6992_v33  ;;  %v10476_v44 = vsel %vm971_vm2, %v5746_v53, %v6993_v51  ;;  %v10494_v25 = vpop.f32.mrf.mxu0  ;;  %v11756_v37 = vld [vmem:[#allocation76_spill] sm:$0xff] }
 0x984   : > { %v7044_v41 = vpack.i.bf16 %v10494_v25, %v10488_v1  ;;  %v6897_v1 = vld [vmem:[%s11433_s3] sm:$0xff] }
 0x985   : > { %7005 = vrot.lane.b32.xlu1 %v7004_v10, %s7843_s10  ;;  %v7039_v10 = vpack.i.bf16 %v11756_v37, %v11755_v58  ;;  %v11776_v58 = vld [vmem:[#allocation73_spill] sm:$0xff] }
 0x986   : > { %v5056_v14 = vpop.f32.mrf.mxu3 }
 0x987   : > { %v7029_v42 = vpack.i.bf16 %v5056_v14, %v5054_v18  ;;  %v5029_v13 = vpop.f32.mrf.mxu2 }
 0x989   : > { %7030 = vrot.lane.b32.xlu0 %v7029_v42, %s7843_s10 }
 0x98b   : > { %v5179_v22 = vpop.f32.mrf.mxu0 }
 0x98f   : > { %v5031_v20 = vpop.f32.mrf.mxu2 }
 0x990   : > { %v7014_v38 = vpack.i.bf16 %v5031_v20, %v5029_v13 }
 0x991   : > { %7035 = vrot.lane.b32.xlu0 %v7034_v15, %s7842_s9 }
 0x992   : > { %7015 = vrot.lane.b32.xlu2 %v7014_v38, %s7843_s10 }
 0x997   : > { %v5129_v9 = vpop.f32.mrf.mxu2 }
 0x998   : > { %v5154_v8 = vpop.f32.mrf.mxu3 }
 0x999   : > { %7050 = vrot.lane.b32.xlu0 %v7049_v57, %s7842_s9 }
 0x99f   : > { %v4850_v12 = vpop.xlane.xlu2 %4849  ;;  %v5131_v32 = vpop.f32.mrf.mxu2 }
 0x9a0   : > { %7714 = vrcp.f32 %v4850_v12  ;;  %v10500_v27 = vpop.xlane.xlu0 %4852  ;;  %v7074_v24 = vpack.i.bf16 %v5131_v32, %v5129_v9  ;;  %v5156_v28 = vpop.f32.mrf.mxu3  ;;  %v11759_v12 = vld [vmem:[#allocation40_spill] sm:$0xff]  ;;  %v11762_v32 = vld [vmem:[#allocation71_spill] sm:$0xff] }
 0x9a1   : > { %7055 = vrot.lane.b32.xlu0 %v11754_v52, %s7841_s29  ;;  %v7089_v6 = vpack.i.bf16 %v5156_v28, %v5154_v8 }
 0x9a6   : > { %v7715_v11 = vpop.eup %7714 }
 0x9a7   : > { %v4922_v62 = vmul.f32 %v7715_v11, %v10414_v23  ;;  %v10513_v51 = vpop.permute.xlu2 %6995  ;;  %v11761_v11 = vld [vmem:[#allocation63_spill] sm:$0xff] }
 0x9a9   : > { %7060 = vrot.lane.b32.xlu0 %v7059_v55, %s7843_s10  ;;  %v4954_v19 = vpack.c.bf16 %v4922_v62, %v4922_v62 }
 0x9aa   : > { %v4847_v60 = vpop.xlane.xlu1 %4846 }
 0x9ab   : > { %7716 = vrcp.f32 %v4847_v60  ;;  %v5287_v0 = vunpack.c.l.b16 %v4954_v19  ;;  %v6898_v60 = vld [vmem:[%s11433_s3 + $0x8] sm:$0xff]  ;;  %v11766_v19 = vld [vmem:[#allocation56_spill] sm:$0xff] }
 0x9ac   : > { %7718 = vpow2.f32 %v4765_v59  ;;  %v5229_v33 = vpop.f32.mrf.mxu2  ;;  %v7079_v59 = vpack.i.bf16 %v11762_v32, %v11761_v11  ;;  %5930 = vmatpush.bf16.msrb.mxu0 %v6898_v60  ;;  %v11785_v32 = vld [vmem:[#allocation54_spill] sm:$0xff] }
 0x9ad   : > { %v5204_v7 = vpop.f32.mrf.mxu1  ;;  %7720 = vrcp.f32 %v10500_v27  ;;  %v11763_v27 = vld [vmem:[#allocation78_spill] sm:$0xff] }
 0x9af   : > { %4858 = vadd.xlane.f32.xlu1 %v4857_v4  ;;  %v11764_v4 = vld [vmem:[#allocation9_spill] sm:$0xff] }
 0x9b0   : > { %5931 = vmatpush.bf16.msrb.mxu0 %v6897_v1  ;;  %v11787_v1 = vld [vmem:[#allocation91_spill] sm:$0xff] }
 0x9b1   : > { %7075 = vrot.lane.b32.xlu0 %v7074_v24, %s7843_s10  ;;  %v7717_v46 = vpop.eup %7716 }
 0x9b2   : > { %v4921_v45 = vmul.f32 %v7717_v46, %v10424_v17  ;;  %v10507_v23 = vpop.eup %7718  ;;  %v5181_v17 = vpop.f32.mrf.mxu0  ;;  %v11765_v46 = vpack.i.bf16 %v11763_v27, %v11764_v4  ;;  %v11790_v4 = vld [vmem:[#allocation60_spill] sm:$0xff] }
 0x9b3   : > { %v5290_v26 = vpop.permute.xlu0 %5289  ;;  %v4860_v63 = vsel %vm971_vm2, %v10507_v23, 0.0  ;;  %v7104_v49 = vpack.i.bf16 %v5181_v17, %v5179_v22  ;;  %v7721_v62 = vpop.eup %7720  ;;  %v11772_v17 = vld [vmem:[#allocation55_spill] sm:$0xff] }
 0x9b4   : > { %5302 = vmatpush.bf16.msra.mxu1 %v5290_v26  ;;  %v4953_v61 = vpack.c.bf16 %v4921_v45, %v4921_v45  ;;  %v5231_v39 = vpop.f32.mrf.mxu2  ;;  %v4923_v25 = vmul.f32 %v7721_v62, %v10412_v50  ;;  %v11767_v45 = vld [vmem:[#allocation64_spill] sm:$0xff]  ;;  %v11768_v50 = vld [vmem:[#allocation82_spill] sm:$0xff] }
 0x9b5   : > { %v5206_v53 = vpop.f32.mrf.mxu1  ;;  %v7134_v55 = vpack.i.bf16 %v5231_v39, %v5229_v33  ;;  %v7094_v26 = vpack.i.bf16 %v11767_v45, %v11766_v19  ;;  %v11773_v33 = vld [vmem:[#allocation8_spill] sm:$0xff]  ;;  %v11792_v19 = vld [vmem:[#allocation86_spill] sm:$0xff] }
 0x9b6   : > { %v5286_v18 = vunpack.c.l.b16 %v4953_v61  ;;  %v7119_v14 = vpack.i.bf16 %v5206_v53, %v5204_v7  ;;  %v4955_v28 = vpack.c.bf16 %v4923_v25, %v4923_v25  ;;  %v11775_v53 = vld [vmem:[#allocation72_spill] sm:$0xff]  ;;  %v11788_v25 = vld [vmem:[#allocation90_spill] sm:$0xff] }
 0x9b7   : > { %v7124_v37 = vpack.i.bf16 %v11776_v58, %v11775_v53  ;;  %v11789_v27 = vpack.i.bf16 %v11787_v1, %v11788_v25  ;;  %v11793_v45 = vld [vmem:[#allocation88_spill] sm:$0xff] }
 0x9b8   : > { %v5288_v40 = vpack.c.b16 %v5287_v0, %v5286_v18 }
 0x9b9   : > { %7090 = vrot.lane.b32.xlu0 %v7089_v6, %s7843_s10  ;;  %v5311_v6 = vunpack.c.l.b16 %v4955_v28  ;;  %v11794_v28 = vld [vmem:[#allocation77_spill] sm:$0xff] }
 0x9ba   : > { %6862 = vmatmul.msk.bf16.vlgmr.msra.gmra.mxu1 %vm971_vm2, %v5288_v40  ;;  %v11769_v40 = vld [vmem:[#allocation80_spill] sm:$0xff] }
 0x9bb   : > { %v5315_v47 = vpop.permute.xlu0 %5314  ;;  %4861 = vadd.xlane.f32.xlu2 %v4860_v63  ;;  %v11770_v7 = vpack.i.bf16 %v11768_v50, %v11769_v40 }
 0x9bc   : > { %5327 = vmatpush.bf16.msra.mxu2 %v5315_v47  ;;  %v11771_v47 = vld [vmem:[#allocation45_spill] sm:$0xff] }
 0x9c1   : > { %7105 = vrot.lane.b32.xlu0 %v7104_v49, %s7843_s10  ;;  %v7109_v49 = vpack.i.bf16 %v11772_v17, %v11771_v47  ;;  %v11797_v47 = vld [vmem:[#allocation83_spill] sm:$0xff] }
 0x9c3   : > { %v7021_v5 = vpop.permute.xlu0 %7020 }
 0x9c4   : > { %v7023_v13 = vunpack.i.h.bf16 %v7021_v5  ;;  %v7022_v3 = vunpack.i.l.bf16 %v7021_v5 }
 0x9c6   : > { %v5750_v35 = vsel %vm545_vm1, %v11757_v16, %v7023_v13  ;;  %v5749_v52 = vsel %vm545_vm1, %v11758_v2, %v7022_v3  ;;  %v11780_v3 = vld [vmem:[#allocation62_spill] sm:$0xff]  ;;  %v5279_v16 = vpop.f32.mrf.mxu0 }
 0x9c8   : > { %v7011_v42 = vpop.permute.xlu2 %7010  ;;  %7040 = vrot.lane.b32.xlu1 %v7039_v10, %s7841_s29 }
 0x9c9   : > { %v7013_v31 = vunpack.i.h.bf16 %v7011_v42  ;;  %v7012_v15 = vunpack.i.l.bf16 %v7011_v42  ;;  %7120 = vrot.lane.b32.xlu0 %v7119_v14, %s7843_s10  ;;  %v11777_v14 = vld [vmem:[#allocation81_spill] sm:$0xff]  ;;  %v11778_v42 = vld [vmem:[#allocation74_spill] sm:$0xff] }
 0x9ca   : > { %v11779_v13 = vpack.i.bf16 %v11777_v14, %v11778_v42  ;;  %v11803_v42 = vld [vmem:[#allocation94_spill] sm:$0xff] }
 0x9cb   : > { %v10522_v20 = vsel %vm5807_vm3, %v10473_v56, %v7012_v15  ;;  %v10526_v38 = vsel %vm5807_vm3, %v10476_v44, %v7013_v31  ;;  %v7026_v29 = vpop.permute.xlu0 %7025  ;;  %v11760_v44 = vld [vmem:[#allocation67_spill] sm:$0xff]  ;;  %v11781_v31 = vld [vmem:[#allocation70_spill] sm:$0xff] }
 0x9cc   : > { %v5841_v57 = vpack.c.bf16 %v10526_v38, %v10522_v20  ;;  %v7028_v30 = vunpack.i.h.bf16 %v7026_v29  ;;  %v7027_v54 = vunpack.i.l.bf16 %v7026_v29  ;;  %v7064_v43 = vpack.i.bf16 %v11760_v44, %v11759_v12  ;;  %v11782_v44 = vld [vmem:[#allocation89_spill] sm:$0xff]  ;;  %v11799_v20 = vld [vmem:[#allocation23_spill] sm:$0xff] }
 0x9cd   : > { %v7139_v15 = vpack.i.bf16 %v11781_v31, %v11780_v3 }
 0x9ce   : > { %v5781_v56 = vsel %vm971_vm2, %v5749_v52, %v7027_v54  ;;  %v5782_v9 = vsel %vm971_vm2, %v5750_v35, %v7028_v30 }
 0x9d0   : > { %7065 = vrot.lane.b32.xlu1 %v7064_v43, %s7842_s9  ;;  %v11783_v43 = vld [vmem:[#allocation87_spill] sm:$0xff] }
 0x9d1   : > { %7135 = vrot.lane.b32.xlu0 %v7134_v55, %s7843_s10  ;;  %v11784_v55 = vpack.i.bf16 %v11782_v44, %v11783_v43 }
 0x9d3   : > { %v5340_v8 = vpop.permute.xlu0 %5339  ;;  %7045 = vrot.lane.b32.xlu2 %v7044_v41, %s7843_s10 }
 0x9d4   : > { %5352 = vmatpush.bf16.msra.mxu3 %v5340_v8 }
 0x9d7   : > { %v4856_v24 = vpop.xlane.xlu1 %4855 }
 0x9d8   : > { %7722 = vrcp.f32 %v4856_v24  ;;  %7080 = vrot.lane.b32.xlu1 %v7079_v59, %s7842_s9 }
 0x9db   : > { %7070 = vrot.lane.b32.xlu2 %v11765_v46, %s7841_s29 }
 0x9de   : > { %v7723_v22 = vpop.eup %7722 }
 0x9df   : > { %v4924_v61 = vmul.f32 %v7723_v22, %v10446_v48  ;;  %v11774_v48 = vld [vmem:[#allocation84_spill] sm:$0xff] }
 0x9e0   : > { %7095 = vrot.lane.b32.xlu1 %v7094_v26, %s7842_s9  ;;  %v7099_v5 = vpack.i.bf16 %v11774_v48, %v11773_v33  ;;  %v7159_v26 = vpack.i.bf16 %v11793_v45, %v11792_v19  ;;  %v11801_v48 = vld [vmem:[#allocation68_spill] sm:$0xff] }
 0x9e1   : > { %v4956_v0 = vpack.c.bf16 %v4924_v61, %v4924_v61  ;;  %v11795_v61 = vld [vmem:[#allocation66_spill] sm:$0xff] }
 0x9e3   : > { %v5312_v18 = vunpack.c.l.b16 %v4956_v0  ;;  %7085 = vrot.lane.b32.xlu2 %v11770_v7, %s7841_s29  ;;  %v7184_v0 = vpack.i.bf16 %v11795_v61, %v11794_v28 }
 0x9e5   : > { %v5313_v63 = vpack.c.b16 %v5312_v18, %v5311_v6  ;;  %v6998_v6 = vunpack.i.h.bf16 %v10513_v51  ;;  %v6997_v18 = vunpack.i.l.bf16 %v10513_v51 }
 0x9e7   : > { %6863 = vmatmul.msk.bf16.vlgmr.msra.gmra.mxu2 %vm971_vm2, %v5313_v63  ;;  %v11796_v63 = vld [vmem:[#allocation85_spill] sm:$0xff]  ;;  %v5748_v38 = vsel %vm545_vm1, %v11799_v20, %v6998_v6 }
 0x9e8   : > { %7110 = vrot.lane.b32.xlu1 %v7109_v49, %s7842_s9  ;;  %v11798_v17 = vpack.i.bf16 %v11796_v63, %v11797_v47  ;;  %v11811_v63 = vld [vmem:[#allocation41_spill] sm:$0xff] }
 0x9eb   : > { %7100 = vrot.lane.b32.xlu2 %v7099_v5, %s7841_s29  ;;  %v11802_v5 = vld [vmem:[#allocation69_spill] sm:$0xff] }
 0x9ec   : > { %v7016_v7 = vpop.permute.xlu2 %7015  ;;  %v7199_v53 = vpack.i.bf16 %v11802_v5, %v11801_v48 }
 0x9ed   : > { %v7018_v58 = vunpack.i.h.bf16 %v7016_v7 }
 0x9ef   : > { %v7001_v10 = vpop.permute.xlu1 %7000 }
 0x9f0   : > { %7125 = vrot.lane.b32.xlu1 %v7124_v37, %s7842_s9  ;;  %v7003_v50 = vunpack.i.h.bf16 %v7001_v10  ;;  %v7002_v40 = vunpack.i.l.bf16 %v7001_v10  ;;  %v7017_v37 = vunpack.i.l.bf16 %v7016_v7 }
 0x9f2   : > { %v5780_v33 = vsel %vm971_vm2, %v5748_v38, %v7003_v50 }
 0x9f3   : > { %7115 = vrot.lane.b32.xlu2 %v11779_v13, %s7841_s29  ;;  %v5813_v14 = vsel %vm5807_vm3, %v5780_v33, %v7018_v58  ;;  %v11804_v13 = vld [vmem:[#allocation92_spill] sm:$0xff] }
 0x9f4   : > { %v11805_v3 = vpack.i.bf16 %v11803_v42, %v11804_v13 }
 0x9f6   : > { %v5254_v29 = vpop.f32.mrf.mxu3 }
 0x9f7   : > { %v7006_v39 = vpop.permute.xlu1 %7005 }
 0x9f8   : > { %v7008_v30 = vunpack.i.h.bf16 %v7006_v39  ;;  %v7007_v54 = vunpack.i.l.bf16 %v7006_v39  ;;  %7140 = vrot.lane.b32.xlu1 %v7139_v15, %s7842_s9  ;;  %v11806_v15 = vld [vmem:[#allocation95_spill] sm:$0xff] }
 0x9fa   : > { %v5808_v35 = vsel %vm5807_vm3, %v10462_v34, %v7007_v54  ;;  %v5809_v2 = vsel %vm5807_vm3, %v10459_v21, %v7008_v30  ;;  %v11786_v34 = vld [vmem:[#allocation59_spill] sm:$0xff] }
 0x9fb   : > { %v7031_v52 = vpop.permute.xlu0 %7030  ;;  %v5840_v12 = vpack.c.bf16 %v5809_v2, %v5808_v35  ;;  %7130 = vrot.lane.b32.xlu2 %v11784_v55, %s7841_s29  ;;  %v7154_v59 = vpack.i.bf16 %v11786_v34, %v11785_v32 }
 0x9fc   : > { %v7033_v41 = vunpack.i.h.bf16 %v7031_v52  ;;  %v7032_v8 = vunpack.i.l.bf16 %v7031_v52 }
 0x9fd   : > { %6873 = vmatmul.msk.bf16.vlgmr.msrb.gmra.mxu0 %vm336_vm0, %v5840_v12 }
 0x9fe   : > { %v5814_v60 = vsel %vm5807_vm3, %v5781_v56, %v7032_v8  ;;  %v5815_v11 = vsel %vm5807_vm3, %v5782_v9, %v7033_v41  ;;  %v5256_v21 = vpop.f32.mrf.mxu3  ;;  %v5281_v56 = vpop.f32.mrf.mxu0  ;;  %v11791_v9 = vld [vmem:[#allocation61_spill] sm:$0xff] }
 0x9ff   : > { %v5843_v24 = vpack.c.bf16 %v5815_v11, %v5814_v60  ;;  %v7149_v62 = vpack.i.bf16 %v5256_v21, %v5254_v29  ;;  %v7169_v46 = vpack.i.bf16 %v11791_v9, %v11790_v4  ;;  %v7164_v22 = vpack.i.bf16 %v5281_v56, %v5279_v16  ;;  %v11807_v29 = vld [vmem:[#allocation93_spill] sm:$0xff]  ;;  %v11809_v21 = vld [vmem:[#allocation44_spill] sm:$0xff] }
 0xa00   : > { %7155 = vrot.lane.b32.xlu1 %v7154_v59, %s7842_s9  ;;  %v11808_v39 = vpack.i.bf16 %v11806_v15, %v11807_v29 }
 0xa01   : > { %7150 = vrot.lane.b32.xlu0 %v7149_v62, %s7843_s10 }
 0xa03   : > { %7145 = vrot.lane.b32.xlu2 %v11789_v27, %s7841_s29  ;;  %v7036_v54 = vpop.permute.xlu0 %7035  ;;  %v11810_v27 = vld [vmem:[#allocation18_spill] sm:$0xff] }
 0xa04   : > { %v7038_v55 = vunpack.i.h.bf16 %v7036_v54  ;;  %v7037_v8 = vunpack.i.l.bf16 %v7036_v54 }
 0xa08   : > { %7170 = vrot.lane.b32.xlu1 %v7169_v46, %s7842_s9 }
 0xa09   : > { %7165 = vrot.lane.b32.xlu0 %v7164_v22, %s7843_s10 }
 0xa0b   : > { %7160 = vrot.lane.b32.xlu2 %v7159_v26, %s7841_s29  ;;  %v7051_v2 = vpop.permute.xlu0 %7050 }
 0xa0c   : > { %v7052_v6 = vunpack.i.l.bf16 %v7051_v2 }
 0xa0d   : > { %6874 = vmatmul.msk.bf16.gmra.mxu0 %vm336_vm0, %v5841_v57  ;;  %v11800_v57 = vld [vmem:[#allocation11_spill] sm:$0xff] }
 0xa0e   : > { %v5747_v49 = vsel %vm545_vm1, %v11800_v57, %v6997_v18 }
 0xa0f   : > { %v5779_v51 = vsel %vm971_vm2, %v5747_v49, %v7002_v40 }
 0xa10   : > { %7185 = vrot.lane.b32.xlu1 %v7184_v0, %s7842_s9  ;;  %v5812_v10 = vsel %vm5807_vm3, %v5779_v51, %v7017_v37  ;;  %v7053_v0 = vunpack.i.h.bf16 %v7051_v2  ;;  %v11813_v37 = vld [vmem:[#allocation46_spill] sm:$0xff] }
 0xa11   : > { %v5842_v31 = vpack.c.bf16 %v5813_v14, %v5812_v10  ;;  %v11814_v14 = vld [vmem:[#allocation27_spill] sm:$0xff] }
 0xa12   : > { %v5754_v47 = vsel %vm545_vm1, %v11811_v63, %v7053_v0 }
 0xa13   : > { %7175 = vrot.lane.b32.xlu2 %v11798_v17, %s7841_s29  ;;  %v7056_v62 = vpop.permute.xlu0 %7055  ;;  %v11812_v17 = vld [vmem:[#allocation12_spill] sm:$0xff] }
 0xa14   : > { %v7058_v18 = vunpack.i.h.bf16 %v7056_v62  ;;  %v7057_v50 = vunpack.i.l.bf16 %v7056_v62  ;;  %v5753_v20 = vsel %vm545_vm1, %v11812_v17, %v7052_v6 }
 0xa16   : > { %v5785_v38 = vsel %vm971_vm2, %v5753_v20, %v7057_v50  ;;  %v5786_v57 = vsel %vm971_vm2, %v5754_v47, %v7058_v18 }
 0xa18   : > { %7200 = vrot.lane.b32.xlu1 %v7199_v53, %s7842_s9 }
 0xa1b   : > { %7190 = vrot.lane.b32.xlu2 %v11805_v3, %s7841_s29  ;;  %v7061_v61 = vpop.permute.xlu0 %7060 }
 0xa1c   : > { %v7063_v40 = vunpack.i.h.bf16 %v7061_v61  ;;  %v7062_v7 = vunpack.i.l.bf16 %v7061_v61 }
 0xa1d   : > { %6875 = vmatmul.msk.bf16.gmra.mxu0 %vm336_vm0, %v5842_v31 }
 0xa1e   : > { %v5818_v49 = vsel %vm5807_vm3, %v5785_v38, %v7062_v7  ;;  %v5819_v33 = vsel %vm5807_vm3, %v5786_v57, %v7063_v40 }
 0xa1f   : > { %v5845_v51 = vpack.c.bf16 %v5819_v33, %v5818_v49  ;;  %v11819_v33 = vld [vmem:[#allocation38_spill] sm:$0xff] }
 0xa22   : > { %v4859_v30 = vpop.xlane.xlu1 %4858 }
 0xa23   : > { %7205 = vrot.lane.b32.xlu2 %v11808_v39, %s7841_s29  ;;  %7724 = vrcp.f32 %v4859_v30  ;;  %v7076_v13 = vpop.permute.xlu0 %7075  ;;  %s6710_s29 = sshll.u32 %s259_s28, 6 }
 0xa24   : > { %v7078_v39 = vunpack.i.h.bf16 %v7076_v13  ;;  %v7077_v30 = vunpack.i.l.bf16 %v7076_v13  ;;  %s11182_s9 = scalar_lea.vmem [#allocation5], %s6710_s29 }
 0xa25   : > { %s6627_s13 = sshll.u32 %s11182_s9, 4  ;;  %s6628_s13 = int_to_ptr.vmem [resolvable:$true] %s6627_s13 }
 0xa29   : > { %v7725_v35 = vpop.eup %7724 }
 0xa2a   : > { %v4925_v52 = vmul.f32 %v7725_v35, %v10498_v36  ;;  %v5751_v36 = vsel %vm545_vm1, %v11810_v27, %v7037_v8 }
 0xa2c   : > { %v4957_v44 = vpack.c.bf16 %v4925_v52, %v4925_v52 }
 0xa2d   : > { %6876 = vmatmul.msk.bf16.gmra.mxu0 %vm336_vm0, %v5843_v24  ;;  %v5752_v24 = vsel %vm545_vm1, %v11809_v21, %v7038_v55 }
 0xa2e   : > { %v4862_v16 = vpop.xlane.xlu2 %4861  ;;  %v5336_v32 = vunpack.c.l.b16 %v4957_v44 }
 0xa2f   : > { %7726 = vrcp.f32 %v4862_v16 }
 0xa35   : > { %v7727_v12 = vpop.eup %7726 }
 0xa36   : > { %v4926_v43 = vmul.f32 %v7727_v12, %v10507_v23  ;;  %v7046_v11 = vpop.permute.xlu2 %7045 }
 0xa37   : > { %v5304_v41 = vpop.f32.mrf.mxu1  ;;  %v7048_v4 = vunpack.i.h.bf16 %v7046_v11  ;;  %v7047_v23 = vunpack.i.l.bf16 %v7046_v11 }
 0xa38   : > { %v4958_v60 = vpack.c.bf16 %v4926_v43, %v4926_v43  ;;  %v11815_v43 = vld [vmem:[#allocation19_spill] sm:$0xff] }
 0xa3a   : > { %v5337_v34 = vunpack.c.l.b16 %v4958_v60  ;;  %v7041_v59 = vpop.permute.xlu1 %7040  ;;  %v7091_v60 = vpop.permute.xlu0 %7090 }
 0xa3b   : > { %v7043_v1 = vunpack.i.h.bf16 %v7041_v59  ;;  %v7042_v25 = vunpack.i.l.bf16 %v7041_v59  ;;  %v7093_v21 = vunpack.i.h.bf16 %v7091_v60 }
 0xa3c   : > { %v5338_v56 = vpack.c.b16 %v5337_v34, %v5336_v32 }
 0xa3d   : > { %v5783_v9 = vsel %vm971_vm2, %v5751_v36, %v7042_v25  ;;  %v5784_v46 = vsel %vm971_vm2, %v5752_v24, %v7043_v1  ;;  %v7092_v24 = vunpack.i.l.bf16 %v7091_v60 }
 0xa3e   : > { %6864 = vmatmul.msk.bf16.vlgmr.msra.gmra.mxu3 %vm971_vm2, %v5338_v56  ;;  %v5816_v22 = vsel %vm5807_vm3, %v5783_v9, %v7047_v23  ;;  %v5817_v19 = vsel %vm5807_vm3, %v5784_v46, %v7048_v4  ;;  %v7071_v58 = vpop.permute.xlu2 %7070 }
 0xa3f   : > { %v5306_v45 = vpop.f32.mrf.mxu1  ;;  %v5844_v26 = vpack.c.bf16 %v5817_v19, %v5816_v22  ;;  %v7073_v3 = vunpack.i.h.bf16 %v7071_v58  ;;  %v7072_v31 = vunpack.i.l.bf16 %v7071_v58  ;;  %v11817_v22 = vld [vmem:[#allocation17_spill] sm:$0xff] }
 0xa40   : > { %v7179_v28 = vpack.i.bf16 %v5306_v45, %v5304_v41  ;;  %v11816_v41 = vld [vmem:[#allocation20_spill] sm:$0xff] }
 0xa41   : > { %6877 = vmatmul.msk.bf16.gmra.mxu0 %vm336_vm0, %v5844_v26  ;;  %v11818_v45 = vld [vmem:[#allocation36_spill] sm:$0xff] }
 0xa42   : > { %7180 = vrot.lane.b32.xlu0 %v7179_v28, %s7843_s10  ;;  %v7066_v48 = vpop.permute.xlu1 %7065  ;;  %v7106_v28 = vpop.permute.xlu0 %7105 }
 0xa43   : > { %v7068_v5 = vunpack.i.h.bf16 %v7066_v48  ;;  %v7067_v53 = vunpack.i.l.bf16 %v7066_v48  ;;  %v7108_v50 = vunpack.i.h.bf16 %v7106_v28  ;;  %v7107_v40 = vunpack.i.l.bf16 %v7106_v28  ;;  %v11820_v48 = vld [vmem:[#allocation25_spill] sm:$0xff] }
 0xa45   : > { %v5756_v10 = vsel %vm545_vm1, %v11813_v37, %v7068_v5  ;;  %v5755_v42 = vsel %vm545_vm1, %v11814_v14, %v7067_v53 }
 0xa46   : > { %v5787_v15 = vsel %vm971_vm2, %v5755_v42, %v7072_v31  ;;  %v5788_v29 = vsel %vm971_vm2, %v5756_v10, %v7073_v3  ;;  %v7086_v44 = vpop.permute.xlu2 %7085  ;;  %v10700_v42 = vld [vmem:[%s11434_s4] ss:$0 sm:$0xff] }
 0xa47   : > { %v5820_v54 = vsel %vm5807_vm3, %v5787_v15, %v7077_v30  ;;  %v5821_v16 = vsel %vm5807_vm3, %v5788_v29, %v7078_v39  ;;  %v7088_v11 = vunpack.i.h.bf16 %v7086_v44  ;;  %v7087_v32 = vunpack.i.l.bf16 %v7086_v44  ;;  %v11821_v44 = vld [vmem:[#allocation26_spill] sm:$0xff] }
 0xa48   : > { %v5846_v2 = vpack.c.bf16 %v5821_v16, %v5820_v54 }
 0xa4a   : > { %v7081_v35 = vpop.permute.xlu1 %7080  ;;  %v7121_v58 = vpop.permute.xlu0 %7120 }
 0xa4b   : > { %v7083_v52 = vunpack.i.h.bf16 %v7081_v35  ;;  %v7082_v12 = vunpack.i.l.bf16 %v7081_v35  ;;  %v7123_v31 = vunpack.i.h.bf16 %v7121_v58  ;;  %v7122_v15 = vunpack.i.l.bf16 %v7121_v58 }
 0xa4d   : > { %v5758_v55 = vsel %vm545_vm1, %v11815_v43, %v7083_v52  ;;  %v5757_v8 = vsel %vm545_vm1, %v11816_v41, %v7082_v12 }
 0xa4e   : > { %v5789_v34 = vsel %vm971_vm2, %v5757_v8, %v7087_v32  ;;  %v5790_v59 = vsel %vm971_vm2, %v5758_v55, %v7088_v11  ;;  %v7101_v9 = vpop.permute.xlu2 %7100  ;;  %v11822_v8 = vld [vmem:[#allocation43_spill] sm:$0xff] }
 0xa4f   : > { %v5822_v1 = vsel %vm5807_vm3, %v5789_v34, %v7092_v24  ;;  %v5823_v25 = vsel %vm5807_vm3, %v5790_v59, %v7093_v21  ;;  %v7103_v61 = vunpack.i.h.bf16 %v7101_v9  ;;  %v7102_v0 = vunpack.i.l.bf16 %v7101_v9 }
 0xa50   : > { %v5847_v36 = vpack.c.bf16 %v5823_v25, %v5822_v1 }
 0xa51   : > { %6878 = vmatmul.msk.bf16.gmra.mxu0 %vm336_vm0, %v5845_v51 }
 0xa52   : > { %v7096_v27 = vpop.permute.xlu1 %7095  ;;  %v7136_v1 = vpop.permute.xlu0 %7135 }
 0xa53   : > { %v7098_v56 = vunpack.i.h.bf16 %v7096_v27  ;;  %v7097_v4 = vunpack.i.l.bf16 %v7096_v27  ;;  %v7138_v28 = vunpack.i.h.bf16 %v7136_v1 }
 0xa55   : > { %v5760_v19 = vsel %vm545_vm1, %v11817_v22, %v7098_v56  ;;  %v5759_v26 = vsel %vm545_vm1, %v11818_v45, %v7097_v4 }
 0xa56   : > { %v5791_v6 = vsel %vm971_vm2, %v5759_v26, %v7102_v0  ;;  %v5792_v18 = vsel %vm971_vm2, %v5760_v19, %v7103_v61  ;;  %v7116_v20 = vpop.permute.xlu2 %7115 }
 0xa57   : > { %v5824_v47 = vsel %vm5807_vm3, %v5791_v6, %v7107_v40  ;;  %v5825_v17 = vsel %vm5807_vm3, %v5792_v18, %v7108_v50  ;;  %v7118_v37 = vunpack.i.h.bf16 %v7116_v20  ;;  %v7117_v10 = vunpack.i.l.bf16 %v7116_v20 }
 0xa58   : > { %v5848_v49 = vpack.c.bf16 %v5825_v17, %v5824_v47 }
 0xa5a   : > { %v7111_v7 = vpop.permute.xlu1 %7110 }
 0xa5b   : > { %v7113_v38 = vunpack.i.h.bf16 %v7111_v7  ;;  %v7112_v57 = vunpack.i.l.bf16 %v7111_v7 }
 0xa5d   : > { %v5762_v51 = vsel %vm545_vm1, %v11819_v33, %v7113_v38  ;;  %v5761_v5 = vsel %vm545_vm1, %v11820_v48, %v7112_v57 }
 0xa5e   : > { %v5793_v13 = vsel %vm971_vm2, %v5761_v5, %v7117_v10  ;;  %v5794_v3 = vsel %vm971_vm2, %v5762_v51, %v7118_v37  ;;  %v7131_v29 = vpop.permute.xlu2 %7130 }
 0xa5f   : > { %v5826_v16 = vsel %vm5807_vm3, %v5793_v13, %v7122_v15  ;;  %v5827_v35 = vsel %vm5807_vm3, %v5794_v3, %v7123_v31  ;;  %v7132_v52 = vunpack.i.l.bf16 %v7131_v29  ;;  %v7137_v13 = vunpack.i.l.bf16 %v7136_v1 }
 0xa60   : > { %v5849_v41 = vpack.c.bf16 %v5827_v35, %v5826_v16 }
 0xa61   : > { %6879 = vmatmul.msk.bf16.gmra.mxu0 %vm336_vm0, %v5846_v2  ;;  %v7133_v2 = vunpack.i.h.bf16 %v7131_v29 }
 0xa62   : > { %v7126_v14 = vpop.permute.xlu1 %7125 }
 0xa63   : > { %v7128_v39 = vunpack.i.h.bf16 %v7126_v14  ;;  %v7127_v30 = vunpack.i.l.bf16 %v7126_v14 }
 0xa65   : > { %v5764_v43 = vsel %vm545_vm1, %v11821_v44, %v7128_v39  ;;  %v5763_v60 = vsel %vm545_vm1, %v11822_v8, %v7127_v30 }
 0xa66   : > { %v5795_v6 = vsel %vm971_vm2, %v5763_v60, %v7132_v52  ;;  %v5796_v18 = vsel %vm971_vm2, %v5764_v43, %v7133_v2 }
 0xa67   : > { %v5828_v16 = vsel %vm5807_vm3, %v5795_v6, %v7137_v13  ;;  %v5829_v35 = vsel %vm5807_vm3, %v5796_v18, %v7138_v28 }
 0xa6a   : > { %v5329_v62 = vpop.f32.mrf.mxu2 }
 0xa71   : > { %6880 = vmatmul.msk.bf16.gmra.mxu0 %vm336_vm0, %v5847_v36 }
 0xa72   : > { %v5331_v23 = vpop.f32.mrf.mxu2 }
 0xa73   : > { %v7194_v46 = vpack.i.bf16 %v5331_v23, %v5329_v62 }
 0xa75   : > { %7195 = vrot.lane.b32.xlu0 %v7194_v46, %s7843_s10 }
 0xa7a   : > { %v5933_v63 = vpop.f32.mrf.mxu0 }
 0xa7b   : > { %v5934_v54 = vadd.f32 %v10700_v42, %v5933_v63 }
 0xa7d   : > { %v6266_v11 = vrot.slane %v5934_v54, 7  ;;  %v6232_v32 = vrot.slane %v5934_v54, 6  ;;  %v6066_v34 = vrot.slane %v5934_v54, 1  ;;  %v6198_v24 = vrot.slane %v5934_v54, 5 }
 0xa7e   : > { %v6134_v62 = vrot.slane %v5934_v54, 3  ;;  %v6100_v23 = vrot.slane %v5934_v54, 2  ;;  %v6168_v46 = vrot.slane %v5934_v54, 4 }
 0xa81   : > { %6881 = vmatmul.msk.bf16.gmra.mxu0 %vm336_vm0, %v5848_v49 }
 0xa82   : > { %v5935_v53 = vpop.f32.mrf.mxu0 }
 0xa83   : > { %v5936_v59 = vadd.f32 %v10700_v42, %v5935_v53 }
 0xa85   : > { %v6478_v40 = vrot.slane %v5936_v59, 5  ;;  %v6346_v47 = vrot.slane %v5936_v59, 1  ;;  %v6512_v17 = vrot.slane %v5936_v59, 6  ;;  %v6380_v38 = vrot.slane %v5936_v59, 2 }
 0xa86   : > { %v6414_v57 = vrot.slane %v5936_v59, 3  ;;  %v6448_v49 = vrot.slane %v5936_v59, 4  ;;  %v6546_v33 = vrot.slane %v5936_v59, 7 }
 0xa8a   : > { %v5938_v12 = vpop.f32.mrf.mxu0 }
 0xa8b   : > { %v5939_v55 = vadd.f32 %v10700_v42, %v5938_v12  ;;  %v5850_v12 = vpack.c.bf16 %v5829_v35, %v5828_v16 }
 0xa8d   : > { %v6267_v21 = vrot.slane %v5939_v55, 6  ;;  %v6233_v25 = vrot.slane %v5939_v55, 5  ;;  %v6199_v27 = vrot.slane %v5939_v55, 4  ;;  %v6067_v36 = vsel %vm6030_vm4, %v5939_v55, %v6066_v34 }
 0xa8e   : > { %v6135_v56 = vrot.slane %v5939_v55, 2  ;;  %v6101_v9 = vrot.slane %v5939_v55, 1  ;;  %v6169_v26 = vrot.slane %v5939_v55, 3  ;;  %v6029_v0 = vrot.slane %v5939_v55, 7 }
 0xa8f   : > { %v6268_v4 = vsel %vm6030_vm4, %v6267_v21, %v6266_v11  ;;  %v6234_v22 = vsel %vm6030_vm4, %v6233_v25, %v6232_v32  ;;  %v6200_v19 = vsel %vm6030_vm4, %v6199_v27, %v6198_v24 }
 0xa90   : > { %v6136_v45 = vsel %vm6030_vm4, %v6135_v56, %v6134_v62  ;;  %v6102_v61 = vsel %vm6030_vm4, %v6101_v9, %v6100_v23  ;;  %v6170_v7 = vsel %vm6030_vm4, %v6169_v26, %v6168_v46  ;;  %v6031_v20 = vsel %vm6030_vm4, %v6029_v0, %v5934_v54  ;;  %v7141_v62 = vpop.permute.xlu1 %7140  ;;  %v7151_v46 = vpop.permute.xlu0 %7150  ;;  %v11823_v26 = vld [vmem:[#allocation48_spill] sm:$0xff] }
 0xa91   : > { %6882 = vmatmul.msk.bf16.gmra.mxu0 %vm336_vm0, %v5849_v41  ;;  %v7142_v23 = vunpack.i.l.bf16 %v7141_v62  ;;  %v7153_v6 = vunpack.i.h.bf16 %v7151_v46  ;;  %v7152_v18 = vunpack.i.l.bf16 %v7151_v46 }
 0xa92   : > { %v5940_v50 = vpop.f32.mrf.mxu0 }
 0xa93   : > { %v5941_v63 = vadd.f32 %v10700_v42, %v5940_v50 }
 0xa95   : > { %v6479_v51 = vrot.slane %v5941_v63, 4  ;;  %v10726_v48 = vsel %vm6030_vm4, %v5941_v63, %v6346_v47  ;;  %v6513_v5 = vrot.slane %v5941_v63, 5  ;;  %v6381_v53 = vrot.slane %v5941_v63, 1 }
 0xa96   : > { %v6415_v58 = vrot.slane %v5941_v63, 2  ;;  %v6316_v37 = vrot.slane %v5941_v63, 7  ;;  %v6449_v10 = vrot.slane %v5941_v63, 3  ;;  %v6547_v14 = vrot.slane %v5941_v63, 6 }
 0xa97   : > { %v10729_v3 = vsel %vm6030_vm4, %v6479_v51, %v6478_v40  ;;  %v10732_v31 = vsel %vm6030_vm4, %v6513_v5, %v6512_v17  ;;  %v10735_v15 = vsel %vm6030_vm4, %v6381_v53, %v6380_v38 }
 0xa98   : > { %v10738_v29 = vsel %vm6030_vm4, %v6415_v58, %v6414_v57  ;;  %v6317_v39 = vsel %vm6030_vm4, %v6316_v37, %v5936_v59  ;;  %v6450_v30 = vsel %vm6030_vm4, %v6449_v10, %v6448_v49  ;;  %v6548_v54 = vsel %vm6030_vm4, %v6547_v14, %v6546_v33  ;;  %v7156_v58 = vpop.permute.xlu1 %7155 }
 0xa99   : > { %v7158_v13 = vunpack.i.h.bf16 %v7156_v58 }
 0xa9a   : > { %v5943_v2 = vpop.f32.mrf.mxu0 }
 0xa9b   : > { %v5944_v52 = vadd.f32 %v10700_v42, %v5943_v2  ;;  %v11825_v2 = vld [vmem:[#allocation32_spill] sm:$0xff] }
 0xa9d   : > { %v6269_v44 = vrot.slane %v5944_v52, 5  ;;  %v6235_v43 = vrot.slane %v5944_v52, 4  ;;  %v6201_v55 = vrot.slane %v5944_v52, 3  ;;  %v6068_v41 = vrot.slane %v5944_v52, 7 }
 0xa9e   : > { %v6137_v8 = vrot.slane %v5944_v52, 1  ;;  %v10747_v60 = vsel %vm6033_vm5, %v5944_v52, %v6102_v61  ;;  %v6171_v11 = vrot.slane %v5944_v52, 2  ;;  %v6032_v32 = vrot.slane %v5944_v52, 6  ;;  %v11824_v61 = vld [vmem:[#allocation31_spill] sm:$0xff] }
 0xa9f   : > { %v10750_v34 = vsel %vm6033_vm5, %v6269_v44, %v6268_v4  ;;  %v10753_v59 = vsel %vm6033_vm5, %v6235_v43, %v6234_v22  ;;  %v10756_v21 = vsel %vm6033_vm5, %v6201_v55, %v6200_v19  ;;  %v10759_v24 = vsel %vm6033_vm5, %v6068_v41, %v6067_v36  ;;  %v7146_v22 = vpop.permute.xlu2 %7145 }
 0xaa0   : > { %v10762_v1 = vsel %vm6033_vm5, %v6137_v8, %v6136_v45  ;;  %v6172_v25 = vsel %vm6033_vm5, %v6171_v11, %v6170_v7  ;;  %v6034_v27 = vsel %vm6033_vm5, %v6032_v32, %v6031_v20  ;;  %v7143_v4 = vunpack.i.h.bf16 %v7141_v62 }
 0xaa1   : > { %6883 = vmatmul.msk.bf16.gmra.mxu0 %vm336_vm0, %v5850_v12  ;;  %v5765_v0 = vsel %vm545_vm1, %v11824_v61, %v7142_v23  ;;  %v7148_v63 = vunpack.i.h.bf16 %v7146_v22  ;;  %v7147_v47 = vunpack.i.l.bf16 %v7146_v22  ;;  %v5768_v52 = vsel %vm545_vm1, %v11825_v2, %v7158_v13  ;;  %v11826_v12 = vld [vmem:[#allocation51_spill] sm:$0xff] }
 0xaa2   : > { %v5945_v56 = vpop.f32.mrf.mxu0  ;;  %v5766_v28 = vsel %vm545_vm1, %v11823_v26, %v7143_v4 }
 0xaa3   : > { %v10768_v9 = vadd.f32 %v10700_v42, %v5945_v56  ;;  %v5797_v20 = vsel %vm971_vm2, %v5765_v0, %v7147_v47  ;;  %v5798_v38 = vsel %vm971_vm2, %v5766_v28, %v7148_v63  ;;  %v11827_v47 = vld [vmem:[#allocation47_spill] sm:$0xff] }
 0xaa4   : > { %v5831_v49 = vsel %vm5807_vm3, %v5798_v38, %v7153_v6  ;;  %v5830_v33 = vsel %vm5807_vm3, %v5797_v20, %v7152_v18  ;;  %v11828_v20 = vld [vmem:[#allocation50_spill] sm:$0xff] }
 0xaa5   : > { %v6318_v36 = vrot.slane %v10768_v9, 6  ;;  %v6451_v19 = vrot.slane %v10768_v9, 2  ;;  %v6549_v45 = vrot.slane %v10768_v9, 5  ;;  %v5851_v53 = vpack.c.bf16 %v5831_v49, %v5830_v33 }
 0xaa7   : > { %v6319_v50 = vsel %vm6033_vm5, %v6318_v36, %v6317_v39  ;;  %v6452_v40 = vsel %vm6033_vm5, %v6451_v19, %v6450_v30  ;;  %v6550_v7 = vsel %vm6033_vm5, %v6549_v45, %v6548_v54  ;;  %v7157_v30 = vunpack.i.l.bf16 %v7156_v58  ;;  %v7166_v54 = vpop.permute.xlu0 %7165  ;;  %v7161_v16 = vpop.permute.xlu2 %7160 }
 0xaa8   : > { %v7168_v43 = vunpack.i.h.bf16 %v7166_v54  ;;  %v7167_v55 = vunpack.i.l.bf16 %v7166_v54  ;;  %v7163_v8 = vunpack.i.h.bf16 %v7161_v16  ;;  %v7162_v11 = vunpack.i.l.bf16 %v7161_v16  ;;  %v7171_v45 = vpop.permute.xlu1 %7170 }
 0xaa9   : > { %v5767_v44 = vsel %vm545_vm1, %v11826_v12, %v7157_v30  ;;  %v7173_v0 = vunpack.i.h.bf16 %v7171_v45  ;;  %v7172_v6 = vunpack.i.l.bf16 %v7171_v45 }
 0xaaa   : > { %v5948_v17 = vpop.f32.mrf.mxu0 }
 0xaab   : > { %v10783_v57 = vadd.f32 %v10700_v42, %v5948_v17  ;;  %v5770_v17 = vsel %vm545_vm1, %v11827_v47, %v7173_v0  ;;  %v5769_v38 = vsel %vm545_vm1, %v11828_v20, %v7172_v6  ;;  %v6348_v47 = vrot.slane %v10768_v9, 7 }
 0xaad   : > { %v6173_v51 = vrot.slane %v10783_v57, 1  ;;  %v6035_v5 = vrot.slane %v10783_v57, 5 }
 0xaaf   : > { %v6174_v37 = vsel %vm6036_vm6, %v6173_v51, %v6172_v25  ;;  %v6037_v10 = vsel %vm6036_vm6, %v6035_v5, %v6034_v27  ;;  %v5799_v25 = vsel %vm971_vm2, %v5767_v44, %v7162_v11  ;;  %v5800_v27 = vsel %vm971_vm2, %v5768_v52, %v7163_v8 }
 0xab0   : > { %v5833_v23 = vsel %vm5807_vm3, %v5800_v27, %v7168_v43  ;;  %v5832_v46 = vsel %vm5807_vm3, %v5799_v25, %v7167_v55 }
 0xab1   : > { %6884 = vmatmul.msk.bf16.gmra.mxu0 %vm336_vm0, %v5851_v53  ;;  %v5852_v36 = vpack.c.bf16 %v5833_v23, %v5832_v46 }
 0xab2   : > { %v5950_v14 = vpop.f32.mrf.mxu0 }
 0xab3   : > { %v10793_v39 = vadd.f32 %v10700_v42, %v5950_v14 }
 0xab4   : > { %v7181_v18 = vpop.permute.xlu0 %7180 }
 0xab5   : > { %v6320_v35 = vrot.slane %v10793_v39, 5  ;;  %v6453_v32 = vrot.slane %v10793_v39, 1  ;;  %v6551_v62 = vrot.slane %v10793_v39, 4  ;;  %v7183_v49 = vunpack.i.h.bf16 %v7181_v18 }
 0xab6   : > { %v7182_v33 = vunpack.i.l.bf16 %v7181_v18 }
 0xab7   : > { %v6321_v41 = vsel %vm6036_vm6, %v6320_v35, %v6319_v50  ;;  %v6454_v56 = vsel %vm6036_vm6, %v6453_v32, %v6452_v40  ;;  %v6552_v4 = vsel %vm6036_vm6, %v6551_v62, %v6550_v7  ;;  %v7176_v40 = vpop.permute.xlu2 %7175 }
 0xab8   : > { %v7178_v51 = vunpack.i.h.bf16 %v7176_v40  ;;  %v7177_v5 = vunpack.i.l.bf16 %v7176_v40 }
 0xaba   : > { %v5801_v14 = vsel %vm971_vm2, %v5769_v38, %v7177_v5  ;;  %v5802_v13 = vsel %vm971_vm2, %v5770_v17, %v7178_v51 }
 0xabb   : > { %v5835_v30 = vsel %vm5807_vm3, %v5802_v13, %v7183_v49  ;;  %v5834_v54 = vsel %vm5807_vm3, %v5801_v14, %v7182_v33  ;;  %v6271_v33 = vrot.slane %v10783_v57, 4  ;;  %v10882_v13 = vsel %vm6033_vm5, %v6348_v47, %v10726_v48 }
 0xabc   : > { %v5853_v12 = vpack.c.bf16 %v5835_v30, %v5834_v54  ;;  %v6515_v30 = vrot.slane %v10768_v9, 4  ;;  %v6104_v48 = vrot.slane %v10783_v57, 7 }
 0xabe   : > { %v5953_v22 = vpop.f32.mrf.mxu0 }
 0xabf   : > { %v10810_v19 = vadd.f32 %v10700_v42, %v5953_v22 }
 0xac1   : > { %v5354_v26 = vpop.f32.mrf.mxu3  ;;  %6885 = vmatmul.msk.bf16.gmra.mxu0 %vm336_vm0, %v5852_v36  ;;  %v6175_v28 = vsel %vm6039_vm7, %v10810_v19, %v6174_v37  ;;  %v6038_v61 = vrot.slane %v10810_v19, 4 }
 0xac3   : > { %v6040_v50 = vsel %vm6039_vm7, %v6038_v61, %v6037_v10  ;;  %v11829_v61 = vld [vmem:[#allocation35_spill] sm:$0xff] }
 0xac6   : > { %v5955_v7 = vpop.f32.mrf.mxu0 }
 0xac7   : > { %v10818_v63 = vadd.f32 %v10700_v42, %v5955_v7  ;;  %v6481_v7 = vrot.slane %v10768_v9, 3 }
 0xac9   : > { %v5356_v53 = vpop.f32.mrf.mxu3  ;;  %v6322_v37 = vrot.slane %v10818_v63, 4  ;;  %v6455_v10 = vsel %vm6039_vm7, %v10818_v63, %v6454_v56  ;;  %v6553_v35 = vrot.slane %v10818_v63, 3  ;;  %v7186_v56 = vpop.permute.xlu1 %7185  ;;  %v10878_v14 = vsel %vm6033_vm5, %v6481_v7, %v10729_v3 }
 0xaca   : > { %v7209_v58 = vpack.i.bf16 %v5356_v53, %v5354_v26  ;;  %v7188_v22 = vunpack.i.h.bf16 %v7186_v56  ;;  %v7187_v45 = vunpack.i.l.bf16 %v7186_v56  ;;  %v6139_v3 = vsel %vm6036_vm6, %v10783_v57, %v10762_v1 }
 0xacb   : > { %v6323_v16 = vsel %vm6039_vm7, %v6322_v37, %v6321_v41  ;;  %v6554_v52 = vsel %vm6039_vm7, %v6553_v35, %v6552_v4  ;;  %v6203_v35 = vrot.slane %v10783_v57, 2 }
 0xacc   : > { %7210 = vrot.lane.b32.xlu0 %v7209_v58, %s7843_s10  ;;  %v5772_v0 = vsel %vm545_vm1, %v11829_v61, %v7188_v22  ;;  %v6237_v58 = vrot.slane %v10783_v57, 3 }
 0xace   : > { %v5958_v2 = vpop.f32.mrf.mxu0 }
 0xacf   : > { %v10836_v44 = vadd.f32 %v10700_v42, %v5958_v2  ;;  %v6070_v2 = vrot.slane %v10783_v57, 6 }
 0xad1   : > { %6886 = vmatmul.msk.bf16.gmra.mxu0 %vm336_vm0, %v5853_v12  ;;  %v6176_v43 = vrot.slane %v10836_v44, 7  ;;  %v6041_v55 = vrot.slane %v10836_v44, 3  ;;  %v6273_v12 = vrot.slane %v10810_v19, 3  ;;  %v6241_v22 = vrot.slane %v10836_v44, 1 }
 0xad3   : > { %v6177_v8 = vsel %vm6042_vm8, %v6176_v43, %v6175_v28  ;;  %v6043_v41 = vsel %vm6042_vm8, %v6041_v55, %v6040_v50  ;;  %v7191_v28 = vpop.permute.xlu2 %7190  ;;  %v11830_v50 = vld [vmem:[#allocation21_spill] sm:$0xff] }
 0xad4   : > { %v5771_v40 = vsel %vm545_vm1, %v11830_v50, %v7187_v45  ;;  %v7193_v17 = vunpack.i.h.bf16 %v7191_v28  ;;  %v7192_v20 = vunpack.i.l.bf16 %v7191_v28  ;;  %v6071_v45 = vsel %vm6036_vm6, %v6070_v2, %v10759_v24 }
 0xad5   : > { %v6142_v2 = vrot.slane %v10836_v44, 6 }
 0xad6   : > { %v5960_v11 = vpop.f32.mrf.mxu0  ;;  %v5803_v5 = vsel %vm971_vm2, %v5771_v40, %v7192_v20  ;;  %v5804_v53 = vsel %vm971_vm2, %v5772_v0, %v7193_v17 }
 0xad7   : > { %v10844_v32 = vadd.f32 %v10700_v42, %v5960_v11 }
 0xad9   : > { %v6324_v62 = vrot.slane %v10844_v32, 3  ;;  %v6456_v25 = vrot.slane %v10844_v32, 7  ;;  %v6555_v27 = vrot.slane %v10844_v32, 2 }
 0xadb   : > { %v6325_v4 = vsel %vm6042_vm8, %v6324_v62, %v6323_v16  ;;  %v6457_v23 = vsel %vm6042_vm8, %v6456_v25, %v6455_v10  ;;  %v6556_v46 = vsel %vm6042_vm8, %v6555_v27, %v6554_v52  ;;  %v6272_v52 = vsel %vm6036_vm6, %v6271_v33, %v10750_v34 }
 0xadc   : > { %v6275_v34 = vrot.slane %v10836_v44, 2  ;;  %v6239_v62 = vrot.slane %v10810_v19, 2  ;;  %v6205_v25 = vrot.slane %v10810_v19, 1 }
 0xade   : > { %v5963_v36 = vpop.f32.mrf.mxu0 }
 0xadf   : > { %v10853_v26 = vadd.f32 %v10700_v42, %v5963_v36  ;;  %v6204_v36 = vsel %vm6036_vm6, %v6203_v35, %v10756_v21  ;;  %v6072_v21 = vrot.slane %v10810_v19, 5 }
 0xae0   : > { %v6206_v50 = vsel %vm6039_vm7, %v6205_v25, %v6204_v36 }
 0xae1   : > { %v6178_v6 = vrot.slane %v10853_v26, 6  ;;  %v6044_v18 = vrot.slane %v10853_v26, 2  ;;  %v6277_v1 = vrot.slane %v10853_v26, 1  ;;  %v6207_v7 = vsel %vm6042_vm8, %v10836_v44, %v6206_v50 }
 0xae2   : > { %v6076_v35 = vrot.slane %v10853_v26, 3  ;;  %v6352_v50 = vrot.slane %v10818_v63, 5 }
 0xae3   : > { %v10864_v38 = vsel %vm6045_vm9, %v6178_v6, %v6177_v8  ;;  %v10867_v49 = vsel %vm6045_vm9, %v6044_v18, %v6043_v41  ;;  %v6238_v8 = vsel %vm6036_vm6, %v6237_v58, %v10753_v59  ;;  %v6274_v59 = vsel %vm6039_vm7, %v6273_v12, %v6272_v52 }
 0xae4   : > { %v6276_v18 = vsel %vm6042_vm8, %v6275_v34, %v6274_v59  ;;  %v6240_v24 = vsel %vm6039_vm7, %v6239_v62, %v6238_v8  ;;  %v6106_v52 = vrot.slane %v10810_v19, 6  ;;  %v6483_v34 = vrot.slane %v10793_v39, 2 }
 0xae5   : > { %v6278_v40 = vsel %vm6045_vm9, %v6277_v1, %v6276_v18 }
 0xae6   : > { %v5965_v51 = vpop.f32.mrf.mxu0 }
 0xae7   : > { %v10874_v37 = vadd.f32 %v10700_v42, %v5965_v51  ;;  %v7196_v10 = vpop.permute.xlu0 %7195 }
 0xae8   : > { %v7198_v54 = vunpack.i.h.bf16 %v7196_v10  ;;  %v7197_v16 = vunpack.i.l.bf16 %v7196_v10 }
 0xae9   : > { %v6326_v41 = vrot.slane %v10874_v37, 2  ;;  %v6458_v27 = vrot.slane %v10874_v37, 6  ;;  %v6557_v56 = vrot.slane %v10874_v37, 1 }
 0xaea   : > { %v5837_v43 = vsel %vm5807_vm3, %v5804_v53, %v7198_v54  ;;  %v5836_v55 = vsel %vm5807_vm3, %v5803_v5, %v7197_v16  ;;  %v6074_v54 = vrot.slane %v10836_v44, 4  ;;  %v6105_v16 = vsel %vm6036_vm6, %v6104_v48, %v10747_v60 }
 0xaeb   : > { %v5854_v11 = vpack.c.bf16 %v5837_v43, %v5836_v55  ;;  %v10904_v57 = vsel %vm6045_vm9, %v6326_v41, %v6325_v4  ;;  %v6208_v4 = vrot.slane %v10853_v26, 7  ;;  %v10917_v61 = vsel %vm6045_vm9, %v6458_v27, %v6457_v23 }
 0xaec   : > { %v6558_v0 = vsel %vm6045_vm9, %v6557_v56, %v6556_v46  ;;  %v6140_v23 = vrot.slane %v10810_v19, 7  ;;  %v6242_v46 = vsel %vm6042_vm8, %v6241_v22, %v6240_v24  ;;  %v6144_v55 = vrot.slane %v10853_v26, 5 }
 0xaed   : > { %6887 = vmatmul.msk.bf16.gmra.mxu0 %vm336_vm0, %v5854_v11  ;;  %v6243_v33 = vsel %vm6045_vm9, %v10853_v26, %v6242_v46  ;;  %v6209_v51 = vsel %vm6045_vm9, %v6208_v4, %v6207_v7  ;;  %v6108_v60 = vrot.slane %v10836_v44, 5  ;;  %v6073_v41 = vsel %vm6039_vm7, %v6072_v21, %v6071_v45 }
 0xaee   : > { %v5968_v28 = vpop.f32.mrf.mxu0  ;;  %v6141_v11 = vsel %vm6039_vm7, %v6140_v23, %v6139_v3  ;;  %v6110_v19 = vrot.slane %v10853_v26, 4  ;;  %v6075_v62 = vsel %vm6042_vm8, %v6074_v54, %v6073_v41  ;;  %v6107_v27 = vsel %vm6039_vm7, %v6106_v52, %v6105_v16 }
 0xaef   : > { %v5969_v6 = vadd.f32 %v10700_v42, %v5968_v28  ;;  %v6077_v1 = vsel %vm6045_vm9, %v6076_v35, %v6075_v62  ;;  %v6350_v56 = vrot.slane %v10793_v39, 6  ;;  %v6109_v59 = vsel %vm6042_vm8, %v6108_v60, %v6107_v27 }
 0xaf0   : > { %v6485_v22 = vrot.slane %v10818_v63, 1  ;;  %v6111_v36 = vsel %vm6045_vm9, %v6110_v19, %v6109_v59  ;;  %v6517_v21 = vrot.slane %v10793_v39, 3  ;;  %v6519_v24 = vrot.slane %v10818_v63, 2 }
 0xaf1   : > { %v6279_v47 = vsel %vm6048_vm10, %v5969_v6, %v6278_v40  ;;  %v6244_v17 = vrot.slane %v5969_v6, 7  ;;  %v6210_v20 = vrot.slane %v5969_v6, 6  ;;  %v6180_v5 = vrot.slane %v5969_v6, 5 }
 0xaf2   : > { %6294 = vrot.lane.b32.xlu1 %v6279_v47, %s7830_s12  ;;  %v6047_v53 = vrot.slane %v5969_v6, 1  ;;  %v6078_v43 = vrot.slane %v5969_v6, 2  ;;  %v6146_v25 = vrot.slane %v5969_v6, 4  ;;  %v6112_v44 = vrot.slane %v5969_v6, 3 }
 0xaf3   : > { %v6245_v58 = vsel %vm6048_vm10, %v6244_v17, %v6243_v33  ;;  %v6211_v10 = vsel %vm6048_vm10, %v6210_v20, %v6209_v51  ;;  %v10947_v12 = vsel %vm6048_vm10, %v6180_v5, %v10864_v38  ;;  %v6488_v40 = vrot.slane %v10874_v37, 7 }
 0xaf4   : > { %6260 = vrot.lane.b32.xlu2 %v6245_v58, %s7832_s14  ;;  %6226 = vrot.lane.b32.xlu0 %v6211_v10, %s7844_s19  ;;  %v10953_v48 = vsel %vm6048_vm10, %v6047_v53, %v10867_v49  ;;  %v6143_v49 = vsel %vm6042_vm8, %v6142_v2, %v6141_v11  ;;  %v6079_v3 = vsel %vm6048_vm10, %v6078_v43, %v6077_v1  ;;  %v6354_v46 = vrot.slane %v10844_v32, 4 }
 0xaf5   : > { %v6145_v26 = vsel %vm6045_vm9, %v6144_v55, %v6143_v49  ;;  %v6113_v18 = vsel %vm6048_vm10, %v6112_v44, %v6111_v36  ;;  %v6484_v23 = vsel %vm6036_vm6, %v6483_v34, %v10878_v14  ;;  %v6521_v17 = vrot.slane %v10844_v32, 1 }
 0xaf6   : > { %v5970_v8 = vpop.f32.mrf.mxu0  ;;  %v6147_v6 = vsel %vm6048_vm10, %v6146_v25, %v6145_v26  ;;  %v6486_v33 = vsel %vm6039_vm7, %v6485_v22, %v6484_v23  ;;  %v6356_v51 = vrot.slane %v10874_v37, 3  ;;  %v6386_v43 = vrot.slane %v10818_v63, 6 }
 0xaf7   : > { %v10960_v38 = vadd.f32 %v10700_v42, %v5970_v8  ;;  %v6487_v14 = vsel %vm6042_vm8, %v10844_v32, %v6486_v33  ;;  %v6417_v55 = vrot.slane %v10768_v9, 1  ;;  %v6388_v41 = vrot.slane %v10844_v32, 5 }
 0xaf8   : > { %v6489_v10 = vsel %vm6045_vm9, %v6488_v40, %v6487_v14  ;;  %v6383_v11 = vsel %vm6033_vm5, %v10768_v9, %v10735_v15  ;;  %v6390_v19 = vrot.slane %v10874_v37, 4  ;;  %v6420_v34 = vrot.slane %v10818_v63, 7 }
 0xaf9   : > { %v6328_v45 = vrot.slane %v10960_v38, 1  ;;  %v6460_v28 = vrot.slane %v10960_v38, 5  ;;  %v10977_v4 = vsel %vm6048_vm10, %v10960_v38, %v6558_v0  ;;  %v6490_v47 = vrot.slane %v10960_v38, 6 }
 0xafa   : > { %6094 = vrot.lane.b32.xlu1 %v6079_v3, %s7844_s19  ;;  %v6358_v5 = vrot.slane %v10960_v38, 2  ;;  %v6524_v58 = vrot.slane %v10960_v38, 7  ;;  %v6392_v25 = vrot.slane %v10960_v38, 3  ;;  %v6422_v44 = vrot.slane %v10844_v32, 6 }
 0xafb   : > { %v10989_v0 = vsel %vm6048_vm10, %v6328_v45, %v10904_v57  ;;  %v10993_v7 = vsel %vm6048_vm10, %v6460_v28, %v10917_v61  ;;  %v6351_v57 = vsel %vm6036_vm6, %v6350_v56, %v10882_v13  ;;  %v6516_v61 = vsel %vm6033_vm5, %v6515_v30, %v10732_v31 }
 0xafc   : > { %6162 = vrot.lane.b32.xlu2 %v6147_v6, %s7830_s12  ;;  %6128 = vrot.lane.b32.xlu0 %v6113_v18, %s7832_s14  ;;  %v6518_v53 = vsel %vm6036_vm6, %v6517_v21, %v6516_v61  ;;  %v6353_v13 = vsel %vm6039_vm7, %v6352_v50, %v6351_v57  ;;  %v6491_v16 = vsel %vm6048_vm10, %v6490_v47, %v6489_v10  ;;  %v6384_v30 = vrot.slane %v10793_v39, 7 }
 0xafd   : > { %v6520_v54 = vsel %vm6039_vm7, %v6519_v24, %v6518_v53  ;;  %v6355_v35 = vsel %vm6042_vm8, %v6354_v46, %v6353_v13  ;;  %v6418_v27 = vsel %vm6033_vm5, %v6417_v55, %v10738_v29  ;;  %v6424_v56 = vrot.slane %v10874_v37, 5 }
 0xafe   : > { %v5973_v20 = vpop.f32.mrf.mxu0  ;;  %v6522_v31 = vsel %vm6042_vm8, %v6521_v17, %v6520_v54  ;;  %v6357_v2 = vsel %vm6045_vm9, %v6356_v51, %v6355_v35  ;;  %v6385_v62 = vsel %vm6036_vm6, %v6384_v30, %v6383_v11  ;;  %v6419_v9 = vsel %vm6036_vm6, %v10793_v39, %v6418_v27 }
 0xaff   : > { %v6523_v52 = vsel %vm6045_vm9, %v10874_v37, %v6522_v31  ;;  %v6359_v60 = vsel %vm6048_vm10, %v6358_v5, %v6357_v2  ;;  %v6387_v49 = vsel %vm6039_vm7, %v6386_v43, %v6385_v62  ;;  %v6426_v63 = vrot.slane %v10960_v38, 4 }
 0xb00   : > { %v6525_v8 = vsel %vm6048_vm10, %v6524_v58, %v6523_v52  ;;  %v6389_v15 = vsel %vm6042_vm8, %v6388_v41, %v6387_v49  ;;  %v6421_v26 = vsel %vm6039_vm7, %v6420_v34, %v6419_v9  ;;  %v5974_v37 = vadd.f32 %v10700_v42, %v5973_v20 }
 0xb01   : > { %v6391_v3 = vsel %vm6045_vm9, %v6390_v19, %v6389_v15  ;;  %v6423_v59 = vsel %vm6042_vm8, %v6422_v44, %v6421_v26 }
 0xb02   : > { %6506 = vrot.lane.b32.xlu1 %v6491_v16, %s7844_s19  ;;  %v6393_v32 = vsel %vm6048_vm10, %v6392_v25, %v6391_v3  ;;  %v6425_v29 = vsel %vm6045_vm9, %v6424_v56, %v6423_v59  ;;  %v6280_v36 = vrot.slane %v5974_v37, 7  ;;  %v6246_v45 = vrot.slane %v5974_v37, 6 }
 0xb03   : > { %v6427_v22 = vsel %vm6048_vm10, %v6426_v63, %v6425_v29  ;;  %v6080_v28 = vrot.slane %v5974_v37, 1  ;;  %v6212_v6 = vrot.slane %v5974_v37, 5  ;;  %v6148_v18 = vrot.slane %v5974_v37, 3 }
 0xb04   : > { %6374 = vrot.lane.b32.xlu2 %v6359_v60, %s7844_s19  ;;  %6540 = vrot.lane.b32.xlu0 %v6525_v8, %s7832_s14  ;;  %v6114_v50 = vrot.slane %v5974_v37, 2  ;;  %v6182_v21 = vrot.slane %v5974_v37, 4 }
 0xb06   : > { %v5975_v1 = vpop.f32.mrf.mxu0 }
 0xb07   : > { %v5976_v57 = vadd.f32 %v10700_v42, %v5975_v1 }
 0xb09   : > { %v6492_v16 = vrot.slane %v5976_v57, 5  ;;  %v6360_v35 = vrot.slane %v5976_v57, 1  ;;  %v6526_v31 = vrot.slane %v5976_v57, 6  ;;  %v6394_v30 = vrot.slane %v5976_v57, 2 }
 0xb0a   : > { %6408 = vrot.lane.b32.xlu1 %v6393_v32, %s7832_s14  ;;  %v6560_v2 = vrot.slane %v5976_v57, 7  ;;  %v6428_v52 = vrot.slane %v5976_v57, 3  ;;  %v6462_v43 = vrot.slane %v5976_v57, 4 }
 0xb0c   : > { %6442 = vrot.lane.b32.xlu0 %v6427_v22, %s7830_s12 }
 0xb0e   : > { %v5978_v39 = vpop.f32.mrf.mxu0 }
 0xb0f   : > { %v5979_v38 = vadd.f32 %v10700_v42, %v5978_v39 }
 0xb11   : > { %v6281_v40 = vrot.slane %v5979_v38, 6  ;;  %v6247_v24 = vrot.slane %v5979_v38, 5  ;;  %v6213_v23 = vrot.slane %v5979_v38, 4  ;;  %v6081_v47 = vsel %vm6030_vm4, %v5979_v38, %v6080_v28 }
 0xb12   : > { %v6149_v46 = vrot.slane %v5979_v38, 2  ;;  %v6115_v17 = vrot.slane %v5979_v38, 1  ;;  %v6050_v20 = vrot.slane %v5979_v38, 7  ;;  %v6183_v33 = vrot.slane %v5979_v38, 3 }
 0xb13   : > { %v6282_v51 = vsel %vm6030_vm4, %v6281_v40, %v6280_v36  ;;  %v6248_v61 = vsel %vm6030_vm4, %v6247_v24, %v6246_v45  ;;  %v6214_v14 = vsel %vm6030_vm4, %v6213_v23, %v6212_v6 }
 0xb14   : > { %v6150_v5 = vsel %vm6030_vm4, %v6149_v46, %v6148_v18  ;;  %v6116_v53 = vsel %vm6030_vm4, %v6115_v17, %v6114_v50  ;;  %v6051_v58 = vsel %vm6030_vm4, %v6050_v20, %v5974_v37  ;;  %v6184_v10 = vsel %vm6030_vm4, %v6183_v33, %v6182_v21 }
 0xb16   : > { %v5980_v13 = vpop.f32.mrf.mxu0 }
 0xb17   : > { %v5981_v54 = vadd.f32 %v10700_v42, %v5980_v13 }
 0xb19   : > { %v6493_v55 = vrot.slane %v5981_v54, 4  ;;  %v6361_v60 = vsel %vm6030_vm4, %v5981_v54, %v6360_v35  ;;  %v6527_v8 = vrot.slane %v5981_v54, 5  ;;  %v6395_v41 = vrot.slane %v5981_v54, 1 }
 0xb1a   : > { %v6561_v11 = vrot.slane %v5981_v54, 6  ;;  %v6429_v19 = vrot.slane %v5981_v54, 2  ;;  %v6463_v34 = vrot.slane %v5981_v54, 3  ;;  %v6330_v62 = vrot.slane %v5981_v54, 7 }
 0xb1b   : > { %v6494_v25 = vsel %vm6030_vm4, %v6493_v55, %v6492_v16  ;;  %v6528_v44 = vsel %vm6030_vm4, %v6527_v8, %v6526_v31  ;;  %v6396_v1 = vsel %vm6030_vm4, %v6395_v41, %v6394_v30 }
 0xb1c   : > { %v6562_v49 = vsel %vm6030_vm4, %v6561_v11, %v6560_v2  ;;  %v6430_v27 = vsel %vm6030_vm4, %v6429_v19, %v6428_v52  ;;  %v6464_v56 = vsel %vm6030_vm4, %v6463_v34, %v6462_v43  ;;  %v6331_v15 = vsel %vm6030_vm4, %v6330_v62, %v5976_v57  ;;  %v7201_v2 = vpop.permute.xlu1 %7200 }
 0xb1d   : > { %v7203_v55 = vunpack.i.h.bf16 %v7201_v2 }
 0xb1e   : > { %v5983_v9 = vpop.f32.mrf.mxu0 }
 0xb1f   : > { %v5984_v63 = vadd.f32 %v10700_v42, %v5983_v9 }
 0xb21   : > { %v6283_v3 = vrot.slane %v5984_v63, 5  ;;  %v6249_v26 = vrot.slane %v5984_v63, 4  ;;  %v6215_v32 = vrot.slane %v5984_v63, 3  ;;  %v6082_v59 = vrot.slane %v5984_v63, 7 }
 0xb22   : > { %v6151_v29 = vrot.slane %v5984_v63, 1  ;;  %v11077_v37 = vsel %vm6033_vm5, %v5984_v63, %v6116_v53  ;;  %v6052_v22 = vrot.slane %v5984_v63, 6  ;;  %v6185_v39 = vrot.slane %v5984_v63, 2 }
 0xb23   : > { %v11080_v38 = vsel %vm6033_vm5, %v6283_v3, %v6282_v51  ;;  %v11083_v36 = vsel %vm6033_vm5, %v6249_v26, %v6248_v61  ;;  %v11086_v45 = vsel %vm6033_vm5, %v6215_v32, %v6214_v14  ;;  %v11089_v28 = vsel %vm6033_vm5, %v6082_v59, %v6081_v47  ;;  %v11831_v26 = vld [vmem:[#allocation53_spill] sm:$0xff]  ;;  %v11832_v59 = vld [vmem:[#allocation42_spill] sm:$0xff] }
 0xb24   : > { %v11092_v6 = vsel %vm6033_vm5, %v6151_v29, %v6150_v5  ;;  %v6053_v18 = vsel %vm6033_vm5, %v6052_v22, %v6051_v58  ;;  %v6186_v50 = vsel %vm6033_vm5, %v6185_v39, %v6184_v10  ;;  %v5774_v32 = vsel %vm545_vm1, %v11831_v26, %v7203_v55 }
 0xb26   : > { %v5985_v21 = vpop.f32.mrf.mxu0 }
 0xb27   : > { %v5986_v40 = vadd.f32 %v10700_v42, %v5985_v21 }
 0xb29   : > { %v6495_v24 = vrot.slane %v5986_v40, 3  ;;  %v6362_v23 = vrot.slane %v5986_v40, 7  ;;  %v6529_v46 = vrot.slane %v5986_v40, 4  ;;  %v6397_v17 = vsel %vm6033_vm5, %v5986_v40, %v6396_v1  ;;  %v7206_v1 = vpop.permute.xlu2 %7205 }
 0xb2a   : > { %v6563_v20 = vrot.slane %v5986_v40, 5  ;;  %v6431_v33 = vrot.slane %v5986_v40, 1  ;;  %v6465_v57 = vrot.slane %v5986_v40, 2  ;;  %v6332_v47 = vrot.slane %v5986_v40, 6 }
 0xb2b   : > { %v6496_v51 = vsel %vm6033_vm5, %v6495_v24, %v6494_v25  ;;  %v6363_v61 = vsel %vm6033_vm5, %v6362_v23, %v6361_v60  ;;  %v6530_v14 = vsel %vm6033_vm5, %v6529_v46, %v6528_v44  ;;  %v7202_v60 = vunpack.i.l.bf16 %v7201_v2 }
 0xb2c   : > { %v6564_v5 = vsel %vm6033_vm5, %v6563_v20, %v6562_v49  ;;  %v6432_v53 = vsel %vm6033_vm5, %v6431_v33, %v6430_v27  ;;  %v6466_v58 = vsel %vm6033_vm5, %v6465_v57, %v6464_v56  ;;  %v6333_v10 = vsel %vm6033_vm5, %v6332_v47, %v6331_v15 }
 0xb2d   : > { %v5773_v29 = vsel %vm545_vm1, %v11832_v59, %v7202_v60  ;;  %v7208_v22 = vunpack.i.h.bf16 %v7206_v1  ;;  %v7207_v39 = vunpack.i.l.bf16 %v7206_v1 }
 0xb2e   : > { %v5988_v13 = vpop.f32.mrf.mxu0 }
 0xb2f   : > { %v11106_v54 = vadd.f32 %v10700_v42, %v5988_v13  ;;  %v5805_v23 = vsel %vm971_vm2, %v5773_v29, %v7207_v39  ;;  %v5806_v46 = vsel %vm971_vm2, %v5774_v32, %v7208_v22 }
 0xb31   : > { %v6054_v16 = vrot.slane %v11106_v54, 5  ;;  %v6187_v35 = vrot.slane %v11106_v54, 1 }
 0xb33   : > { %v6055_v31 = vsel %vm6036_vm6, %v6054_v16, %v6053_v18  ;;  %v6188_v30 = vsel %vm6036_vm6, %v6187_v35, %v6186_v50 }
 0xb36   : > { %v5990_v52 = vpop.f32.mrf.mxu0 }
 0xb37   : > { %v5991_v43 = vadd.f32 %v10700_v42, %v5990_v52  ;;  %v11166_v52 = vld [vmem:[%s11434_s4] ss:$0 sm:$0xff] }
 0xb39   : > { %v6497_v8 = vrot.slane %v5991_v43, 2  ;;  %v6364_v41 = vrot.slane %v5991_v43, 6  ;;  %v6531_v11 = vrot.slane %v5991_v43, 3  ;;  %v6398_v19 = vrot.slane %v5991_v43, 7 }
 0xb3a   : > { %v6565_v34 = vrot.slane %v5991_v43, 4  ;;  %v11114_v62 = vsel %vm6036_vm6, %v5991_v43, %v6432_v53  ;;  %v6467_v25 = vrot.slane %v5991_v43, 1  ;;  %v6334_v44 = vrot.slane %v5991_v43, 5 }
 0xb3b   : > { %v11117_v49 = vsel %vm6036_vm6, %v6497_v8, %v6496_v51  ;;  %v11120_v27 = vsel %vm6036_vm6, %v6364_v41, %v6363_v61  ;;  %v11123_v56 = vsel %vm6036_vm6, %v6531_v11, %v6530_v14  ;;  %v11126_v15 = vsel %vm6036_vm6, %v6398_v19, %v6397_v17 }
 0xb3c   : > { %v11129_v9 = vsel %vm6036_vm6, %v6565_v34, %v6564_v5  ;;  %v6468_v63 = vsel %vm6036_vm6, %v6467_v25, %v6466_v58  ;;  %v6335_v3 = vsel %vm6036_vm6, %v6334_v44, %v6333_v10 }
 0xb3e   : > { %v7211_v18 = vpop.permute.xlu0 %7210  ;;  %v5993_v50 = vpop.f32.mrf.mxu0 }
 0xb3f   : > { %v7213_v21 = vunpack.i.h.bf16 %v7211_v18  ;;  %v7212_v40 = vunpack.i.l.bf16 %v7211_v18  ;;  %v11138_v24 = vadd.f32 %v10700_v42, %v5993_v50 }
 0xb41   : > { %v5839_v17 = vsel %vm5807_vm3, %v5806_v46, %v7213_v21  ;;  %v5838_v20 = vsel %vm5807_vm3, %v5805_v23, %v7212_v40  ;;  %v6056_v57 = vrot.slane %v11138_v24, 4  ;;  %v6189_v51 = vsel %vm6039_vm7, %v11138_v24, %v6188_v30 }
 0xb42   : > { %v5855_v33 = vpack.c.bf16 %v5839_v17, %v5838_v20 }
 0xb43   : > { %v6057_v47 = vsel %vm6039_vm7, %v6056_v57, %v6055_v31 }
 0xb44   : > { %6888 = vmatmul.msk.bf16.gmra.mxu0 %vm336_vm0, %v5855_v33 }
 0xb46   : > { %v5995_v61 = vpop.f32.mrf.mxu0 }
 0xb47   : > { %v11150_v14 = vadd.f32 %v10700_v42, %v5995_v61 }
 0xb49   : > { %v6469_v5 = vsel %vm6039_vm7, %v11150_v14, %v6468_v63  ;;  %v6336_v53 = vrot.slane %v11150_v14, 4 }
 0xb4b   : > { %v6337_v58 = vsel %vm6039_vm7, %v6336_v53, %v6335_v3 }
 0xb4e   : > { %v5998_v10 = vpop.f32.mrf.mxu0  ;;  %v6261_v11 = vpop.permute.xlu2 %6260 }
 0xb4f   : > { %v11157_v13 = vadd.f32 %v10700_v42, %v5998_v10  ;;  %v6285_v10 = vrot.slane %v11106_v54, 4 }
 0xb51   : > { %v6058_v16 = vrot.slane %v11157_v13, 3  ;;  %v6190_v35 = vrot.slane %v11157_v13, 7 }
 0xb53   : > { %v6059_v31 = vsel %vm6042_vm8, %v6058_v16, %v6057_v47  ;;  %v6191_v30 = vsel %vm6042_vm8, %v6190_v35, %v6189_v51  ;;  %v6287_v16 = vrot.slane %v11138_v24, 3  ;;  %v6217_v35 = vrot.slane %v11106_v54, 2 }
 0xb56   : > { %v6000_v2 = vpop.f32.mrf.mxu0  ;;  %v6163_v59 = vpop.permute.xlu2 %6162 }
 0xb57   : > { %v11169_v43 = vadd.f32 %v11166_v52, %v6000_v2  ;;  %v6219_v2 = vrot.slane %v11138_v24, 1 }
 0xb59   : > { %v6470_v42 = vrot.slane %v11169_v43, 7  ;;  %v6338_v55 = vrot.slane %v11169_v43, 3 }
 0xb5b   : > { %v6471_v60 = vsel %vm6042_vm8, %v6470_v42, %v6469_v5  ;;  %v6339_v8 = vsel %vm6042_vm8, %v6338_v55, %v6337_v58  ;;  %v6253_v42 = vrot.slane %v11138_v24, 2  ;;  %v6286_v55 = vsel %vm6036_vm6, %v6285_v10, %v11080_v38 }
 0xb5e   : > { %v6375_v47 = vpop.permute.xlu2 %6374 }
 0xb5f   : > { %v6594_v61 = vsel %vm336_vm0, %v10989_v0, %v6375_v47 }
 0xb64   : > { %v6295_v41 = vpop.permute.xlu1 %6294 }
 0xb66   : > { %v6227_v19 = vpop.permute.xlu0 %6226 }
 0xb67   : > { %v6588_v34 = vsel %vm336_vm0, %v10947_v12, %v6227_v19  ;;  %v6288_v19 = vsel %vm6039_vm7, %v6287_v16, %v6286_v55 }
 0xb68   : > { %v6590_v25 = vsel %vm6582_vm11, %v6588_v34, %v6261_v11  ;;  %v6218_v34 = vsel %vm6036_vm6, %v6217_v35, %v11086_v45 }
 0xb69   : > { %v6592_v44 = vsel %vm6585_vm12, %v6590_v25, %v6295_v41  ;;  %v6153_v41 = vsel %vm6036_vm6, %v11106_v54, %v11092_v6 }
 0xb6a   : > { %6607 = vst [vmem:[%s11182_s9 + $0x8] sm:$0xff] %v6592_v44  ;;  %v6003_v1 = vpop.f32.mrf.mxu0  ;;  %v6118_v44 = vrot.slane %v11106_v54, 7 }
 0xb6b   : > { %v11186_v63 = vadd.f32 %v11166_v52, %v6003_v1 }
 0xb6c   : > { %v6095_v3 = vpop.permute.xlu1 %6094 }
 0xb6d   : > { %v6580_v26 = vsel %vm336_vm0, %v10953_v48, %v6095_v3  ;;  %v6060_v12 = vrot.slane %v11186_v63, 2  ;;  %v6192_v22 = vrot.slane %v11186_v63, 6  ;;  %v6291_v0 = vrot.slane %v11186_v63, 1 }
 0xb6e   : > { %v6129_v32 = vpop.permute.xlu0 %6128  ;;  %v6222_v25 = vrot.slane %v11186_v63, 7  ;;  %v6090_v47 = vrot.slane %v11186_v63, 3 }
 0xb6f   : > { %v6583_v29 = vsel %vm6582_vm11, %v6580_v26, %v6129_v32  ;;  %v11196_v18 = vsel %vm6045_vm9, %v6060_v12, %v6059_v31  ;;  %v11199_v50 = vsel %vm6045_vm9, %v6192_v22, %v6191_v30  ;;  %v6289_v31 = vrot.slane %v11157_v13, 2 }
 0xb70   : > { %v6586_v39 = vsel %vm6585_vm12, %v6583_v29, %v6163_v59  ;;  %v6251_v30 = vrot.slane %v11106_v54, 3  ;;  %v6220_v26 = vsel %vm6039_vm7, %v6219_v2, %v6218_v34  ;;  %v6086_v12 = vrot.slane %v11138_v24, 5 }
 0xb71   : > { %6606 = vst [vmem:[%s11182_s9] sm:$0xff] %v6586_v39  ;;  %v6290_v1 = vsel %vm6042_vm8, %v6289_v31, %v6288_v19  ;;  %v6221_v45 = vsel %vm6042_vm8, %v11157_v13, %v6220_v26  ;;  %v6158_v31 = vrot.slane %v11186_v63, 5 }
 0xb72   : > { %v6005_v21 = vpop.f32.mrf.mxu0  ;;  %v6252_v3 = vsel %vm6036_vm6, %v6251_v30, %v11083_v36  ;;  %v6292_v6 = vsel %vm6045_vm9, %v6291_v0, %v6290_v1  ;;  %v6223_v39 = vsel %vm6045_vm9, %v6222_v25, %v6221_v45  ;;  %v6533_v1 = vrot.slane %v11150_v14, 2 }
 0xb73   : > { %v11202_v48 = vadd.f32 %v11166_v52, %v6005_v21  ;;  %v6254_v32 = vsel %vm6039_vm7, %v6253_v42, %v6252_v3  ;;  %v6535_v45 = vrot.slane %v11169_v43, 1 }
 0xb74   : > { %v6507_v40 = vpop.permute.xlu1 %6506 }
 0xb75   : > { %v6600_v23 = vsel %vm336_vm0, %v10993_v7, %v6507_v40  ;;  %v6472_v17 = vrot.slane %v11202_v48, 6  ;;  %v6340_v33 = vrot.slane %v11202_v48, 2 }
 0xb76   : > { %v6541_v46 = vpop.permute.xlu0 %6540 }
 0xb77   : > { %v11208_v20 = vsel %vm6582_vm11, %v6600_v23, %v6541_v46  ;;  %v11212_v57 = vsel %vm6045_vm9, %v6472_v17, %v6471_v60  ;;  %v11215_v51 = vsel %vm6045_vm9, %v6340_v33, %v6339_v8  ;;  %v6255_v60 = vrot.slane %v11157_v13, 1 }
 0xb78   : > { %v6084_v8 = vrot.slane %v11106_v54, 6  ;;  %v6088_v33 = vrot.slane %v11157_v13, 4 }
 0xb79   : > { %v6256_v59 = vsel %vm6042_vm8, %v6255_v60, %v6254_v32  ;;  %v6368_v32 = vrot.slane %v11169_v43, 4 }
 0xb7a   : > { %v6257_v36 = vsel %vm6045_vm9, %v11186_v63, %v6256_v59  ;;  %v6085_v17 = vsel %vm6036_vm6, %v6084_v8, %v11089_v28  ;;  %v6122_v28 = vrot.slane %v11157_v13, 5 }
 0xb7b   : > { %v6087_v35 = vsel %vm6039_vm7, %v6086_v12, %v6085_v17 }
 0xb7c   : > { %v6409_v5 = vpop.permute.xlu1 %6408  ;;  %v6089_v2 = vsel %vm6042_vm8, %v6088_v33, %v6087_v35  ;;  %v6404_v33 = vrot.slane %v11202_v48, 4  ;;  %v6438_v35 = vrot.slane %v11202_v48, 5 }
 0xb7d   : > { %v6596_v7 = vsel %vm6582_vm11, %v6594_v61, %v6409_v5  ;;  %v6154_v61 = vrot.slane %v11138_v24, 7  ;;  %v6120_v5 = vrot.slane %v11138_v24, 6  ;;  %v6119_v24 = vsel %vm6036_vm6, %v6118_v44, %v11077_v37 }
 0xb7e   : > { %v6443_v53 = vpop.permute.xlu0 %6442  ;;  %v6366_v44 = vrot.slane %v11150_v14, 5 }
 0xb7f   : > { %v6598_v58 = vsel %vm6585_vm12, %v6596_v7, %v6443_v53  ;;  %v6155_v42 = vsel %vm6039_vm7, %v6154_v61, %v6153_v41  ;;  %v6121_v55 = vsel %vm6039_vm7, %v6120_v5, %v6119_v24  ;;  %v6434_v61 = vrot.slane %v11150_v14, 7 }
 0xb80   : > { %6608 = vst [vmem:[%s11182_s9 + $0x10] sm:$0xff] %v6598_v58  ;;  %v6156_v58 = vrot.slane %v11157_v13, 6  ;;  %v6123_v37 = vsel %vm6042_vm8, %v6122_v28, %v6121_v55 }
 0xb82   : > { %v6157_v8 = vsel %vm6042_vm8, %v6156_v58, %v6155_v42  ;;  %v6436_v58 = vrot.slane %v11169_v43, 6 }
 0xbc1   : > { %v6008_v11 = vpop.f32.mrf.mxu0 }
 0xbc2   : > { %v6009_v38 = vadd.f32 %v11166_v52, %v6008_v11 }
 0xbc4   : > { %v6293_v54 = vsel %vm6048_vm10, %v6009_v38, %v6292_v6  ;;  %v6258_v29 = vrot.slane %v6009_v38, 7  ;;  %v6224_v22 = vrot.slane %v6009_v38, 6  ;;  %v6062_v21 = vrot.slane %v6009_v38, 1 }
 0xbc5   : > { %6296 = vrot.lane.b32.xlu2 %v6293_v54, %s7830_s12  ;;  %v6194_v40 = vrot.slane %v6009_v38, 5  ;;  %v6092_v53 = vrot.slane %v6009_v38, 2  ;;  %v6160_v13 = vrot.slane %v6009_v38, 4  ;;  %v6126_v0 = vrot.slane %v6009_v38, 3 }
 0xbc6   : > { %v6259_v23 = vsel %vm6048_vm10, %v6258_v29, %v6257_v36  ;;  %v6225_v46 = vsel %vm6048_vm10, %v6224_v22, %v6223_v39  ;;  %v11270_v7 = vsel %vm6048_vm10, %v6062_v21, %v11196_v18  ;;  %v6124_v18 = vrot.slane %v11186_v63, 4 }
 0xbc7   : > { %6262 = vrot.lane.b32.xlu0 %v6259_v23, %s7832_s14  ;;  %6228 = vrot.lane.b32.xlu1 %v6225_v46, %s7844_s19  ;;  %v11276_v10 = vsel %vm6048_vm10, %v6194_v40, %v11199_v50  ;;  %v6091_v50 = vsel %vm6045_vm9, %v6090_v47, %v6089_v2  ;;  %v6499_v63 = vrot.slane %v11150_v14, 1  ;;  %v6502_v38 = vrot.slane %v11202_v48, 7 }
 0xbc8   : > { %v6093_v60 = vsel %vm6048_vm10, %v6092_v53, %v6091_v50  ;;  %v6125_v11 = vsel %vm6045_vm9, %v6124_v18, %v6123_v37  ;;  %v6370_v54 = vrot.slane %v11202_v48, 3  ;;  %v6367_v22 = vsel %vm6039_vm7, %v6366_v44, %v11120_v27 }
 0xbc9   : > { %v6010_v16 = vpop.f32.mrf.mxu0  ;;  %v6127_v25 = vsel %vm6048_vm10, %v6126_v0, %v6125_v11  ;;  %v6500_v12 = vsel %vm6039_vm7, %v6499_v63, %v11117_v49  ;;  %v6534_v36 = vsel %vm6039_vm7, %v6533_v1, %v11123_v56  ;;  %v6369_v49 = vsel %vm6042_vm8, %v6368_v32, %v6367_v22 }
 0xbca   : > { %v11284_v30 = vadd.f32 %v11166_v52, %v6010_v16  ;;  %v6159_v52 = vsel %vm6045_vm9, %v6158_v31, %v6157_v8  ;;  %v6501_v59 = vsel %vm6042_vm8, %v11169_v43, %v6500_v12  ;;  %v6536_v21 = vsel %vm6042_vm8, %v6535_v45, %v6534_v36 }
 0xbcb   : > { %v6161_v34 = vsel %vm6048_vm10, %v6160_v13, %v6159_v52  ;;  %v6371_v40 = vsel %vm6045_vm9, %v6370_v54, %v6369_v49  ;;  %v6537_v23 = vsel %vm6045_vm9, %v11202_v48, %v6536_v21  ;;  %v6400_v46 = vrot.slane %v11150_v14, 6 }
 0xbcc   : > { %v6474_v19 = vrot.slane %v11284_v30, 5  ;;  %v6342_v41 = vrot.slane %v11284_v30, 1  ;;  %v6504_v6 = vrot.slane %v11284_v30, 6  ;;  %v6538_v29 = vrot.slane %v11284_v30, 7 }
 0xbcd   : > { %6096 = vrot.lane.b32.xlu2 %v6093_v60, %s7844_s19  ;;  %v6402_v56 = vrot.slane %v11169_v43, 5  ;;  %v6567_v47 = vrot.slane %v11150_v14, 3  ;;  %v6406_v5 = vrot.slane %v11284_v30, 3  ;;  %v6569_v53 = vrot.slane %v11169_v43, 2 }
 0xbce   : > { %v11308_v3 = vsel %vm6048_vm10, %v6474_v19, %v11212_v57  ;;  %v11312_v26 = vsel %vm6048_vm10, %v6342_v41, %v11215_v51  ;;  %v6372_v57 = vrot.slane %v11284_v30, 2  ;;  %v6503_v51 = vsel %vm6045_vm9, %v6502_v38, %v6501_v59 }
 0xbcf   : > { %6164 = vrot.lane.b32.xlu0 %v6161_v34, %s7830_s12  ;;  %6130 = vrot.lane.b32.xlu1 %v6127_v25, %s7832_s14  ;;  %v6505_v39 = vsel %vm6048_vm10, %v6504_v6, %v6503_v51  ;;  %v6539_v17 = vsel %vm6048_vm10, %v6538_v29, %v6537_v23  ;;  %v6401_v28 = vsel %vm6039_vm7, %v6400_v46, %v11126_v15  ;;  %v6571_v16 = vrot.slane %v11202_v48, 1 }
 0xbd0   : > { %v6373_v27 = vsel %vm6048_vm10, %v6372_v57, %v6371_v40  ;;  %v6403_v31 = vsel %vm6042_vm8, %v6402_v56, %v6401_v28  ;;  %v6440_v24 = vrot.slane %v11284_v30, 4  ;;  %v6568_v14 = vsel %vm6039_vm7, %v6567_v47, %v11129_v9 }
 0xbd1   : > { %v6405_v18 = vsel %vm6045_vm9, %v6404_v33, %v6403_v31  ;;  %v6435_v2 = vsel %vm6039_vm7, %v6434_v61, %v11114_v62  ;;  %v6570_v15 = vsel %vm6042_vm8, %v6569_v53, %v6568_v14 }
 0xbd2   : > { %v6407_v43 = vsel %vm6048_vm10, %v6406_v5, %v6405_v18  ;;  %v6437_v13 = vsel %vm6042_vm8, %v6436_v58, %v6435_v2  ;;  %v6572_v48 = vsel %vm6045_vm9, %v6571_v16, %v6570_v15 }
 0xbd3   : > { %v6439_v0 = vsel %vm6045_vm9, %v6438_v35, %v6437_v13  ;;  %v6573_v50 = vsel %vm6048_vm10, %v11284_v30, %v6572_v48 }
 0xbd4   : > { %v6441_v9 = vsel %vm6048_vm10, %v6440_v24, %v6439_v0 }
 0xbd5   : > { %6508 = vrot.lane.b32.xlu2 %v6505_v39, %s7844_s19 }
 0xbd7   : > { %6376 = vrot.lane.b32.xlu0 %v6373_v27, %s7844_s19  ;;  %6542 = vrot.lane.b32.xlu1 %v6539_v17, %s7832_s14 }
 0xbdd   : > { %6410 = vrot.lane.b32.xlu2 %v6407_v43, %s7832_s14 }
 0xbdf   : > { %6576 = vrot.lane.b32.xlu0 %v6573_v50, %s7830_s12  ;;  %6444 = vrot.lane.b32.xlu1 %v6441_v9, %s7830_s12 }
 0xbe5   : > { %6574 = vrot.lane.b32.xlu2 %v10977_v4, %s7830_s12  ;;  %s6899_s12 = sshll.u32 %s7902_s25, 6  ;;  %s6615_s25 = scalar_lea.sflag [#allocation4], %s259_s28 }
 0xbe6   : > { %s6626_s11 = scalar_lea.hbm %s11436_s6, %s6899_s12 }
 0xbe7   : > { %s6629_s15 = sshll.u32 %s6626_s11, 4  ;;  %s6630_s15 = int_to_ptr.hbm [resolvable:$true] %s6629_s15 }
 0xbe8   : > { %s7773_s16 = sshra.s32 %s6630_s15, 4  ;;  %s7774_s16 = int_to_ptr.hbm [resolvable:$true] %s7773_s16 }
 0xbe9   : > { %s7775_s17 = scalar_lea.hbm %s7774_s16, 64  ;;  %p7780_p3 = scmp.lt.s32.totalorder %s7774_s16, %s11436_s6 }
 0xbea   : > { %p7776_p0 = scmp.ne.s32.totalorder %s7774_s16, %s7775_s17  ;;  %p7781_p4 = scmp.lt.s32.totalorder %s7779_s26, %s7775_s17 }
 0xbec   : > { %p7777_p1 = pnand %p7776_p0, %p7919_p5  ;;  %p7782_p7 = por %p7781_p4, %p7780_p3 }
 0xbee   : > { %p7778_p2 = pneg %p7777_p1 }
 0xbf0   : > { %p7783_p8 = pnand %p7782_p7, %p7778_p2 }
 0xc1f   : > { %v6297_v62 = vpop.permute.xlu2 %6296 }
 0xc27   : > { %v6097_v42 = vpop.permute.xlu2 %6096 }
 0xc28   : > { %v6581_v19 = vsel %vm336_vm0, %v11270_v7, %v6097_v42 }
 0xc2f   : > { %v6509_v55 = vpop.permute.xlu2 %6508 }
 0xc30   : > { %v6601_v7 = vsel %vm336_vm0, %v11308_v3, %v6509_v55 }
 0xc37   : > { %v6411_v60 = vpop.permute.xlu2 %6410 }
 0xc39   : > { %v6263_v8 = vpop.permute.xlu0 %6262  ;;  %v6229_v37 = vpop.permute.xlu1 %6228 }
 0xc3a   : > { %v6589_v30 = vsel %vm336_vm0, %v11276_v10, %v6229_v37 }
 0xc3b   : > { %v6591_v63 = vsel %vm6582_vm11, %v6589_v30, %v6263_v8 }
 0xc3c   : > { %v6593_v52 = vsel %vm6585_vm12, %v6591_v63, %v6297_v62 }
 0xc3d   : > { %6611 = vst [vmem:[%s11182_s9 + $0x28] sm:$0xff] %v6593_v52 }
 0xc3f   : > { %v6575_v11 = vpop.permute.xlu2 %6574 }
 0xc40   : > { %v6604_v4 = vsel %vm6585_vm12, %v11208_v20, %v6575_v11 }
 0xc41   : > { %6609 = vst [vmem:[%s11182_s9 + $0x18] sm:$0xff] %v6604_v4  ;;  %v6165_v41 = vpop.permute.xlu0 %6164  ;;  %v6131_v34 = vpop.permute.xlu1 %6130 }
 0xc42   : > { %v6584_v25 = vsel %vm6582_vm11, %v6581_v19, %v6131_v34 }
 0xc43   : > { %v6587_v10 = vsel %vm6585_vm12, %v6584_v25, %v6165_v41 }
 0xc44   : > { %6610 = vst [vmem:[%s11182_s9 + $0x20] sm:$0xff] %v6587_v10 }
 0xc49   : > { %v6377_v44 = vpop.permute.xlu0 %6376  ;;  %v6543_v38 = vpop.permute.xlu1 %6542 }
 0xc4a   : > { %v6595_v20 = vsel %vm336_vm0, %v11312_v26, %v6377_v44  ;;  %v6603_v1 = vsel %vm6582_vm11, %v6601_v7, %v6543_v38 }
 0xc4b   : > { %v6597_v32 = vsel %vm6582_vm11, %v6595_v20, %v6411_v60 }
 0xc51   : > { %v6577_v6 = vpop.permute.xlu0 %6576  ;;  %v6445_v45 = vpop.permute.xlu1 %6444 }
 0xc52   : > { %v6605_v12 = vsel %vm6585_vm12, %v6603_v1, %v6577_v6  ;;  %v6599_v54 = vsel %vm6585_vm12, %v6597_v32, %v6445_v45 }
 0xc53   : > { %6613 = vst [vmem:[%s11182_s9 + $0x38] sm:$0xff] %v6605_v12 }
 0xc54   : > { %6612 = vst [vmem:[%s11182_s9 + $0x30] sm:$0xff] %v6599_v54 }
 0xc55   : > { %7786 = shalt.err (!%p7783_p8)
}
 0xc56   : > { %s7845_s28 = smov 512  }
 0xc57   : > { %6910 = dma.vmem_to_hbm [thread:$0]  (%p7919_p5), %s6628_s13, 1024, %s6630_s15, %s6615_s25, %s7845_s28, %s7845_s28, %s7844_s19  }
 0xc58 PF: > { %p6922_p9 = scmp.ge.s32.totalorder %s7825_s24, 2  ;;  %s6644_s9 = sand.u32 1, %s7813_s21  }
 0xc59   : > { %s6645_s14 = scalar_lea.sflag [#allocation4], %s6644_s9 }
 0xc5a   : > { %p6917_p10 = pnand %p6922_p9, %p7923_p6 }
 0xc5c   : > { %p6918_p11 = pneg %p6917_p10 }
 0xc5e   : > { %7808 = dma.done.wait (%p6918_p11), %s6645_s14, 1024  }
 0xc5f   : > { %7810 = vsyncadd (%p6918_p11), %s6645_s14, 4294966272  ;;  %p17_p12 = scmp.ge.s32.totalorder %s7906_s27, 4   ;;  %s11833_s21 = smov %s7817_s22 }
 0xc60   : > { %s11834_s22 = smov %s7821_s23  ;;  %s11835_s23 = smov %s7917_s30 }
 0xc61   : > { %s11836_s24 = smov %s7906_s27  ;;  %19 = sbr.rel (!%p17_p12) target bundleno = 4 (0x4), region = 87 }
 0xc66   :  { %6651 = vsyncpa [#allocation3], 1 }
 0xc67   :  { %6653 = vsyncpa [#allocation3 + $0x1], 1 }
 0xc68   :  { %6654 = vsyncpa [#allocation4], 1 }
 0xc69   :  { %6656 = vsyncpa [#allocation4 + $0x1], 1 }

</bundles_post_ra>
